<compile_context>
chip_gen: v7x
topology: tpu7x:2x2x1
jax: 0.10.0
libtpu: 0.0.40
codegen_flags: <defaults>
</compile_context>

<pallas_src>
import functools

import jax
import jax.numpy as jnp
from jax import lax
from jax.experimental import pallas as pl
from jax.experimental.pallas import tpu as pltpu

LANE = 128


def _round_up(x, m):
    return (x + m - 1) // m * m


def _default_vmem_limit():
    """Generation-aware scoped-VMEM budget: ~capacity - 16 MiB, clamped to [32, 100] MiB."""
    try:
        info = pltpu.get_tpu_info()
        cap = getattr(info, "vmem_capacity_bytes", None) or (64 * 1024 * 1024)
    except Exception:  # pragma: no cover - non-TPU / query failure
        cap = 64 * 1024 * 1024
    return int(min(max(cap - 16 * 1024 * 1024, 32 * 1024 * 1024), 100 * 1024 * 1024))


_VMEM_LIMIT = _default_vmem_limit()


# ----------------------------- Pallas kernels -------------------------------

def conv3x3_stats_kernel(xw_ref, w_ref, o_ref, stats_ref, *, stride, th, wout):
    """3x3 conv of one halo row-window as 9 accumulated MXU matmuls + BN partial stats.

    xw_ref    : (1, 1, th_in, Wp, Cin_pad)  zero-padded bf16 halo window
    w_ref     : (9, Cin_pad, Cout_pad)      bf16 weights, tap-major
    o_ref     : (1, th, Wout, Cout_pad)     conv output tile (bf16 or f32)
    stats_ref : (1, 1, 2, Cout_pad)         f32 [sum, sum_sq] for this tile
    """
    cin_pad = xw_ref.shape[-1]
    acc = None
    for kh in range(3):
        for kw in range(3):
            if stride == 1:
                xs = xw_ref[0, 0, kh:kh + th, kw:kw + wout, :]
            else:
                # TODO(synk): strided-tap path is untested (stride > 1 never exercised);
                # review suggests contiguous loads + in-register decimation instead.
                xs = xw_ref[0, 0, pl.ds(kh, th, stride), pl.ds(kw, wout, stride), :]
            # Reshape is layout-free when wout % 8 == 0 (true for the shapes used here).
            tap = xs.reshape(th * wout, cin_pad)
            part = jnp.dot(tap, w_ref[kh * 3 + kw],
                           preferred_element_type=jnp.float32)
            acc = part if acc is None else acc + part
    # Per-tile channel statistics in f32 (before any bf16 cast of the output);
    # the tiny cross-tile reduction + rsqrt runs in plain JAX so both grid axes
    # stay "parallel" (no output revisits).
    stats_ref[0, 0] = jnp.concatenate(
        [jnp.sum(acc, axis=0, keepdims=True),
         jnp.sum(acc * acc, axis=0, keepdims=True)], axis=0)
    o_ref[0] = acc.reshape(th, wout, acc.shape[-1]).astype(o_ref.dtype)


def bn_adapter_relu_kernel(y_ref, scale_ref, shift_ref, w1b_ref, w2b_ref, o_ref):
    """Fused BatchNorm normalize + FeedforwardAdapter + pre-conv2 ReLU on a row tile.

    y_ref     : (1, th, W, Cpad) bf16 un-normalized conv1 output tile
    scale_ref : (1, Cpad) f32    gamma * rsqrt(var + eps)
    shift_ref : (1, Cpad) f32    beta - mean * scale
    w1b_ref   : (th*hid, th*W)   bf16 block-diag kron(I_th, w1.T)
    w2b_ref   : (th*W, th*hid)   bf16 block-diag kron(I_th, w2.T)
    o_ref     : (1, th, W, Cpad) bf16
    """
    _, th, wdim, cpad = y_ref.shape
    t = y_ref[0].astype(jnp.float32) * scale_ref[0] + shift_ref[0]       # (th, W, Cpad)
    t2d = t.reshape(th * wdim, cpad)                                     # (th*W, Cpad)
    # Adapter contracts over the W axis (last dim of the NCHW tensor in PyTorch).
    # Block-diagonal weights turn the whole tile into ONE 2-D MXU matmul per layer:
    # no broadcast_to weight copies, no th tiny batched dots, no transposes, and the
    # channel axis stays on the 128-lane dim throughout. (Zero blocks waste th x
    # MXU flops, but the adapter is tiny next to the convs.)
    net = jnp.dot(w1b_ref[...], t2d.astype(jnp.bfloat16),
                  preferred_element_type=jnp.float32)                    # (th*hid, Cpad)
    net = jnp.maximum(net, 0.0)
    res = jnp.dot(w2b_ref[...], net.astype(jnp.bfloat16),
                  preferred_element_type=jnp.float32)                    # (th*W, Cpad)
    out = jnp.maximum(t2d + res, 0.0)        # adapter residual + pre-conv2 ReLU
    o_ref[0] = out.reshape(th, wdim, cpad).astype(o_ref.dtype)


# ------------------------------ pallas_call wrappers -------------------------

def conv3x3_bn_stats(xw, w, *, stride, th, hout, wout, out_dtype):
    n, nrb, th_in, wp, cin_pad = xw.shape
    _, _, cout_pad = w.shape
    kernel = functools.partial(conv3x3_stats_kernel, stride=stride, th=th, wout=wout)
    flops = 2 * n * hout * wout * 9 * cin_pad * cout_pad
    bytes_accessed = (xw.size * xw.dtype.itemsize + w.size * w.dtype.itemsize
                      + n * hout * wout * cout_pad * jnp.dtype(out_dtype).itemsize
                      + n * nrb * 2 * cout_pad * 4)
    # NOTE: weights/scale operands are revisited every step; pl.Buffered(1) would save
    # one VMEM copy but is skipped here to avoid relying on single-buffer support.
    return pl.pallas_call(
        kernel,
        grid=(n, nrb),
        in_specs=[
            pl.BlockSpec((1, 1, th_in, wp, cin_pad), lambda i, j: (i, j, 0, 0, 0)),
            pl.BlockSpec((9, cin_pad, cout_pad), lambda i, j: (0, 0, 0)),
        ],
        out_specs=[
            pl.BlockSpec((1, th, wout, cout_pad), lambda i, j: (i, j, 0, 0)),
            pl.BlockSpec((1, 1, 2, cout_pad), lambda i, j: (i, j, 0, 0)),
        ],
        out_shape=[
            jax.ShapeDtypeStruct((n, hout, wout, cout_pad), out_dtype),
            jax.ShapeDtypeStruct((n, nrb, 2, cout_pad), jnp.float32),
        ],
        compiler_params=pltpu.CompilerParams(
            dimension_semantics=("parallel", "parallel"),
            vmem_limit_bytes=_VMEM_LIMIT),
        cost_estimate=pl.CostEstimate(flops=flops, transcendentals=0,
                                      bytes_accessed=bytes_accessed),
    )(xw, w)


def bn_adapter_relu(y, scale, shift, w1b, w2b, *, row_tile, out_dtype=jnp.bfloat16):
    n, h, wdim, cpad = y.shape
    th = row_tile
    assert h % th == 0, (h, th)
    flops = (4 * n * h * wdim * cpad
             + 2 * n * (h // th) * (w1b.shape[0] * w1b.shape[1]
                                    + w2b.shape[0] * w2b.shape[1]) * cpad)
    bytes_accessed = (y.size * y.dtype.itemsize
                      + n * h * wdim * cpad * jnp.dtype(out_dtype).itemsize
                      + (w1b.size + w2b.size) * 2 + 2 * cpad * 4)
    return pl.pallas_call(
        bn_adapter_relu_kernel,
        grid=(n, h // th),
        in_specs=[
            pl.BlockSpec((1, th, wdim, cpad), lambda i, j: (i, j, 0, 0)),
            pl.BlockSpec((1, cpad), lambda i, j: (0, 0)),
            pl.BlockSpec((1, cpad), lambda i, j: (0, 0)),
            pl.BlockSpec(w1b.shape, lambda i, j: (0, 0)),
            pl.BlockSpec(w2b.shape, lambda i, j: (0, 0)),
        ],
        out_specs=pl.BlockSpec((1, th, wdim, cpad), lambda i, j: (i, j, 0, 0)),
        out_shape=jax.ShapeDtypeStruct((n, h, wdim, cpad), out_dtype),
        compiler_params=pltpu.CompilerParams(
            dimension_semantics=("parallel", "parallel"),
            vmem_limit_bytes=_VMEM_LIMIT),
        cost_estimate=pl.CostEstimate(flops=flops, transcendentals=0,
                                      bytes_accessed=bytes_accessed),
    )(y, scale, shift, w1b, w2b)


# ------------------------------ glue (plain JAX) ------------------------------

def _window_rows(xp, th, stride):
    """(N, Hp, Wp, C) padded image -> (N, nrb, th_in, Wp, C) overlapping halo windows."""
    n, hp, wp, c = xp.shape
    th_in = (th - 1) * stride + 3
    hout = (hp - 3) // stride + 1
    assert hout % th == 0, (hout, th)
    nrb = hout // th
    if nrb == 1:
        return xp[:, None, :th_in]
    return jnp.stack([xp[:, j * th * stride: j * th * stride + th_in]
                      for j in range(nrb)], axis=1)


def _pick_conv_row_tile(h1, w1, cin_pad, cout_pad, stride, budget=None):
    """Largest row tile (divisor of h1) whose per-step VMEM fits the budget."""
    budget = budget or max(8 * 1024 * 1024, _VMEM_LIMIT // 4)
    wp = w1 * stride + 2
    for th in range(h1, 0, -1):
        if h1 % th:
            continue
        th_in = (th - 1) * stride + 3
        vmem = (2 * th_in * wp * cin_pad * 2       # double-buffered bf16 input window
                + 2 * th * w1 * cout_pad * 4       # double-buffered output (<= f32)
                + th * w1 * cout_pad * 4           # f32 accumulator value
                + 2 * 9 * cin_pad * cout_pad * 2)  # double-buffered bf16 weights
        if vmem <= budget:
            return th
    return 1


def _pick_bn_row_tile(h1, w1, max_rows=512):
    """Largest row tile with th*W <= max_rows (keeps block-diag K within ~2 MXU passes)."""
    for th in range(h1, 0, -1):
        if h1 % th == 0 and th * w1 <= max_rows:
            return th
    return 1


def _bn_scale_shift(stats, gamma, beta, count, eps=1e-5):
    """Training-mode BatchNorm affine from accumulated [sum, sum_sq] (biased variance)."""
    s = jnp.sum(stats[:, :, 0, :], axis=(0, 1))
    ss = jnp.sum(stats[:, :, 1, :], axis=(0, 1))
    mean = s / count
    # E[x^2]-E[x]^2 in f32; clamp guards cancellation for large-mean activations.
    var = jnp.maximum(ss / count - mean * mean, 0.0)
    scale = gamma * lax.rsqrt(var + eps)
    shift = beta - mean * scale
    return scale, shift


def basic_block_forward(x_nchw, params, *, planes, stride=1,
                        conv_row_tile=None, bn_row_tile=None):
    n, cin, h, w = x_nchw.shape
    cin_pad = params["wconv1"].shape[1]
    cout_pad = params["wconv1"].shape[2]
    h1 = (h + 2 - 3) // stride + 1
    w1 = (w + 2 - 3) // stride + 1

    # NCHW -> NHWC, channel-pad to a lane multiple, spatial zero-pad, bf16 MXU operands.
    x_nhwc = jnp.transpose(x_nchw, (0, 2, 3, 1))
    xp = jnp.pad(x_nhwc, ((0, 0), (1, 1), (1, 1), (0, cin_pad - cin))).astype(jnp.bfloat16)

    # conv1 (row-tiled halo windows) + per-tile BN statistics; bf16 activation output.
    th1 = conv_row_tile or _pick_conv_row_tile(h1, w1, cin_pad, cout_pad, stride)
    xw = _window_rows(xp, th1, stride)
    y1, stats1 = conv3x3_bn_stats(xw, params["wconv1"], stride=stride, th=th1,
                                  hout=h1, wout=w1, out_dtype=jnp.bfloat16)
    scale1, shift1 = _bn_scale_shift(stats1, params["gamma1"], params["beta1"],
                                     n * h1 * w1)

    # bn1 + FeedforwardAdapter + pre-conv2 ReLU fused; block-diag adapter weights.
    thb = bn_row_tile or _pick_bn_row_tile(h1, w1)
    eye = jnp.eye(thb, dtype=jnp.float32)
    w1b = jnp.kron(eye, params["w1a"].T).astype(jnp.bfloat16)   # (thb*hid, thb*W)
    w2b = jnp.kron(eye, params["w2a"].T).astype(jnp.bfloat16)   # (thb*W, thb*hid)
    a1 = bn_adapter_relu(y1, scale1.reshape(1, -1), shift1.reshape(1, -1), w1b, w2b,
                         row_tile=thb, out_dtype=jnp.bfloat16)

    # conv2 + per-tile BN statistics.
    # TODO(synk): the spatial re-pad/windowing of a1 still costs one XLA pass over the
    # activation; emitting the bn output directly in a halo-padded windowed layout
    # would remove it (review item 7).
    a1p = jnp.pad(a1, ((0, 0), (1, 1), (1, 1), (0, 0)))
    th2 = conv_row_tile or _pick_conv_row_tile(h1, w1, cout_pad, cout_pad, 1)
    aw = _window_rows(a1p, th2, 1)
    y2, stats2 = conv3x3_bn_stats(aw, params["wconv2"], stride=1, th=th2,
                                  hout=h1, wout=w1, out_dtype=jnp.float32)
    scale2, shift2 = _bn_scale_shift(stats2, params["gamma2"], params["beta2"],
                                     n * h1 * w1)

    # bn2 is normalize-only: pure elementwise, folded into the final slice + transpose
    # in plain JAX (no third pallas_call, no dead adapter-weight DMAs).
    y = y2 * scale2 + shift2
    return jnp.transpose(y[..., :planes], (0, 3, 1, 2))


# ------------------------------ parameters -----------------------------------

def init_params(key, in_planes, planes, w_in, stride=1):
    k = jax.random.split(key, 4)
    cin_pad = _round_up(in_planes, LANE)
    cout_pad = _round_up(planes, LANE)

    # TODO(synk): for very small Cin (stem-like layers) the review suggests packing the
    # flattened 9*Cin to one 128-wide K instead of padding Cin per tap; not done here.
    def pack_conv(wc, cin, cinp):
        wp = jnp.zeros((3, 3, cinp, cout_pad), jnp.float32)
        wp = wp.at[:, :, :cin, :planes].set(wc)
        return wp.reshape(9, cinp, cout_pad).astype(jnp.bfloat16)

    wconv1 = 0.1 * jax.random.normal(k[0], (3, 3, in_planes, planes), jnp.float32)
    wconv2 = 0.1 * jax.random.normal(k[1], (3, 3, planes, planes), jnp.float32)

    # FeedforwardAdapter(hid_siz_per=0.5, adjSize=(10,10), init_scale=0.001)
    w1_dim = (w_in + 2 - 3) // stride + 1            # W of the conv1/bn1 output
    hidden = max(1, int(round(w1_dim * 0.5)))
    adjust = 0.001 * jax.random.normal(k[2], (10, 10), jnp.float32)
    w1a = (jnp.eye(w1_dim, 10, dtype=jnp.float32) @ adjust
           @ jnp.eye(10, hidden, dtype=jnp.float32))                 # (W, hidden)
    # TODO(synk): PyTorch redraws w2 ~ N(0, 0.001) on every forward(); we freeze one
    # deterministic draw so the kernel is a pure function of its parameters.
    w2a = 0.001 * jax.random.normal(k[3], (hidden, w1_dim), jnp.float32)  # (hidden, W)

    gamma = jnp.zeros((cout_pad,), jnp.float32).at[:planes].set(1.0)
    beta = jnp.zeros((cout_pad,), jnp.float32)

    return {
        "wconv1": pack_conv(wconv1, in_planes, cin_pad),
        "wconv2": pack_conv(wconv2, planes, cout_pad),
        "wconv1_f32": wconv1, "wconv2_f32": wconv2,   # for the pure-JAX reference
        "gamma1": gamma, "beta1": beta, "gamma2": gamma, "beta2": beta,
        "w1a": w1a, "w2a": w2a,                       # adapter weights (reference layout)
    }


# ------------------------------ pure-JAX reference ----------------------------

def reference_forward(x_nchw, params, stride=1):
    eps = 1e-5
    x = jnp.transpose(x_nchw, (0, 2, 3, 1))

    def conv(x, w, s):
        return lax.conv_general_dilated(
            x, w, window_strides=(s, s), padding=((1, 1), (1, 1)),
            dimension_numbers=("NHWC", "HWIO", "NHWC"))

    def bn(x):   # training-mode BatchNorm2d right after __init__ (gamma=1, beta=0)
        m = jnp.mean(x, axis=(0, 1, 2), keepdims=True)
        v = jnp.mean((x - m) ** 2, axis=(0, 1, 2), keepdims=True)
        return (x - m) * lax.rsqrt(v + eps)

    out = bn(conv(x, params["wconv1_f32"], stride))
    out_nchw = jnp.transpose(out, (0, 3, 1, 2))
    net = jnp.maximum(out_nchw @ params["w1a"], 0.0) @ params["w2a"] + out_nchw
    out = jnp.transpose(net, (0, 2, 3, 1))
    out = bn(conv(jnp.maximum(out, 0.0), params["wconv2_f32"], 1))
    return jnp.transpose(out, (0, 3, 1, 2))


# ------------------------------ main ------------------------------------------

if __name__ == "__main__":
    key = jax.random.PRNGKey(0)
    kx, kp = jax.random.split(key)

    N, Cin, H, W = 2, 4, 16, 16
    planes, stride = 4, 1

    x = jax.random.normal(kx, (N, Cin, H, W), jnp.float32)
    params = init_params(kp, Cin, planes, W, stride)

    fwd = jax.jit(basic_block_forward,
                  static_argnames=("planes", "stride", "conv_row_tile", "bn_row_tile"))

    # Default tiling (full-image tiles at this small size).
    y = jax.block_until_ready(fwd(x, params, planes=planes, stride=stride))
    y_ref = reference_forward(x, params, stride)
    assert y.shape == y_ref.shape, (y.shape, y_ref.shape)
    err = float(jnp.max(jnp.abs(y - y_ref)))
    # bf16 MXU operands + bf16 stored intermediates vs an all-f32 reference.
    assert err < 5e-2, f"max abs error vs reference: {err}"

    # Also exercise the row-tiled (halo-window) path explicitly.
    y_t = jax.block_until_ready(fwd(x, params, planes=planes, stride=stride,
                                    conv_row_tile=8, bn_row_tile=8))
    err_t = float(jnp.max(jnp.abs(y_t - y_ref)))
    assert err_t < 5e-2, f"row-tiled path: max abs error vs reference: {err_t}"

    print("KERNEL_OK")
</pallas_src>

<mosaic_0001>
module attributes {stable_mosaic.version = 11 : i64} {
  func.func @conv3x3_stats_kernel(%arg0: i32, %arg1: i32, %arg2: memref<1x1x18x18x128xbf16, #tpu.memory_space<vmem>>, %arg3: memref<9x128x128xbf16, #tpu.memory_space<vmem>>, %arg4: memref<1x16x16x128xbf16, #tpu.memory_space<vmem>>, %arg5: memref<1x1x2x128xf32, #tpu.memory_space<vmem>>) attributes {dimension_semantics = [#tpu.dimension_semantics<parallel>, #tpu.dimension_semantics<parallel>], iteration_bounds = array<i64: 2, 1>, scalar_prefetch = 0 : i64, scratch_operands = 0 : i64, tpu.core_type = #tpu.core_type<tc>, window_params = [{transform_indices = @transform_0, window_bounds = array<i64: 1, 1, 18, 18, 128>}, {pipeline_mode = #tpu.pipeline_mode<synchronous>, transform_indices = @transform_1, window_bounds = array<i64: 9, 128, 128>}, {transform_indices = @transform_2, window_bounds = array<i64: 1, 16, 16, 128>}, {transform_indices = @transform_3, window_bounds = array<i64: 1, 1, 2, 128>}]} {
    %c0 = arith.constant 0 : index
    %c0_0 = arith.constant 0 : index
    %c0_1 = arith.constant 0 : index
    %c0_2 = arith.constant 0 : index
    %c0_3 = arith.constant 0 : index
    %0 = vector.load %arg2[%c0, %c0_0, %c0_1, %c0_2, %c0_3] : memref<1x1x18x18x128xbf16, #tpu.memory_space<vmem>>, vector<1x1x16x16x128xbf16>
    %1 = vector.shape_cast %0 : vector<1x1x16x16x128xbf16> to vector<16x16x128xbf16>
    %2 = vector.shape_cast %1 : vector<16x16x128xbf16> to vector<256x128xbf16>
    %c0_4 = arith.constant 0 : index
    %c0_5 = arith.constant 0 : index
    %c0_6 = arith.constant 0 : index
    %3 = vector.load %arg3[%c0_4, %c0_5, %c0_6] : memref<9x128x128xbf16, #tpu.memory_space<vmem>>, vector<1x128x128xbf16>
    %4 = vector.shape_cast %3 : vector<1x128x128xbf16> to vector<128x128xbf16>
    %cst = arith.constant dense<0.000000e+00> : vector<256x128xf32>
    %5 = tpu.matmul %2, %4, %cst {dimension_numbers = #tpu.dot_dimension_numbers<[1], [0], [0], [1], [0, 0, 1, 1], [], []>} : vector<256x128xbf16>, vector<128x128xbf16>, vector<256x128xf32> -> vector<256x128xf32>
    %c0_7 = arith.constant 0 : index
    %c0_8 = arith.constant 0 : index
    %c0_9 = arith.constant 0 : index
    %c1 = arith.constant 1 : index
    %c0_10 = arith.constant 0 : index
    %6 = vector.load %arg2[%c0_7, %c0_8, %c0_9, %c1, %c0_10] : memref<1x1x18x18x128xbf16, #tpu.memory_space<vmem>>, vector<1x1x16x16x128xbf16>
    %7 = vector.shape_cast %6 : vector<1x1x16x16x128xbf16> to vector<16x16x128xbf16>
    %8 = vector.shape_cast %7 : vector<16x16x128xbf16> to vector<256x128xbf16>
    %c1_11 = arith.constant 1 : index
    %c0_12 = arith.constant 0 : index
    %c0_13 = arith.constant 0 : index
    %9 = vector.load %arg3[%c1_11, %c0_12, %c0_13] : memref<9x128x128xbf16, #tpu.memory_space<vmem>>, vector<1x128x128xbf16>
    %10 = vector.shape_cast %9 : vector<1x128x128xbf16> to vector<128x128xbf16>
    %cst_14 = arith.constant dense<0.000000e+00> : vector<256x128xf32>
    %11 = tpu.matmul %8, %10, %cst_14 {dimension_numbers = #tpu.dot_dimension_numbers<[1], [0], [0], [1], [0, 0, 1, 1], [], []>} : vector<256x128xbf16>, vector<128x128xbf16>, vector<256x128xf32> -> vector<256x128xf32>
    %12 = arith.addf %5, %11 : vector<256x128xf32>
    %c0_15 = arith.constant 0 : index
    %c0_16 = arith.constant 0 : index
    %c0_17 = arith.constant 0 : index
    %c2 = arith.constant 2 : index
    %c0_18 = arith.constant 0 : index
    %13 = vector.load %arg2[%c0_15, %c0_16, %c0_17, %c2, %c0_18] : memref<1x1x18x18x128xbf16, #tpu.memory_space<vmem>>, vector<1x1x16x16x128xbf16>
    %14 = vector.shape_cast %13 : vector<1x1x16x16x128xbf16> to vector<16x16x128xbf16>
    %15 = vector.shape_cast %14 : vector<16x16x128xbf16> to vector<256x128xbf16>
    %c2_19 = arith.constant 2 : index
    %c0_20 = arith.constant 0 : index
    %c0_21 = arith.constant 0 : index
    %16 = vector.load %arg3[%c2_19, %c0_20, %c0_21] : memref<9x128x128xbf16, #tpu.memory_space<vmem>>, vector<1x128x128xbf16>
    %17 = vector.shape_cast %16 : vector<1x128x128xbf16> to vector<128x128xbf16>
    %cst_22 = arith.constant dense<0.000000e+00> : vector<256x128xf32>
    %18 = tpu.matmul %15, %17, %cst_22 {dimension_numbers = #tpu.dot_dimension_numbers<[1], [0], [0], [1], [0, 0, 1, 1], [], []>} : vector<256x128xbf16>, vector<128x128xbf16>, vector<256x128xf32> -> vector<256x128xf32>
    %19 = arith.addf %12, %18 : vector<256x128xf32>
    %c0_23 = arith.constant 0 : index
    %c0_24 = arith.constant 0 : index
    %c1_25 = arith.constant 1 : index
    %c0_26 = arith.constant 0 : index
    %c0_27 = arith.constant 0 : index
    %20 = vector.load %arg2[%c0_23, %c0_24, %c1_25, %c0_26, %c0_27] : memref<1x1x18x18x128xbf16, #tpu.memory_space<vmem>>, vector<1x1x16x16x128xbf16>
    %21 = vector.shape_cast %20 : vector<1x1x16x16x128xbf16> to vector<16x16x128xbf16>
    %22 = vector.shape_cast %21 : vector<16x16x128xbf16> to vector<256x128xbf16>
    %c3 = arith.constant 3 : index
    %c0_28 = arith.constant 0 : index
    %c0_29 = arith.constant 0 : index
    %23 = vector.load %arg3[%c3, %c0_28, %c0_29] : memref<9x128x128xbf16, #tpu.memory_space<vmem>>, vector<1x128x128xbf16>
    %24 = vector.shape_cast %23 : vector<1x128x128xbf16> to vector<128x128xbf16>
    %cst_30 = arith.constant dense<0.000000e+00> : vector<256x128xf32>
    %25 = tpu.matmul %22, %24, %cst_30 {dimension_numbers = #tpu.dot_dimension_numbers<[1], [0], [0], [1], [0, 0, 1, 1], [], []>} : vector<256x128xbf16>, vector<128x128xbf16>, vector<256x128xf32> -> vector<256x128xf32>
    %26 = arith.addf %19, %25 : vector<256x128xf32>
    %c0_31 = arith.constant 0 : index
    %c0_32 = arith.constant 0 : index
    %c1_33 = arith.constant 1 : index
    %c1_34 = arith.constant 1 : index
    %c0_35 = arith.constant 0 : index
    %27 = vector.load %arg2[%c0_31, %c0_32, %c1_33, %c1_34, %c0_35] : memref<1x1x18x18x128xbf16, #tpu.memory_space<vmem>>, vector<1x1x16x16x128xbf16>
    %28 = vector.shape_cast %27 : vector<1x1x16x16x128xbf16> to vector<16x16x128xbf16>
    %29 = vector.shape_cast %28 : vector<16x16x128xbf16> to vector<256x128xbf16>
    %c4 = arith.constant 4 : index
    %c0_36 = arith.constant 0 : index
    %c0_37 = arith.constant 0 : index
    %30 = vector.load %arg3[%c4, %c0_36, %c0_37] : memref<9x128x128xbf16, #tpu.memory_space<vmem>>, vector<1x128x128xbf16>
    %31 = vector.shape_cast %30 : vector<1x128x128xbf16> to vector<128x128xbf16>
    %cst_38 = arith.constant dense<0.000000e+00> : vector<256x128xf32>
    %32 = tpu.matmul %29, %31, %cst_38 {dimension_numbers = #tpu.dot_dimension_numbers<[1], [0], [0], [1], [0, 0, 1, 1], [], []>} : vector<256x128xbf16>, vector<128x128xbf16>, vector<256x128xf32> -> vector<256x128xf32>
    %33 = arith.addf %26, %32 : vector<256x128xf32>
    %c0_39 = arith.constant 0 : index
    %c0_40 = arith.constant 0 : index
    %c1_41 = arith.constant 1 : index
    %c2_42 = arith.constant 2 : index
    %c0_43 = arith.constant 0 : index
    %34 = vector.load %arg2[%c0_39, %c0_40, %c1_41, %c2_42, %c0_43] : memref<1x1x18x18x128xbf16, #tpu.memory_space<vmem>>, vector<1x1x16x16x128xbf16>
    %35 = vector.shape_cast %34 : vector<1x1x16x16x128xbf16> to vector<16x16x128xbf16>
    %36 = vector.shape_cast %35 : vector<16x16x128xbf16> to vector<256x128xbf16>
    %c5 = arith.constant 5 : index
    %c0_44 = arith.constant 0 : index
    %c0_45 = arith.constant 0 : index
    %37 = vector.load %arg3[%c5, %c0_44, %c0_45] : memref<9x128x128xbf16, #tpu.memory_space<vmem>>, vector<1x128x128xbf16>
    %38 = vector.shape_cast %37 : vector<1x128x128xbf16> to vector<128x128xbf16>
    %cst_46 = arith.constant dense<0.000000e+00> : vector<256x128xf32>
    %39 = tpu.matmul %36, %38, %cst_46 {dimension_numbers = #tpu.dot_dimension_numbers<[1], [0], [0], [1], [0, 0, 1, 1], [], []>} : vector<256x128xbf16>, vector<128x128xbf16>, vector<256x128xf32> -> vector<256x128xf32>
    %40 = arith.addf %33, %39 : vector<256x128xf32>
    %c0_47 = arith.constant 0 : index
    %c0_48 = arith.constant 0 : index
    %c2_49 = arith.constant 2 : index
    %c0_50 = arith.constant 0 : index
    %c0_51 = arith.constant 0 : index
    %41 = vector.load %arg2[%c0_47, %c0_48, %c2_49, %c0_50, %c0_51] : memref<1x1x18x18x128xbf16, #tpu.memory_space<vmem>>, vector<1x1x16x16x128xbf16>
    %42 = vector.shape_cast %41 : vector<1x1x16x16x128xbf16> to vector<16x16x128xbf16>
    %43 = vector.shape_cast %42 : vector<16x16x128xbf16> to vector<256x128xbf16>
    %c6 = arith.constant 6 : index
    %c0_52 = arith.constant 0 : index
    %c0_53 = arith.constant 0 : index
    %44 = vector.load %arg3[%c6, %c0_52, %c0_53] : memref<9x128x128xbf16, #tpu.memory_space<vmem>>, vector<1x128x128xbf16>
    %45 = vector.shape_cast %44 : vector<1x128x128xbf16> to vector<128x128xbf16>
    %cst_54 = arith.constant dense<0.000000e+00> : vector<256x128xf32>
    %46 = tpu.matmul %43, %45, %cst_54 {dimension_numbers = #tpu.dot_dimension_numbers<[1], [0], [0], [1], [0, 0, 1, 1], [], []>} : vector<256x128xbf16>, vector<128x128xbf16>, vector<256x128xf32> -> vector<256x128xf32>
    %47 = arith.addf %40, %46 : vector<256x128xf32>
    %c0_55 = arith.constant 0 : index
    %c0_56 = arith.constant 0 : index
    %c2_57 = arith.constant 2 : index
    %c1_58 = arith.constant 1 : index
    %c0_59 = arith.constant 0 : index
    %48 = vector.load %arg2[%c0_55, %c0_56, %c2_57, %c1_58, %c0_59] : memref<1x1x18x18x128xbf16, #tpu.memory_space<vmem>>, vector<1x1x16x16x128xbf16>
    %49 = vector.shape_cast %48 : vector<1x1x16x16x128xbf16> to vector<16x16x128xbf16>
    %50 = vector.shape_cast %49 : vector<16x16x128xbf16> to vector<256x128xbf16>
    %c7 = arith.constant 7 : index
    %c0_60 = arith.constant 0 : index
    %c0_61 = arith.constant 0 : index
    %51 = vector.load %arg3[%c7, %c0_60, %c0_61] : memref<9x128x128xbf16, #tpu.memory_space<vmem>>, vector<1x128x128xbf16>
    %52 = vector.shape_cast %51 : vector<1x128x128xbf16> to vector<128x128xbf16>
    %cst_62 = arith.constant dense<0.000000e+00> : vector<256x128xf32>
    %53 = tpu.matmul %50, %52, %cst_62 {dimension_numbers = #tpu.dot_dimension_numbers<[1], [0], [0], [1], [0, 0, 1, 1], [], []>} : vector<256x128xbf16>, vector<128x128xbf16>, vector<256x128xf32> -> vector<256x128xf32>
    %54 = arith.addf %47, %53 : vector<256x128xf32>
    %c0_63 = arith.constant 0 : index
    %c0_64 = arith.constant 0 : index
    %c2_65 = arith.constant 2 : index
    %c2_66 = arith.constant 2 : index
    %c0_67 = arith.constant 0 : index
    %55 = vector.load %arg2[%c0_63, %c0_64, %c2_65, %c2_66, %c0_67] : memref<1x1x18x18x128xbf16, #tpu.memory_space<vmem>>, vector<1x1x16x16x128xbf16>
    %56 = vector.shape_cast %55 : vector<1x1x16x16x128xbf16> to vector<16x16x128xbf16>
    %57 = vector.shape_cast %56 : vector<16x16x128xbf16> to vector<256x128xbf16>
    %c8 = arith.constant 8 : index
    %c0_68 = arith.constant 0 : index
    %c0_69 = arith.constant 0 : index
    %58 = vector.load %arg3[%c8, %c0_68, %c0_69] : memref<9x128x128xbf16, #tpu.memory_space<vmem>>, vector<1x128x128xbf16>
    %59 = vector.shape_cast %58 : vector<1x128x128xbf16> to vector<128x128xbf16>
    %cst_70 = arith.constant dense<0.000000e+00> : vector<256x128xf32>
    %60 = tpu.matmul %57, %59, %cst_70 {dimension_numbers = #tpu.dot_dimension_numbers<[1], [0], [0], [1], [0, 0, 1, 1], [], []>} : vector<256x128xbf16>, vector<128x128xbf16>, vector<256x128xf32> -> vector<256x128xf32>
    %61 = arith.addf %54, %60 : vector<256x128xf32>
    %cst_71 = arith.constant dense<0.000000e+00> : vector<128xf32>
    %62 = vector.multi_reduction <add>, %61, %cst_71 [0] : vector<256x128xf32> to vector<128xf32>
    %63 = vector.shape_cast %62 : vector<128xf32> to vector<1x128xf32>
    %64 = arith.mulf %61, %61 : vector<256x128xf32>
    %cst_72 = arith.constant dense<0.000000e+00> : vector<128xf32>
    %65 = vector.multi_reduction <add>, %64, %cst_72 [0] : vector<256x128xf32> to vector<128xf32>
    %66 = vector.shape_cast %65 : vector<128xf32> to vector<1x128xf32>
    %67 = tpu.concatenate %63, %66 in 0 : vector<1x128xf32>, vector<1x128xf32> -> vector<2x128xf32>
    %c0_73 = arith.constant 0 : index
    %c0_74 = arith.constant 0 : index
    %c0_75 = arith.constant 0 : index
    %c0_76 = arith.constant 0 : index
    %68 = vector.load %arg5[%c0_73, %c0_74, %c0_75, %c0_76] : memref<1x1x2x128xf32, #tpu.memory_space<vmem>>, vector<1x1x2x128xf32>
    %69 = vector.shape_cast %68 : vector<1x1x2x128xf32> to vector<2x128xf32>
    %70 = vector.shape_cast %67 : vector<2x128xf32> to vector<1x1x2x128xf32>
    tpu.vector_store %arg5[%c0_73, %c0_74, %c0_75, %c0_76], %70 {strides = array<i32>} : memref<1x1x2x128xf32, #tpu.memory_space<vmem>>, vector<1x1x2x128xf32>,
    %71 = vector.shape_cast %61 : vector<256x128xf32> to vector<16x16x128xf32>
    %72 = arith.truncf %71 : vector<16x16x128xf32> to vector<16x16x128xbf16>
    %c0_77 = arith.constant 0 : index
    %c0_78 = arith.constant 0 : index
    %c0_79 = arith.constant 0 : index
    %c0_80 = arith.constant 0 : index
    %73 = vector.load %arg4[%c0_77, %c0_78, %c0_79, %c0_80] : memref<1x16x16x128xbf16, #tpu.memory_space<vmem>>, vector<1x16x16x128xbf16>
    %74 = vector.shape_cast %73 : vector<1x16x16x128xbf16> to vector<16x16x128xbf16>
    %75 = vector.shape_cast %72 : vector<16x16x128xbf16> to vector<1x16x16x128xbf16>
    tpu.vector_store %arg4[%c0_77, %c0_78, %c0_79, %c0_80], %75 {strides = array<i32>} : memref<1x16x16x128xbf16, #tpu.memory_space<vmem>>, vector<1x16x16x128xbf16>,
    return
  }
  func.func @transform_0(%arg0: i32, %arg1: i32) -> (i32, i32, i32, i32, i32) {
    %c0_i32 = arith.constant 0 : i32
    %c0_i32_0 = arith.constant 0 : i32
    %c0_i32_1 = arith.constant 0 : i32
    %c0_i32_2 = arith.constant 0 : i32
    return %arg0, %arg1, %c0_i32, %c0_i32_0, %c0_i32_1 : i32, i32, i32, i32, i32
  }
  func.func @transform_1(%arg0: i32, %arg1: i32) -> (i32, i32, i32) {
    %c0_i32 = arith.constant 0 : i32
    %c0_i32_0 = arith.constant 0 : i32
    %c0_i32_1 = arith.constant 0 : i32
    %c0_i32_2 = arith.constant 0 : i32
    return %c0_i32, %c0_i32_0, %c0_i32_1 : i32, i32, i32
  }
  func.func @transform_2(%arg0: i32, %arg1: i32) -> (i32, i32, i32, i32) {
    %c0_i32 = arith.constant 0 : i32
    %c0_i32_0 = arith.constant 0 : i32
    %c0_i32_1 = arith.constant 0 : i32
    return %arg0, %arg1, %c0_i32, %c0_i32_0 : i32, i32, i32, i32
  }
  func.func @transform_3(%arg0: i32, %arg1: i32) -> (i32, i32, i32, i32) {
    %c0_i32 = arith.constant 0 : i32
    %c0_i32_0 = arith.constant 0 : i32
    %c0_i32_1 = arith.constant 0 : i32
    return %arg0, %arg1, %c0_i32, %c0_i32_0 : i32, i32, i32, i32
  }
}

module attributes {stable_mosaic.version = 11 : i64} {
  func.func @bn_adapter_relu_kernel(%arg0: i32, %arg1: i32, %arg2: memref<1x16x16x128xbf16, #tpu.memory_space<vmem>>, %arg3: memref<1x128xf32, #tpu.memory_space<vmem>>, %arg4: memref<1x128xf32, #tpu.memory_space<vmem>>, %arg5: memref<128x256xbf16, #tpu.memory_space<vmem>>, %arg6: memref<256x128xbf16, #tpu.memory_space<vmem>>, %arg7: memref<1x16x16x128xbf16, #tpu.memory_space<vmem>>) attributes {dimension_semantics = [#tpu.dimension_semantics<parallel>, #tpu.dimension_semantics<parallel>], iteration_bounds = array<i64: 2, 1>, scalar_prefetch = 0 : i64, scratch_operands = 0 : i64, tpu.core_type = #tpu.core_type<tc>, window_params = [{transform_indices = @transform_0, window_bounds = array<i64: 1, 16, 16, 128>}, {pipeline_mode = #tpu.pipeline_mode<synchronous>, transform_indices = @transform_1, window_bounds = array<i64: 1, 128>}, {pipeline_mode = #tpu.pipeline_mode<synchronous>, transform_indices = @transform_2, window_bounds = array<i64: 1, 128>}, {pipeline_mode = #tpu.pipeline_mode<synchronous>, transform_indices = @transform_3, window_bounds = array<i64: 128, 256>}, {pipeline_mode = #tpu.pipeline_mode<synchronous>, transform_indices = @transform_4, window_bounds = array<i64: 256, 128>}, {transform_indices = @transform_5, window_bounds = array<i64: 1, 16, 16, 128>}]} {
    %c0 = arith.constant 0 : index
    %c0_0 = arith.constant 0 : index
    %c0_1 = arith.constant 0 : index
    %c0_2 = arith.constant 0 : index
    %0 = vector.load %arg2[%c0, %c0_0, %c0_1, %c0_2] : memref<1x16x16x128xbf16, #tpu.memory_space<vmem>>, vector<1x16x16x128xbf16>
    %1 = vector.shape_cast %0 : vector<1x16x16x128xbf16> to vector<16x16x128xbf16>
    %2 = arith.extf %1 : vector<16x16x128xbf16> to vector<16x16x128xf32>
    %c0_3 = arith.constant 0 : index
    %c0_4 = arith.constant 0 : index
    %3 = vector.load %arg3[%c0_3, %c0_4] : memref<1x128xf32, #tpu.memory_space<vmem>>, vector<1x128xf32>
    %4 = vector.shape_cast %3 : vector<1x128xf32> to vector<128xf32>
    %5 = vector.shape_cast %4 : vector<128xf32> to vector<1x1x128xf32>
    %6 = vector.broadcast %5 : vector<1x1x128xf32> to vector<16x16x128xf32>
    %7 = arith.mulf %2, %6 : vector<16x16x128xf32>
    %c0_5 = arith.constant 0 : index
    %c0_6 = arith.constant 0 : index
    %8 = vector.load %arg4[%c0_5, %c0_6] : memref<1x128xf32, #tpu.memory_space<vmem>>, vector<1x128xf32>
    %9 = vector.shape_cast %8 : vector<1x128xf32> to vector<128xf32>
    %10 = vector.shape_cast %9 : vector<128xf32> to vector<1x1x128xf32>
    %11 = vector.broadcast %10 : vector<1x1x128xf32> to vector<16x16x128xf32>
    %12 = arith.addf %7, %11 : vector<16x16x128xf32>
    %13 = vector.shape_cast %12 : vector<16x16x128xf32> to vector<256x128xf32>
    %c0_7 = arith.constant 0 : index
    %c0_8 = arith.constant 0 : index
    %14 = vector.load %arg5[%c0_7, %c0_8] : memref<128x256xbf16, #tpu.memory_space<vmem>>, vector<128x256xbf16>
    %15 = arith.truncf %13 : vector<256x128xf32> to vector<256x128xbf16>
    %cst = arith.constant dense<0.000000e+00> : vector<128x128xf32>
    %16 = tpu.matmul %14, %15, %cst {dimension_numbers = #tpu.dot_dimension_numbers<[1], [0], [0], [1], [0, 0, 1, 1], [], []>} : vector<128x256xbf16>, vector<256x128xbf16>, vector<128x128xf32> -> vector<128x128xf32>
    %cst_9 = arith.constant 0.000000e+00 : f32
    %17 = vector.broadcast %cst_9 : f32 to vector<128x128xf32>
    %18 = arith.maximumf %16, %17 : vector<128x128xf32>
    %c0_10 = arith.constant 0 : index
    %c0_11 = arith.constant 0 : index
    %19 = vector.load %arg6[%c0_10, %c0_11] : memref<256x128xbf16, #tpu.memory_space<vmem>>, vector<256x128xbf16>
    %20 = arith.truncf %18 : vector<128x128xf32> to vector<128x128xbf16>
    %cst_12 = arith.constant dense<0.000000e+00> : vector<256x128xf32>
    %21 = tpu.matmul %19, %20, %cst_12 {dimension_numbers = #tpu.dot_dimension_numbers<[1], [0], [0], [1], [0, 0, 1, 1], [], []>} : vector<256x128xbf16>, vector<128x128xbf16>, vector<256x128xf32> -> vector<256x128xf32>
    %22 = arith.addf %13, %21 : vector<256x128xf32>
    %cst_13 = arith.constant 0.000000e+00 : f32
    %23 = vector.broadcast %cst_13 : f32 to vector<256x128xf32>
    %24 = arith.maximumf %22, %23 : vector<256x128xf32>
    %25 = vector.shape_cast %24 : vector<256x128xf32> to vector<16x16x128xf32>
    %26 = arith.truncf %25 : vector<16x16x128xf32> to vector<16x16x128xbf16>
    %c0_14 = arith.constant 0 : index
    %c0_15 = arith.constant 0 : index
    %c0_16 = arith.constant 0 : index
    %c0_17 = arith.constant 0 : index
    %27 = vector.load %arg7[%c0_14, %c0_15, %c0_16, %c0_17] : memref<1x16x16x128xbf16, #tpu.memory_space<vmem>>, vector<1x16x16x128xbf16>
    %28 = vector.shape_cast %27 : vector<1x16x16x128xbf16> to vector<16x16x128xbf16>
    %29 = vector.shape_cast %26 : vector<16x16x128xbf16> to vector<1x16x16x128xbf16>
    tpu.vector_store %arg7[%c0_14, %c0_15, %c0_16, %c0_17], %29 {strides = array<i32>} : memref<1x16x16x128xbf16, #tpu.memory_space<vmem>>, vector<1x16x16x128xbf16>,
    return
  }
  func.func @transform_0(%arg0: i32, %arg1: i32) -> (i32, i32, i32, i32) {
    %c0_i32 = arith.constant 0 : i32
    %c0_i32_0 = arith.constant 0 : i32
    %c0_i32_1 = arith.constant 0 : i32
    return %arg0, %arg1, %c0_i32, %c0_i32_0 : i32, i32, i32, i32
  }
  func.func @transform_1(%arg0: i32, %arg1: i32) -> (i32, i32) {
    %c0_i32 = arith.constant 0 : i32
    %c0_i32_0 = arith.constant 0 : i32
    %c0_i32_1 = arith.constant 0 : i32
    return %c0_i32, %c0_i32_0 : i32, i32
  }
  func.func @transform_2(%arg0: i32, %arg1: i32) -> (i32, i32) {
    %c0_i32 = arith.constant 0 : i32
    %c0_i32_0 = arith.constant 0 : i32
    %c0_i32_1 = arith.constant 0 : i32
    return %c0_i32, %c0_i32_0 : i32, i32
  }
  func.func @transform_3(%arg0: i32, %arg1: i32) -> (i32, i32) {
    %c0_i32 = arith.constant 0 : i32
    %c0_i32_0 = arith.constant 0 : i32
    %c0_i32_1 = arith.constant 0 : i32
    return %c0_i32, %c0_i32_0 : i32, i32
  }
  func.func @transform_4(%arg0: i32, %arg1: i32) -> (i32, i32) {
    %c0_i32 = arith.constant 0 : i32
    %c0_i32_0 = arith.constant 0 : i32
    %c0_i32_1 = arith.constant 0 : i32
    return %c0_i32, %c0_i32_0 : i32, i32
  }
  func.func @transform_5(%arg0: i32, %arg1: i32) -> (i32, i32, i32, i32) {
    %c0_i32 = arith.constant 0 : i32
    %c0_i32_0 = arith.constant 0 : i32
    %c0_i32_1 = arith.constant 0 : i32
    return %arg0, %arg1, %c0_i32, %c0_i32_0 : i32, i32, i32, i32
  }
}

module attributes {stable_mosaic.version = 11 : i64} {
  func.func @conv3x3_stats_kernel(%arg0: i32, %arg1: i32, %arg2: memref<1x1x18x18x128xbf16, #tpu.memory_space<vmem>>, %arg3: memref<9x128x128xbf16, #tpu.memory_space<vmem>>, %arg4: memref<1x16x16x128xf32, #tpu.memory_space<vmem>>, %arg5: memref<1x1x2x128xf32, #tpu.memory_space<vmem>>) attributes {dimension_semantics = [#tpu.dimension_semantics<parallel>, #tpu.dimension_semantics<parallel>], iteration_bounds = array<i64: 2, 1>, scalar_prefetch = 0 : i64, scratch_operands = 0 : i64, tpu.core_type = #tpu.core_type<tc>, window_params = [{transform_indices = @transform_0, window_bounds = array<i64: 1, 1, 18, 18, 128>}, {pipeline_mode = #tpu.pipeline_mode<synchronous>, transform_indices = @transform_1, window_bounds = array<i64: 9, 128, 128>}, {transform_indices = @transform_2, window_bounds = array<i64: 1, 16, 16, 128>}, {transform_indices = @transform_3, window_bounds = array<i64: 1, 1, 2, 128>}]} {
    %c0 = arith.constant 0 : index
    %c0_0 = arith.constant 0 : index
    %c0_1 = arith.constant 0 : index
    %c0_2 = arith.constant 0 : index
    %c0_3 = arith.constant 0 : index
    %0 = vector.load %arg2[%c0, %c0_0, %c0_1, %c0_2, %c0_3] : memref<1x1x18x18x128xbf16, #tpu.memory_space<vmem>>, vector<1x1x16x16x128xbf16>
    %1 = vector.shape_cast %0 : vector<1x1x16x16x128xbf16> to vector<16x16x128xbf16>
    %2 = vector.shape_cast %1 : vector<16x16x128xbf16> to vector<256x128xbf16>
    %c0_4 = arith.constant 0 : index
    %c0_5 = arith.constant 0 : index
    %c0_6 = arith.constant 0 : index
    %3 = vector.load %arg3[%c0_4, %c0_5, %c0_6] : memref<9x128x128xbf16, #tpu.memory_space<vmem>>, vector<1x128x128xbf16>
    %4 = vector.shape_cast %3 : vector<1x128x128xbf16> to vector<128x128xbf16>
    %cst = arith.constant dense<0.000000e+00> : vector<256x128xf32>
    %5 = tpu.matmul %2, %4, %cst {dimension_numbers = #tpu.dot_dimension_numbers<[1], [0], [0], [1], [0, 0, 1, 1], [], []>} : vector<256x128xbf16>, vector<128x128xbf16>, vector<256x128xf32> -> vector<256x128xf32>
    %c0_7 = arith.constant 0 : index
    %c0_8 = arith.constant 0 : index
    %c0_9 = arith.constant 0 : index
    %c1 = arith.constant 1 : index
    %c0_10 = arith.constant 0 : index
    %6 = vector.load %arg2[%c0_7, %c0_8, %c0_9, %c1, %c0_10] : memref<1x1x18x18x128xbf16, #tpu.memory_space<vmem>>, vector<1x1x16x16x128xbf16>
    %7 = vector.shape_cast %6 : vector<1x1x16x16x128xbf16> to vector<16x16x128xbf16>
    %8 = vector.shape_cast %7 : vector<16x16x128xbf16> to vector<256x128xbf16>
    %c1_11 = arith.constant 1 : index
    %c0_12 = arith.constant 0 : index
    %c0_13 = arith.constant 0 : index
    %9 = vector.load %arg3[%c1_11, %c0_12, %c0_13] : memref<9x128x128xbf16, #tpu.memory_space<vmem>>, vector<1x128x128xbf16>
    %10 = vector.shape_cast %9 : vector<1x128x128xbf16> to vector<128x128xbf16>
    %cst_14 = arith.constant dense<0.000000e+00> : vector<256x128xf32>
    %11 = tpu.matmul %8, %10, %cst_14 {dimension_numbers = #tpu.dot_dimension_numbers<[1], [0], [0], [1], [0, 0, 1, 1], [], []>} : vector<256x128xbf16>, vector<128x128xbf16>, vector<256x128xf32> -> vector<256x128xf32>
    %12 = arith.addf %5, %11 : vector<256x128xf32>
    %c0_15 = arith.constant 0 : index
    %c0_16 = arith.constant 0 : index
    %c0_17 = arith.constant 0 : index
    %c2 = arith.constant 2 : index
    %c0_18 = arith.constant 0 : index
    %13 = vector.load %arg2[%c0_15, %c0_16, %c0_17, %c2, %c0_18] : memref<1x1x18x18x128xbf16, #tpu.memory_space<vmem>>, vector<1x1x16x16x128xbf16>
    %14 = vector.shape_cast %13 : vector<1x1x16x16x128xbf16> to vector<16x16x128xbf16>
    %15 = vector.shape_cast %14 : vector<16x16x128xbf16> to vector<256x128xbf16>
    %c2_19 = arith.constant 2 : index
    %c0_20 = arith.constant 0 : index
    %c0_21 = arith.constant 0 : index
    %16 = vector.load %arg3[%c2_19, %c0_20, %c0_21] : memref<9x128x128xbf16, #tpu.memory_space<vmem>>, vector<1x128x128xbf16>
    %17 = vector.shape_cast %16 : vector<1x128x128xbf16> to vector<128x128xbf16>
    %cst_22 = arith.constant dense<0.000000e+00> : vector<256x128xf32>
    %18 = tpu.matmul %15, %17, %cst_22 {dimension_numbers = #tpu.dot_dimension_numbers<[1], [0], [0], [1], [0, 0, 1, 1], [], []>} : vector<256x128xbf16>, vector<128x128xbf16>, vector<256x128xf32> -> vector<256x128xf32>
    %19 = arith.addf %12, %18 : vector<256x128xf32>
    %c0_23 = arith.constant 0 : index
    %c0_24 = arith.constant 0 : index
    %c1_25 = arith.constant 1 : index
    %c0_26 = arith.constant 0 : index
    %c0_27 = arith.constant 0 : index
    %20 = vector.load %arg2[%c0_23, %c0_24, %c1_25, %c0_26, %c0_27] : memref<1x1x18x18x128xbf16, #tpu.memory_space<vmem>>, vector<1x1x16x16x128xbf16>
    %21 = vector.shape_cast %20 : vector<1x1x16x16x128xbf16> to vector<16x16x128xbf16>
    %22 = vector.shape_cast %21 : vector<16x16x128xbf16> to vector<256x128xbf16>
    %c3 = arith.constant 3 : index
    %c0_28 = arith.constant 0 : index
    %c0_29 = arith.constant 0 : index
    %23 = vector.load %arg3[%c3, %c0_28, %c0_29] : memref<9x128x128xbf16, #tpu.memory_space<vmem>>, vector<1x128x128xbf16>
    %24 = vector.shape_cast %23 : vector<1x128x128xbf16> to vector<128x128xbf16>
    %cst_30 = arith.constant dense<0.000000e+00> : vector<256x128xf32>
    %25 = tpu.matmul %22, %24, %cst_30 {dimension_numbers = #tpu.dot_dimension_numbers<[1], [0], [0], [1], [0, 0, 1, 1], [], []>} : vector<256x128xbf16>, vector<128x128xbf16>, vector<256x128xf32> -> vector<256x128xf32>
    %26 = arith.addf %19, %25 : vector<256x128xf32>
    %c0_31 = arith.constant 0 : index
    %c0_32 = arith.constant 0 : index
    %c1_33 = arith.constant 1 : index
    %c1_34 = arith.constant 1 : index
    %c0_35 = arith.constant 0 : index
    %27 = vector.load %arg2[%c0_31, %c0_32, %c1_33, %c1_34, %c0_35] : memref<1x1x18x18x128xbf16, #tpu.memory_space<vmem>>, vector<1x1x16x16x128xbf16>
    %28 = vector.shape_cast %27 : vector<1x1x16x16x128xbf16> to vector<16x16x128xbf16>
    %29 = vector.shape_cast %28 : vector<16x16x128xbf16> to vector<256x128xbf16>
    %c4 = arith.constant 4 : index
    %c0_36 = arith.constant 0 : index
    %c0_37 = arith.constant 0 : index
    %30 = vector.load %arg3[%c4, %c0_36, %c0_37] : memref<9x128x128xbf16, #tpu.memory_space<vmem>>, vector<1x128x128xbf16>
    %31 = vector.shape_cast %30 : vector<1x128x128xbf16> to vector<128x128xbf16>
    %cst_38 = arith.constant dense<0.000000e+00> : vector<256x128xf32>
    %32 = tpu.matmul %29, %31, %cst_38 {dimension_numbers = #tpu.dot_dimension_numbers<[1], [0], [0], [1], [0, 0, 1, 1], [], []>} : vector<256x128xbf16>, vector<128x128xbf16>, vector<256x128xf32> -> vector<256x128xf32>
    %33 = arith.addf %26, %32 : vector<256x128xf32>
    %c0_39 = arith.constant 0 : index
    %c0_40 = arith.constant 0 : index
    %c1_41 = arith.constant 1 : index
    %c2_42 = arith.constant 2 : index
    %c0_43 = arith.constant 0 : index
    %34 = vector.load %arg2[%c0_39, %c0_40, %c1_41, %c2_42, %c0_43] : memref<1x1x18x18x128xbf16, #tpu.memory_space<vmem>>, vector<1x1x16x16x128xbf16>
    %35 = vector.shape_cast %34 : vector<1x1x16x16x128xbf16> to vector<16x16x128xbf16>
    %36 = vector.shape_cast %35 : vector<16x16x128xbf16> to vector<256x128xbf16>
    %c5 = arith.constant 5 : index
    %c0_44 = arith.constant 0 : index
    %c0_45 = arith.constant 0 : index
    %37 = vector.load %arg3[%c5, %c0_44, %c0_45] : memref<9x128x128xbf16, #tpu.memory_space<vmem>>, vector<1x128x128xbf16>
    %38 = vector.shape_cast %37 : vector<1x128x128xbf16> to vector<128x128xbf16>
    %cst_46 = arith.constant dense<0.000000e+00> : vector<256x128xf32>
    %39 = tpu.matmul %36, %38, %cst_46 {dimension_numbers = #tpu.dot_dimension_numbers<[1], [0], [0], [1], [0, 0, 1, 1], [], []>} : vector<256x128xbf16>, vector<128x128xbf16>, vector<256x128xf32> -> vector<256x128xf32>
    %40 = arith.addf %33, %39 : vector<256x128xf32>
    %c0_47 = arith.constant 0 : index
    %c0_48 = arith.constant 0 : index
    %c2_49 = arith.constant 2 : index
    %c0_50 = arith.constant 0 : index
    %c0_51 = arith.constant 0 : index
    %41 = vector.load %arg2[%c0_47, %c0_48, %c2_49, %c0_50, %c0_51] : memref<1x1x18x18x128xbf16, #tpu.memory_space<vmem>>, vector<1x1x16x16x128xbf16>
    %42 = vector.shape_cast %41 : vector<1x1x16x16x128xbf16> to vector<16x16x128xbf16>
    %43 = vector.shape_cast %42 : vector<16x16x128xbf16> to vector<256x128xbf16>
    %c6 = arith.constant 6 : index
    %c0_52 = arith.constant 0 : index
    %c0_53 = arith.constant 0 : index
    %44 = vector.load %arg3[%c6, %c0_52, %c0_53] : memref<9x128x128xbf16, #tpu.memory_space<vmem>>, vector<1x128x128xbf16>
    %45 = vector.shape_cast %44 : vector<1x128x128xbf16> to vector<128x128xbf16>
    %cst_54 = arith.constant dense<0.000000e+00> : vector<256x128xf32>
    %46 = tpu.matmul %43, %45, %cst_54 {dimension_numbers = #tpu.dot_dimension_numbers<[1], [0], [0], [1], [0, 0, 1, 1], [], []>} : vector<256x128xbf16>, vector<128x128xbf16>, vector<256x128xf32> -> vector<256x128xf32>
    %47 = arith.addf %40, %46 : vector<256x128xf32>
    %c0_55 = arith.constant 0 : index
    %c0_56 = arith.constant 0 : index
    %c2_57 = arith.constant 2 : index
    %c1_58 = arith.constant 1 : index
    %c0_59 = arith.constant 0 : index
    %48 = vector.load %arg2[%c0_55, %c0_56, %c2_57, %c1_58, %c0_59] : memref<1x1x18x18x128xbf16, #tpu.memory_space<vmem>>, vector<1x1x16x16x128xbf16>
    %49 = vector.shape_cast %48 : vector<1x1x16x16x128xbf16> to vector<16x16x128xbf16>
    %50 = vector.shape_cast %49 : vector<16x16x128xbf16> to vector<256x128xbf16>
    %c7 = arith.constant 7 : index
    %c0_60 = arith.constant 0 : index
    %c0_61 = arith.constant 0 : index
    %51 = vector.load %arg3[%c7, %c0_60, %c0_61] : memref<9x128x128xbf16, #tpu.memory_space<vmem>>, vector<1x128x128xbf16>
    %52 = vector.shape_cast %51 : vector<1x128x128xbf16> to vector<128x128xbf16>
    %cst_62 = arith.constant dense<0.000000e+00> : vector<256x128xf32>
    %53 = tpu.matmul %50, %52, %cst_62 {dimension_numbers = #tpu.dot_dimension_numbers<[1], [0], [0], [1], [0, 0, 1, 1], [], []>} : vector<256x128xbf16>, vector<128x128xbf16>, vector<256x128xf32> -> vector<256x128xf32>
    %54 = arith.addf %47, %53 : vector<256x128xf32>
    %c0_63 = arith.constant 0 : index
    %c0_64 = arith.constant 0 : index
    %c2_65 = arith.constant 2 : index
    %c2_66 = arith.constant 2 : index
    %c0_67 = arith.constant 0 : index
    %55 = vector.load %arg2[%c0_63, %c0_64, %c2_65, %c2_66, %c0_67] : memref<1x1x18x18x128xbf16, #tpu.memory_space<vmem>>, vector<1x1x16x16x128xbf16>
    %56 = vector.shape_cast %55 : vector<1x1x16x16x128xbf16> to vector<16x16x128xbf16>
    %57 = vector.shape_cast %56 : vector<16x16x128xbf16> to vector<256x128xbf16>
    %c8 = arith.constant 8 : index
    %c0_68 = arith.constant 0 : index
    %c0_69 = arith.constant 0 : index
    %58 = vector.load %arg3[%c8, %c0_68, %c0_69] : memref<9x128x128xbf16, #tpu.memory_space<vmem>>, vector<1x128x128xbf16>
    %59 = vector.shape_cast %58 : vector<1x128x128xbf16> to vector<128x128xbf16>
    %cst_70 = arith.constant dense<0.000000e+00> : vector<256x128xf32>
    %60 = tpu.matmul %57, %59, %cst_70 {dimension_numbers = #tpu.dot_dimension_numbers<[1], [0], [0], [1], [0, 0, 1, 1], [], []>} : vector<256x128xbf16>, vector<128x128xbf16>, vector<256x128xf32> -> vector<256x128xf32>
    %61 = arith.addf %54, %60 : vector<256x128xf32>
    %cst_71 = arith.constant dense<0.000000e+00> : vector<128xf32>
    %62 = vector.multi_reduction <add>, %61, %cst_71 [0] : vector<256x128xf32> to vector<128xf32>
    %63 = vector.shape_cast %62 : vector<128xf32> to vector<1x128xf32>
    %64 = arith.mulf %61, %61 : vector<256x128xf32>
    %cst_72 = arith.constant dense<0.000000e+00> : vector<128xf32>
    %65 = vector.multi_reduction <add>, %64, %cst_72 [0] : vector<256x128xf32> to vector<128xf32>
    %66 = vector.shape_cast %65 : vector<128xf32> to vector<1x128xf32>
    %67 = tpu.concatenate %63, %66 in 0 : vector<1x128xf32>, vector<1x128xf32> -> vector<2x128xf32>
    %c0_73 = arith.constant 0 : index
    %c0_74 = arith.constant 0 : index
    %c0_75 = arith.constant 0 : index
    %c0_76 = arith.constant 0 : index
    %68 = vector.load %arg5[%c0_73, %c0_74, %c0_75, %c0_76] : memref<1x1x2x128xf32, #tpu.memory_space<vmem>>, vector<1x1x2x128xf32>
    %69 = vector.shape_cast %68 : vector<1x1x2x128xf32> to vector<2x128xf32>
    %70 = vector.shape_cast %67 : vector<2x128xf32> to vector<1x1x2x128xf32>
    tpu.vector_store %arg5[%c0_73, %c0_74, %c0_75, %c0_76], %70 {strides = array<i32>} : memref<1x1x2x128xf32, #tpu.memory_space<vmem>>, vector<1x1x2x128xf32>,
    %71 = vector.shape_cast %61 : vector<256x128xf32> to vector<16x16x128xf32>
    %c0_77 = arith.constant 0 : index
    %c0_78 = arith.constant 0 : index
    %c0_79 = arith.constant 0 : index
    %c0_80 = arith.constant 0 : index
    %72 = vector.load %arg4[%c0_77, %c0_78, %c0_79, %c0_80] : memref<1x16x16x128xf32, #tpu.memory_space<vmem>>, vector<1x16x16x128xf32>
    %73 = vector.shape_cast %72 : vector<1x16x16x128xf32> to vector<16x16x128xf32>
    %74 = vector.shape_cast %71 : vector<16x16x128xf32> to vector<1x16x16x128xf32>
    tpu.vector_store %arg4[%c0_77, %c0_78, %c0_79, %c0_80], %74 {strides = array<i32>} : memref<1x16x16x128xf32, #tpu.memory_space<vmem>>, vector<1x16x16x128xf32>,
    return
  }
  func.func @transform_0(%arg0: i32, %arg1: i32) -> (i32, i32, i32, i32, i32) {
    %c0_i32 = arith.constant 0 : i32
    %c0_i32_0 = arith.constant 0 : i32
    %c0_i32_1 = arith.constant 0 : i32
    %c0_i32_2 = arith.constant 0 : i32
    return %arg0, %arg1, %c0_i32, %c0_i32_0, %c0_i32_1 : i32, i32, i32, i32, i32
  }
  func.func @transform_1(%arg0: i32, %arg1: i32) -> (i32, i32, i32) {
    %c0_i32 = arith.constant 0 : i32
    %c0_i32_0 = arith.constant 0 : i32
    %c0_i32_1 = arith.constant 0 : i32
    %c0_i32_2 = arith.constant 0 : i32
    return %c0_i32, %c0_i32_0, %c0_i32_1 : i32, i32, i32
  }
  func.func @transform_2(%arg0: i32, %arg1: i32) -> (i32, i32, i32, i32) {
    %c0_i32 = arith.constant 0 : i32
    %c0_i32_0 = arith.constant 0 : i32
    %c0_i32_1 = arith.constant 0 : i32
    return %arg0, %arg1, %c0_i32, %c0_i32_0 : i32, i32, i32, i32
  }
  func.func @transform_3(%arg0: i32, %arg1: i32) -> (i32, i32, i32, i32) {
    %c0_i32 = arith.constant 0 : i32
    %c0_i32_0 = arith.constant 0 : i32
    %c0_i32_1 = arith.constant 0 : i32
    return %arg0, %arg1, %c0_i32, %c0_i32_0 : i32, i32, i32, i32
  }
}

</mosaic_0001>

<bundles_post_ra>
// kernel: basic_block_forward.4
= control target key start
LH: loop header
LB: loop body
LE: loop exit
PB: predicated region body
PF: predicated region fallthrough
CT: control target
= control target key end

     0   :  { %s1793_s18 = smov 0   ;;  %s1795_s19 = smov 0   ;;  %s2167_s0 = inlined_call_operand.vmem [shape: bf16[2,16,16,128], index: 0, kind: input, shape index: {}]   ;;  %s2168_s1 = inlined_call_operand.vmem [shape: f32[1,128], index: 1, kind: input, shape index: {}]   ;;  %s2169_s2 = inlined_call_operand.vmem [shape: f32[1,128], index: 2, kind: input, shape index: {}]   ;;  %s2170_s3 = inlined_call_operand.vmem [shape: bf16[128,256], index: 3, kind: input, shape index: {}]   ;;  %s2171_s4 = inlined_call_operand.vmem [shape: bf16[256,128], index: 4, kind: input, shape index: {}]   ;;  %s2172_s5 = inlined_call_operand.vmem [shape: bf16[2,16,16,128], index: 5, kind: output, shape index: {}]  }
   0x1   :  { %s1797_s20 = smov 0  }
   0x2 LB: > { %s27_s21 = sadd.s32 1, %s1757_s19  ;;  %p1258_p0 = scmp.ge.s32.totalorder %s1761_s20, 1  ;;  %s1761_s20 = sphi %s1797_s20, %s15_s20   ;;  %s1757_s19 = sphi %s1795_s19, %s2174_s19   ;;  %s1753_s18 = sphi %s1793_s18, %s2173_s18  }
   0x3   : > { %p29_p1 = scmp.ge.s32.totalorder %s27_s21, 2  ;;  %p209_p2 = scmp.lt.s32.totalorder %s1761_s20, 3 }
   0x5   : > { %s2176_s21 = smov (%p29_p1, %s27_s21), 0  ;;  %p210_p3 = pnand %p1258_p0, %p209_p2 }
   0x6   : > { %p248_p4 = scmp.lt.s32.totalorder (!%p210_p3), %s1753_s18, 1  ;;  %v1701_v0 = vld [vmem:[%s2170_s3 + $0x4] ss:$8 sps:$4 sm:$0xff] (!%p210_p3)   ;;  %v1827_v1 = vld [vmem:[%s2168_s1] ss:$0 sm:$0xff] (!%p210_p3) }
   0x7   : > { %213 = sbr.rel (%p210_p3) target bundleno = 617 (0x269), region = 40  ;;  %556 = vmatprep.mubr.bf16.mxu0 (!%p210_p3), %v1701_v0  ;;  %v1836_v10 = vld [vmem:[%s2169_s2] ss:$0 sm:$0xff] (!%p210_p3) }
   0xe   : > { %s2178_s18 = smov (!%p248_p4, %s1753_s18), 1 }
   0xf   : > { %s1331_s24 = sshll.u32 %s2178_s18, 7 }
  0x10   : > { %s1822_s27 = scalar_lea.vmem %s2167_s0, %s1331_s24  ;;  %s2112_s11 = scalar_lea.vmem %s2172_s5, %s1331_s24 }
  0x11   : > { %v1516_v2 = vld [vmem:[%s1822_s27 + $0x40] sm:$0xff]   ;;  %v1517_v4 = vld [vmem:[%s1822_s27 + $0x48] sm:$0xff]   ;;  %v1518_v23 = vld [vmem:[%s1822_s27 + $0x50] sm:$0xff]  }
  0x12   : > { %v1366_v3 = vld [vmem:[%s1822_s27] sm:$0xff]   ;;  %v1399_v5 = vunpack.c.l.bf16 %v1516_v2  ;;  %v1400_v6 = vunpack.c.h.bf16 %v1516_v2  ;;  %v1509_v9 = vld [vmem:[%s1822_s27 + $0x8] sm:$0xff]   ;;  %v1403_v11 = vunpack.c.l.bf16 %v1517_v4  ;;  %v1404_v12 = vunpack.c.h.bf16 %v1517_v4  ;;  %v1510_v28 = vld [vmem:[%s1822_s27 + $0x10] sm:$0xff]  }
  0x13   : > { %v1367_v7 = vunpack.c.l.bf16 %v1366_v3  ;;  %v1368_v8 = vunpack.c.h.bf16 %v1366_v3  ;;  %v1371_v13 = vunpack.c.l.bf16 %v1509_v9  ;;  %v1372_v14 = vunpack.c.h.bf16 %v1509_v9  ;;  %v1519_v33 = vld [vmem:[%s1822_s27 + $0x58] sm:$0xff]   ;;  %v1520_v51 = vld [vmem:[%s1822_s27 + $0x60] sm:$0xff]   ;;  %v1521_v57 = vld [vmem:[%s1822_s27 + $0x68] sm:$0xff]  }
  0x14   : > { %v357_v15 = vmul.f32 %v1399_v5, %v1827_v1  ;;  %v358_v16 = vmul.f32 %v1400_v6, %v1827_v1  ;;  %v359_v19 = vmul.f32 %v1403_v11, %v1827_v1  ;;  %v360_v20 = vmul.f32 %v1404_v12, %v1827_v1  ;;  %v1511_v38 = vld [vmem:[%s1822_s27 + $0x18] sm:$0xff]   ;;  %v1512_v52 = vld [vmem:[%s1822_s27 + $0x20] sm:$0xff]   ;;  %v1513_v62 = vld [vmem:[%s1822_s27 + $0x28] sm:$0xff]  }
  0x15   : > { %v341_v17 = vmul.f32 %v1367_v7, %v1827_v1  ;;  %v342_v18 = vmul.f32 %v1368_v8, %v1827_v1  ;;  %v343_v21 = vmul.f32 %v1371_v13, %v1827_v1  ;;  %v344_v22 = vmul.f32 %v1372_v14, %v1827_v1  ;;  %v1522_v8 = vld [vmem:[%s1822_s27 + $0x70] sm:$0xff]  }
  0x16   : > { %v1848_v24 = vadd.f32 %v1836_v10, %v357_v15  ;;  %v1851_v25 = vadd.f32 %v1836_v10, %v358_v16  ;;  %v1861_v29 = vadd.f32 %v1836_v10, %v359_v19  ;;  %v1864_v30 = vadd.f32 %v1836_v10, %v360_v20 }
  0x17   : > { %v1854_v26 = vadd.f32 %v1836_v10, %v341_v17  ;;  %v1857_v27 = vadd.f32 %v1836_v10, %v342_v18  ;;  %v1867_v31 = vadd.f32 %v1836_v10, %v343_v21  ;;  %v1870_v32 = vadd.f32 %v1836_v10, %v344_v22  ;;  %v1514_v22 = vld [vmem:[%s1822_s27 + $0x30] sm:$0xff]  }
  0x18   : > { %v436_v34 = vpack.c.bf16 %v1851_v25, %v1848_v24  ;;  %v1407_v36 = vunpack.c.l.bf16 %v1518_v23  ;;  %v1408_v37 = vunpack.c.h.bf16 %v1518_v23  ;;  %v437_v39 = vpack.c.bf16 %v1864_v30, %v1861_v29 }
  0x19   : > { %v428_v35 = vpack.c.bf16 %v1857_v27, %v1854_v26  ;;  %v429_v40 = vpack.c.bf16 %v1870_v32, %v1867_v31  ;;  %v1375_v41 = vunpack.c.l.bf16 %v1510_v28  ;;  %v1376_v42 = vunpack.c.h.bf16 %v1510_v28 }
  0x1a   : > { %1539 = vmatprep.subr.bf16.mxu0 %v436_v34  ;;  %v361_v43 = vmul.f32 %v1407_v36, %v1827_v1  ;;  %v362_v44 = vmul.f32 %v1408_v37, %v1827_v1  ;;  %v1411_v45 = vunpack.c.l.bf16 %v1519_v33  ;;  %v1412_v46 = vunpack.c.h.bf16 %v1519_v33 }
  0x1b   : > { %1540 = vmatpush3.bf16.msra.mxu0 %v428_v35  ;;  %v345_v47 = vmul.f32 %v1375_v41, %v1827_v1  ;;  %v346_v48 = vmul.f32 %v1376_v42, %v1827_v1  ;;  %v1379_v49 = vunpack.c.l.bf16 %v1511_v38  ;;  %v1380_v50 = vunpack.c.h.bf16 %v1511_v38  ;;  %v1523_v35 = vld [vmem:[%s1822_s27 + $0x78] sm:$0xff]  }
  0x1c   : > { %1541 = vmatprep.subr.bf16.mxu0 %v437_v39  ;;  %v1889_v53 = vadd.f32 %v1836_v10, %v361_v43  ;;  %v1892_v54 = vadd.f32 %v1836_v10, %v362_v44  ;;  %v363_v55 = vmul.f32 %v1411_v45, %v1827_v1  ;;  %v364_v56 = vmul.f32 %v1412_v46, %v1827_v1 }
  0x1d   : > { %v1898_v58 = vadd.f32 %v1836_v10, %v345_v47  ;;  %v1901_v59 = vadd.f32 %v1836_v10, %v346_v48  ;;  %v347_v60 = vmul.f32 %v1379_v49, %v1827_v1  ;;  %v348_v61 = vmul.f32 %v1380_v50, %v1827_v1  ;;  %v1515_v48 = vld [vmem:[%s1822_s27 + $0x38] sm:$0xff]  }
  0x1e   : > { %v438_v63 = vpack.c.bf16 %v1892_v54, %v1889_v53  ;;  %v1909_v0 = vadd.f32 %v1836_v10, %v363_v55  ;;  %v1912_v2 = vadd.f32 %v1836_v10, %v364_v56  ;;  %v1415_v3 = vunpack.c.l.bf16 %v1520_v51 }
  0x1f   : > { %1542 = vmatpush3.bf16.msra.mxu0 %v429_v40  ;;  %v430_v4 = vpack.c.bf16 %v1901_v59, %v1898_v58  ;;  %v1917_v5 = vadd.f32 %v1836_v10, %v347_v60  ;;  %v1920_v6 = vadd.f32 %v1836_v10, %v348_v61  ;;  %v1416_v7 = vunpack.c.h.bf16 %v1520_v51 }
  0x20   : > { %1543 = vmatprep.subr.bf16.mxu0 %v438_v63  ;;  %v439_v9 = vpack.c.bf16 %v1912_v2, %v1909_v0  ;;  %v365_v11 = vmul.f32 %v1415_v3, %v1827_v1  ;;  %v1383_v12 = vunpack.c.l.bf16 %v1512_v52  ;;  %v1384_v13 = vunpack.c.h.bf16 %v1512_v52 }
  0x21   : > { %v431_v14 = vpack.c.bf16 %v1920_v6, %v1917_v5  ;;  %v366_v15 = vmul.f32 %v1416_v7, %v1827_v1  ;;  %v1419_v16 = vunpack.c.l.bf16 %v1521_v57  ;;  %v1420_v17 = vunpack.c.h.bf16 %v1521_v57 }
  0x22   : > { %v1930_v18 = vadd.f32 %v1836_v10, %v365_v11  ;;  %v349_v19 = vmul.f32 %v1383_v12, %v1827_v1  ;;  %v350_v20 = vmul.f32 %v1384_v13, %v1827_v1  ;;  %v1387_v21 = vunpack.c.l.bf16 %v1513_v62 }
  0x23   : > { %1544 = vmatpush3.bf16.msra.mxu0 %v430_v4  ;;  %v1936_v23 = vadd.f32 %v1836_v10, %v366_v15  ;;  %v367_v28 = vmul.f32 %v1419_v16, %v1827_v1  ;;  %v368_v33 = vmul.f32 %v1420_v17, %v1827_v1  ;;  %v1388_v34 = vunpack.c.h.bf16 %v1513_v62 }
  0x24   : > { %1545 = vmatprep.subr.bf16.mxu0 %v439_v9  ;;  %v1942_v36 = vadd.f32 %v1836_v10, %v349_v19  ;;  %v1945_v37 = vadd.f32 %v1836_v10, %v350_v20  ;;  %v351_v38 = vmul.f32 %v1387_v21, %v1827_v1  ;;  %v1423_v39 = vunpack.c.l.bf16 %v1522_v8 }
  0x25   : > { %v440_v40 = vpack.c.bf16 %v1936_v23, %v1930_v18  ;;  %v1951_v41 = vadd.f32 %v1836_v10, %v367_v28  ;;  %v1954_v42 = vadd.f32 %v1836_v10, %v368_v33  ;;  %v352_v43 = vmul.f32 %v1388_v34, %v1827_v1  ;;  %v1702_v33 = vld [vmem:[%s2170_s3 + $0x14] ss:$8 sps:$4 sm:$0xff]   ;;  %v1705_v34 = vld [vmem:[%s2170_s3 + $0x24] ss:$8 sps:$4 sm:$0xff]  }
  0x26   : > { %v432_v44 = vpack.c.bf16 %v1945_v37, %v1942_v36  ;;  %v1960_v45 = vadd.f32 %v1836_v10, %v351_v38  ;;  %v1424_v46 = vunpack.c.h.bf16 %v1522_v8  ;;  %v369_v47 = vmul.f32 %v1423_v39, %v1827_v1  ;;  %v1708_v38 = vld [vmem:[%s2170_s3 + $0x34] ss:$8 sps:$4 sm:$0xff]   ;;  %v1710_v39 = vld [vmem:[%s2170_s3 + $0x30] ss:$8 sps:$4 sm:$0xff]  }
  0x27   : > { %1546 = vmatpush3.bf16.msra.mxu0 %v431_v14  ;;  %v441_v49 = vpack.c.bf16 %v1954_v42, %v1951_v41  ;;  %v1967_v50 = vadd.f32 %v1836_v10, %v352_v43  ;;  %v1391_v51 = vunpack.c.l.bf16 %v1514_v22  ;;  %v1392_v52 = vunpack.c.h.bf16 %v1514_v22  ;;  %v1713_v43 = vld [vmem:[%s2170_s3 + $0x40] ss:$8 sps:$4 sm:$0xff]  }
  0x28   : > { %1547 = vmatprep.subr.bf16.mxu0 %v440_v40  ;;  %v370_v55 = vmul.f32 %v1424_v46, %v1827_v1  ;;  %v1971_v56 = vadd.f32 %v1836_v10, %v369_v47  ;;  %v1427_v57 = vunpack.c.l.bf16 %v1523_v35  ;;  %v1428_v60 = vunpack.c.h.bf16 %v1523_v35  ;;  %v1707_v35 = vld [vmem:[%s2170_s3 + $0x20] ss:$8 sps:$4 sm:$0xff]   ;;  %v1711_v40 = vld [vmem:[%s2170_s3 + $0x44] ss:$8 sps:$4 sm:$0xff]   ;;  %v1716_v46 = vld [vmem:[%s2170_s3 + $0x50] ss:$8 sps:$4 sm:$0xff]  }
  0x29   : > { %v353_v61 = vmul.f32 %v1391_v51, %v1827_v1  ;;  %v354_v62 = vmul.f32 %v1392_v52, %v1827_v1  ;;  %v1395_v63 = vunpack.c.l.bf16 %v1515_v48  ;;  %v1396_v8 = vunpack.c.h.bf16 %v1515_v48  ;;  %v1717_v47 = vld [vmem:[%s2170_s3 + $0x64] ss:$8 sps:$4 sm:$0xff]   ;;  %v1719_v48 = vld [vmem:[%s2170_s3 + $0x60] ss:$8 sps:$4 sm:$0xff]   ;;  %v1722_v51 = vld [vmem:[%s2170_s3 + $0x70] ss:$8 sps:$4 sm:$0xff]  }
  0x2a   : > { %v1976_v3 = vadd.f32 %v1836_v10, %v370_v55  ;;  %v371_v4 = vmul.f32 %v1427_v57, %v1827_v1  ;;  %v372_v7 = vmul.f32 %v1428_v60, %v1827_v1  ;;  %v433_v9 = vpack.c.bf16 %v1967_v50, %v1960_v45  ;;  %v1723_v52 = vld [vmem:[%s2171_s4] sm:$0xff]  }
  0x2b   : > { %1548 = vmatpush3.bf16.msra.mxu0 %v432_v44  ;;  %v1983_v11 = vadd.f32 %v1836_v10, %v353_v61  ;;  %v1986_v12 = vadd.f32 %v1836_v10, %v354_v62  ;;  %v355_v13 = vmul.f32 %v1395_v63, %v1827_v1  ;;  %v356_v17 = vmul.f32 %v1396_v8, %v1827_v1  ;;  %v1699_v1 = vld [vmem:[%s2170_s3] ss:$8 sps:$4 sm:$0xff]   ;;  %v1714_v44 = vld [vmem:[%s2170_s3 + $0x54] ss:$8 sps:$4 sm:$0xff]  }
  0x2c   : > { %1549 = vmatprep.subr.bf16.mxu0 %v441_v49  ;;  %v442_v14 = vpack.c.bf16 %v1976_v3, %v1971_v56  ;;  %v1992_v15 = vadd.f32 %v1836_v10, %v371_v4  ;;  %v1995_v16 = vadd.f32 %v1836_v10, %v372_v7  ;;  %v1720_v49 = vld [vmem:[%s2170_s3 + $0x74] ss:$8 sps:$4 sm:$0xff]   ;;  %1643 = vmatprep.mubr.bf16.mxu1 %v1723_v52 }
  0x2d   : > { %v434_v19 = vpack.c.bf16 %v1986_v12, %v1983_v11  ;;  %v2001_v20 = vadd.f32 %v1836_v10, %v355_v13  ;;  %v2004_v21 = vadd.f32 %v1836_v10, %v356_v17  ;;  %v1704_v10 = vld [vmem:[%s2170_s3 + $0x10] ss:$8 sps:$4 sm:$0xff]  }
  0x2e   : > { %v443_v22 = vpack.c.bf16 %v1995_v16, %v1992_v15 }
  0x2f   : > { %1550 = vmatpush3.bf16.msra.mxu0 %v433_v9  ;;  %v435_v28 = vpack.c.bf16 %v2004_v21, %v2001_v20 }
  0x30   : > { %1551 = vmatprep.subr.bf16.mxu0 %v442_v14 }
  0x33   : > { %1552 = vmatpush3.bf16.msra.mxu0 %v434_v19 }
  0x34   : > { %1553 = vmatprep.subr.bf16.mxu0 %v443_v22 }
  0x37   : > { %1554 = vmatpush3.bf16.msra.mxu0 %v435_v28 }
  0x3a   : > { %557 = vmatmul.mubr.bf16.vlgmr.msra.gmra.mrb[0].mxu0 %v1699_v1 }
  0x3b   : > { %564 = vmatprep.mubr.bf16.mxu0 %v1702_v33 }
  0x42   : > { %565 = vmatmul.mubr.bf16.gmra.mrb[4].mxu0 %v1704_v10 }
  0x43   : > { %572 = vmatprep.mubr.bf16.mxu0 %v1705_v34 }
  0x4a   : > { %573 = vmatmul.mubr.bf16.gmra.mrb[8].mxu0 %v1707_v35 }
  0x4b   : > { %580 = vmatprep.mubr.bf16.mxu0 %v1708_v38 }
  0x52   : > { %581 = vmatmul.mubr.bf16.gmra.mrb[12].mxu0 %v1710_v39 }
  0x53   : > { %588 = vmatprep.mubr.bf16.mxu0 %v1711_v40 }
  0x5a   : > { %589 = vmatmul.mubr.bf16.gmra.mrb[16].mxu0 %v1713_v43 }
  0x5b   : > { %596 = vmatprep.mubr.bf16.mxu0 %v1714_v44 }
  0x62   : > { %597 = vmatmul.mubr.bf16.gmra.mrb[20].mxu0 %v1716_v46 }
  0x63   : > { %604 = vmatprep.mubr.bf16.mxu0 %v1717_v47 }
  0x6a   : > { %605 = vmatmul.mubr.bf16.gmra.mrb[24].mxu0 %v1719_v48 }
  0x6b   : > { %612 = vmatprep.mubr.bf16.mxu0 %v1720_v49 }
  0x72   : > { %613 = vmatmul.mubr.bf16.gmra.mrb[28].mxu0 %v1722_v51 }
 0x10d   : > { %v1555_v55 = vpop.f32.mrb[0].mxu0 }
 0x10e   : > { %v1556_v57 = vpop.f32.mrb[1].mxu0 }
 0x10f   : > { %v1557_v60 = vadd.f32 %v1556_v57, %v1555_v55  ;;  %v1558_v61 = vpop.f32.mrb[2].mxu0 }
 0x110   : > { %v1559_v62 = vpop.f32.mrb[3].mxu0 }
 0x111   : > { %v1560_v63 = vadd.f32 %v1559_v62, %v1558_v61  ;;  %v621_v4 = vmax.f32 %v1557_v60, 0.0 }
 0x113   : > { %v622_v7 = vmax.f32 %v1560_v63, 0.0 }
 0x115   : > { %v1561_v8 = vpop.f32.mrb[4].mxu0  ;;  %v669_v9 = vpack.c.bf16 %v622_v7, %v621_v4 }
 0x116   : > { %v1562_v13 = vpop.f32.mrb[5].mxu0 }
 0x117   : > { %v1563_v14 = vadd.f32 %v1562_v13, %v1561_v8  ;;  %v1564_v17 = vpop.f32.mrb[6].mxu0  ;;  %1627 = vmatprep.subr.bf16.mxu1 %v669_v9 }
 0x118   : > { %v1565_v19 = vpop.f32.mrb[7].mxu0  ;;  %1628 = vmatpush3.bf16.msra.mxu1 %v669_v9 }
 0x119   : > { %v1566_v22 = vadd.f32 %v1565_v19, %v1564_v17  ;;  %v623_v28 = vmax.f32 %v1563_v14, 0.0 }
 0x11b   : > { %v624_v1 = vmax.f32 %v1566_v22, 0.0 }
 0x11d   : > { %v670_v33 = vpack.c.bf16 %v624_v1, %v623_v28  ;;  %v1567_v10 = vpop.f32.mrb[8].mxu0 }
 0x11e   : > { %v1568_v34 = vpop.f32.mrb[9].mxu0 }
 0x11f   : > { %v1569_v35 = vadd.f32 %v1568_v34, %v1567_v10  ;;  %v1570_v38 = vpop.f32.mrb[10].mxu0  ;;  %1629 = vmatprep.subr.bf16.mxu1 %v670_v33 }
 0x120   : > { %v1571_v39 = vpop.f32.mrb[11].mxu0  ;;  %1630 = vmatpush3.bf16.msra.mxu1 %v670_v33 }
 0x121   : > { %v1572_v40 = vadd.f32 %v1571_v39, %v1570_v38  ;;  %v625_v43 = vmax.f32 %v1569_v35, 0.0 }
 0x123   : > { %v626_v44 = vmax.f32 %v1572_v40, 0.0 }
 0x125   : > { %v671_v46 = vpack.c.bf16 %v626_v44, %v625_v43  ;;  %v1573_v47 = vpop.f32.mrb[12].mxu0 }
 0x126   : > { %v1574_v48 = vpop.f32.mrb[13].mxu0 }
 0x127   : > { %v1575_v49 = vadd.f32 %v1574_v48, %v1573_v47  ;;  %v1576_v51 = vpop.f32.mrb[14].mxu0  ;;  %1631 = vmatprep.subr.bf16.mxu1 %v671_v46 }
 0x128   : > { %v1577_v52 = vpop.f32.mrb[15].mxu0  ;;  %1632 = vmatpush3.bf16.msra.mxu1 %v671_v46 }
 0x129   : > { %v1578_v55 = vadd.f32 %v1577_v52, %v1576_v51  ;;  %v627_v57 = vmax.f32 %v1575_v49, 0.0 }
 0x12b   : > { %v628_v60 = vmax.f32 %v1578_v55, 0.0 }
 0x12d   : > { %v672_v61 = vpack.c.bf16 %v628_v60, %v627_v57  ;;  %v1579_v62 = vpop.f32.mrb[16].mxu0 }
 0x12e   : > { %v1580_v63 = vpop.f32.mrb[17].mxu0 }
 0x12f   : > { %v1581_v4 = vadd.f32 %v1580_v63, %v1579_v62  ;;  %v1582_v7 = vpop.f32.mrb[18].mxu0  ;;  %1633 = vmatprep.subr.bf16.mxu1 %v672_v61 }
 0x130   : > { %v1583_v8 = vpop.f32.mrb[19].mxu0  ;;  %1634 = vmatpush3.bf16.msra.mxu1 %v672_v61 }
 0x131   : > { %v1584_v9 = vadd.f32 %v1583_v8, %v1582_v7  ;;  %v629_v13 = vmax.f32 %v1581_v4, 0.0  ;;  %v1724_v8 = vld [vmem:[%s2171_s4 + $0x8] sm:$0xff]  }
 0x133   : > { %v630_v14 = vmax.f32 %v1584_v9, 0.0  ;;  %v1725_v9 = vld [vmem:[%s2171_s4 + $0x10] sm:$0xff]  }
 0x135   : > { %v673_v17 = vpack.c.bf16 %v630_v14, %v629_v13  ;;  %v1585_v19 = vpop.f32.mrb[20].mxu0  ;;  %v1726_v13 = vld [vmem:[%s2171_s4 + $0x18] sm:$0xff]   ;;  %v1727_v14 = vld [vmem:[%s2171_s4 + $0x20] sm:$0xff]  }
 0x136   : > { %v1586_v22 = vpop.f32.mrb[21].mxu0 }
 0x137   : > { %v1587_v28 = vadd.f32 %v1586_v22, %v1585_v19  ;;  %v1588_v1 = vpop.f32.mrb[22].mxu0  ;;  %1635 = vmatprep.subr.bf16.mxu1 %v673_v17  ;;  %v1729_v19 = vld [vmem:[%s2171_s4 + $0x30] sm:$0xff]   ;;  %v1730_v22 = vld [vmem:[%s2171_s4 + $0x38] sm:$0xff]  }
 0x138   : > { %v1589_v33 = vpop.f32.mrb[23].mxu0  ;;  %1636 = vmatpush3.bf16.msra.mxu1 %v673_v17  ;;  %v1728_v17 = vld [vmem:[%s2171_s4 + $0x28] sm:$0xff]  }
 0x139   : > { %v1590_v10 = vadd.f32 %v1589_v33, %v1588_v1  ;;  %v631_v34 = vmax.f32 %v1587_v28, 0.0  ;;  %v1731_v28 = vld [vmem:[%s2171_s4 + $0x40] sm:$0xff]   ;;  %v1732_v1 = vld [vmem:[%s2171_s4 + $0x48] sm:$0xff]   ;;  %v1733_v33 = vld [vmem:[%s2171_s4 + $0x50] sm:$0xff]  }
 0x13b   : > { %v632_v35 = vmax.f32 %v1590_v10, 0.0  ;;  %v1734_v10 = vld [vmem:[%s2171_s4 + $0x58] sm:$0xff]  }
 0x13d   : > { %v674_v38 = vpack.c.bf16 %v632_v35, %v631_v34  ;;  %v1591_v39 = vpop.f32.mrb[24].mxu0  ;;  %v1735_v34 = vld [vmem:[%s2171_s4 + $0x60] sm:$0xff]   ;;  %v1736_v35 = vld [vmem:[%s2171_s4 + $0x68] sm:$0xff]  }
 0x13e   : > { %v1592_v40 = vpop.f32.mrb[25].mxu0 }
 0x13f   : > { %v1593_v43 = vadd.f32 %v1592_v40, %v1591_v39  ;;  %v1594_v44 = vpop.f32.mrb[26].mxu0  ;;  %1637 = vmatprep.subr.bf16.mxu1 %v674_v38  ;;  %v1738_v39 = vld [vmem:[%s2171_s4 + $0x78] sm:$0xff]  }
 0x140   : > { %v1595_v46 = vpop.f32.mrb[27].mxu0  ;;  %1638 = vmatpush3.bf16.msra.mxu1 %v674_v38  ;;  %v1737_v38 = vld [vmem:[%s2171_s4 + $0x70] sm:$0xff]  }
 0x141   : > { %v1596_v47 = vadd.f32 %v1595_v46, %v1594_v44  ;;  %v633_v48 = vmax.f32 %v1593_v43, 0.0 }
 0x143   : > { %v634_v49 = vmax.f32 %v1596_v47, 0.0 }
 0x145   : > { %v675_v51 = vpack.c.bf16 %v634_v49, %v633_v48  ;;  %v1597_v52 = vpop.f32.mrb[28].mxu0 }
 0x146   : > { %v1598_v55 = vpop.f32.mrb[29].mxu0 }
 0x147   : > { %v1599_v57 = vadd.f32 %v1598_v55, %v1597_v52  ;;  %v1600_v60 = vpop.f32.mrb[30].mxu0  ;;  %1639 = vmatprep.subr.bf16.mxu1 %v675_v51 }
 0x148   : > { %v1601_v61 = vpop.f32.mrb[31].mxu0  ;;  %1640 = vmatpush3.bf16.msra.mxu1 %v675_v51 }
 0x149   : > { %v1602_v62 = vadd.f32 %v1601_v61, %v1600_v60  ;;  %v635_v63 = vmax.f32 %v1599_v57, 0.0 }
 0x14b   : > { %v636_v4 = vmax.f32 %v1602_v62, 0.0 }
 0x14d   : > { %v676_v7 = vpack.c.bf16 %v636_v4, %v635_v63 }
 0x14f   : > { %1641 = vmatprep.subr.bf16.mxu1 %v676_v7 }
 0x150   : > { %1642 = vmatpush3.bf16.msra.mxu1 %v676_v7 }
 0x153   : > { %1644 = vmatmul.mubr.bf16.vlgmr.msra.gmra.mrb[0].mxu1 %v1724_v8 }
 0x154   : > { %1647 = vmatprep.mubr.bf16.mxu1 %v1725_v9 }
 0x15b   : > { %1648 = vmatmul.mubr.bf16.gmra.mrb[4].mxu1 %v1726_v13 }
 0x15c   : > { %1651 = vmatprep.mubr.bf16.mxu1 %v1727_v14 }
 0x163   : > { %1652 = vmatmul.mubr.bf16.gmra.mrb[8].mxu1 %v1728_v17 }
 0x164   : > { %1655 = vmatprep.mubr.bf16.mxu1 %v1729_v19 }
 0x16b   : > { %1656 = vmatmul.mubr.bf16.gmra.mrb[12].mxu1 %v1730_v22 }
 0x16c   : > { %1659 = vmatprep.mubr.bf16.mxu1 %v1731_v28 }
 0x173   : > { %1660 = vmatmul.mubr.bf16.gmra.mrb[16].mxu1 %v1732_v1 }
 0x174   : > { %1663 = vmatprep.mubr.bf16.mxu1 %v1733_v33 }
 0x17b   : > { %1664 = vmatmul.mubr.bf16.gmra.mrb[20].mxu1 %v1734_v10 }
 0x17c   : > { %1667 = vmatprep.mubr.bf16.mxu1 %v1735_v34 }
 0x183   : > { %1668 = vmatmul.mubr.bf16.gmra.mrb[24].mxu1 %v1736_v35 }
 0x184   : > { %1671 = vmatprep.mubr.bf16.mxu1 %v1737_v38 }
 0x18b   : > { %1672 = vmatmul.mubr.bf16.gmra.mrb[28].mxu1 %v1738_v39 }
 0x226   : > { %v1645_v40 = vpop.f32.mrb[0].mxu1 }
 0x227   : > { %v936_v43 = vadd.f32 %v1645_v40, %v1867_v31  ;;  %v807_v44 = vpop.f32.mrb[1].mxu1 }
 0x228   : > { %v934_v46 = vadd.f32 %v807_v44, %v1854_v26  ;;  %v1646_v47 = vpop.f32.mrb[2].mxu1 }
 0x229   : > { %v937_v48 = vadd.f32 %v1646_v47, %v1870_v32  ;;  %v810_v49 = vpop.f32.mrb[3].mxu1  ;;  %v968_v52 = vmax.f32 %v936_v43, 0.0 }
 0x22a   : > { %v935_v51 = vadd.f32 %v810_v49, %v1857_v27  ;;  %v966_v57 = vmax.f32 %v934_v46, 0.0 }
 0x22b   : > { %v969_v55 = vmax.f32 %v937_v48, 0.0 }
 0x22c   : > { %v967_v31 = vmax.f32 %v935_v51, 0.0 }
 0x22d   : > { %v1437_v60 = vpack.c.bf16 %v969_v55, %v968_v52 }
 0x22e   : > { %v1432_v26 = vpack.c.bf16 %v967_v31, %v966_v57  ;;  %v1649_v61 = vpop.f32.mrb[4].mxu1 }
 0x22f   : > { %1524 = vst [vmem:[%s2112_s11 + $0x8] sm:$0xff] %v1437_v60   ;;  %v940_v32 = vadd.f32 %v1649_v61, %v1917_v5  ;;  %v823_v27 = vpop.f32.mrb[5].mxu1 }
 0x230   : > { %1433 = vst [vmem:[%s2112_s11] sm:$0xff] %v1432_v26   ;;  %v938_v62 = vadd.f32 %v823_v27, %v1898_v58  ;;  %v1650_v63 = vpop.f32.mrb[6].mxu1 }
 0x231   : > { %v941_v4 = vadd.f32 %v1650_v63, %v1920_v6  ;;  %v826_v7 = vpop.f32.mrb[7].mxu1  ;;  %v972_v9 = vmax.f32 %v940_v32, 0.0 }
 0x232   : > { %v939_v8 = vadd.f32 %v826_v7, %v1901_v59  ;;  %v970_v14 = vmax.f32 %v938_v62, 0.0 }
 0x233   : > { %v973_v13 = vmax.f32 %v941_v4, 0.0 }
 0x234   : > { %v971_v17 = vmax.f32 %v939_v8, 0.0 }
 0x235   : > { %v1447_v19 = vpack.c.bf16 %v973_v13, %v972_v9 }
 0x236   : > { %v1442_v22 = vpack.c.bf16 %v971_v17, %v970_v14  ;;  %v1653_v28 = vpop.f32.mrb[8].mxu1 }
 0x237   : > { %1526 = vst [vmem:[%s2112_s11 + $0x18] sm:$0xff] %v1447_v19   ;;  %v944_v5 = vadd.f32 %v1653_v28, %v1960_v45  ;;  %v839_v1 = vpop.f32.mrb[9].mxu1 }
 0x238   : > { %1525 = vst [vmem:[%s2112_s11 + $0x10] sm:$0xff] %v1442_v22   ;;  %v942_v58 = vadd.f32 %v839_v1, %v1942_v36  ;;  %v1654_v6 = vpop.f32.mrb[10].mxu1 }
 0x239   : > { %v945_v33 = vadd.f32 %v1654_v6, %v1967_v50  ;;  %v842_v59 = vpop.f32.mrb[11].mxu1  ;;  %v976_v34 = vmax.f32 %v944_v5, 0.0 }
 0x23a   : > { %v943_v10 = vadd.f32 %v842_v59, %v1945_v37  ;;  %v974_v38 = vmax.f32 %v942_v58, 0.0 }
 0x23b   : > { %v977_v35 = vmax.f32 %v945_v33, 0.0 }
 0x23c   : > { %v975_v39 = vmax.f32 %v943_v10, 0.0 }
 0x23d   : > { %v1457_v40 = vpack.c.bf16 %v977_v35, %v976_v34 }
 0x23e   : > { %v1452_v43 = vpack.c.bf16 %v975_v39, %v974_v38  ;;  %v1657_v44 = vpop.f32.mrb[12].mxu1 }
 0x23f   : > { %1528 = vst [vmem:[%s2112_s11 + $0x28] sm:$0xff] %v1457_v40   ;;  %v948_v45 = vadd.f32 %v1657_v44, %v2001_v20  ;;  %v855_v46 = vpop.f32.mrb[13].mxu1 }
 0x240   : > { %1527 = vst [vmem:[%s2112_s11 + $0x20] sm:$0xff] %v1452_v43   ;;  %v946_v36 = vadd.f32 %v855_v46, %v1983_v11  ;;  %v1658_v50 = vpop.f32.mrb[14].mxu1 }
 0x241   : > { %v949_v47 = vadd.f32 %v1658_v50, %v2004_v21  ;;  %v858_v37 = vpop.f32.mrb[15].mxu1  ;;  %v980_v49 = vmax.f32 %v948_v45, 0.0 }
 0x242   : > { %v947_v48 = vadd.f32 %v858_v37, %v1986_v12  ;;  %v978_v52 = vmax.f32 %v946_v36, 0.0 }
 0x243   : > { %v981_v51 = vmax.f32 %v949_v47, 0.0 }
 0x244   : > { %v979_v55 = vmax.f32 %v947_v48, 0.0 }
 0x245   : > { %v1467_v57 = vpack.c.bf16 %v981_v51, %v980_v49 }
 0x246   : > { %v1462_v31 = vpack.c.bf16 %v979_v55, %v978_v52  ;;  %v1661_v60 = vpop.f32.mrb[16].mxu1 }
 0x247   : > { %1530 = vst [vmem:[%s2112_s11 + $0x38] sm:$0xff] %v1467_v57   ;;  %v952_v20 = vadd.f32 %v1661_v60, %v1861_v29  ;;  %v871_v26 = vpop.f32.mrb[17].mxu1 }
 0x248   : > { %1529 = vst [vmem:[%s2112_s11 + $0x30] sm:$0xff] %v1462_v31   ;;  %v950_v11 = vadd.f32 %v871_v26, %v1848_v24  ;;  %v1662_v21 = vpop.f32.mrb[18].mxu1 }
 0x249   : > { %v953_v61 = vadd.f32 %v1662_v21, %v1864_v30  ;;  %v874_v12 = vpop.f32.mrb[19].mxu1  ;;  %v984_v27 = vmax.f32 %v952_v20, 0.0 }
 0x24a   : > { %v951_v32 = vadd.f32 %v874_v12, %v1851_v25  ;;  %v982_v63 = vmax.f32 %v950_v11, 0.0 }
 0x24b   : > { %v985_v62 = vmax.f32 %v953_v61, 0.0 }
 0x24c   : > { %v983_v4 = vmax.f32 %v951_v32, 0.0 }
 0x24d   : > { %v1477_v7 = vpack.c.bf16 %v985_v62, %v984_v27 }
 0x24e   : > { %v1472_v8 = vpack.c.bf16 %v983_v4, %v982_v63  ;;  %v1665_v9 = vpop.f32.mrb[20].mxu1 }
 0x24f   : > { %1532 = vst [vmem:[%s2112_s11 + $0x48] sm:$0xff] %v1477_v7   ;;  %v956_v29 = vadd.f32 %v1665_v9, %v1909_v0  ;;  %v887_v13 = vpop.f32.mrb[21].mxu1 }
 0x250   : > { %1531 = vst [vmem:[%s2112_s11 + $0x40] sm:$0xff] %v1472_v8   ;;  %v954_v24 = vadd.f32 %v887_v13, %v1889_v53  ;;  %v1666_v30 = vpop.f32.mrb[22].mxu1 }
 0x251   : > { %v957_v14 = vadd.f32 %v1666_v30, %v1912_v2  ;;  %v890_v25 = vpop.f32.mrb[23].mxu1  ;;  %v988_v19 = vmax.f32 %v956_v29, 0.0 }
 0x252   : > { %v955_v17 = vadd.f32 %v890_v25, %v1892_v54  ;;  %v986_v28 = vmax.f32 %v954_v24, 0.0 }
 0x253   : > { %v989_v22 = vmax.f32 %v957_v14, 0.0 }
 0x254   : > { %v987_v5 = vmax.f32 %v955_v17, 0.0 }
 0x255   : > { %v1487_v1 = vpack.c.bf16 %v989_v22, %v988_v19 }
 0x256   : > { %v1482_v58 = vpack.c.bf16 %v987_v5, %v986_v28  ;;  %v1669_v6 = vpop.f32.mrb[24].mxu1 }
 0x257   : > { %1534 = vst [vmem:[%s2112_s11 + $0x58] sm:$0xff] %v1487_v1   ;;  %v960_v0 = vadd.f32 %v1669_v6, %v1951_v41  ;;  %v903_v33 = vpop.f32.mrb[25].mxu1 }
 0x258   : > { %1533 = vst [vmem:[%s2112_s11 + $0x50] sm:$0xff] %v1482_v58   ;;  %v958_v53 = vadd.f32 %v903_v33, %v1930_v18  ;;  %v1670_v2 = vpop.f32.mrb[26].mxu1 }
 0x259   : > { %v961_v59 = vadd.f32 %v1670_v2, %v1954_v42  ;;  %v906_v54 = vpop.f32.mrb[27].mxu1  ;;  %v992_v34 = vmax.f32 %v960_v0, 0.0 }
 0x25a   : > { %v959_v10 = vadd.f32 %v906_v54, %v1936_v23  ;;  %v990_v38 = vmax.f32 %v958_v53, 0.0 }
 0x25b   : > { %v993_v35 = vmax.f32 %v961_v59, 0.0 }
 0x25c   : > { %v991_v39 = vmax.f32 %v959_v10, 0.0 }
 0x25d   : > { %v1497_v40 = vpack.c.bf16 %v993_v35, %v992_v34 }
 0x25e   : > { %v1492_v43 = vpack.c.bf16 %v991_v39, %v990_v38  ;;  %v1673_v44 = vpop.f32.mrb[28].mxu1 }
 0x25f   : > { %1536 = vst [vmem:[%s2112_s11 + $0x68] sm:$0xff] %v1497_v40   ;;  %v964_v41 = vadd.f32 %v1673_v44, %v1992_v15  ;;  %v919_v45 = vpop.f32.mrb[29].mxu1 }
 0x260   : > { %1535 = vst [vmem:[%s2112_s11 + $0x60] sm:$0xff] %v1492_v43   ;;  %v962_v18 = vadd.f32 %v919_v45, %v1971_v56  ;;  %v1674_v42 = vpop.f32.mrb[30].mxu1 }
 0x261   : > { %v965_v46 = vadd.f32 %v1674_v42, %v1995_v16  ;;  %v922_v23 = vpop.f32.mrb[31].mxu1  ;;  %v996_v50 = vmax.f32 %v964_v41, 0.0 }
 0x262   : > { %v963_v36 = vadd.f32 %v922_v23, %v1976_v3  ;;  %v994_v37 = vmax.f32 %v962_v18, 0.0 }
 0x263   : > { %v997_v47 = vmax.f32 %v965_v46, 0.0 }
 0x264   : > { %v995_v48 = vmax.f32 %v963_v36, 0.0 }
 0x265   : > { %v1507_v49 = vpack.c.bf16 %v997_v47, %v996_v50 }
 0x266   : > { %v1502_v51 = vpack.c.bf16 %v995_v48, %v994_v37 }
 0x267   : > { %1538 = vst [vmem:[%s2112_s11 + $0x78] sm:$0xff] %v1507_v49  }
 0x268   : > { %1537 = vst [vmem:[%s2112_s11 + $0x70] sm:$0xff] %v1502_v51  }
 0x269 PF: > { %s15_s20 = sadd.s32 1, %s1761_s20   ;;  %s2173_s18 = smov %s1757_s19 }
 0x26a   : > { %p12_p5 = scmp.ge.s32.totalorder %s15_s20, 4   ;;  %s2174_s19 = smov %s2176_s21 }
 0x26c   :  { %14 = sbr.rel (!%p12_p5) target bundleno = 2 (0x2), region = 70 }

// kernel: basic_block_forward.3
= control target key start
LH: loop header
LB: loop body
LE: loop exit
PB: predicated region body
PF: predicated region fallthrough
CT: control target
= control target key end

     0   :  { %s7379_s12 = smov 0   ;;  %s7381_s13 = smov 0   ;;  %s9208_s0 = inlined_call_operand.vmem [shape: bf16[2,1,18,18,128], index: 0, kind: input, shape index: {}]   ;;  %s9209_s1 = inlined_call_operand.vmem [shape: bf16[9,128,128], index: 1, kind: input, shape index: {}]   ;;  %s9210_s2 = inlined_call_operand.vmem [shape: bf16[2,16,16,128], index: 2, kind: output, shape index: {0}]   ;;  %s9211_s3 = inlined_call_operand.vmem [shape: f32[2,1,2,128], index: 3, kind: output, shape index: {1}]  }
   0x1   :  { %s7383_s14 = smov 0  }
   0x2 LB: > { %s26_s15 = sadd.s32 1, %s7353_s13  ;;  %p5449_p0 = scmp.ge.s32.totalorder %s7357_s14, 1  ;;  %s7357_s14 = sphi %s7383_s14, %s14_s14   ;;  %s7353_s13 = sphi %s7381_s13, %s9279_s13   ;;  %s7349_s12 = sphi %s7379_s12, %s9278_s12  }
   0x3   : > { %p28_p1 = scmp.ge.s32.totalorder %s26_s15, 2  ;;  %p162_p2 = scmp.lt.s32.totalorder %s7357_s14, 3 }
   0x5   : > { %s9281_s15 = smov (%p28_p1, %s26_s15), 0  ;;  %p163_p3 = pnand %p5449_p0, %p162_p2 }
   0x7   : > { %166 = sbr.rel (%p163_p3) target bundleno = 605 (0x25d), region = 28 }
   0xe   : > { %v7145_v0 = vld [vmem:[%s9209_s1 + $0x40] sm:$0xff]   ;;  %p202_p4 = scmp.lt.s32.totalorder %s7349_s12, 1  ;;  %v7147_v2 = vld [vmem:[%s9209_s1 + $0x48] sm:$0xff]   ;;  %v7149_v4 = vld [vmem:[%s9209_s1 + $0x50] sm:$0xff]   ;;  %vm294_vm0 = vsmask.f32 3328 }
   0xf   : > { %v7146_v1 = vld [vmem:[%s9209_s1 + $0x100] sm:$0xff]   ;;  %6416 = vmatprep.subr.bf16.mxu1 %v7145_v0  ;;  %v7148_v3 = vld [vmem:[%s9209_s1 + $0x108] sm:$0xff]   ;;  %v7150_v5 = vld [vmem:[%s9209_s1 + $0x110] sm:$0xff]   ;;  %vm295_vm1 = vsmask.f32 7440  ;;  %vm1324_vm3 = vcmask 1042432  }
  0x10   : > { %6608 = vmatprep.subr.bf16.mxu0 %v7146_v1  ;;  %6417 = vmatpush3.bf16.msra.mxu1 %v7145_v0  ;;  %s9283_s12 = smov (!%p202_p4, %s7349_s12), 1  ;;  %v7151_v6 = vld [vmem:[%s9209_s1 + $0x58] sm:$0xff]   ;;  %v7153_v8 = vld [vmem:[%s9209_s1 + $0x60] sm:$0xff]   ;;  %v7155_v10 = vld [vmem:[%s9209_s1 + $0x68] sm:$0xff]   ;;  %vm1325_vm4 = vcmask 1046532   ;;  %vm5145_vm6 = vcmask 1040384  }
  0x11   : > { %6609 = vmatpush3.bf16.msra.mxu0 %v7146_v1  ;;  %6418 = vmatprep.subr.bf16.mxu1 %v7147_v2  ;;  %v7152_v7 = vld [vmem:[%s9209_s1 + $0x118] sm:$0xff]   ;;  %s7120_s5 = smul.u32 216, %s9283_s12  ;;  %v7154_v9 = vld [vmem:[%s9209_s1 + $0x120] sm:$0xff]   ;;  %v7156_v11 = vld [vmem:[%s9209_s1 + $0x128] sm:$0xff]   ;;  %s5453_s28 = sshll.u32 %s9283_s12, 1 }
  0x12   : > { %6610 = vmatprep.subr.bf16.mxu0 %v7148_v3  ;;  %v7157_v25 = vld [vmem:[%s9209_s1 + $0x70] sm:$0xff]   ;;  %v7159_v36 = vld [vmem:[%s9209_s1 + $0x78] sm:$0xff]   ;;  %vm7465_vm2 = vmor %vm294_vm0, %vm295_vm1  ;;  %s228_s4 = scalar_lea.vmem %s9211_s3, %s5453_s28 }
  0x13   : > { %s7433_s16 = scalar_lea.vmem %s9208_s0, %s7120_s5  ;;  %v7158_v30 = vld [vmem:[%s9209_s1 + $0x130] sm:$0xff]   ;;  %v7160_v51 = vld [vmem:[%s9209_s1 + $0x138] sm:$0xff]   ;;  %vm7711_vm5 = vmor %vm1324_vm3, %vm1325_vm4 }
  0x14   : > { %6419 = vmatpush3.bf16.msra.mxu1 %v7147_v2  ;;  %v230_v12 = vld [vmem:[%s7433_s16] sm:$0xf]  ;;  %v231_v13 = vld [vmem:[%s7433_s16 + $0x4] sm:$0xf]  ;;  %v278_v14 = vld [vmem:[%s7433_s16 + $0x8] sm:$0x1] }
  0x15   : > { %6611 = vmatpush3.bf16.msra.mxu0 %v7148_v3  ;;  %6420 = vmatprep.subr.bf16.mxu1 %v7149_v4  ;;  %v298_v15 = vshrl.u32 %v230_v12, 16  ;;  %v301_v16 = vshll.u32 %v230_v12, 16  ;;  %v307_v17 = vshll.u32 %v231_v13, 16  ;;  %v311_v18 = vshrl.u32 %v231_v13, 16  ;;  %v5646_v20 = vld [vmem:[%s7433_s16 + $0xc] sm:$0xf] }
  0x16   : > { %6612 = vmatprep.subr.bf16.mxu0 %v7150_v5  ;;  %v317_v19 = vshll.u32 %v278_v14, 16  ;;  %v7446_v23 = vld [vmem:[%s7433_s16 + $0x10] sm:$0xf]  ;;  %v7449_v24 = vld [vmem:[%s7433_s16 + $0x14] sm:$0x1]  ;;  %v2197_v29 = vshrl.u32 %v5646_v20, 16 }
  0x17   : > { %v300_v21 = vrot.slane %v298_v15, 4  ;;  %v303_v22 = vrot.slane %v301_v16, 5  ;;  %v309_v26 = vrot.slane %v307_v17, 5  ;;  %v313_v27 = vrot.slane %v311_v18, 4  ;;  %v232_v35 = vld [vmem:[%s7433_s16 + $0xc] sm:$0xf] }
  0x18   : > { %6421 = vmatpush3.bf16.msra.mxu1 %v7149_v4  ;;  %v319_v28 = vrot.slane %v317_v19, 5  ;;  %v2200_v32 = vshll.u32 %v5646_v20, 16  ;;  %v2206_v33 = vshll.u32 %v7446_v23, 16  ;;  %v2210_v34 = vshrl.u32 %v7446_v23, 16  ;;  %v233_v42 = vld [vmem:[%s7433_s16 + $0x10] sm:$0xf] }
  0x19   : > { %6613 = vmatpush3.bf16.msra.mxu0 %v7150_v5  ;;  %6422 = vmatprep.subr.bf16.mxu1 %v7151_v6  ;;  %v304_v31 = vor.u32 %v303_v22, %v300_v21  ;;  %v314_v38 = vor.u32 %v313_v27, %v309_v26  ;;  %v2199_v39 = vrot.slane %v2197_v29, 4  ;;  %v2216_v40 = vshll.u32 %v7449_v24, 16  ;;  %v279_v55 = vld [vmem:[%s7433_s16 + $0x14] sm:$0x1]  ;;  %v5649_v57 = vld [vmem:[%s7433_s16 + $0x18] sm:$0xf] }
  0x1a   : > { %6614 = vmatprep.subr.bf16.mxu0 %v7152_v7  ;;  %v2971_v41 = vrot.slane %v7449_v24, 5  ;;  %v2202_v44 = vrot.slane %v2200_v32, 5  ;;  %v2208_v45 = vrot.slane %v2206_v33, 5  ;;  %v2212_v46 = vrot.slane %v2210_v34, 4  ;;  %v7482_v62 = vld [vmem:[%s7433_s16 + $0x1c] sm:$0xf] }
  0x1b   : > { %v305_v43 = vrot.slane %v304_v31, 4  ;;  %v315_v47 = vrot.slane %v314_v38, 4  ;;  %v2218_v48 = vrot.slane %v2216_v40, 5  ;;  %v322_v49 = vshrl.u32 %v232_v35, 16  ;;  %v7161_v3 = vld [vmem:[%s9209_s1] sm:$0xff]  }
  0x1c   : > { %6423 = vmatpush3.bf16.msra.mxu1 %v7151_v6  ;;  %v325_v50 = vshll.u32 %v232_v35, 16  ;;  %v2203_v53 = vor.u32 %v2202_v44, %v2199_v39  ;;  %v2213_v54 = vor.u32 %v2212_v46, %v2208_v45  ;;  %v331_v56 = vshll.u32 %v233_v42, 16  ;;  %v7490_v4 = vld [vmem:[%s9209_s1 + $0x140] sm:$0xff]   ;;  %v234_v21 = vld [vmem:[%s7433_s16 + $0x18] sm:$0xf]  ;;  %v7164_v46 = vld [vmem:[%s9209_s1 + $0x8] sm:$0xff]  }
  0x1d   : > { %6615 = vmatpush3.bf16.msra.mxu0 %v7152_v7  ;;  %6424 = vmatprep.subr.bf16.mxu1 %v7153_v8  ;;  %v310_v52 = vsel %vm7465_vm2, %v305_v43, %v309_v26  ;;  %v320_v58 = vsel %vm7465_vm2, %v315_v47, %v319_v28  ;;  %v324_v59 = vrot.slane %v322_v49, 4  ;;  %v335_v61 = vshrl.u32 %v233_v42, 16  ;;  %v235_v28 = vld [vmem:[%s7433_s16 + $0x1c] sm:$0xf]  ;;  %v280_v33 = vld [vmem:[%s7433_s16 + $0x20] sm:$0x1] }
  0x1e   : > { %6616 = vmatprep.subr.bf16.mxu0 %v7154_v9  ;;  %v327_v60 = vrot.slane %v325_v50, 5  ;;  %v5470_v63 = vcombine.low %v310_v52, %v320_v58  ;;  %v2204_v0 = vrot.slane %v2203_v53, 4  ;;  %v2214_v1 = vrot.slane %v2213_v54, 4  ;;  %v5652_v39 = vld [vmem:[%s7433_s16 + $0x24] sm:$0xf] }
  0x1f   : > { %v333_v2 = vrot.slane %v331_v56, 5  ;;  %v337_v6 = vrot.slane %v335_v61, 4  ;;  %v341_v7 = vshll.u32 %v279_v55, 16  ;;  %v2224_v12 = vshll.u32 %v5649_v57, 16  ;;  %v236_v52 = vld [vmem:[%s7433_s16 + $0x24] sm:$0xf] }
  0x20   : > { %6425 = vmatpush3.bf16.msra.mxu1 %v7153_v8  ;;  %v328_v5 = vor.u32 %v327_v60, %v324_v59  ;;  %v7493_v8 = vld [vmem:[%s7433_s16 + $0x20] sm:$0x1]  ;;  %6432 = vmatprep.mubr.bf16.mxu1 %v5470_v63  ;;  %v2230_v19 = vshll.u32 %v7482_v62, 16  ;;  %v2234_v20 = vshrl.u32 %v7482_v62, 16  ;;  %v2975_v27 = vrot.slane %v7482_v62, 5  ;;  %v7163_v63 = vld [vmem:[%s9209_s1 + $0x148] sm:$0xff]  }
  0x21   : > { %6617 = vmatpush3.bf16.msra.mxu0 %v7154_v9  ;;  %6426 = vmatprep.subr.bf16.mxu1 %v7155_v10  ;;  %v2209_v9 = vsel %vm7465_vm2, %v2204_v0, %v2208_v45  ;;  %v338_v15 = vor.u32 %v337_v6, %v333_v2  ;;  %v343_v16 = vrot.slane %v341_v7, 5  ;;  %v2226_v18 = vrot.slane %v2224_v12, 5  ;;  %v7518_v45 = vld [vmem:[%s7433_s16 + $0x28] sm:$0xf] }
  0x22   : > { %6618 = vmatprep.subr.bf16.mxu0 %v7156_v11  ;;  %v329_v14 = vrot.slane %v328_v5, 4  ;;  %v2240_v26 = vshll.u32 %v7493_v8, 16  ;;  %v2236_v31 = vrot.slane %v2234_v20, 4  ;;  %v2978_v32 = vrot.slane %v7493_v8, 5  ;;  %v237_v5 = vld [vmem:[%s7433_s16 + $0x28] sm:$0xf] }
  0x23   : > { %v346_v38 = vshrl.u32 %v234_v21, 16  ;;  %v349_v44 = vshll.u32 %v234_v21, 16  ;;  %v359_v49 = vshrl.u32 %v235_v28, 16  ;;  %v365_v50 = vshll.u32 %v280_v33, 16  ;;  %v7549_v33 = vld [vmem:[%s7433_s16 + $0x34] sm:$0xf] }
  0x24   : > { %6427 = vmatpush3.bf16.msra.mxu1 %v7155_v10  ;;  %v2219_v10 = vsel %vm7465_vm2, %v2214_v1, %v2218_v48  ;;  %v334_v22 = vsel %vm7465_vm2, %v329_v14, %v333_v2  ;;  %v2242_v35 = vrot.slane %v2240_v26, 5  ;;  %v355_v48 = vshll.u32 %v235_v28, 16 }
  0x25   : > { %6619 = vmatpush3.bf16.msra.mxu0 %v7156_v11  ;;  %6428 = vmatprep.subr.bf16.mxu1 %v7157_v25  ;;  %v2221_v11 = vshrl.u32 %v5649_v57, 16  ;;  %v5710_v13 = vcombine.low %v2209_v9, %v2219_v10  ;;  %v348_v47 = vrot.slane %v346_v38, 4  ;;  %v351_v55 = vrot.slane %v349_v44, 5 }
  0x26   : > { %6620 = vmatprep.subr.bf16.mxu0 %v7158_v30  ;;  %v2245_v56 = vshrl.u32 %v5652_v39, 16  ;;  %v357_v57 = vrot.slane %v355_v48, 5  ;;  %v361_v58 = vrot.slane %v359_v49, 4  ;;  %v367_v59 = vrot.slane %v365_v50, 5  ;;  %v7166_v48 = vld [vmem:[%s9209_s1 + $0x158] sm:$0xff]  }
  0x27   : > { %v2223_v17 = vrot.slane %v2221_v11, 4  ;;  %6624 = vmatprep.mubr.bf16.mxu0 %v5710_v13  ;;  %v2248_v60 = vshll.u32 %v5652_v39, 16  ;;  %v352_v0 = vor.u32 %v351_v55, %v348_v47  ;;  %v2254_v2 = vshll.u32 %v7518_v45, 16  ;;  %v281_v11 = vld [vmem:[%s7433_s16 + $0x2c] sm:$0x1] }
  0x28   : > { %6429 = vmatpush3.bf16.msra.mxu1 %v7157_v25  ;;  %v339_v25 = vrot.slane %v338_v15, 4  ;;  %v2247_v1 = vrot.slane %v2245_v56, 4  ;;  %v362_v7 = vor.u32 %v361_v58, %v357_v57  ;;  %v2258_v10 = vshrl.u32 %v7518_v45, 16 }
  0x29   : > { %6621 = vmatpush3.bf16.msra.mxu0 %v7158_v30  ;;  %6430 = vmatprep.subr.bf16.mxu1 %v7159_v36  ;;  %v2227_v29 = vor.u32 %v2226_v18, %v2223_v17  ;;  %v2232_v30 = vrot.slane %v2230_v19, 5  ;;  %v2250_v9 = vrot.slane %v2248_v60, 5  ;;  %v353_v12 = vrot.slane %v352_v0, 4  ;;  %v7173_v60 = vld [vmem:[%s9209_s1 + $0x20] sm:$0xff]  }
  0x2a   : > { %6622 = vmatprep.subr.bf16.mxu0 %v7160_v51  ;;  %v344_v34 = vsel %vm7465_vm2, %v339_v25, %v343_v16  ;;  %v2256_v13 = vrot.slane %v2254_v2, 5  ;;  %v370_v15 = vshrl.u32 %v236_v52, 16  ;;  %v5655_v16 = vld [vmem:[%s7433_s16 + $0x30] sm:$0xf]  ;;  %v363_v17 = vrot.slane %v362_v7, 4 }
  0x2b   : > { %v5471_v40 = vcombine.low %v334_v22, %v344_v34  ;;  %v2228_v42 = vrot.slane %v2227_v29, 4  ;;  %v2237_v43 = vor.u32 %v2236_v31, %v2232_v30  ;;  %v2251_v18 = vor.u32 %v2250_v9, %v2247_v1  ;;  %v7170_v34 = vld [vmem:[%s9209_s1 + $0x18] sm:$0xff]  }
  0x2c   : > { %6431 = vmatpush3.bf16.msra.mxu1 %v7159_v36  ;;  %v7514_v36 = vrot.slane %v2975_v27, 4  ;;  %v2260_v19 = vrot.slane %v2258_v10, 4  ;;  %v373_v20 = vshll.u32 %v236_v52, 16  ;;  %v358_v21 = vsel %vm7465_vm2, %v353_v12, %v357_v57  ;;  %v282_v2 = vld [vmem:[%s7433_s16 + $0x38] sm:$0x1] }
  0x2d   : > { %6623 = vmatpush3.bf16.msra.mxu0 %v7160_v51  ;;  %6464 = vmatprep.subr.bf16.mxu1 %v7161_v3  ;;  %v7524_v51 = vld [vmem:[%s7433_s16 + $0x2c] sm:$0x1]  ;;  %v2233_v53 = vsel %vm7465_vm2, %v2228_v42, %v2232_v30  ;;  %v2238_v54 = vrot.slane %v2237_v43, 4  ;;  %v372_v25 = vrot.slane %v370_v15, 4  ;;  %v379_v26 = vshll.u32 %v237_v5, 16 }
  0x2e   : > { %6656 = vmatprep.subr.bf16.mxu0 %v7490_v4  ;;  %v2264_v14 = vshll.u32 %v7524_v51, 16  ;;  %v368_v28 = vsel %vm7465_vm2, %v363_v17, %v367_v59  ;;  %v2252_v29 = vrot.slane %v2251_v18, 4  ;;  %v2261_v30 = vor.u32 %v2260_v19, %v2256_v13  ;;  %v239_v59 = vld [vmem:[%s7433_s16 + $0x34] sm:$0xf]  ;;  %v5658_v9 = vld [vmem:[%s7433_s16 + $0x3c] sm:$0xf] }
  0x2f   : > { %6433 = vmatmul.mubr.bf16.vlgmr.msra.gmra.mrb[0].mxu1 %v5471_v40  ;;  %v2243_v61 = vsel %vm7465_vm2, %v2238_v54, %v2242_v35  ;;  %v375_v31 = vrot.slane %v373_v20, 5  ;;  %v5472_v35 = vcombine.low %v358_v21, %v368_v28  ;;  %v381_v38 = vrot.slane %v379_v26, 5  ;;  %v238_v54 = vld [vmem:[%s7433_s16 + $0x30] sm:$0xf]  ;;  %v7583_v19 = vld [vmem:[%s7433_s16 + $0x40] sm:$0xf] }
  0x30   : > { %6465 = vmatpush3.bf16.msra.mxu1 %v7161_v3  ;;  %v7167_v3 = vld [vmem:[%s9209_s1 + $0x10] sm:$0xff]   ;;  %v5711_v6 = vcombine.low %v2233_v53, %v2243_v61  ;;  %v2266_v22 = vrot.slane %v2264_v14, 5  ;;  %v383_v39 = vshrl.u32 %v237_v5, 16  ;;  %v389_v40 = vshll.u32 %v281_v11, 16  ;;  %v7175_v14 = vld [vmem:[%s9209_s1 + $0x28] sm:$0xff]   ;;  %v7168_v20 = vld [vmem:[%s9209_s1 + $0x160] sm:$0xff]  }
  0x31   : > { %6466 = vmatprep.subr.bf16.mxu1 %v7164_v46  ;;  %v2257_v42 = vsel %vm7465_vm2, %v2252_v29, %v2256_v13  ;;  %v2262_v43 = vrot.slane %v2261_v30, 4  ;;  %v376_v44 = vor.u32 %v375_v31, %v372_v25  ;;  %v2269_v47 = vshrl.u32 %v5655_v16, 16  ;;  %6436 = vmatprep.mubr.bf16.mxu1 %v5472_v35  ;;  %v7591_v28 = vld [vmem:[%s7433_s16 + $0x44] sm:$0x1]  ;;  %v7177_v35 = vld [vmem:[%s9209_s1 + $0x30] sm:$0xff]  }
  0x32   : > { %6625 = vmatmul.mubr.bf16.vlgmr.msra.gmra.mrb[0].mxu0 %v5711_v6  ;;  %v385_v49 = vrot.slane %v383_v39, 4  ;;  %v391_v50 = vrot.slane %v389_v40, 5  ;;  %v2272_v52 = vshll.u32 %v5655_v16, 16  ;;  %v2278_v53 = vshll.u32 %v7549_v33, 16 }
  0x33   : > { %6657 = vmatpush3.bf16.msra.mxu0 %v7490_v4  ;;  %v7165_v4 = vld [vmem:[%s9209_s1 + $0x150] sm:$0xff]   ;;  %v2267_v55 = vsel %vm7465_vm2, %v2262_v43, %v2266_v22  ;;  %v377_v56 = vrot.slane %v376_v44, 4  ;;  %v2271_v57 = vrot.slane %v2269_v47, 4  ;;  %v2282_v58 = vshrl.u32 %v7549_v33, 16 }
  0x34   : > { %6467 = vmatpush3.bf16.msra.mxu1 %v7164_v46  ;;  %6658 = vmatprep.subr.bf16.mxu0 %v7163_v63  ;;  %v7560_v46 = vld [vmem:[%s7433_s16 + $0x38] sm:$0x1]  ;;  %v5712_v61 = vcombine.low %v2257_v42, %v2267_v55  ;;  %v2274_v0 = vrot.slane %v2272_v52, 5  ;;  %v2280_v1 = vrot.slane %v2278_v53, 5  ;;  %v394_v7 = vshrl.u32 %v238_v54, 16 }
  0x35   : > { %6468 = vmatprep.subr.bf16.mxu1 %v7167_v3  ;;  %v382_v5 = vsel %vm7465_vm2, %v377_v56, %v381_v38  ;;  %v2288_v6 = vshll.u32 %v7560_v46, 16  ;;  %v397_v12 = vshll.u32 %v238_v54, 16  ;;  %v403_v13 = vshll.u32 %v239_v59, 16  ;;  %v241_v55 = vld [vmem:[%s7433_s16 + $0x40] sm:$0xf] }
  0x36   : > { %6628 = vmatprep.mubr.bf16.mxu0 %v5712_v61  ;;  %v2275_v11 = vor.u32 %v2274_v0, %v2271_v57  ;;  %v396_v17 = vrot.slane %v394_v7, 4  ;;  %v407_v18 = vshrl.u32 %v239_v59, 16  ;;  %v2293_v40 = vshrl.u32 %v5658_v9, 16 }
  0x37   : > { %6659 = vmatpush3.bf16.msra.mxu0 %v7163_v63  ;;  %v386_v63 = vor.u32 %v385_v49, %v381_v38  ;;  %v2290_v16 = vrot.slane %v2288_v6, 5  ;;  %v399_v25 = vrot.slane %v397_v12, 5  ;;  %v405_v26 = vrot.slane %v403_v13, 5 }
  0x38   : > { %6469 = vmatpush3.bf16.msra.mxu1 %v7167_v3  ;;  %6660 = vmatprep.subr.bf16.mxu0 %v7165_v4  ;;  %v2284_v3 = vrot.slane %v2282_v58, 4  ;;  %v2276_v22 = vrot.slane %v2275_v11, 4  ;;  %v409_v31 = vrot.slane %v407_v18, 4  ;;  %v2296_v42 = vshll.u32 %v5658_v9, 16  ;;  %v5661_v9 = vld [vmem:[%s7433_s16 + $0x48] sm:$0xf] }
  0x39   : > { %6470 = vmatprep.subr.bf16.mxu1 %v7170_v34  ;;  %v387_v10 = vrot.slane %v386_v63, 4  ;;  %v400_v39 = vor.u32 %v399_v25, %v396_v17  ;;  %v2302_v49 = vshll.u32 %v7583_v19, 16  ;;  %v2295_v53 = vrot.slane %v2293_v40, 4  ;;  %v283_v63 = vld [vmem:[%s7433_s16 + $0x44] sm:$0x1] }
  0x3a   : > { %v2285_v15 = vor.u32 %v2284_v3, %v2280_v1  ;;  %v2281_v38 = vsel %vm7465_vm2, %v2276_v22, %v2280_v1  ;;  %v410_v44 = vor.u32 %v409_v31, %v405_v26  ;;  %v2298_v54 = vrot.slane %v2296_v42, 5  ;;  %v7624_v22 = vld [vmem:[%s7433_s16 + $0x50] sm:$0x1]  ;;  %v7172_v31 = vld [vmem:[%s9209_s1 + $0x178] sm:$0xff]  }
  0x3b   : > { %6661 = vmatpush3.bf16.msra.mxu0 %v7165_v4  ;;  %v392_v21 = vsel %vm7465_vm2, %v387_v10, %v391_v50  ;;  %v413_v4 = vshll.u32 %v282_v2, 16  ;;  %v401_v52 = vrot.slane %v400_v39, 4  ;;  %v2304_v57 = vrot.slane %v2302_v49, 5  ;;  %v7179_v2 = vld [vmem:[%s9209_s1 + $0x38] sm:$0xff]  }
  0x3c   : > { %6471 = vmatpush3.bf16.msra.mxu1 %v7170_v34  ;;  %6662 = vmatprep.subr.bf16.mxu0 %v7166_v48  ;;  %v5473_v29 = vcombine.low %v382_v5, %v392_v21  ;;  %v2286_v30 = vrot.slane %v2285_v15, 4  ;;  %v240_v34 = vld [vmem:[%s7433_s16 + $0x3c] sm:$0xf]  ;;  %v411_v56 = vrot.slane %v410_v44, 4  ;;  %v2306_v58 = vshrl.u32 %v7583_v19, 16  ;;  %v7171_v15 = vld [vmem:[%s9209_s1 + $0x170] sm:$0xff]  }
  0x3d   : > { %6472 = vmatprep.subr.bf16.mxu1 %v7173_v60  ;;  %v415_v47 = vrot.slane %v413_v4, 5  ;;  %v2312_v59 = vshll.u32 %v7591_v28, 16  ;;  %v2299_v61 = vor.u32 %v2298_v54, %v2295_v53  ;;  %v418_v0 = vshrl.u32 %v240_v34, 16  ;;  %v7635_v4 = vld [vmem:[%s9209_s1 + $0x80] sm:$0xff]   ;;  %v243_v53 = vld [vmem:[%s7433_s16 + $0x4c] sm:$0xf] }
  0x3e   : > { %6437 = vmatmul.mubr.bf16.gmra.mrb[4].mxu1 %v5473_v29  ;;  %v2291_v43 = vsel %vm7465_vm2, %v2286_v30, %v2290_v16  ;;  %v421_v1 = vshll.u32 %v240_v34, 16  ;;  %v2308_v3 = vrot.slane %v2306_v58, 4  ;;  %v427_v7 = vshll.u32 %v241_v55, 16  ;;  %v242_v30 = vld [vmem:[%s7433_s16 + $0x48] sm:$0xf] }
  0x3f   : > { %6663 = vmatpush3.bf16.msra.mxu0 %v7166_v48  ;;  %v5713_v50 = vcombine.low %v2281_v38, %v2291_v43  ;;  %v7169_v48 = vld [vmem:[%s9209_s1 + $0x168] sm:$0xff]   ;;  %v416_v5 = vsel %vm7465_vm2, %v411_v56, %v415_v47  ;;  %v2314_v6 = vrot.slane %v2312_v59, 5  ;;  %v2300_v11 = vrot.slane %v2299_v61, 4  ;;  %v284_v54 = vld [vmem:[%s7433_s16 + $0x50] sm:$0x1] }
  0x40   : > { %6473 = vmatpush3.bf16.msra.mxu1 %v7173_v60  ;;  %6664 = vmatprep.subr.bf16.mxu0 %v7168_v20  ;;  %v406_v60 = vsel %vm7465_vm2, %v401_v52, %v405_v26  ;;  %v420_v12 = vrot.slane %v418_v0, 4  ;;  %v423_v13 = vrot.slane %v421_v1, 5  ;;  %v2309_v16 = vor.u32 %v2308_v3, %v2304_v57  ;;  %v5664_v58 = vld [vmem:[%s7433_s16 + $0x54] sm:$0xf]  ;;  %v7649_v0 = vld [vmem:[%s7433_s16 + $0x58] sm:$0xf] }
  0x41   : > { %6474 = vmatprep.subr.bf16.mxu1 %v7175_v14  ;;  %6629 = vmatmul.mubr.bf16.gmra.mrb[4].mxu0 %v5713_v50  ;;  %v5474_v10 = vcombine.low %v406_v60, %v416_v5  ;;  %v429_v17 = vrot.slane %v427_v7, 5  ;;  %v431_v18 = vshrl.u32 %v241_v55, 16  ;;  %v437_v21 = vshll.u32 %v283_v63, 16 }
  0x42   : > { %v424_v25 = vor.u32 %v423_v13, %v420_v12  ;;  %v2317_v26 = vshrl.u32 %v5661_v9, 16  ;;  %v2320_v29 = vshll.u32 %v5661_v9, 16  ;;  %v2310_v34 = vrot.slane %v2309_v16, 4 }
  0x43   : > { %6665 = vmatpush3.bf16.msra.mxu0 %v7168_v20  ;;  %6440 = vmatprep.mubr.bf16.mxu1 %v5474_v10  ;;  %v2305_v20 = vsel %vm7465_vm2, %v2300_v11, %v2304_v57  ;;  %v439_v38 = vrot.slane %v437_v21, 5  ;;  %v2336_v52 = vshll.u32 %v7624_v22, 16  ;;  %v442_v61 = vshrl.u32 %v242_v30, 16 }
  0x44   : > { %6475 = vmatpush3.bf16.msra.mxu1 %v7175_v14  ;;  %v7618_v14 = vld [vmem:[%s7433_s16 + $0x4c] sm:$0xf]  ;;  %6666 = vmatprep.subr.bf16.mxu0 %v7169_v48  ;;  %v425_v40 = vrot.slane %v424_v25, 4  ;;  %v2319_v42 = vrot.slane %v2317_v26, 4  ;;  %v2322_v43 = vrot.slane %v2320_v29, 5  ;;  %v2315_v47 = vsel %vm7465_vm2, %v2310_v34, %v2314_v6  ;;  %v7654_v6 = vld [vmem:[%s9209_s1 + $0x180] sm:$0xff]  }
  0x45   : > { %6476 = vmatprep.subr.bf16.mxu1 %v7177_v35  ;;  %v2326_v39 = vshll.u32 %v7618_v14, 16  ;;  %v2330_v44 = vshrl.u32 %v7618_v14, 16  ;;  %v5714_v55 = vcombine.low %v2305_v20, %v2315_v47  ;;  %v2338_v60 = vrot.slane %v2336_v52, 5  ;;  %v7661_v20 = vld [vmem:[%s7433_s16 + $0x5c] sm:$0x1] }
  0x46   : > { %v2323_v56 = vor.u32 %v2322_v43, %v2319_v42  ;;  %v445_v63 = vshll.u32 %v242_v30, 16  ;;  %v455_v3 = vshrl.u32 %v243_v53, 16  ;;  %v444_v9 = vrot.slane %v442_v61, 4  ;;  %v245_v43 = vld [vmem:[%s7433_s16 + $0x58] sm:$0xf] }
  0x47   : > { %6667 = vmatpush3.bf16.msra.mxu0 %v7169_v48  ;;  %v2328_v50 = vrot.slane %v2326_v39, 5  ;;  %v430_v48 = vsel %vm7465_vm2, %v425_v40, %v429_v17  ;;  %v2332_v57 = vrot.slane %v2330_v44, 4  ;;  %6632 = vmatprep.mubr.bf16.mxu0 %v5714_v55  ;;  %v461_v11 = vshll.u32 %v284_v54, 16  ;;  %v5667_v52 = vld [vmem:[%s7433_s16 + $0x60] sm:$0xf] }
  0x48   : > { %6477 = vmatpush3.bf16.msra.mxu1 %v7177_v35  ;;  %v433_v35 = vrot.slane %v431_v18, 4  ;;  %6668 = vmatprep.subr.bf16.mxu0 %v7171_v15  ;;  %v2324_v1 = vrot.slane %v2323_v56, 4  ;;  %v447_v10 = vrot.slane %v445_v63, 5  ;;  %v457_v18 = vrot.slane %v455_v3, 4 }
  0x49   : > { %6478 = vmatprep.subr.bf16.mxu1 %v7179_v2  ;;  %v2333_v5 = vor.u32 %v2332_v57, %v2328_v50  ;;  %v463_v21 = vrot.slane %v461_v11, 5  ;;  %v2341_v25 = vshrl.u32 %v5664_v58, 16  ;;  %v2344_v29 = vshll.u32 %v5664_v58, 16 }
  0x4a   : > { %v434_v49 = vor.u32 %v433_v35, %v429_v17  ;;  %v2329_v13 = vsel %vm7465_vm2, %v2324_v1, %v2328_v50  ;;  %v448_v17 = vor.u32 %v447_v10, %v444_v9  ;;  %v2350_v30 = vshll.u32 %v7649_v0, 16  ;;  %v244_v35 = vld [vmem:[%s7433_s16 + $0x54] sm:$0xf]  ;;  %v285_v50 = vld [vmem:[%s7433_s16 + $0x5c] sm:$0x1] }
  0x4b   : > { %6669 = vmatpush3.bf16.msra.mxu0 %v7171_v15  ;;  %v2334_v15 = vrot.slane %v2333_v5, 4  ;;  %v2354_v34 = vshrl.u32 %v7649_v0, 16  ;;  %v2343_v42 = vrot.slane %v2341_v25, 4  ;;  %v466_v55 = vshrl.u32 %v244_v35, 16  ;;  %v7689_v25 = vld [vmem:[%s7433_s16 + $0x60] sm:$0xf] }
  0x4c   : > { %6479 = vmatpush3.bf16.msra.mxu1 %v7179_v2  ;;  %v435_v59 = vrot.slane %v434_v49, 4  ;;  %v451_v2 = vshll.u32 %v243_v53, 16  ;;  %6670 = vmatprep.subr.bf16.mxu0 %v7172_v31  ;;  %v449_v39 = vrot.slane %v448_v17, 4  ;;  %v2352_v44 = vrot.slane %v2350_v30, 5  ;;  %v7685_v17 = vld [vmem:[%s7433_s16 + $0x68] sm:$0x1] }
  0x4d   : > { %6512 = vmatprep.subr.bf16.mxu1 %v7635_v4  ;;  %v2339_v26 = vsel %vm7465_vm2, %v2334_v15, %v2338_v60  ;;  %v2356_v47 = vrot.slane %v2354_v34, 4  ;;  %v2360_v49 = vshll.u32 %v7661_v20, 16  ;;  %v7676_v60 = vld [vmem:[%s7433_s16 + $0x64] sm:$0xf]  ;;  %v468_v63 = vrot.slane %v466_v55, 4 }
  0x4e   : > { %v440_v7 = vsel %vm7465_vm2, %v435_v59, %v439_v38  ;;  %v453_v16 = vrot.slane %v451_v2, 5  ;;  %v5715_v38 = vcombine.low %v2329_v13, %v2339_v26  ;;  %v475_v59 = vshll.u32 %v245_v43, 16 }
  0x4f   : > { %v5475_v12 = vcombine.low %v430_v48, %v440_v7  ;;  %6671 = vmatpush3.bf16.msra.mxu0 %v7172_v31  ;;  %v2346_v31 = vrot.slane %v2344_v29, 5  ;;  %v469_v48 = vshll.u32 %v244_v35, 16  ;;  %v2357_v57 = vor.u32 %v2356_v47, %v2352_v44  ;;  %v7692_v35 = vld [vmem:[%s7433_s16 + $0x64] sm:$0xf] }
  0x50   : > { %6704 = vmatprep.subr.bf16.mxu0 %v7654_v6  ;;  %v458_v40 = vor.u32 %v457_v18, %v453_v16  ;;  %6633 = vmatmul.mubr.bf16.gmra.mrb[8].mxu0 %v5715_v38  ;;  %v454_v53 = vsel %vm7465_vm2, %v449_v39, %v453_v16  ;;  %v2362_v58 = vrot.slane %v2360_v49, 5  ;;  %v479_v5 = vshrl.u32 %v245_v43, 16  ;;  %v286_v43 = vld [vmem:[%s7433_s16 + $0x68] sm:$0x1] }
  0x51   : > { %6441 = vmatmul.mubr.bf16.gmra.mrb[8].mxu1 %v5475_v12  ;;  %v2347_v56 = vor.u32 %v2346_v31, %v2343_v42  ;;  %v471_v1 = vrot.slane %v469_v48, 5  ;;  %v2358_v7 = vrot.slane %v2357_v57, 4  ;;  %v477_v9 = vrot.slane %v475_v59, 5 }
  0x52   : > { %v459_v54 = vrot.slane %v458_v40, 4  ;;  %v481_v11 = vrot.slane %v479_v5, 4  ;;  %v485_v12 = vshll.u32 %v285_v50, 16  ;;  %v2365_v13 = vshrl.u32 %v5667_v52, 16  ;;  %v5734_v50 = vld [vmem:[%s7433_s16 + $0xc] sm:$0xe] }
  0x53   : > { %v2348_v3 = vrot.slane %v2347_v56, 4  ;;  %v472_v10 = vor.u32 %v471_v1, %v468_v63  ;;  %v2363_v16 = vsel %vm7465_vm2, %v2358_v7, %v2362_v58  ;;  %v2368_v18 = vshll.u32 %v5667_v52, 16  ;;  %v7707_v5 = vld [vmem:[%s7433_s16 + $0x6c] sm:$0xf] }
  0x54   : > { %v464_v61 = vsel %vm7465_vm2, %v459_v54, %v463_v21  ;;  %v2374_v21 = vshll.u32 %v7676_v60, 16  ;;  %v482_v30 = vor.u32 %v481_v11, %v477_v9  ;;  %v487_v34 = vrot.slane %v485_v12, 5 }
  0x55   : > { %v5476_v2 = vcombine.low %v454_v53, %v464_v61  ;;  %v2353_v15 = vsel %vm7465_vm2, %v2348_v3, %v2352_v44  ;;  %v473_v29 = vrot.slane %v472_v10, 4  ;;  %v2367_v38 = vrot.slane %v2365_v13, 4 }
  0x56   : > { %v5716_v26 = vcombine.low %v2353_v15, %v2363_v16  ;;  %v2370_v39 = vrot.slane %v2368_v18, 5  ;;  %v2376_v40 = vrot.slane %v2374_v21, 5  ;;  %v2378_v42 = vshrl.u32 %v7676_v60, 16  ;;  %v7719_v21 = vld [vmem:[%s7433_s16 + $0x70] sm:$0xf] }
  0x57   : > { %6444 = vmatprep.mubr.bf16.mxu1 %v5476_v2  ;;  %v478_v31 = vsel %vm7465_vm2, %v473_v29, %v477_v9  ;;  %v483_v44 = vrot.slane %v482_v30, 4  ;;  %v2384_v47 = vshll.u32 %v7685_v17, 16  ;;  %v490_v49 = vshrl.u32 %v7689_v25, 16  ;;  %v7263_v9 = vld [vmem:[%s7433_s16 + $0xb4] sm:$0xff]  }
  0x58   : > { %6636 = vmatprep.mubr.bf16.mxu0 %v5716_v26  ;;  %v2371_v52 = vor.u32 %v2370_v39, %v2367_v38  ;;  %v2380_v53 = vrot.slane %v2378_v42, 4  ;;  %v493_v54 = vshll.u32 %v7689_v25, 16  ;;  %v499_v55 = vshll.u32 %v7692_v35, 16 }
  0x59   : > { %v488_v48 = vsel %vm7465_vm2, %v483_v44, %v487_v34  ;;  %v2386_v56 = vrot.slane %v2384_v47, 5  ;;  %v492_v57 = vrot.slane %v490_v49, 4  ;;  %v503_v58 = vshrl.u32 %v7692_v35, 16  ;;  %v7730_v47 = vld [vmem:[%s7433_s16 + $0x78] sm:$0xf] }
  0x5a   : > { %v5477_v59 = vcombine.low %v478_v31, %v488_v48  ;;  %v2372_v61 = vrot.slane %v2371_v52, 4  ;;  %v2381_v63 = vor.u32 %v2380_v53, %v2376_v40  ;;  %v495_v1 = vrot.slane %v493_v54, 5  ;;  %v7741_v54 = vld [vmem:[%s7433_s16 + $0x7c] sm:$0xf] }
  0x5b   : > { %v501_v2 = vrot.slane %v499_v55, 5  ;;  %v505_v3 = vrot.slane %v503_v58, 4  ;;  %v509_v7 = vshll.u32 %v286_v43, 16  ;;  %v5750_v10 = vrot.slane %v5734_v50, 9  ;;  %v288_v58 = vld [vmem:[%s7433_s16 + $0x80] sm:$0x1] }
  0x5c   : > { %6445 = vmatmul.mubr.bf16.gmra.mrb[12].mxu1 %v5477_v59  ;;  %v2377_v11 = vsel %vm7465_vm2, %v2372_v61, %v2376_v40  ;;  %v2382_v12 = vrot.slane %v2381_v63, 4  ;;  %v496_v13 = vor.u32 %v495_v1, %v492_v57  ;;  %v2968_v15 = vrot.slane %v7446_v23, 5  ;;  %v287_v40 = vld [vmem:[%s7433_s16 + $0x74] sm:$0x1]  ;;  %v5735_v23 = vld [vmem:[%s7433_s16 + $0x18] sm:$0xe] }
  0x5d   : > { %v506_v16 = vor.u32 %v505_v3, %v501_v2  ;;  %v511_v18 = vrot.slane %v509_v7, 5  ;;  %v514_v26 = vshrl.u32 %v7707_v5, 16  ;;  %v517_v29 = vshll.u32 %v7707_v5, 16 }
  0x5e   : > { %v2387_v30 = vsel %vm7465_vm2, %v2382_v12, %v2386_v56  ;;  %v497_v34 = vrot.slane %v496_v13, 4  ;;  %v2969_v38 = vsel %vm7711_vm5, %v5750_v10, %v2968_v15  ;;  %v2970_v39 = vrot.slane %v2968_v15, 4  ;;  %v5736_v13 = vld [vmem:[%s7433_s16 + $0x24] sm:$0xe] }
  0x5f   : > { %v5717_v42 = vcombine.low %v2377_v11, %v2387_v30  ;;  %v507_v43 = vrot.slane %v506_v16, 4  ;;  %v516_v31 = vrot.slane %v514_v26, 4  ;;  %v519_v44 = vrot.slane %v517_v29, 5  ;;  %v7763_v16 = vld [vmem:[%s7433_s16 + $0x84] sm:$0xf]  ;;  %v7176_v29 = vld [vmem:[%s9209_s1 + $0x188] sm:$0xff]  }
  0x60   : > { %v502_v49 = vsel %vm7465_vm2, %v497_v34, %v501_v2  ;;  %v2972_v50 = vsel %vm7711_vm5, %v2970_v39, %v2971_v41  ;;  %v523_v52 = vshll.u32 %v7719_v21, 16  ;;  %v527_v53 = vshrl.u32 %v7719_v21, 16 }
  0x61   : > { %6637 = vmatmul.mubr.bf16.gmra.mrb[12].mxu0 %v5717_v42  ;;  %v512_v55 = vsel %vm7465_vm2, %v507_v43, %v511_v18  ;;  %v5782_v48 = vcombine.low %v2969_v38, %v2972_v50  ;;  %v520_v56 = vor.u32 %v519_v44, %v516_v31  ;;  %v533_v57 = vshll.u32 %v287_v40, 16  ;;  %v7771_v40 = vld [vmem:[%s7433_s16 + $0x88] sm:$0xf]  ;;  %v289_v31 = vld [vmem:[%s7433_s16 + $0x8c] sm:$0x1] }
  0x62   : > { %v5478_v59 = vcombine.low %v502_v49, %v512_v55  ;;  %v525_v24 = vrot.slane %v523_v52, 5  ;;  %v529_v61 = vrot.slane %v527_v53, 4  ;;  %v5751_v63 = vrot.slane %v5735_v23, 9 }
  0x63   : > { %6672 = vmatprep.mubr.bf16.mxu0 %v5782_v48  ;;  %v521_v41 = vrot.slane %v520_v56, 4  ;;  %v535_v1 = vrot.slane %v533_v57, 5  ;;  %v2979_v2 = vsel %vm7711_vm5, %v7514_v36, %v2978_v32  ;;  %v538_v3 = vshrl.u32 %v7730_v47, 16 }
  0x64   : > { %6448 = vmatprep.mubr.bf16.mxu1 %v5478_v59  ;;  %v530_v7 = vor.u32 %v529_v61, %v525_v24  ;;  %v2976_v10 = vsel %vm7711_vm5, %v5751_v63, %v2975_v27  ;;  %v541_v11 = vshll.u32 %v7730_v47, 16  ;;  %v547_v12 = vshll.u32 %v7741_v54, 16 }
  0x65   : > { %v526_v8 = vsel %vm7465_vm2, %v521_v41, %v525_v24  ;;  %v5783_v15 = vcombine.low %v2976_v10, %v2979_v2  ;;  %v540_v32 = vrot.slane %v538_v3, 4  ;;  %v551_v36 = vshrl.u32 %v7741_v54, 16  ;;  %v7792_v2 = vld [vmem:[%s7433_s16 + $0x90] sm:$0xf]  ;;  %v7795_v3 = vld [vmem:[%s7433_s16 + $0x94] sm:$0xf] }
  0x66   : > { %v531_v62 = vrot.slane %v530_v7, 4  ;;  %v543_v18 = vrot.slane %v541_v11, 5  ;;  %v549_v26 = vrot.slane %v547_v12, 5  ;;  %v557_v27 = vshll.u32 %v288_v58, 16 }
  0x67   : > { %v553_v30 = vrot.slane %v551_v36, 4  ;;  %v5752_v34 = vrot.slane %v5736_v13, 9  ;;  %v2982_v38 = vrot.slane %v7518_v45, 5  ;;  %v2985_v39 = vrot.slane %v7524_v51, 5  ;;  %v5737_v45 = vld [vmem:[%s7433_s16 + $0x30] sm:$0xe] }
  0x68   : > { %v536_v23 = vsel %vm7465_vm2, %v531_v62, %v535_v1  ;;  %v544_v42 = vor.u32 %v543_v18, %v540_v32  ;;  %v559_v43 = vrot.slane %v557_v27, 5  ;;  %v562_v44 = vshrl.u32 %v7763_v16, 16  ;;  %v290_v62 = vld [vmem:[%s7433_s16 + $0x98] sm:$0x1] }
  0x69   : > { %v5479_v49 = vcombine.low %v526_v8, %v536_v23  ;;  %6673 = vmatmul.mubr.bf16.vlgmr.msra.gmra.mrb[0].mxu0 %v5783_v15  ;;  %v554_v50 = vor.u32 %v553_v30, %v549_v26  ;;  %v2983_v52 = vsel %vm7711_vm5, %v5752_v34, %v2982_v38  ;;  %v2984_v53 = vrot.slane %v2982_v38, 4  ;;  %v7180_v30 = vld [vmem:[%s9209_s1 + $0x198] sm:$0xff]  }
  0x6a   : > { %6705 = vmatpush3.bf16.msra.mxu0 %v7654_v6  ;;  %v545_v51 = vrot.slane %v544_v42, 4  ;;  %v564_v55 = vrot.slane %v562_v44, 4  ;;  %v565_v48 = vshll.u32 %v7763_v16, 16  ;;  %v571_v56 = vshll.u32 %v7771_v40, 16  ;;  %v7178_v6 = vld [vmem:[%s9209_s1 + $0x190] sm:$0xff]  }
  0x6b   : > { %6449 = vmatmul.mubr.bf16.gmra.mrb[16].mxu1 %v5479_v49  ;;  %v555_v57 = vrot.slane %v554_v50, 4  ;;  %v2986_v58 = vsel %vm7711_vm5, %v2984_v53, %v2985_v39  ;;  %v575_v59 = vshrl.u32 %v7771_v40, 16  ;;  %v581_v24 = vshll.u32 %v289_v31, 16  ;;  %6706 = vmatprep.subr.bf16.mxu0 %v7176_v29  ;;  %v5738_v38 = vld [vmem:[%s7433_s16 + $0x3c] sm:$0xe] }
  0x6c   : > { %v550_v61 = vsel %vm7465_vm2, %v545_v51, %v549_v26  ;;  %v5784_v63 = vcombine.low %v2983_v52, %v2986_v58  ;;  %v567_v41 = vrot.slane %v565_v48, 5  ;;  %v573_v1 = vrot.slane %v571_v56, 5  ;;  %v7813_v31 = vld [vmem:[%s7433_s16 + $0x9c] sm:$0xf]  ;;  %v7822_v48 = vld [vmem:[%s7433_s16 + $0xa0] sm:$0xf] }
  0x6d   : > { %v560_v7 = vsel %vm7465_vm2, %v555_v57, %v559_v43  ;;  %v577_v10 = vrot.slane %v575_v59, 4  ;;  %v583_v11 = vrot.slane %v581_v24, 5  ;;  %v5753_v12 = vrot.slane %v5737_v45, 9  ;;  %v7184_v56 = vld [vmem:[%s9209_s1 + $0x1a0] sm:$0xff]  }
  0x6e   : > { %v5480_v13 = vcombine.low %v550_v61, %v560_v7  ;;  %6676 = vmatprep.mubr.bf16.mxu0 %v5784_v63  ;;  %v568_v8 = vor.u32 %v567_v41, %v564_v55  ;;  %v2989_v15 = vrot.slane %v7549_v33, 5  ;;  %v2992_v32 = vrot.slane %v7560_v46, 5  ;;  %6707 = vmatpush3.bf16.msra.mxu0 %v7176_v29  ;;  %v291_v61 = vld [vmem:[%s7433_s16 + $0xa4] sm:$0x1] }
  0x6f   : > { %v578_v36 = vor.u32 %v577_v10, %v573_v1  ;;  %v586_v18 = vshrl.u32 %v7792_v2, 16  ;;  %v589_v26 = vshll.u32 %v7792_v2, 16  ;;  %v595_v27 = vshll.u32 %v7795_v3, 16  ;;  %6708 = vmatprep.subr.bf16.mxu0 %v7178_v6 }
  0x70   : > { %6452 = vmatprep.mubr.bf16.mxu1 %v5480_v13  ;;  %v569_v34 = vrot.slane %v568_v8, 4  ;;  %v2990_v33 = vsel %vm7711_vm5, %v5753_v12, %v2989_v15  ;;  %v2991_v46 = vrot.slane %v2989_v15, 4  ;;  %v599_v29 = vshrl.u32 %v7795_v3, 16  ;;  %v5739_v15 = vld [vmem:[%s7433_s16 + $0x48] sm:$0xe] }
  0x71   : > { %v579_v39 = vrot.slane %v578_v36, 4  ;;  %v588_v23 = vrot.slane %v586_v18, 4  ;;  %v591_v42 = vrot.slane %v589_v26, 5  ;;  %v597_v43 = vrot.slane %v595_v27, 5  ;;  %v7847_v27 = vld [vmem:[%s7433_s16 + $0xa8] sm:$0xf] }
  0x72   : > { %v574_v44 = vsel %vm7465_vm2, %v569_v34, %v573_v1  ;;  %v2993_v49 = vsel %vm7711_vm5, %v2991_v46, %v2992_v32  ;;  %v601_v50 = vrot.slane %v599_v29, 4  ;;  %v605_v52 = vshll.u32 %v290_v62, 16  ;;  %6709 = vmatpush3.bf16.msra.mxu0 %v7178_v6  ;;  %v7188_v32 = vld [vmem:[%s9209_s1 + $0x1a8] sm:$0xff]  }
  0x73   : > { %v584_v53 = vsel %vm7465_vm2, %v579_v39, %v583_v11  ;;  %v5785_v45 = vcombine.low %v2990_v33, %v2993_v49  ;;  %v592_v51 = vor.u32 %v591_v42, %v588_v23  ;;  %v5754_v55 = vrot.slane %v5738_v38, 9  ;;  %6710 = vmatprep.subr.bf16.mxu0 %v7180_v30  ;;  %v7850_v29 = vld [vmem:[%s7433_s16 + $0xac] sm:$0xf] }
  0x74   : > { %v5481_v57 = vcombine.low %v574_v44, %v584_v53  ;;  %v602_v58 = vor.u32 %v601_v50, %v597_v43  ;;  %v607_v59 = vrot.slane %v605_v52, 5  ;;  %v2996_v24 = vrot.slane %v7583_v19, 5  ;;  %v5740_v53 = vld [vmem:[%s7433_s16 + $0x54] sm:$0xe] }
  0x75   : > { %6677 = vmatmul.mubr.bf16.gmra.mrb[4].mxu0 %v5785_v45  ;;  %v593_v6 = vrot.slane %v592_v51, 4  ;;  %v2999_v63 = vrot.slane %v7591_v28, 5  ;;  %v610_v41 = vshrl.u32 %v7813_v31, 16  ;;  %v613_v1 = vshll.u32 %v7813_v31, 16  ;;  %v7192_v45 = vld [vmem:[%s9209_s1 + $0x1b0] sm:$0xff]  }
  0x76   : > { %6453 = vmatmul.mubr.bf16.gmra.mrb[20].mxu1 %v5481_v57  ;;  %v603_v7 = vrot.slane %v602_v58, 4  ;;  %v2997_v10 = vsel %vm7711_vm5, %v5754_v55, %v2996_v24  ;;  %v2998_v11 = vrot.slane %v2996_v24, 4  ;;  %v619_v12 = vshll.u32 %v7822_v48, 16  ;;  %6711 = vmatpush3.bf16.msra.mxu0 %v7180_v30 }
  0x77   : > { %v598_v19 = vsel %vm7465_vm2, %v593_v6, %v597_v43  ;;  %v612_v13 = vrot.slane %v610_v41, 4  ;;  %v615_v28 = vrot.slane %v613_v1, 5  ;;  %v623_v8 = vshrl.u32 %v7822_v48, 16  ;;  %6712 = vmatprep.subr.bf16.mxu0 %v7184_v56  ;;  %v292_v43 = vld [vmem:[%s7433_s16 + $0xb0] sm:$0x1] }
  0x78   : > { %v608_v36 = vsel %vm7465_vm2, %v603_v7, %v607_v59  ;;  %v3000_v62 = vsel %vm7711_vm5, %v2998_v11, %v2999_v63  ;;  %v621_v18 = vrot.slane %v619_v12, 5  ;;  %v629_v26 = vshll.u32 %v291_v61, 16  ;;  %v7870_v41 = vld [vmem:[%s7433_s16 + $0xb4] sm:$0xf]  ;;  %v7875_v12 = vld [vmem:[%s7433_s16 + $0xb8] sm:$0xf] }
  0x79   : > { %v5482_v30 = vcombine.low %v598_v19, %v608_v36  ;;  %v5786_v34 = vcombine.low %v2997_v10, %v3000_v62  ;;  %v616_v33 = vor.u32 %v615_v28, %v612_v13  ;;  %v625_v46 = vrot.slane %v623_v8, 4  ;;  %v293_v19 = vld [vmem:[%s7433_s16 + $0xbc] sm:$0x1] }
  0x7a   : > { %v631_v38 = vrot.slane %v629_v26, 5  ;;  %v5755_v39 = vrot.slane %v5739_v15, 9  ;;  %v3003_v23 = vrot.slane %v7618_v14, 5  ;;  %v3006_v42 = vrot.slane %v7624_v22, 5  ;;  %6713 = vmatpush3.bf16.msra.mxu0 %v7184_v56  ;;  %v7196_v13 = vld [vmem:[%s9209_s1 + $0x1b8] sm:$0xff]  }
  0x7b   : > { %6456 = vmatprep.mubr.bf16.mxu1 %v5482_v30  ;;  %6680 = vmatprep.mubr.bf16.mxu0 %v5786_v34  ;;  %v617_v44 = vrot.slane %v616_v33, 4  ;;  %v626_v49 = vor.u32 %v625_v46, %v621_v18  ;;  %v634_v50 = vshrl.u32 %v7847_v27, 16  ;;  %v637_v52 = vshll.u32 %v7847_v27, 16  ;;  %v5741_v30 = vld [vmem:[%s7433_s16 + $0x60] sm:$0xe] }
  0x7c   : > { %v3004_v14 = vsel %vm7711_vm5, %v5755_v39, %v3003_v23  ;;  %v3005_v22 = vrot.slane %v3003_v23, 4  ;;  %v643_v51 = vshll.u32 %v7850_v29, 16  ;;  %v647_v55 = vshrl.u32 %v7850_v29, 16  ;;  %6714 = vmatprep.subr.bf16.mxu0 %v7188_v32  ;;  %v5671_v39 = vld [vmem:[%s7433_s16 + $0x70] sm:$0xf] }
  0x7d   : > { %v622_v56 = vsel %vm7465_vm2, %v617_v44, %v621_v18  ;;  %v627_v57 = vrot.slane %v626_v49, 4  ;;  %v636_v58 = vrot.slane %v634_v50, 4  ;;  %v639_v59 = vrot.slane %v637_v52, 5  ;;  %v7897_v44 = vld [vmem:[%s9209_s1 + $0x1c0] sm:$0xff]  }
  0x7e   : > { %v3007_v24 = vsel %vm7711_vm5, %v3005_v22, %v3006_v42  ;;  %v645_v61 = vrot.slane %v643_v51, 5  ;;  %v649_v6 = vrot.slane %v647_v55, 4  ;;  %v653_v63 = vshll.u32 %v292_v43, 16  ;;  %6715 = vmatpush3.bf16.msra.mxu0 %v7188_v32  ;;  %v5742_v43 = vld [vmem:[%s7433_s16 + $0x6c] sm:$0xe] }
  0x7f   : > { %v632_v1 = vsel %vm7465_vm2, %v627_v57, %v631_v38  ;;  %v5787_v7 = vcombine.low %v3004_v14, %v3007_v24  ;;  %v640_v10 = vor.u32 %v639_v59, %v636_v58  ;;  %v5756_v11 = vrot.slane %v5740_v53, 9  ;;  %6716 = vmatprep.subr.bf16.mxu0 %v7192_v45  ;;  %v5672_v55 = vld [vmem:[%s7433_s16 + $0x74] sm:$0x1]  ;;  %v5743_v24 = vld [vmem:[%s7433_s16 + $0x78] sm:$0xe] }
  0x80   : > { %v5483_v28 = vcombine.low %v622_v56, %v632_v1  ;;  %v650_v8 = vor.u32 %v649_v6, %v645_v61  ;;  %v655_v15 = vrot.slane %v653_v63, 5  ;;  %v3010_v32 = vrot.slane %v7649_v0, 5 }
  0x81   : > { %6681 = vmatmul.mubr.bf16.gmra.mrb[8].mxu0 %v5787_v7  ;;  %v641_v36 = vrot.slane %v640_v10, 4  ;;  %v3013_v62 = vrot.slane %v7661_v20, 5  ;;  %v658_v18 = vshrl.u32 %v7870_v41, 16  ;;  %v661_v26 = vshll.u32 %v7870_v41, 16 }
  0x82   : > { %6457 = vmatmul.mubr.bf16.gmra.mrb[24].mxu1 %v5483_v28  ;;  %v651_v34 = vrot.slane %v650_v8, 4  ;;  %v3011_v33 = vsel %vm7711_vm5, %v5756_v11, %v3010_v32  ;;  %v3012_v46 = vrot.slane %v3010_v32, 4  ;;  %v667_v38 = vshll.u32 %v7875_v12, 16  ;;  %6717 = vmatpush3.bf16.msra.mxu0 %v7192_v45  ;;  %v7910_v11 = vld [vmem:[%s7433_s16 + $0x7c] sm:$0xf] }
  0x83   : > { %v646_v0 = vsel %vm7465_vm2, %v641_v36, %v645_v61  ;;  %v660_v20 = vrot.slane %v658_v18, 4  ;;  %v663_v23 = vrot.slane %v661_v26, 5  ;;  %v671_v42 = vshrl.u32 %v7875_v12, 16  ;;  %6718 = vmatprep.subr.bf16.mxu0 %v7196_v13  ;;  %v7265_v36 = vld [vmem:[%s7433_s16] sm:$0xf] }
  0x84   : > { %v656_v49 = vsel %vm7465_vm2, %v651_v34, %v655_v15  ;;  %v3014_v50 = vsel %vm7711_vm5, %v3012_v46, %v3013_v62  ;;  %v669_v52 = vrot.slane %v667_v38, 5  ;;  %v677_v53 = vshll.u32 %v293_v19, 16  ;;  %v5677_v15 = vld [vmem:[%s7433_s16 + $0x88] sm:$0xf]  ;;  %v7925_v62 = vld [vmem:[%s7433_s16 + $0x4] sm:$0xf] }
  0x85   : > { %v5484_v45 = vcombine.low %v646_v0, %v656_v49  ;;  %v5788_v14 = vcombine.low %v3011_v33, %v3014_v50  ;;  %v664_v22 = vor.u32 %v663_v23, %v660_v20  ;;  %v673_v51 = vrot.slane %v671_v42, 4  ;;  %v5678_v26 = vld [vmem:[%s7433_s16 + $0x8c] sm:$0x1]  ;;  %v5681_v23 = vld [vmem:[%s7433_s16 + $0x98] sm:$0x1] }
  0x86   : > { %v679_v56 = vrot.slane %v677_v53, 5  ;;  %v5757_v57 = vrot.slane %v5741_v30, 9  ;;  %v3017_v58 = vrot.slane %v7676_v60, 5  ;;  %v3020_v59 = vrot.slane %v7685_v17, 5  ;;  %6719 = vmatpush3.bf16.msra.mxu0 %v7196_v13  ;;  %v7913_v17 = vld [vmem:[%s7433_s16 + $0x80] sm:$0x1] }
  0x87   : > { %6460 = vmatprep.mubr.bf16.mxu1 %v5484_v45  ;;  %6684 = vmatprep.mubr.bf16.mxu0 %v5788_v14  ;;  %v665_v61 = vrot.slane %v664_v22, 4  ;;  %v674_v6 = vor.u32 %v673_v51, %v669_v52  ;;  %v5758_v63 = vrot.slane %v5742_v43, 9  ;;  %v3024_v1 = vrot.slane %v5671_v39, 5  ;;  %v5744_v30 = vld [vmem:[%s7433_s16 + $0x84] sm:$0xe] }
  0x88   : > { %v3018_v7 = vsel %vm7711_vm5, %v5757_v57, %v3017_v58  ;;  %v3019_v10 = vrot.slane %v3017_v58, 4  ;;  %v3027_v60 = vrot.slane %v5672_v55, 5  ;;  %6752 = vmatprep.subr.bf16.mxu0 %v7897_v44  ;;  %v5494_v18 = vcombine.low %v7265_v36, %v7925_v62  ;;  %v5680_v39 = vld [vmem:[%s7433_s16 + $0x94] sm:$0xf]  ;;  %v5745_v42 = vld [vmem:[%s7433_s16 + $0x90] sm:$0xe] }
  0x89   : > { %v670_v19 = vsel %vm7465_vm2, %v665_v61, %v669_v52  ;;  %v675_v13 = vrot.slane %v674_v6, 4  ;;  %v3025_v28 = vsel %vm7711_vm5, %v5758_v63, %v3024_v1  ;;  %v3026_v8 = vrot.slane %v3024_v1, 4  ;;  %v5746_v50 = vld [vmem:[%s7433_s16 + $0x9c] sm:$0xe]  ;;  %v5683_v14 = vld [vmem:[%s7433_s16 + $0xa0] sm:$0xf] }
  0x8a   : > { %v3021_v32 = vsel %vm7711_vm5, %v3019_v10, %v3020_v59  ;;  %v5759_v38 = vrot.slane %v5743_v24, 9  ;;  %v3031_v43 = vrot.slane %v7910_v11, 5  ;;  %v3034_v49 = vrot.slane %v7913_v17, 5  ;;  %v5684_v22 = vld [vmem:[%s7433_s16 + $0xa4] sm:$0x1] }
  0x8b   : > { %v680_v34 = vsel %vm7465_vm2, %v675_v13, %v679_v56  ;;  %v5789_v33 = vcombine.low %v3018_v7, %v3021_v32  ;;  %v3028_v46 = vsel %vm7711_vm5, %v3026_v8, %v3027_v60  ;;  %v5760_v52 = vrot.slane %v5744_v30, 9  ;;  %v5686_v59 = vld [vmem:[%s7433_s16 + $0xac] sm:$0xf]  ;;  %v7949_v61 = vld [vmem:[%s7433_s16 + $0x10] sm:$0xf] }
  0x8c   : > { %v5485_v0 = vcombine.low %v670_v19, %v680_v34  ;;  %v5790_v20 = vcombine.low %v3025_v28, %v3028_v46  ;;  %v3038_v53 = vrot.slane %v5677_v15, 5  ;;  %v3041_v45 = vrot.slane %v5678_v26, 5  ;;  %v7267_v24 = vld [vmem:[%s7433_s16 + $0xc] sm:$0xf]  ;;  %v7269_v8 = vld [vmem:[%s7433_s16 + $0x18] sm:$0xf] }
  0x8d   : > { %6685 = vmatmul.mubr.bf16.gmra.mrb[12].mxu0 %v5789_v33  ;;  %v3032_v51 = vsel %vm7711_vm5, %v5759_v38, %v3031_v43  ;;  %v3033_v55 = vrot.slane %v3031_v43, 4  ;;  %v3045_v58 = vrot.slane %v5680_v39, 5  ;;  %v5495_v6 = vcombine.low %v7267_v24, %v7949_v61  ;;  %v7187_v19 = vld [vmem:[%s9209_s1 + $0x88] sm:$0xff]   ;;  %v7961_v15 = vld [vmem:[%s7433_s16 + $0x1c] sm:$0xf] }
  0x8e   : > { %6461 = vmatmul.mubr.bf16.gmra.mrb[28].mxu1 %v5485_v0  ;;  %6688 = vmatprep.mubr.bf16.mxu0 %v5790_v20  ;;  %v3039_v56 = vsel %vm7711_vm5, %v5760_v52, %v3038_v53  ;;  %v3040_v57 = vrot.slane %v3038_v53, 4  ;;  %v5761_v1 = vrot.slane %v5745_v42, 9  ;;  %v3048_v7 = vrot.slane %v5681_v23, 5  ;;  %v5687_v30 = vld [vmem:[%s7433_s16 + $0xb0] sm:$0x1] }
  0x8f   : > { %6480 = vmatprep.mubr.bf16.mxu1 %v5494_v18  ;;  %v3035_v63 = vsel %vm7711_vm5, %v3033_v55, %v3034_v49  ;;  %v3047_v13 = vrot.slane %v3045_v58, 4  ;;  %v5762_v28 = vrot.slane %v5746_v50, 9  ;;  %v5496_v32 = vcombine.low %v7269_v8, %v7961_v15  ;;  %v5747_v34 = vld [vmem:[%s7433_s16 + $0xa8] sm:$0xe]  ;;  %v5689_v33 = vld [vmem:[%s7433_s16 + $0xb8] sm:$0xf] }
  0x90   : > { %v5791_v10 = vcombine.low %v3032_v51, %v3035_v63  ;;  %v3042_v60 = vsel %vm7711_vm5, %v3040_v57, %v3041_v45  ;;  %v3052_v18 = vrot.slane %v5683_v14, 5  ;;  %v3055_v26 = vrot.slane %v5684_v22, 5  ;;  %v5690_v20 = vld [vmem:[%s7433_s16 + $0xbc] sm:$0x1]  ;;  %v5748_v23 = vld [vmem:[%s7433_s16 + $0xb4] sm:$0xe] }
  0x91   : > { %v5792_v36 = vcombine.low %v3039_v56, %v3042_v60  ;;  %v3059_v38 = vrot.slane %v5686_v59, 5  ;;  %v3046_v39 = vsel %vm7711_vm5, %v5761_v1, %v3045_v58  ;;  %v3049_v0 = vsel %vm7711_vm5, %v3047_v13, %v3048_v7  ;;  %v7191_v50 = vld [vmem:[%s9209_s1 + $0x90] sm:$0xff]   ;;  %v5692_v53 = vld [vmem:[%s7433_s16 + $0xc4] sm:$0xf]  ;;  %v7984_v51 = vld [vmem:[%s7433_s16 + $0x28] sm:$0xf] }
  0x92   : > { %v3054_v46 = vrot.slane %v3052_v18, 4  ;;  %v3053_v42 = vsel %vm7711_vm5, %v5762_v28, %v3052_v18  ;;  %v3066_v49 = vrot.slane %v5689_v33, 5  ;;  %v5763_v52 = vrot.slane %v5747_v34, 9  ;;  %v7271_v22 = vld [vmem:[%s7433_s16 + $0x24] sm:$0xf]  ;;  %v7195_v1 = vld [vmem:[%s9209_s1 + $0x98] sm:$0xff]  }
  0x93   : > { %v5793_v45 = vcombine.low %v3046_v39, %v3049_v0  ;;  %v3061_v14 = vrot.slane %v3059_v38, 4  ;;  %v5497_v55 = vcombine.low %v7271_v22, %v7984_v51  ;;  %v7273_v57 = vld [vmem:[%s7433_s16 + $0x30] sm:$0xf]  ;;  %v7989_v58 = vld [vmem:[%s7433_s16 + $0x34] sm:$0xf]  ;;  %v5764_v24 = vrot.slane %v5748_v23, 9 }
  0x94   : > { %v3056_v43 = vsel %vm7711_vm5, %v3054_v46, %v3055_v26  ;;  %v5498_v59 = vcombine.low %v7273_v57, %v7989_v58  ;;  %v3069_v63 = vrot.slane %v5690_v20, 5  ;;  %v5749_v7 = vld [vmem:[%s7433_s16 + $0xc0] sm:$0xe]  ;;  %v3060_v60 = vsel %vm7711_vm5, %v5763_v52, %v3059_v38  ;;  %v5693_v8 = vld [vmem:[%s7433_s16 + $0xc8] sm:$0x1]  ;;  %v7198_v22 = vld [vmem:[%s7433_s16 + $0x18] sm:$0xff]  }
  0x95   : > { %6689 = vmatmul.mubr.bf16.gmra.mrb[16].mxu0 %v5791_v10  ;;  %v5794_v56 = vcombine.low %v3053_v42, %v3056_v43  ;;  %v3073_v10 = vrot.slane %v5692_v53, 5  ;;  %v3067_v13 = vsel %vm7711_vm5, %v5764_v24, %v3066_v49  ;;  %v5765_v18 = vrot.slane %v5749_v7, 9  ;;  %v7275_v26 = vld [vmem:[%s7433_s16 + $0x3c] sm:$0xf]  ;;  %v7277_v39 = vld [vmem:[%s7433_s16 + $0x48] sm:$0xf] }
  0x96   : > { %6481 = vmatmul.mubr.bf16.vlgmr.msra.gmra.mrb[0].mxu1 %v5495_v6  ;;  %6692 = vmatprep.mubr.bf16.mxu0 %v5792_v36  ;;  %v3068_v6 = vrot.slane %v3066_v49, 4  ;;  %v3076_v38 = vrot.slane %v5693_v8, 5  ;;  %v8015_v0 = vld [vmem:[%s7433_s16 + $0x4c] sm:$0xf]  ;;  %v7212_v49 = vld [vmem:[%s9209_s1 + $0xb0] sm:$0xff]   ;;  %v2426_v52 = vshrl.u32 %v7910_v11, 16 }
  0x97   : > { %6513 = vmatpush3.bf16.msra.mxu1 %v7635_v4  ;;  %6484 = vmatprep.mubr.bf16.mxu1 %v5496_v32  ;;  %v3062_v4 = vrot.slane %v5687_v30, 5  ;;  %v7200_v32 = vld [vmem:[%s9209_s1 + $0xa0] sm:$0xff]   ;;  %v3075_v46 = vrot.slane %v3073_v10, 4  ;;  %v5500_v20 = vcombine.low %v7277_v39, %v8015_v0  ;;  %v7206_v23 = vld [vmem:[%s9209_s1 + $0xa8] sm:$0xff]   ;;  %v3074_v42 = vsel %vm7711_vm5, %v5765_v18, %v3073_v10  ;;  %v7204_v18 = vld [vmem:[%s7433_s16 + $0x30] sm:$0xff]  }
  0x98   : > { %6514 = vmatprep.subr.bf16.mxu1 %v7187_v19  ;;  %v3070_v28 = vsel %vm7711_vm5, %v3068_v6, %v3069_v63  ;;  %v8010_v30 = vld [vmem:[%s7433_s16 + $0x40] sm:$0xf]  ;;  %v8043_v57 = vrot.slane %v2426_v52, 4  ;;  %v7201_v6 = vld [vmem:[%s7433_s16 + $0x24] sm:$0xff]   ;;  %v1336_v7 = vrot.slane %v7949_v61, 5  ;;  %v2432_v8 = vshll.u32 %v7913_v17, 16 }
  0x99   : > { %v5499_v34 = vcombine.low %v7275_v26, %v8010_v30  ;;  %v5796_v33 = vcombine.low %v3067_v13, %v3070_v28  ;;  %v3077_v43 = vsel %vm7711_vm5, %v3075_v46, %v3076_v38  ;;  %v1276_v63 = vld [vmem:[%s7433_s16] sm:$0xe]  ;;  %v1277_v10 = vld [vmem:[%s7433_s16 + $0xc] sm:$0xe]  ;;  %v1343_v13 = vrot.slane %v7961_v15, 5 }
  0x9a   : > { %v5797_v53 = vcombine.low %v3074_v42, %v3077_v43  ;;  %v1279_v61 = vld [vmem:[%s7433_s16 + $0x24] sm:$0xe]  ;;  %v5505_v15 = vcombine.low %v7763_v16, %v7771_v40  ;;  %v5506_v26 = vcombine.low %v7792_v2, %v7795_v3  ;;  %v5518_v17 = vrot.slane %v1276_v63, 9  ;;  %v7283_v38 = vld [vmem:[%s7433_s16 + $0x20] sm:$0x1]  ;;  %v7213_v2 = vld [vmem:[%s7433_s16 + $0x54] sm:$0xff]  }
  0x9b   : > { %6515 = vmatpush3.bf16.msra.mxu1 %v7187_v19  ;;  %v3063_v19 = vsel %vm7711_vm5, %v3061_v14, %v3062_v4  ;;  %v8032_v14 = vld [vmem:[%s7433_s16 + $0x58] sm:$0xf]  ;;  %v1345_v46 = vrot.slane %v1343_v13, 4  ;;  %v1346_v39 = vrot.slane %v7283_v38, 5  ;;  %v7284_v43 = vld [vmem:[%s7433_s16 + $0x2c] sm:$0x1] }
  0x9c   : > { %6516 = vmatprep.subr.bf16.mxu1 %v7191_v50  ;;  %v5795_v36 = vcombine.low %v3060_v60, %v3063_v19  ;;  %v8058_v60 = vld [vmem:[%s9209_s1 + $0xc0] sm:$0xff]   ;;  %v1278_v19 = vld [vmem:[%s7433_s16 + $0x18] sm:$0xe]  ;;  %v7287_v38 = vld [vmem:[%s7433_s16 + $0x50] sm:$0x1]  ;;  %v1378_v16 = vrot.slane %v8032_v14, 5 }
  0x9d   : > { %6693 = vmatmul.mubr.bf16.gmra.mrb[20].mxu0 %v5793_v45  ;;  %v7279_v45 = vld [vmem:[%s7433_s16 + $0x54] sm:$0xf]  ;;  %v8181_v40 = vld [vmem:[%s7433_s16 + $0x64] sm:$0xf] }
  0x9e   : > { %6485 = vmatmul.mubr.bf16.gmra.mrb[4].mxu1 %v5497_v55  ;;  %6696 = vmatprep.mubr.bf16.mxu0 %v5794_v56  ;;  %v5501_v4 = vcombine.low %v7279_v45, %v8032_v14  ;;  %v5502_v55 = vcombine.low %v7689_v25, %v7692_v35  ;;  %v7218_v56 = vld [vmem:[%s9209_s1 + $0xb8] sm:$0xff]   ;;  %v7282_v25 = vld [vmem:[%s7433_s16 + $0x14] sm:$0x1]  ;;  %v7216_v3 = vld [vmem:[%s7433_s16 + $0x60] sm:$0xff]  }
  0x9f   : > { %6488 = vmatprep.mubr.bf16.mxu1 %v5498_v59  ;;  %6517 = vmatpush3.bf16.msra.mxu1 %v7191_v50  ;;  %v2422_v50 = vshll.u32 %v7910_v11, 16  ;;  %v8046_v59 = vld [vmem:[%s7433_s16 + $0x8] sm:$0x1]  ;;  %v1339_v35 = vrot.slane %v7282_v25, 5 }
  0xa0   : > { %6518 = vmatprep.subr.bf16.mxu1 %v7195_v1  ;;  %v1332_v24 = vrot.slane %v8046_v59, 5 }
  0xa1   : > { %v8041_v11 = vrot.slane %v2422_v50, 5 }
  0xa3   : > { %6519 = vmatpush3.bf16.msra.mxu1 %v7195_v1  ;;  %v1329_v1 = vrot.slane %v7925_v62, 5  ;;  %v5503_v62 = vcombine.low %v7707_v5, %v7719_v21  ;;  %v5519_v21 = vrot.slane %v1277_v10, 9  ;;  %v5878_v10 = vld [vmem:[%s7433_s16 + $0x18] sm:$0xf] }
  0xa4   : > { %6520 = vmatprep.subr.bf16.mxu1 %v7200_v32 }
  0xa5   : > { %6697 = vmatmul.mubr.bf16.gmra.mrb[24].mxu0 %v5795_v36  ;;  %v5504_v36 = vcombine.low %v7730_v47, %v7741_v54  ;;  %v1331_v5 = vrot.slane %v1329_v1, 4  ;;  %v7208_v47 = vld [vmem:[%s9209_s1 + $0x1c8] sm:$0xff]   ;;  %v5520_v54 = vrot.slane %v1278_v19, 9  ;;  %v8101_v59 = vsel %vm7711_vm5, %v5518_v17, %v1329_v1  ;;  %v5879_v19 = vld [vmem:[%s7433_s16 + $0x1c] sm:$0xf] }
  0xa6   : > { %6489 = vmatmul.mubr.bf16.gmra.mrb[8].mxu1 %v5499_v34  ;;  %6700 = vmatprep.mubr.bf16.mxu0 %v5796_v33  ;;  %v1357_v34 = vrot.slane %v7989_v58, 5  ;;  %v1338_v33 = vrot.slane %v1336_v7, 4  ;;  %v5521_v58 = vrot.slane %v1279_v61, 9  ;;  %v1371_v1 = vrot.slane %v8015_v0, 5  ;;  %v7210_v0 = vld [vmem:[%s7433_s16 + $0x48] sm:$0xff]  }
  0xa7   : > { %6492 = vmatprep.mubr.bf16.mxu1 %v5500_v20  ;;  %6521 = vmatpush3.bf16.msra.mxu1 %v7200_v32  ;;  %v1350_v32 = vrot.slane %v7984_v51, 5  ;;  %v1280_v51 = vld [vmem:[%s7433_s16 + $0x30] sm:$0xe]  ;;  %v5507_v20 = vcombine.low %v7813_v31, %v7822_v48  ;;  %v8109_v25 = vsel %vm7711_vm5, %v1331_v5, %v1332_v24  ;;  %v8117_v63 = vsel %vm7711_vm5, %v5520_v54, %v1343_v13  ;;  %v1282_v13 = vld [vmem:[%s7433_s16 + $0x48] sm:$0xe] }
  0xa8   : > { %6522 = vmatprep.subr.bf16.mxu1 %v7206_v23  ;;  %v5522_v50 = vrot.slane %v1280_v51, 9  ;;  %v1359_v52 = vrot.slane %v1357_v34, 4  ;;  %v3836_v5 = vshrl.u32 %v5878_v10, 16  ;;  %v3849_v51 = vshrl.u32 %v5879_v19, 16  ;;  %v7219_v48 = vld [vmem:[%s7433_s16 + $0x6c] sm:$0xff]  }
  0xa9   : > { %v1352_v42 = vrot.slane %v1350_v32, 4  ;;  %v8129_v24 = vsel %vm7711_vm5, %v5521_v58, %v1350_v32  ;;  %v7286_v32 = vld [vmem:[%s7433_s16 + $0x44] sm:$0x1]  ;;  %v5524_v54 = vrot.slane %v1282_v13, 9  ;;  %v5882_v13 = vld [vmem:[%s7433_s16 + $0x28] sm:$0xf] }
  0xaa   : > { %v8139_v61 = vsel %vm7711_vm5, %v5522_v50, %v1357_v34  ;;  %v1367_v17 = vrot.slane %v7286_v32, 5  ;;  %v5880_v50 = vld [vmem:[%s7433_s16 + $0x20] sm:$0x1]  ;;  %v1284_v32 = vld [vmem:[%s7433_s16 + $0x60] sm:$0xe] }
  0xab   : > { %6523 = vmatpush3.bf16.msra.mxu1 %v7206_v23  ;;  %v5508_v23 = vcombine.low %v7847_v27, %v7850_v29 }
  0xac   : > { %6524 = vmatprep.subr.bf16.mxu1 %v7212_v49 }
  0xad   : > { %6701 = vmatmul.mubr.bf16.gmra.mrb[28].mxu0 %v5797_v53  ;;  %v7285_v53 = vld [vmem:[%s7433_s16 + $0x38] sm:$0x1] }
  0xae   : > { %6493 = vmatmul.mubr.bf16.gmra.mrb[12].mxu1 %v5501_v4  ;;  %6720 = vmatprep.mubr.bf16.mxu0 %v7198_v22  ;;  %v1360_v45 = vrot.slane %v7285_v53, 5  ;;  %v1281_v4 = vld [vmem:[%s7433_s16 + $0x3c] sm:$0xe]  ;;  %v1364_v22 = vrot.slane %v8010_v30, 5  ;;  %v8105_v30 = vsel %vm7711_vm5, %v5519_v21, %v1336_v7  ;;  %v3839_v21 = vshll.u32 %v5878_v10, 16  ;;  %v7224_v53 = vld [vmem:[%s9209_s1 + $0x1e0] sm:$0xff]  }
  0xaf   : > { %6496 = vmatprep.mubr.bf16.mxu1 %v5502_v55  ;;  %6525 = vmatpush3.bf16.msra.mxu1 %v7212_v49  ;;  %v1353_v49 = vrot.slane %v7284_v43, 5  ;;  %v8092_v55 = vrot.slane %v2432_v8, 5  ;;  %v7207_v7 = vld [vmem:[%s7433_s16 + $0x3c] sm:$0xff]   ;;  %v8125_v8 = vsel %vm7711_vm5, %v1345_v46, %v1346_v39  ;;  %v1373_v46 = vrot.slane %v1371_v1, 4  ;;  %v5884_v43 = vld [vmem:[%s7433_s16 + $0x30] sm:$0xf] }
  0xb0   : > { %6526 = vmatprep.subr.bf16.mxu1 %v7218_v56  ;;  %v1374_v39 = vrot.slane %v7287_v38, 5  ;;  %v3838_v10 = vrot.slane %v3836_v5, 4 }
  0xb1   : > { %9230 = vst [vmem:[#allocation2_spill] sm:$0xff] %v8092_v55 }
  0xb3   : > { %6527 = vmatpush3.bf16.msra.mxu1 %v7218_v56  ;;  %v7214_v56 = vld [vmem:[%s9209_s1 + $0x1d0] sm:$0xff]  }
  0xb4   : > { %6560 = vmatprep.subr.bf16.mxu1 %v8058_v60 }
  0xb5   : > { %6721 = vmatmul.mubr.bf16.vlgmr.msra.gmra.mrb[0].mxu0 %v7201_v6  ;;  %v8113_v6 = vsel %vm7711_vm5, %v1338_v33, %v1339_v35  ;;  %v8133_v35 = vsel %vm7711_vm5, %v1352_v42, %v1353_v49  ;;  %v3845_v33 = vshll.u32 %v5879_v19, 16  ;;  %v3841_v19 = vrot.slane %v3839_v21, 5  ;;  %v1285_v21 = vld [vmem:[%s7433_s16 + $0x6c] sm:$0xe] }
  0xb6   : > { %6497 = vmatmul.mubr.bf16.gmra.mrb[16].mxu1 %v5503_v62  ;;  %6753 = vmatpush3.bf16.msra.mxu0 %v7897_v44  ;;  %v5523_v62 = vrot.slane %v1281_v4, 9  ;;  %v5527_v58 = vrot.slane %v1285_v21, 9 }
  0xb7   : > { %6500 = vmatprep.mubr.bf16.mxu1 %v5504_v36  ;;  %6724 = vmatprep.mubr.bf16.mxu0 %v7204_v18  ;;  %v8143_v36 = vsel %vm7711_vm5, %v1359_v52, %v1360_v45  ;;  %v1366_v18 = vrot.slane %v1364_v22, 4  ;;  %v5881_v52 = vld [vmem:[%s7433_s16 + $0x24] sm:$0xf]  ;;  %v3873_v45 = vshrl.u32 %v5882_v13, 16 }
  0xb8   : > { %6754 = vmatprep.subr.bf16.mxu0 %v7208_v47  ;;  %v8160_v49 = vsel %vm7711_vm5, %v5523_v62, %v1364_v22  ;;  %v8177_v22 = vld [vmem:[%s7433_s16 + $0x54] sm:$0xe]  ;;  %v3851_v62 = vrot.slane %v3849_v51, 4  ;;  %v3860_v38 = vshrl.u32 %v5881_v52, 16  ;;  %v3863_v28 = vshll.u32 %v5881_v52, 16 }
  0xb9   : > { %v8174_v4 = vsel %vm7711_vm5, %v1366_v18, %v1367_v17  ;;  %v3855_v17 = vshll.u32 %v5880_v50, 16  ;;  %v5525_v5 = vrot.slane %v8177_v22, 9  ;;  %v7228_v50 = vld [vmem:[%s9209_s1 + $0x1e8] sm:$0xff]   ;;  %v1380_v52 = vrot.slane %v1378_v16, 4 }
  0xba   : > { %6755 = vmatpush3.bf16.msra.mxu0 %v7208_v47  ;;  %v7220_v47 = vld [vmem:[%s9209_s1 + $0x1d8] sm:$0xff]   ;;  %v3842_v22 = vor.u32 %v3841_v19, %v3838_v10  ;;  %v3862_v34 = vrot.slane %v3860_v38, 4  ;;  %v3865_v44 = vrot.slane %v3863_v28, 5  ;;  %v7292_v10 = vld [vmem:[%s7433_s16 + $0x74] sm:$0x1]  ;;  %v3875_v28 = vrot.slane %v3873_v45, 4 }
  0xbb   : > { %6756 = vmatprep.subr.bf16.mxu0 %v7214_v56  ;;  %v8215_v42 = vrot.slane %v3855_v17, 5  ;;  %v1395_v19 = vrot.slane %v7292_v10, 5  ;;  %v3884_v38 = vshrl.u32 %v5884_v43, 16  ;;  %v8240_v27 = vsel %vm7711_vm5, %v5525_v5, %v1378_v16 }
  0xbc   : > { %v3843_v21 = vrot.slane %v3842_v22, 4 }
  0xbd   : > { %6725 = vmatmul.mubr.bf16.gmra.mrb[4].mxu0 %v7207_v7  ;;  %v8187_v7 = vrot.slane %v3845_v33, 5  ;;  %v7290_v33 = vld [vmem:[%s7433_s16 + $0x70] sm:$0xf] }
  0xbe   : > { %6501 = vmatmul.mubr.bf16.gmra.mrb[20].mxu1 %v5505_v15  ;;  %6728 = vmatprep.mubr.bf16.mxu0 %v7210_v0  ;;  %v1385_v15 = vrot.slane %v8181_v40, 5  ;;  %v7289_v0 = vld [vmem:[%s7433_s16 + $0x5c] sm:$0x1]  ;;  %v1392_v51 = vrot.slane %v7290_v33, 5 }
  0xbf   : > { %6504 = vmatprep.mubr.bf16.mxu1 %v5506_v26  ;;  %6757 = vmatpush3.bf16.msra.mxu0 %v7214_v56  ;;  %v1381_v18 = vrot.slane %v7289_v0, 5  ;;  %v8196_v26 = vsel %vm7711_vm5, %v5524_v54, %v1371_v1  ;;  %v8200_v56 = vsel %vm7711_vm5, %v1373_v46, %v1374_v39  ;;  %v7291_v1 = vld [vmem:[%s7433_s16 + $0x68] sm:$0x1]  ;;  %v3869_v0 = vshll.u32 %v5882_v13, 16  ;;  %v7236_v40 = vld [vmem:[%s9209_s1 + $0x1f8] sm:$0xff]  }
  0xc0   : > { %6758 = vmatprep.subr.bf16.mxu0 %v7220_v47  ;;  %v1388_v54 = vrot.slane %v7291_v1, 5  ;;  %v5526_v46 = vrot.slane %v1284_v32, 9  ;;  %v1387_v39 = vrot.slane %v1385_v15, 4  ;;  %v3852_v33 = vor.u32 %v3851_v62, %v8187_v7  ;;  %v5885_v1 = vld [vmem:[%s7433_s16 + $0x34] sm:$0xf] }
  0xc1   : > { %v1394_v32 = vrot.slane %v1392_v51, 4  ;;  %v5883_v62 = vld [vmem:[%s7433_s16 + $0x2c] sm:$0x1]  ;;  %v8227_v17 = vrot.slane %v3869_v0, 5  ;;  %v3893_v13 = vshll.u32 %v5885_v1, 16  ;;  %v3897_v31 = vshrl.u32 %v5885_v1, 16 }
  0xc2   : > { %v3853_v10 = vrot.slane %v3852_v33, 4  ;;  %v8244_v29 = vsel %vm7711_vm5, %v1380_v52, %v1381_v18  ;;  %v8251_v45 = vsel %vm7711_vm5, %v5526_v46, %v1385_v15  ;;  %v8255_v14 = vsel %vm7711_vm5, %v1387_v39, %v1388_v54  ;;  %v1286_v18 = vld [vmem:[%s7433_s16 + $0x78] sm:$0xe] }
  0xc3   : > { %6759 = vmatpush3.bf16.msra.mxu0 %v7220_v47  ;;  %v8259_v16 = vsel %vm7711_vm5, %v5527_v58, %v1392_v51  ;;  %v8269_v15 = vsel %vm7711_vm5, %v1394_v32, %v1395_v19  ;;  %v3876_v5 = vor.u32 %v3875_v28, %v8227_v17  ;;  %v3886_v52 = vrot.slane %v3884_v38, 4  ;;  %v5887_v58 = vld [vmem:[%s7433_s16 + $0x3c] sm:$0xf]  ;;  %v5888_v51 = vld [vmem:[%s7433_s16 + $0x40] sm:$0xf] }
  0xc4   : > { %6760 = vmatprep.subr.bf16.mxu0 %v7224_v53  ;;  %v3848_v0 = vsel %vm7465_vm2, %v3843_v21, %v8187_v7  ;;  %v3858_v46 = vsel %vm7465_vm2, %v3853_v10, %v8215_v42  ;;  %v8280_v39 = vrot.slane %v3893_v13, 5  ;;  %v3899_v22 = vrot.slane %v3897_v31, 4  ;;  %v7294_v19 = vld [vmem:[%s7433_s16 + $0x80] sm:$0x1]  ;;  %v8439_v47 = vld [vmem:[%s7433_s16 + $0x68] sm:$0x1] }
  0xc5   : > { %6729 = vmatmul.mubr.bf16.gmra.mrb[8].mxu0 %v7213_v2  ;;  %v3887_v2 = vshll.u32 %v5884_v43, 16  ;;  %v3879_v43 = vshll.u32 %v5883_v62, 16  ;;  %v5528_v32 = vrot.slane %v1286_v18, 9  ;;  %v1287_v62 = vld [vmem:[%s7433_s16 + $0x84] sm:$0xe]  ;;  %v3908_v28 = vshrl.u32 %v5887_v58, 16 }
  0xc6   : > { %6505 = vmatmul.mubr.bf16.gmra.mrb[24].mxu1 %v5507_v20  ;;  %6732 = vmatprep.mubr.bf16.mxu0 %v7216_v3  ;;  %v7232_v20 = vld [vmem:[%s9209_s1 + $0x1f0] sm:$0xff]   ;;  %v7293_v3 = vld [vmem:[%s7433_s16 + $0x7c] sm:$0xf]  ;;  %v3911_v7 = vshll.u32 %v5887_v58, 16  ;;  %v3917_v38 = vshll.u32 %v5888_v51, 16  ;;  %v9231_v42 = vcombine.low %v7870_v41, %v7875_v12  ;;  %v8291_v13 = vrot.slane %v3876_v5, 4 }
  0xc7   : > { %6508 = vmatprep.mubr.bf16.mxu1 %v5508_v23  ;;  %6761 = vmatpush3.bf16.msra.mxu0 %v7224_v53  ;;  %v3866_v23 = vor.u32 %v3865_v44, %v3862_v34  ;;  %v7221_v53 = vld [vmem:[%s7433_s16 + $0x78] sm:$0xff]   ;;  %v1399_v44 = vrot.slane %v7293_v3, 5  ;;  %v3889_v54 = vrot.slane %v3887_v2, 5  ;;  %v8284_v1 = vrot.slane %v3879_v43, 5  ;;  %v8296_v21 = vld [vmem:[%s9209_s1 + $0x200] sm:$0xff]   ;;  %9239 = vst [vmem:[#allocation5_spill] sm:$0xff] %v8439_v47 }
  0xc8   : > { %6762 = vmatprep.subr.bf16.mxu0 %v7228_v50  ;;  %v5886_v34 = vld [vmem:[%s7433_s16 + $0x38] sm:$0x1]  ;;  %v3921_v2 = vshrl.u32 %v5888_v51, 16  ;;  %v7223_v43 = vld [vmem:[%s7433_s16 + $0x84] sm:$0xff]   ;;  %v3900_v12 = vor.u32 %v3899_v22, %v8280_v39  ;;  %v3913_v58 = vrot.slane %v3911_v7, 5  ;;  %v8318_v51 = vrot.slane %v3917_v38, 5 }
  0xc9   : > { %v8282_v33 = vrot.slane %v3866_v23, 4  ;;  %v1401_v10 = vrot.slane %v1399_v44, 4  ;;  %v3890_v31 = vor.u32 %v3889_v54, %v3886_v52  ;;  %v9232_v23 = vcombine.low %v8101_v59, %v8109_v25  ;;  %v7295_v18 = vld [vmem:[%s7433_s16 + $0x88] sm:$0xf]  ;;  %v5889_v5 = vld [vmem:[%s7433_s16 + $0x44] sm:$0x1] }
  0xca   : > { %v1406_v3 = vrot.slane %v7295_v18, 5  ;;  %v8309_v59 = vcombine.low %v3848_v0, %v3858_v46  ;;  %v5890_v52 = vld [vmem:[%s7433_s16 + $0x48] sm:$0xf]  ;;  %v3910_v54 = vrot.slane %v3908_v28, 4  ;;  %v3923_v22 = vrot.slane %v3921_v2, 4 }
  0xcb   : > { %6763 = vmatpush3.bf16.msra.mxu0 %v7228_v50  ;;  %v1402_v50 = vrot.slane %v7294_v19, 5  ;;  %v7225_v19 = vld [vmem:[%s7433_s16 + $0x90] sm:$0xff]   ;;  %v3872_v0 = vsel %vm7465_vm2, %v8282_v33, %v8227_v17  ;;  %v3891_v46 = vrot.slane %v3890_v31, 4  ;;  %v3882_v28 = vsel %vm7465_vm2, %v8291_v13, %v8284_v1  ;;  %v8340_v33 = vld [vmem:[%s7433_s16 + $0x58] sm:$0xf]  ;;  %v7226_v31 = vld [vmem:[%s9209_s1 + $0xc8] sm:$0xff]  }
  0xcc   : > { %6764 = vmatprep.subr.bf16.mxu0 %v7232_v20  ;;  %v3901_v38 = vrot.slane %v3900_v12, 4  ;;  %v1408_v2 = vrot.slane %v1406_v3, 4  ;;  %v5893_v17 = vld [vmem:[%s7433_s16 + $0x54] sm:$0xf]  ;;  %v3927_v1 = vshll.u32 %v5889_v5, 16  ;;  %v3932_v13 = vshrl.u32 %v5890_v52, 16 }
  0xcd   : > { %6733 = vmatmul.mubr.bf16.gmra.mrb[12].mxu0 %v7219_v48  ;;  %v3903_v48 = vshll.u32 %v5886_v34, 16  ;;  %v8336_v7 = vsel %vm7711_vm5, %v1401_v10, %v1402_v50  ;;  %v3935_v50 = vshll.u32 %v5890_v52, 16  ;;  %v3914_v10 = vor.u32 %v3913_v58, %v3910_v54  ;;  %v7227_v54 = vld [vmem:[%s7433_s16 + $0x9c] sm:$0xff]   ;;  %v7301_v41 = vld [vmem:[%s7433_s16 + $0xac] sm:$0xf] }
  0xce   : > { %6509 = vmatmul.mubr.bf16.gmra.mrb[28].mxu1 %v9231_v42  ;;  %6736 = vmatprep.mubr.bf16.mxu0 %v7221_v53  ;;  %v5529_v53 = vrot.slane %v1287_v62, 9  ;;  %v7296_v42 = vld [vmem:[%s7433_s16 + $0x8c] sm:$0x1]  ;;  %v3965_v5 = vshll.u32 %v8340_v33, 16  ;;  %v9234_v52 = vcombine.low %v8117_v63, %v8125_v8  ;;  %v8376_v63 = vld [vmem:[%s7433_s16 + $0x50] sm:$0x1] }
  0xcf   : > { %6528 = vmatprep.mubr.bf16.mxu1 %v9232_v23  ;;  %6765 = vmatpush3.bf16.msra.mxu0 %v7232_v20  ;;  %v8315_v20 = vsel %vm7711_vm5, %v5528_v32, %v1399_v44  ;;  %v3905_v62 = vrot.slane %v3903_v48, 5  ;;  %v1409_v23 = vrot.slane %v7296_v42, 5  ;;  %v1288_v44 = vld [vmem:[%s7433_s16 + $0x90] sm:$0xe]  ;;  %v8328_v32 = vld [vmem:[%s7433_s16 + $0x4c] sm:$0xf]  ;;  %v3924_v48 = vor.u32 %v3923_v22, %v8318_v51 }
  0xd0   : > { %6766 = vmatprep.subr.bf16.mxu0 %v7236_v40  ;;  %v3941_v12 = vshll.u32 %v8328_v32, 16  ;;  %v3945_v18 = vshrl.u32 %v8328_v32, 16  ;;  %v9233_v42 = vcombine.low %v8105_v30, %v8113_v6  ;;  %v7230_v30 = vld [vmem:[%s9209_s1 + $0xd0] sm:$0xff]   ;;  %v3896_v6 = vsel %vm7465_vm2, %v3891_v46, %v8280_v39  ;;  %v7229_v8 = vld [vmem:[%s7433_s16 + $0xa8] sm:$0xff]   ;;  %v8383_v39 = vld [vmem:[%s7433_s16 + $0x5c] sm:$0x1] }
  0xd1   : > { %v3906_v58 = vsel %vm7465_vm2, %v3901_v38, %v3905_v62  ;;  %v5530_v22 = vrot.slane %v1288_v44, 9  ;;  %v3937_v25 = vrot.slane %v3935_v50, 5  ;;  %9235 = vst [vmem:[#allocation3_spill] sm:$0xff] %v8383_v39  ;;  %v3915_v46 = vrot.slane %v3914_v10, 4 }
  0xd2   : > { %v3925_v62 = vrot.slane %v3924_v48, 4  ;;  %v8385_v38 = vrot.slane %v3941_v12, 5  ;;  %v8387_v34 = vrot.slane %v3965_v5, 5  ;;  %v8392_v50 = vcombine.low %v3872_v0, %v3882_v28  ;;  %v5896_v28 = vld [vmem:[%s7433_s16 + $0x60] sm:$0xf] }
  0xd3   : > { %6767 = vmatpush3.bf16.msra.mxu0 %v7236_v40  ;;  %v8348_v40 = vsel %vm7711_vm5, %v5529_v53, %v1406_v3  ;;  %v3956_v53 = vshrl.u32 %v5893_v17, 16  ;;  %v3959_v3 = vshll.u32 %v5893_v17, 16  ;;  %v7297_v17 = vld [vmem:[%s7433_s16 + $0x94] sm:$0xf]  ;;  %v8396_v48 = vcombine.low %v3896_v6, %v3906_v58 }
  0xd4   : > { %6800 = vmatprep.subr.bf16.mxu0 %v8296_v21  ;;  %v3951_v0 = vshll.u32 %v8376_v63, 16  ;;  %v3920_v6 = vsel %vm7465_vm2, %v3915_v46, %v8318_v51  ;;  %v9238_v46 = vcombine.low %v8139_v61, %v8143_v36 }
  0xd5   : > { %6737 = vmatmul.mubr.bf16.gmra.mrb[16].mxu0 %v7223_v43  ;;  %v3969_v43 = vshrl.u32 %v8340_v33, 16  ;;  %v3958_v44 = vrot.slane %v3956_v53, 4  ;;  %v7298_v53 = vld [vmem:[%s7433_s16 + $0x98] sm:$0x1] }
  0xd6   : > { %6529 = vmatmul.mubr.bf16.vlgmr.msra.gmra.mrb[0].mxu1 %v9233_v42  ;;  %6740 = vmatprep.mubr.bf16.mxu0 %v7225_v19  ;;  %v8379_v19 = vrot.slane %v3927_v1, 5  ;;  %v1413_v42 = vrot.slane %v7297_v17, 5  ;;  %v7299_v17 = vld [vmem:[%s7433_s16 + $0xa0] sm:$0xf]  ;;  %v3953_v36 = vrot.slane %v3951_v0, 5 }
  0xd7   : > { %6561 = vmatpush3.bf16.msra.mxu1 %v8058_v60  ;;  %6532 = vmatprep.mubr.bf16.mxu1 %v9234_v52  ;;  %v8373_v60 = vsel %vm7711_vm5, %v1408_v2, %v1409_v23  ;;  %v3934_v52 = vrot.slane %v3932_v13, 4  ;;  %v3947_v23 = vrot.slane %v3945_v18, 4  ;;  %v3961_v2 = vrot.slane %v3959_v3, 5  ;;  %v7234_v13 = vld [vmem:[%s9209_s1 + $0xd8] sm:$0xff]  }
  0xd8   : > { %6562 = vmatprep.subr.bf16.mxu1 %v7226_v31  ;;  %v3971_v1 = vrot.slane %v3969_v43, 4  ;;  %v1289_v18 = vld [vmem:[%s7433_s16 + $0x9c] sm:$0xe]  ;;  %v1416_v3 = vrot.slane %v7298_v53, 5  ;;  %v8409_v43 = vld [vmem:[%s7433_s16 + $0x64] sm:$0xf] }
  0xd9   : > { %v3938_v5 = vor.u32 %v3937_v25, %v3934_v52  ;;  %9236 = vst [vmem:[#allocation4_spill] sm:$0xff] %v8409_v43  ;;  %v3948_v58 = vor.u32 %v3947_v23, %v8385_v38  ;;  %v1420_v12 = vrot.slane %v7299_v17, 5  ;;  %v9237_v25 = vcombine.low %v8129_v24, %v8133_v35  ;;  %v7231_v23 = vld [vmem:[%s7433_s16 + $0xb4] sm:$0xff]   ;;  %v7237_v24 = vld [vmem:[%s9209_s1 + $0xe0] sm:$0xff]   ;;  %v5899_v17 = vld [vmem:[%s7433_s16 + $0x6c] sm:$0xf] }
  0xda   : > { %v1415_v52 = vrot.slane %v1413_v42, 4  ;;  %v3962_v53 = vor.u32 %v3961_v2, %v3958_v44  ;;  %v3972_v51 = vor.u32 %v3971_v1, %v8387_v34  ;;  %v3980_v35 = vshrl.u32 %v5896_v28, 16  ;;  %v7300_v2 = vld [vmem:[%s7433_s16 + $0xa4] sm:$0x1] }
  0xdb   : > { %6563 = vmatpush3.bf16.msra.mxu1 %v7226_v31  ;;  %v8403_v31 = vsel %vm7711_vm5, %v5530_v22, %v1413_v42  ;;  %v3975_v22 = vshll.u32 %v8383_v39, 16  ;;  %v3993_v42 = vshrl.u32 %v8409_v43, 16  ;;  %v3939_v61 = vrot.slane %v3938_v5, 4  ;;  %v8578_v39 = vld [vmem:[%s7433_s16 + $0x98] sm:$0x1] }
  0xdc   : > { %6564 = vmatprep.subr.bf16.mxu1 %v7230_v30  ;;  %v5531_v44 = vrot.slane %v1289_v18, 9  ;;  %v1423_v1 = vrot.slane %v7300_v2, 5  ;;  %v3963_v5 = vrot.slane %v3962_v53, 4  ;;  %v3973_v18 = vrot.slane %v3972_v51, 4  ;;  %9252 = vst [vmem:[#allocation14_spill] sm:$0xff] %v8578_v39 }
  0xdd   : > { %6741 = vmatmul.mubr.bf16.gmra.mrb[20].mxu0 %v7227_v54  ;;  %v3930_v54 = vsel %vm7465_vm2, %v3925_v62, %v8379_v19  ;;  %v3989_v19 = vshll.u32 %v8409_v43, 16  ;;  %v7233_v62 = vld [vmem:[%s7433_s16 + $0xc0] sm:$0xff]   ;;  %v3977_v10 = vrot.slane %v3975_v22, 5  ;;  %v8445_v43 = vsel %vm7711_vm5, %v1415_v52, %v1416_v3 }
  0xde   : > { %6533 = vmatmul.mubr.bf16.gmra.mrb[4].mxu1 %v9237_v25  ;;  %6744 = vmatprep.mubr.bf16.mxu0 %v7229_v8  ;;  %v3983_v8 = vshll.u32 %v5896_v28, 16  ;;  %v3949_v25 = vrot.slane %v3948_v58, 4  ;;  %v1427_v28 = vrot.slane %v7301_v41, 5  ;;  %v8441_v55 = vcombine.low %v3920_v6, %v3930_v54  ;;  %v7239_v41 = vld [vmem:[%s9209_s1 + $0xe8] sm:$0xff]  }
  0xdf   : > { %6536 = vmatprep.mubr.bf16.mxu1 %v9238_v46  ;;  %6565 = vmatpush3.bf16.msra.mxu1 %v7230_v30  ;;  %v1290_v30 = vld [vmem:[%s7433_s16 + $0xa8] sm:$0xe]  ;;  %v1422_v46 = vrot.slane %v1420_v12, 4  ;;  %v3982_v0 = vrot.slane %v3980_v35, 4  ;;  %v8447_v58 = vrot.slane %v3989_v19, 5  ;;  %v3995_v22 = vrot.slane %v3993_v42, 4 }
  0xe0   : > { %6566 = vmatprep.subr.bf16.mxu1 %v7234_v13  ;;  %v3985_v2 = vrot.slane %v3983_v8, 5  ;;  %v3944_v3 = vsel %vm7465_vm2, %v3939_v61, %v8385_v38  ;;  %v8457_v6 = vsel %vm7711_vm5, %v5531_v44, %v1420_v12  ;;  %v4004_v54 = vshrl.u32 %v5899_v17, 16  ;;  %v7302_v38 = vld [vmem:[%s7433_s16 + $0xb0] sm:$0x1]  ;;  %v1291_v19 = vld [vmem:[%s7433_s16 + $0xb4] sm:$0xe] }
  0xe1   : > { %v4007_v52 = vshll.u32 %v5899_v17, 16  ;;  %v3954_v53 = vsel %vm7465_vm2, %v3949_v25, %v3953_v36  ;;  %v8466_v51 = vsel %vm7711_vm5, %v1422_v46, %v1423_v1  ;;  %v5532_v35 = vrot.slane %v1290_v30, 9  ;;  %v8488_v30 = vld [vmem:[%s7433_s16 + $0x74] sm:$0x1]  ;;  %v7303_v25 = vld [vmem:[%s7433_s16 + $0xb8] sm:$0xf] }
  0xe2   : > { %v1430_v8 = vrot.slane %v7302_v38, 5  ;;  %v9241_v12 = vcombine.low %v8160_v49, %v8174_v4  ;;  %v3968_v42 = vsel %vm7465_vm2, %v3963_v5, %v8387_v34  ;;  %v3978_v61 = vsel %vm7465_vm2, %v3973_v18, %v3977_v10  ;;  %v7235_v4 = vld [vmem:[%s7433_s16 + $0xcc] sm:$0xff]   ;;  %9243 = vst [vmem:[#allocation7_spill] sm:$0xff] %v8488_v30  ;;  %v5905_v38 = vld [vmem:[%s7433_s16 + $0x84] sm:$0xf] }
  0xe3   : > { %6567 = vmatpush3.bf16.msra.mxu1 %v7234_v13  ;;  %v8460_v13 = vld [vmem:[%s7433_s16 + $0x70] sm:$0xf]  ;;  %v1429_v36 = vrot.slane %v1427_v28, 4  ;;  %v3999_v44 = vshll.u32 %v8439_v47, 16  ;;  %v9242_v49 = vcombine.low %v8196_v26, %v8200_v56  ;;  %v3996_v1 = vor.u32 %v3995_v22, %v8447_v58  ;;  %v8505_v22 = vld [vmem:[%s7433_s16 + $0x7c] sm:$0xf] }
  0xe4   : > { %6568 = vmatprep.subr.bf16.mxu1 %v7237_v24  ;;  %9240 = vst [vmem:[#allocation6_spill] sm:$0xff] %v8460_v13  ;;  %v4013_v34 = vshll.u32 %v8460_v13, 16  ;;  %v4017_v10 = vshrl.u32 %v8460_v13, 16  ;;  %v5533_v17 = vrot.slane %v1291_v19, 9  ;;  %v1434_v46 = vrot.slane %v7303_v25, 5  ;;  %9244 = vst [vmem:[#allocation8_spill] sm:$0xff] %v8505_v22 }
  0xe5   : > { %6745 = vmatmul.mubr.bf16.gmra.mrb[24].mxu0 %v7231_v23  ;;  %v7241_v23 = vld [vmem:[%s9209_s1 + $0xf0] sm:$0xff]   ;;  %v4006_v26 = vrot.slane %v4004_v54, 4  ;;  %v4009_v56 = vrot.slane %v4007_v52, 5  ;;  %v8496_v18 = vcombine.low %v3944_v3, %v3954_v53  ;;  %v8508_v19 = vcombine.low %v3968_v42, %v3978_v61  ;;  %v7304_v3 = vld [vmem:[%s7433_s16 + $0xbc] sm:$0x1] }
  0xe6   : > { %6537 = vmatmul.mubr.bf16.gmra.mrb[8].mxu1 %v9241_v12  ;;  %6748 = vmatprep.mubr.bf16.mxu0 %v7233_v62  ;;  %v3986_v62 = vor.u32 %v3985_v2, %v3982_v0  ;;  %v8502_v2 = vsel %vm7711_vm5, %v5532_v35, %v1427_v28  ;;  %v8512_v54 = vsel %vm7711_vm5, %v1429_v36, %v1430_v8  ;;  %v8514_v52 = vrot.slane %v3999_v44, 5  ;;  %v7243_v12 = vld [vmem:[%s9209_s1 + $0xf8] sm:$0xff]   ;;  %v8521_v28 = vld [vmem:[%s7433_s16 + $0x88] sm:$0xf] }
  0xe7   : > { %6540 = vmatprep.mubr.bf16.mxu1 %v9242_v49  ;;  %6569 = vmatpush3.bf16.msra.mxu1 %v7237_v24  ;;  %v5902_v24 = vld [vmem:[%s7433_s16 + $0x78] sm:$0xf]  ;;  %v1437_v53 = vrot.slane %v7304_v3, 5  ;;  %9245 = vst [vmem:[#allocation9_spill] sm:$0xff] %v8521_v28  ;;  %v8525_v42 = vrot.slane %v3996_v1, 4  ;;  %v8527_v61 = vrot.slane %v4013_v34, 5  ;;  %v8531_v36 = vsel %vm7711_vm5, %v5533_v17, %v1434_v46 }
  0xe8   : > { %6570 = vmatprep.subr.bf16.mxu1 %v7239_v41  ;;  %v8523_v35 = vrot.slane %v3986_v62, 4  ;;  %v4019_v8 = vrot.slane %v4017_v10, 4  ;;  %v1436_v44 = vrot.slane %v1434_v46, 4  ;;  %v4010_v49 = vor.u32 %v4009_v56, %v4006_v26  ;;  %v5908_v3 = vld [vmem:[%s7433_s16 + $0x90] sm:$0xf] }
  0xe9   : > { %v4023_v25 = vshll.u32 %v8488_v30, 16  ;;  %v4031_v0 = vshll.u32 %v5902_v24, 16  ;;  %v4037_v62 = vshll.u32 %v8505_v22, 16  ;;  %v4041_v1 = vshrl.u32 %v8505_v22, 16  ;;  %v8538_v34 = vld [vmem:[%s7433_s16 + $0x94] sm:$0xf] }
  0xea   : > { %9246 = vst [vmem:[#allocation10_spill] sm:$0xff] %v8538_v34  ;;  %v9247_v10 = vcombine.low %v8240_v27, %v8244_v29  ;;  %v4052_v17 = vshrl.u32 %v5905_v38, 16  ;;  %v4055_v46 = vshll.u32 %v5905_v38, 16  ;;  %v4065_v26 = vshrl.u32 %v8521_v28, 16  ;;  %v5911_v38 = vld [vmem:[%s7433_s16 + $0x9c] sm:$0xf] }
  0xeb   : > { %6571 = vmatpush3.bf16.msra.mxu1 %v7239_v41  ;;  %v4028_v41 = vshrl.u32 %v5902_v24, 16  ;;  %v9248_v56 = vcombine.low %v8251_v45, %v8255_v14  ;;  %v4020_v29 = vor.u32 %v4019_v8, %v8527_v61  ;;  %v4079_v24 = vshll.u32 %v5908_v3, 16  ;;  %v8560_v45 = vld [vmem:[%s7433_s16 + $0x80] sm:$0x1] }
  0xec   : > { %6572 = vmatprep.subr.bf16.mxu1 %v7241_v23  ;;  %v8557_v5 = vrot.slane %v4023_v25, 5  ;;  %9249 = vst [vmem:[#allocation11_spill] sm:$0xff] %v8560_v45  ;;  %v4085_v14 = vshll.u32 %v8538_v34, 16  ;;  %v4033_v27 = vrot.slane %v4031_v0, 5  ;;  %v4043_v8 = vrot.slane %v4041_v1, 4 }
  0xed   : > { %6749 = vmatmul.mubr.bf16.gmra.mrb[28].mxu0 %v7235_v4  ;;  %v4061_v4 = vshll.u32 %v8521_v28, 16  ;;  %v8564_v28 = vrot.slane %v4037_v62, 5  ;;  %v8570_v22 = vld [vmem:[%s7433_s16 + $0xa0] sm:$0xf]  ;;  %v4054_v25 = vrot.slane %v4052_v17, 4  ;;  %v4057_v30 = vrot.slane %v4055_v46, 5 }
  0xee   : > { %6541 = vmatmul.mubr.bf16.gmra.mrb[12].mxu1 %v9247_v10  ;;  %6768 = vmatprep.mubr.bf16.mxu0 %v8309_v59  ;;  %v4076_v59 = vshrl.u32 %v5908_v3, 16  ;;  %v8555_v10 = vrot.slane %v4010_v49, 4  ;;  %v8567_v3 = vld [vmem:[%s7433_s16 + $0x8c] sm:$0x1]  ;;  %9251 = vst [vmem:[#allocation13_spill] sm:$0xff] %v8570_v22  ;;  %v4067_v47 = vrot.slane %v4065_v26, 4  ;;  %v8587_v62 = vsel %vm7711_vm5, %v1436_v44, %v1437_v53 }
  0xef   : > { %6544 = vmatprep.mubr.bf16.mxu1 %v9248_v56  ;;  %6573 = vmatpush3.bf16.msra.mxu1 %v7241_v23  ;;  %v4089_v23 = vshrl.u32 %v8538_v34, 16  ;;  %v4030_v56 = vrot.slane %v4028_v41, 4  ;;  %9250 = vst [vmem:[#allocation12_spill] sm:$0xff] %v8567_v3  ;;  %v7240_v49 = vld [vmem:[%s9209_s1 + $0x208] sm:$0xff]   ;;  %v8575_v13 = vrot.slane %v4061_v4, 5  ;;  %v4081_v34 = vrot.slane %v4079_v24, 5 }
  0xf0   : > { %6574 = vmatprep.subr.bf16.mxu1 %v7243_v12  ;;  %v5914_v41 = vld [vmem:[%s7433_s16 + $0xa8] sm:$0xf]  ;;  %v4078_v1 = vrot.slane %v4076_v59, 4  ;;  %v8592_v17 = vld [vmem:[%s9209_s1 + $0x100] sm:$0xff]   ;;  %v8595_v46 = vrot.slane %v4085_v14, 5  ;;  %v4100_v26 = vshrl.u32 %v5911_v38, 16  ;;  %v9254_v24 = vcombine.low %v8259_v16, %v8269_v15 }
  0xf1   : > { %9253 = vst [vmem:[#allocation15_spill] sm:$0xff] %v8592_v17  ;;  %v4091_v4 = vrot.slane %v4089_v23, 4  ;;  %v4103_v0 = vshll.u32 %v5911_v38, 16  ;;  %v8598_v53 = vrot.slane %v4020_v29, 4  ;;  %v4109_v44 = vshll.u32 %v8570_v22, 16  ;;  %v7242_v16 = vld [vmem:[%s9209_s1 + $0x210] sm:$0xff]  }
  0xf2   : > { %v4113_v59 = vshrl.u32 %v8570_v22, 16  ;;  %v4034_v14 = vor.u32 %v4033_v27, %v4030_v56  ;;  %v4044_v38 = vor.u32 %v4043_v8, %v8564_v28  ;;  %v4058_v23 = vor.u32 %v4057_v30, %v4054_v25  ;;  %v8610_v29 = vld [vmem:[%s7433_s16 + $0xac] sm:$0xf]  ;;  %v8623_v25 = vld [vmem:[%s7433_s16 + $0xa4] sm:$0x1] }
  0xf3   : > { %6575 = vmatpush3.bf16.msra.mxu1 %v7243_v12  ;;  %v4047_v12 = vshll.u32 %v8560_v45, 16  ;;  %9255 = vst [vmem:[#allocation16_spill] sm:$0xff] %v8610_v29  ;;  %v4068_v15 = vor.u32 %v4067_v47, %v8575_v13  ;;  %v4124_v27 = vshrl.u32 %v5914_v41, 16  ;;  %v4127_v30 = vshll.u32 %v5914_v41, 16 }
  0xf4   : > { %6848 = vmatprep.subr.bf16.mxu1 %v8592_v17  ;;  %v9256_v17 = vcombine.low %v8315_v20, %v8336_v7  ;;  %v4082_v56 = vor.u32 %v4081_v34, %v4078_v1  ;;  %v4092_v8 = vor.u32 %v4091_v4, %v8595_v46  ;;  %v4102_v20 = vrot.slane %v4100_v26, 4 }
  0xf5   : > { %6769 = vmatmul.mubr.bf16.vlgmr.msra.gmra.mrb[0].mxu0 %v8392_v50  ;;  %v4071_v50 = vshll.u32 %v8567_v3, 16  ;;  %v4105_v7 = vrot.slane %v4103_v0, 5  ;;  %v4137_v22 = vshrl.u32 %v8610_v29, 16  ;;  %v4035_v47 = vrot.slane %v4034_v14, 4  ;;  %v7244_v0 = vld [vmem:[%s9209_s1 + $0x218] sm:$0xff]  }
  0xf6   : > { %6545 = vmatmul.mubr.bf16.gmra.mrb[16].mxu1 %v9254_v24  ;;  %6801 = vmatpush3.bf16.msra.mxu0 %v8296_v21  ;;  %v4095_v21 = vshll.u32 %v8578_v39, 16  ;;  %v4133_v24 = vshll.u32 %v8610_v29, 16  ;;  %v4045_v39 = vrot.slane %v4044_v38, 4  ;;  %v4049_v3 = vrot.slane %v4047_v12, 5 }
  0xf7   : > { %6548 = vmatprep.mubr.bf16.mxu1 %v9256_v17  ;;  %6772 = vmatprep.mubr.bf16.mxu0 %v8396_v48  ;;  %v8625_v17 = vrot.slane %v4109_v44, 5  ;;  %v4115_v48 = vrot.slane %v4113_v59, 4  ;;  %v4073_v41 = vrot.slane %v4071_v50, 5  ;;  %v4059_v34 = vrot.slane %v4058_v23, 4 }
  0xf8   : > { %6802 = vmatprep.subr.bf16.mxu0 %v7240_v49  ;;  %v4069_v1 = vrot.slane %v4068_v15, 4  ;;  %v4126_v4 = vrot.slane %v4124_v27, 4  ;;  %v4129_v45 = vrot.slane %v4127_v30, 5  ;;  %v4083_v26 = vrot.slane %v4082_v56, 4  ;;  %v8691_v27 = vld [vmem:[%s7433_s16 + $0xbc] sm:$0x1] }
  0xf9   : > { %v4097_v44 = vrot.slane %v4095_v21, 5  ;;  %v4106_v59 = vor.u32 %v4105_v7, %v4102_v20  ;;  %v4119_v29 = vshll.u32 %v8623_v25, 16  ;;  %v4116_v12 = vor.u32 %v4115_v48, %v8625_v17  ;;  %v8658_v21 = vld [vmem:[%s7433_s16 + $0xb0] sm:$0x1] }
  0xfa   : > { %6803 = vmatpush3.bf16.msra.mxu0 %v7240_v49  ;;  %v4093_v49 = vrot.slane %v4092_v8, 4  ;;  %v8635_v14 = vrot.slane %v4133_v24, 5  ;;  %v4139_v38 = vrot.slane %v4137_v22, 4  ;;  %v9257_v23 = vor.u32 %v8043_v57, %v8041_v11 }
  0xfb   : > { %6804 = vmatprep.subr.bf16.mxu0 %v7242_v16  ;;  %v9258_v15 = vcombine.low %v8348_v40, %v8373_v60  ;;  %v4026_v22 = vsel %vm7465_vm2, %v8598_v53, %v8557_v5  ;;  %v4040_v57 = vsel %vm7465_vm2, %v4035_v47, %v8564_v28  ;;  %v9259_v40 = vcombine.low %v8403_v31, %v8445_v43  ;;  %v7247_v31 = vld [vmem:[%s9209_s1 + $0x220] sm:$0xff]  }
  0xfc   : > { %v8640_v50 = vrot.slane %v9257_v23, 4  ;;  %v4050_v60 = vsel %vm7465_vm2, %v4045_v39, %v4049_v3  ;;  %v4130_v5 = vor.u32 %v4129_v45, %v4126_v4  ;;  %v4074_v28 = vsel %vm7465_vm2, %v4069_v1, %v4073_v41  ;;  %v5970_v41 = vld [vmem:[%s7433_s16 + $0x48] sm:$0xe] }
  0xfd   : > { %6773 = vmatmul.mubr.bf16.gmra.mrb[4].mxu0 %v8441_v55  ;;  %v4016_v55 = vsel %vm7465_vm2, %v8555_v10, %v8527_v61  ;;  %v5917_v61 = vld [vmem:[%s7433_s16 + $0xb4] sm:$0xf]  ;;  %v8670_v10 = vld [vmem:[%s7433_s16 + $0xb8] sm:$0xf]  ;;  %v4088_v39 = vsel %vm7465_vm2, %v4083_v26, %v8595_v46  ;;  %v8680_v43 = vrot.slane %v4106_v59, 4  ;;  %v8682_v3 = vrot.slane %v4119_v29, 5 }
  0xfe   : > { %6549 = vmatmul.mubr.bf16.gmra.mrb[20].mxu1 %v9258_v15  ;;  %6776 = vmatprep.mubr.bf16.mxu0 %v8496_v18  ;;  %v4064_v18 = vsel %vm7465_vm2, %v4059_v34, %v8575_v13  ;;  %v4098_v13 = vsel %vm7465_vm2, %v4093_v49, %v4097_v44  ;;  %v8686_v45 = vrot.slane %v4116_v12, 4  ;;  %v4140_v53 = vor.u32 %v4139_v38, %v8635_v14  ;;  %v5971_v26 = vld [vmem:[%s7433_s16 + $0x54] sm:$0xe] }
  0xff   : > { %6552 = vmatprep.mubr.bf16.mxu1 %v9259_v40  ;;  %6805 = vmatpush3.bf16.msra.mxu0 %v7242_v16  ;;  %v4143_v16 = vshll.u32 %v8658_v21, 16  ;;  %v9260_v46 = vsel %vm7465_vm2, %v8525_v42, %v8514_v52  ;;  %v9261_v29 = vsel %vm7465_vm2, %v8523_v35, %v8447_v58  ;;  %v4148_v56 = vshrl.u32 %v5917_v61, 16 }
 0x100   : > { %6806 = vmatprep.subr.bf16.mxu0 %v7244_v0  ;;  %v5948_v30 = vcombine.low %v9261_v29, %v9260_v46  ;;  %v4151_v8 = vshll.u32 %v5917_v61, 16  ;;  %v4157_v20 = vshll.u32 %v8670_v10, 16  ;;  %v5564_v7 = vcombine.low %v8502_v2, %v8512_v54  ;;  %v7250_v2 = vld [vmem:[%s9209_s1 + $0x228] sm:$0xff]   ;;  %v5920_v54 = vld [vmem:[%s7433_s16 + $0xc0] sm:$0xf]  ;;  %v9265_v29 = vld [vmem:[#allocation5_spill] sm:$0xff] }
 0x101   : > { %v5565_v48 = vcombine.low %v8531_v36, %v8587_v62  ;;  %v5949_v24 = vcombine.low %v4016_v55, %v4026_v22  ;;  %v8708_v52 = vrot.slane %v4130_v5, 4  ;;  %v5950_v42 = vcombine.low %v4040_v57, %v4050_v60 }
 0x102   : > { %v8710_v58 = vcombine.low %v4064_v18, %v4074_v28  ;;  %v8712_v35 = vcombine.low %v4088_v39, %v4098_v13  ;;  %v4112_v47 = vsel %vm7465_vm2, %v8680_v43, %v8625_v17  ;;  %v4122_v34 = vsel %vm7465_vm2, %v8686_v45, %v8682_v3  ;;  %v5973_v28 = vld [vmem:[%s7433_s16 + $0x6c] sm:$0xe] }
 0x103   : > { %6807 = vmatpush3.bf16.msra.mxu0 %v7244_v0  ;;  %v8728_v1 = vrot.slane %v4140_v53, 4  ;;  %v8730_v4 = vrot.slane %v4143_v16, 5  ;;  %v4161_v0 = vshrl.u32 %v8670_v10, 16  ;;  %v9262_v44 = vcombine.low %v8457_v6, %v8466_v51  ;;  %v7253_v6 = vld [vmem:[%s9209_s1 + $0x230] sm:$0xff]   ;;  %v8752_v51 = vld [vmem:[%s7433_s16 + $0xc4] sm:$0xf] }
 0x104   : > { %6808 = vmatprep.subr.bf16.mxu0 %v7247_v31  ;;  %v8737_v59 = vrot.slane %v4148_v56, 4  ;;  %v8741_v49 = vrot.slane %v4157_v20, 5  ;;  %v4167_v12 = vshll.u32 %v8691_v27, 16  ;;  %v4136_v38 = vsel %vm7465_vm2, %v8708_v52, %v8635_v14  ;;  %v5972_v14 = vld [vmem:[%s7433_s16 + $0x60] sm:$0xe]  ;;  %v9263_v39 = vld [vmem:[#allocation3_spill] sm:$0xff] }
 0x105   : > { %6777 = vmatmul.mubr.bf16.gmra.mrb[8].mxu0 %v8508_v19  ;;  %v8739_v19 = vrot.slane %v4151_v8, 5  ;;  %v4172_v23 = vshrl.u32 %v5920_v54, 16  ;;  %v5986_v15 = vrot.slane %v5970_v41, 9  ;;  %v4635_v55 = vrot.slane %v8328_v32, 5  ;;  %v7245_v13 = vld [vmem:[%s7433_s16 + $0xc] sm:$0xff]   ;;  %v7256_v56 = vld [vmem:[%s9209_s1 + $0x238] sm:$0xff]  }
 0x106   : > { %6553 = vmatmul.mubr.bf16.gmra.mrb[24].mxu1 %v9262_v44  ;;  %6780 = vmatprep.mubr.bf16.mxu0 %v5948_v30  ;;  %v4175_v22 = vshll.u32 %v5920_v54, 16  ;;  %v4638_v57 = vrot.slane %v8376_v63, 5  ;;  %v5987_v40 = vrot.slane %v5971_v26, 9  ;;  %v4642_v60 = vrot.slane %v8340_v33, 5  ;;  %v9264_v16 = vld [vmem:[#allocation4_spill] sm:$0xff]  ;;  %v9266_v52 = vld [vmem:[#allocation6_spill] sm:$0xff] }
 0x107   : > { %6556 = vmatprep.mubr.bf16.mxu1 %v5564_v7  ;;  %6809 = vmatpush3.bf16.msra.mxu0 %v7247_v31  ;;  %v4146_v18 = vsel %vm7465_vm2, %v8728_v1, %v8730_v4  ;;  %v8762_v5 = vrot.slane %v4161_v0, 4  ;;  %v8766_v61 = vsel %vm7711_vm5, %v5986_v15, %v4635_v55  ;;  %v4637_v32 = vrot.slane %v4635_v55, 4  ;;  %v9267_v4 = vld [vmem:[#allocation7_spill] sm:$0xff] }
 0x108   : > { %6810 = vmatprep.subr.bf16.mxu0 %v7250_v2  ;;  %v4181_v31 = vshll.u32 %v8752_v51, 16  ;;  %v8772_v63 = vsel %vm7711_vm5, %v5987_v40, %v4642_v60  ;;  %v4644_v33 = vrot.slane %v4642_v60, 4  ;;  %v4645_v3 = vrot.slane %v9263_v39, 5  ;;  %v8803_v26 = vld [vmem:[%s7433_s16 + $0xc8] sm:$0x1]  ;;  %v7246_v40 = vld [vmem:[%s7433_s16 + $0x18] sm:$0xff]  }
 0x109   : > { %v8778_v45 = vsel %vm7711_vm5, %v4637_v32, %v4638_v57  ;;  %v5988_v53 = vrot.slane %v5972_v14, 9  ;;  %v4649_v46 = vrot.slane %v9264_v16, 5  ;;  %v4652_v30 = vrot.slane %v9265_v29, 5  ;;  %v7248_v39 = vld [vmem:[%s7433_s16 + $0x24] sm:$0xff]  }
 0x10a   : > { %v6018_v8 = vcombine.low %v8766_v61, %v8778_v45  ;;  %v8789_v20 = vsel %vm7711_vm5, %v4644_v33, %v4645_v3  ;;  %v5989_v7 = vrot.slane %v5973_v28, 9  ;;  %v4659_v0 = vrot.slane %v9267_v4, 5  ;;  %v9269_v28 = vld [vmem:[#allocation11_spill] sm:$0xff]  ;;  %v5679_v61 = vld [vmem:[%s7433_s16 + $0x90] sm:$0xf] }
 0x10b   : > { %6811 = vmatpush3.bf16.msra.mxu0 %v7250_v2  ;;  %v4656_v2 = vrot.slane %v9266_v52, 5  ;;  %v6019_v54 = vcombine.low %v8772_v63, %v8789_v20  ;;  %v8796_v41 = vsel %vm7711_vm5, %v5988_v53, %v4649_v46  ;;  %v4651_v1 = vrot.slane %v4649_v46, 4  ;;  %v9270_v53 = vld [vmem:[#allocation2_spill] sm:$0xff]  ;;  %v7262_v45 = vld [vmem:[%s7433_s16 + $0xa8] sm:$0xff]  }
 0x10c   : > { %6812 = vmatprep.subr.bf16.mxu0 %v7253_v6  ;;  %v8805_v44 = vrot.slane %v4172_v23, 4  ;;  %v8818_v36 = vcombine.low %v4112_v47, %v4122_v34  ;;  %v4154_v62 = vor.u32 %v8739_v19, %v8737_v59  ;;  %v5974_v23 = vld [vmem:[%s7433_s16 + $0x78] sm:$0xe]  ;;  %v8830_v57 = vrot.slane %v4167_v12, 5  ;;  %v5923_v12 = vld [vmem:[%s7433_s16 + $0xcc] sm:$0xf] }
 0x10d   : > { %6781 = vmatmul.mubr.bf16.gmra.mrb[12].mxu0 %v5949_v24  ;;  %v8807_v24 = vrot.slane %v4175_v22, 5  ;;  %v8811_v15 = vsel %vm7711_vm5, %v5989_v7, %v4656_v2  ;;  %v4658_v55 = vrot.slane %v4656_v2, 4  ;;  %v8828_v22 = vcombine.low %v4136_v38, %v4146_v18  ;;  %v5673_v47 = vld [vmem:[%s7433_s16 + $0x78] sm:$0xf]  ;;  %v9268_v18 = vld [vmem:[#allocation8_spill] sm:$0xff] }
 0x10e   : > { %6557 = vmatmul.mubr.bf16.gmra.mrb[28].mxu1 %v5565_v48  ;;  %6784 = vmatprep.mubr.bf16.mxu0 %v5950_v42  ;;  %v4185_v48 = vshrl.u32 %v8752_v51, 16  ;;  %v8825_v42 = vsel %vm7711_vm5, %v4651_v1, %v4652_v30  ;;  %v4164_v34 = vor.u32 %v8762_v5, %v8741_v49  ;;  %v8841_v59 = vrot.slane %v4181_v31, 5  ;;  %v8855_v31 = vld [vmem:[%s7433_s16 + $0xd0] sm:$0xf]  ;;  %v9271_v1 = vld [vmem:[#allocation9_spill] sm:$0xff] }
 0x10f   : > { %6576 = vmatprep.mubr.bf16.mxu1 %v7245_v13  ;;  %6813 = vmatpush3.bf16.msra.mxu0 %v7253_v6  ;;  %v6020_v17 = vcombine.low %v8796_v41, %v8825_v42  ;;  %v8836_v43 = vsel %vm7711_vm5, %v4658_v55, %v4659_v0  ;;  %v4191_v19 = vshll.u32 %v8803_v26, 16  ;;  %v5975_v6 = vld [vmem:[%s7433_s16 + $0x84] sm:$0xe]  ;;  %v4178_v60 = vor.u32 %v8807_v24, %v8805_v44  ;;  %v9272_v24 = vld [vmem:[#allocation12_spill] sm:$0xff]  ;;  %v7326_v63 = vld [vmem:[%s7433_s16 + $0x8c] sm:$0x1] }
 0x110   : > { %6814 = vmatprep.subr.bf16.mxu0 %v7256_v56  ;;  %v6021_v38 = vcombine.low %v8811_v15, %v8836_v43  ;;  %v5990_v14 = vrot.slane %v5974_v23, 9  ;;  %v4663_v32 = vrot.slane %v9268_v18, 5  ;;  %v4666_v33 = vrot.slane %v9269_v28, 5 }
 0x111   : > { %v4187_v5 = vrot.slane %v4185_v48, 4  ;;  %v2413_v3 = vshrl.u32 %v5673_v47, 16  ;;  %v2416_v13 = vshll.u32 %v5673_v47, 16  ;;  %v2435_v16 = vsel %vm7465_vm2, %v8640_v50, %v9270_v53 }
 0x112   : > { %v4196_v46 = vshrl.u32 %v5923_v12, 16  ;;  %v8863_v29 = vsel %vm7711_vm5, %v5990_v14, %v4663_v32  ;;  %v4665_v30 = vrot.slane %v4663_v32, 4  ;;  %v5991_v7 = vrot.slane %v5975_v6, 9  ;;  %v7306_v6 = vld [vmem:[%s9209_s1 + $0x108] sm:$0xff]  }
 0x113   : > { %6815 = vmatpush3.bf16.msra.mxu0 %v7256_v56  ;;  %v4199_v52 = vshll.u32 %v5923_v12, 16  ;;  %v2415_v2 = vrot.slane %v2413_v3, 4  ;;  %v2418_v56 = vrot.slane %v2416_v13, 5  ;;  %v4670_v4 = vrot.slane %v9271_v1, 5  ;;  %v5976_v12 = vld [vmem:[%s7433_s16 + $0x90] sm:$0xe] }
 0x114   : > { %v4205_v50 = vshll.u32 %v8855_v31, 16  ;;  %v4209_v0 = vshrl.u32 %v8855_v31, 16  ;;  %v8872_v44 = vsel %vm7711_vm5, %v4665_v30, %v4666_v33  ;;  %v4673_v55 = vrot.slane %v9272_v24, 5  ;;  %v7249_v3 = vld [vmem:[%s7433_s16 + $0x30] sm:$0xff]  }
 0x115   : > { %6785 = vmatmul.mubr.bf16.gmra.mrb[16].mxu0 %v8710_v58  ;;  %v9273_v58 = vld [vmem:[#allocation15_spill] sm:$0xff]  ;;  %v4188_v48 = vor.u32 %v4187_v5, %v8841_v59  ;;  %v2419_v23 = vor.u32 %v2418_v56, %v2415_v2  ;;  %v4672_v47 = vrot.slane %v4670_v4, 4  ;;  %v4165_v14 = vrot.slane %v4164_v34, 4  ;;  %v8893_v13 = vld [vmem:[%s7433_s16 + $0xd4] sm:$0x1]  ;;  %v9274_v2 = vld [vmem:[#allocation10_spill] sm:$0xff] }
 0x116   : > { %6577 = vmatmul.mubr.bf16.vlgmr.msra.gmra.mrb[0].mxu1 %v7246_v40  ;;  %6788 = vmatprep.mubr.bf16.mxu0 %v8712_v35  ;;  %v6022_v35 = vcombine.low %v8863_v29, %v8872_v44  ;;  %v4155_v40 = vrot.slane %v4154_v62, 4  ;;  %v4193_v18 = vrot.slane %v4191_v19, 5  ;;  %v8885_v32 = vsel %vm7711_vm5, %v5991_v7, %v4670_v4  ;;  %v7251_v19 = vld [vmem:[%s7433_s16 + $0x3c] sm:$0xff]   ;;  %v7307_v1 = vld [vmem:[%s9209_s1 + $0x110] sm:$0xff]  }
 0x117   : > { %6856 = vmatpush3.bf16.msra.mxu1 %v9273_v58  ;;  %6580 = vmatprep.mubr.bf16.mxu1 %v7248_v39  ;;  %v4198_v28 = vrot.slane %v4196_v46, 4  ;;  %v4201_v33 = vrot.slane %v4199_v52, 5  ;;  %v2420_v39 = vrot.slane %v2419_v23, 4  ;;  %v8889_v5 = vsel %vm7711_vm5, %v4672_v47, %v4673_v55  ;;  %v7308_v47 = vld [vmem:[%s7433_s16 + $0x1c] sm:$0xf] }
 0x118   : > { %6849 = vmatprep.subr.bf16.mxu1 %v7306_v6  ;;  %v8895_v53 = vrot.slane %v4205_v50, 5  ;;  %v4211_v30 = vrot.slane %v4209_v0, 4  ;;  %v6023_v62 = vcombine.low %v8885_v32, %v8889_v5  ;;  %v5992_v34 = vrot.slane %v5976_v12, 9 }
 0x119   : > { %v4179_v7 = vrot.slane %v4178_v60, 4  ;;  %v4189_v46 = vrot.slane %v4188_v48, 4  ;;  %v2425_v52 = vsel %vm7465_vm2, %v2420_v39, %v8041_v11  ;;  %v4677_v56 = vrot.slane %v9274_v2, 5  ;;  %v9275_v11 = vld [vmem:[#allocation14_spill] sm:$0xff]  ;;  %v7252_v39 = vld [vmem:[%s7433_s16 + $0x48] sm:$0xff]  }
 0x11a   : > { %v4160_v4 = vsel %vm7465_vm2, %v4155_v40, %v8741_v49  ;;  %v4170_v60 = vsel %vm7465_vm2, %v4165_v14, %v8830_v57  ;;  %v8913_v50 = vcombine.low %v2425_v52, %v2435_v16  ;;  %v4680_v0 = vrot.slane %v9275_v11, 5  ;;  %v5966_v57 = vld [vmem:[%s7433_s16 + $0x18] sm:$0xe]  ;;  %v5977_v16 = vld [vmem:[%s7433_s16 + $0x9c] sm:$0xe] }
 0x11b   : > { %6857 = vmatpush3.bf16.msra.mxu1 %v7306_v6  ;;  %v4202_v24 = vor.u32 %v4201_v33, %v4198_v28  ;;  %v4215_v55 = vshll.u32 %v8893_v13, 16  ;;  %v8920_v58 = vsel %vm7711_vm5, %v5992_v34, %v4677_v56  ;;  %v4679_v48 = vrot.slane %v4677_v56, 4  ;;  %v7309_v40 = vld [vmem:[%s9209_s1 + $0x118] sm:$0xff]   ;;  %v7310_v2 = vld [vmem:[%s7433_s16 + $0x20] sm:$0x1] }
 0x11c   : > { %6850 = vmatprep.subr.bf16.mxu1 %v7307_v1  ;;  %v4212_v49 = vor.u32 %v4211_v30, %v8895_v53  ;;  %v4194_v23 = vsel %vm7465_vm2, %v4189_v46, %v4193_v18  ;;  %v4607_v12 = vrot.slane %v7308_v47, 5  ;;  %v5955_v6 = vcombine.low %v4160_v4, %v4170_v60  ;;  %v9276_v34 = vld [vmem:[#allocation13_spill] sm:$0xff]  ;;  %v5978_v11 = vld [vmem:[%s7433_s16 + $0xa8] sm:$0xe] }
 0x11d   : > { %6789 = vmatmul.mubr.bf16.gmra.mrb[20].mxu0 %v8818_v36  ;;  %v4184_v36 = vsel %vm7465_vm2, %v4179_v7, %v8841_v59  ;;  %v4203_v14 = vrot.slane %v4202_v24, 4  ;;  %v4217_v28 = vrot.slane %v4215_v55, 5  ;;  %v5982_v18 = vrot.slane %v5966_v57, 9  ;;  %v7254_v46 = vld [vmem:[%s7433_s16 + $0x54] sm:$0xff]   ;;  %v5967_v55 = vld [vmem:[%s7433_s16 + $0x24] sm:$0xe] }
 0x11e   : > { %6581 = vmatmul.mubr.bf16.gmra.mrb[4].mxu1 %v7249_v3  ;;  %6792 = vmatprep.mubr.bf16.mxu0 %v8828_v22  ;;  %v8934_v22 = vsel %vm7711_vm5, %v4679_v48, %v4680_v0  ;;  %v5993_v33 = vrot.slane %v5977_v16, 9  ;;  %v5956_v3 = vcombine.low %v4184_v36, %v4194_v23  ;;  %v4213_v30 = vrot.slane %v4212_v49, 4  ;;  %v7312_v48 = vld [vmem:[%s7433_s16 + $0x28] sm:$0xf]  ;;  %v7313_v36 = vld [vmem:[%s7433_s16 + $0x34] sm:$0xf] }
 0x11f   : > { %6584 = vmatprep.mubr.bf16.mxu1 %v7251_v19  ;;  %6858 = vmatpush3.bf16.msra.mxu1 %v7307_v1  ;;  %v6024_v59 = vcombine.low %v8920_v58, %v8934_v22  ;;  %v4684_v19 = vrot.slane %v9276_v34, 5  ;;  %v4687_v7 = vrot.slane %v8623_v25, 5  ;;  %v4609_v52 = vrot.slane %v4607_v12, 4  ;;  %v7311_v1 = vld [vmem:[%s9209_s1 + $0x120] sm:$0xff]  }
 0x120   : > { %6851 = vmatprep.subr.bf16.mxu1 %v7309_v40  ;;  %v4610_v56 = vrot.slane %v7310_v2, 5  ;;  %v4608_v25 = vsel %vm7711_vm5, %v5982_v18, %v4607_v12  ;;  %v4208_v0 = vsel %vm7465_vm2, %v4203_v14, %v8895_v53  ;;  %v4218_v24 = vsel %vm7465_vm2, %v4213_v30, %v4217_v28  ;;  %v5968_v12 = vld [vmem:[%s7433_s16 + $0x30] sm:$0xe]  ;;  %v7255_v30 = vld [vmem:[%s7433_s16 + $0x60] sm:$0xff]  }
 0x121   : > { %v8951_v4 = vsel %vm7711_vm5, %v5993_v33, %v4684_v19  ;;  %v4686_v60 = vrot.slane %v4684_v19, 4  ;;  %v4614_v49 = vrot.slane %v7312_v48, 5  ;;  %v4621_v23 = vrot.slane %v7313_v36, 5  ;;  %v7315_v33 = vld [vmem:[%s7433_s16 + $0x2c] sm:$0x1] }
 0x122   : > { %v4611_v16 = vsel %vm7711_vm5, %v4609_v52, %v4610_v56  ;;  %v5994_v47 = vrot.slane %v5978_v11, 9  ;;  %v5957_v28 = vcombine.low %v4208_v0, %v4218_v24  ;;  %v5983_v18 = vrot.slane %v5967_v55, 9  ;;  %v7257_v52 = vld [vmem:[%s7433_s16 + $0x6c] sm:$0xff]   ;;  %v5979_v11 = vld [vmem:[%s7433_s16 + $0xb4] sm:$0xe] }
 0x123   : > { %6859 = vmatpush3.bf16.msra.mxu1 %v7309_v40  ;;  %v8965_v57 = vsel %vm7711_vm5, %v4686_v60, %v4687_v7  ;;  %v9277_v40 = vld [vmem:[#allocation16_spill] sm:$0xff]  ;;  %v6014_v34 = vcombine.low %v4608_v25, %v4611_v16  ;;  %v4616_v19 = vrot.slane %v4614_v49, 4  ;;  %v5984_v2 = vrot.slane %v5968_v12, 9  ;;  %v5969_v0 = vld [vmem:[%s7433_s16 + $0x3c] sm:$0xe] }
 0x124   : > { %6852 = vmatprep.subr.bf16.mxu1 %v7311_v1  ;;  %v6025_v53 = vcombine.low %v8951_v4, %v8965_v57  ;;  %v4691_v14 = vrot.slane %v9277_v40, 5  ;;  %v4623_v56 = vrot.slane %v4621_v23, 4  ;;  %v7317_v24 = vld [vmem:[%s7433_s16 + $0x40] sm:$0xf]  ;;  %v4615_v48 = vsel %vm7711_vm5, %v5983_v18, %v4614_v49  ;;  %v7319_v18 = vld [vmem:[%s7433_s16 + $0x44] sm:$0x1] }
 0x125   : > { %6793 = vmatmul.mubr.bf16.gmra.mrb[24].mxu0 %v5955_v6  ;;  %v7314_v6 = vld [vmem:[%s9209_s1 + $0x128] sm:$0xff]   ;;  %v4628_v55 = vrot.slane %v7317_v24, 5  ;;  %v4698_v12 = vrot.slane %v8670_v10, 5  ;;  %v4622_v49 = vsel %vm7711_vm5, %v5984_v2, %v4621_v23  ;;  %v7320_v10 = vld [vmem:[%s9209_s1 + $0x138] sm:$0xff]   ;;  %v5980_v23 = vld [vmem:[%s7433_s16 + $0xc0] sm:$0xe] }
 0x126   : > { %6585 = vmatmul.mubr.bf16.gmra.mrb[8].mxu1 %v7252_v39  ;;  %6796 = vmatprep.mubr.bf16.mxu0 %v5956_v3  ;;  %v4617_v39 = vrot.slane %v7315_v33, 5  ;;  %v4694_v3 = vrot.slane %v8658_v21, 5  ;;  %v8982_v7 = vsel %vm7711_vm5, %v5994_v47, %v4691_v14  ;;  %v7318_v21 = vld [vmem:[%s9209_s1 + $0x130] sm:$0xff]   ;;  %v5995_v47 = vrot.slane %v5979_v11, 9 }
 0x127   : > { %6588 = vmatprep.mubr.bf16.mxu1 %v7254_v46  ;;  %6860 = vmatpush3.bf16.msra.mxu1 %v7311_v1  ;;  %v4693_v46 = vrot.slane %v4691_v14, 4  ;;  %v7316_v1 = vld [vmem:[%s7433_s16 + $0x38] sm:$0x1]  ;;  %v5985_v14 = vrot.slane %v5969_v0, 9  ;;  %v4631_v33 = vrot.slane %v7319_v18, 5  ;;  %v4705_v11 = vrot.slane %v8752_v51, 5 }
 0x128   : > { %6853 = vmatprep.subr.bf16.mxu1 %v7314_v6  ;;  %v4624_v60 = vrot.slane %v7316_v1, 5  ;;  %v4618_v36 = vsel %vm7711_vm5, %v4616_v19, %v4617_v39  ;;  %v4700_v39 = vrot.slane %v4698_v12, 4  ;;  %v5670_v19 = vld [vmem:[%s7433_s16 + $0x6c] sm:$0xf]  ;;  %v7260_v18 = vld [vmem:[%s7433_s16 + $0x90] sm:$0xff]   ;;  %v2456_v20 = vshll.u32 %v7326_v63, 16 }
 0x129   : > { %v8994_v25 = vsel %vm7711_vm5, %v4693_v46, %v4694_v3  ;;  %v6015_v3 = vcombine.low %v4615_v48, %v4618_v36  ;;  %v4629_v1 = vsel %vm7711_vm5, %v5985_v14, %v4628_v55  ;;  %v2389_v0 = vshrl.u32 %v5670_v19, 16  ;;  %v5981_v51 = vld [vmem:[%s7433_s16 + $0xcc] sm:$0xe] }
 0x12a   : > { %v6026_v16 = vcombine.low %v8982_v7, %v8994_v25  ;;  %v4625_v40 = vsel %vm7711_vm5, %v4623_v56, %v4624_v60  ;;  %v5996_v56 = vrot.slane %v5980_v23, 9  ;;  %v2392_v24 = vshll.u32 %v5670_v19, 16 }
 0x12b   : > { %6861 = vmatpush3.bf16.msra.mxu1 %v7314_v6  ;;  %v4701_v6 = vrot.slane %v8691_v27, 5  ;;  %v9014_v27 = vsel %vm7711_vm5, %v5995_v47, %v4698_v12  ;;  %v4708_v36 = vrot.slane %v8803_v26, 5  ;;  %v4707_v12 = vrot.slane %v4705_v11, 4 }
 0x12c   : > { %6854 = vmatprep.subr.bf16.mxu1 %v7318_v21  ;;  %v2394_v26 = vrot.slane %v2392_v24, 5  ;;  %v4715_v23 = vrot.slane %v8893_v13, 5 }
 0x12d   : > { %6797 = vmatmul.mubr.bf16.gmra.mrb[28].mxu0 %v5957_v28  ;;  %v4630_v28 = vrot.slane %v4628_v55, 4  ;;  %v9021_v46 = vsel %vm7711_vm5, %v4700_v39, %v4701_v6  ;;  %v9035_v55 = vsel %vm7711_vm5, %v5996_v56, %v4705_v11  ;;  %v4712_v39 = vrot.slane %v8855_v31, 5  ;;  %v7322_v56 = vld [vmem:[%s7433_s16 + $0x74] sm:$0x1] }
 0x12e   : > { %6589 = vmatmul.mubr.bf16.gmra.mrb[12].mxu1 %v7255_v30  ;;  %6816 = vmatprep.mubr.bf16.mxu0 %v6014_v34  ;;  %v7258_v30 = vld [vmem:[%s7433_s16 + $0x78] sm:$0xff]   ;;  %v6016_v34 = vcombine.low %v4622_v49, %v4625_v40  ;;  %v6027_v2 = vcombine.low %v9014_v27, %v9021_v46  ;;  %v9040_v49 = vsel %vm7711_vm5, %v4707_v12, %v4708_v36  ;;  %v2391_v40 = vrot.slane %v2389_v0, 4  ;;  %v7323_v0 = vld [vmem:[%s7433_s16 + $0x88] sm:$0xf] }
 0x12f   : > { %6592 = vmatprep.mubr.bf16.mxu1 %v7257_v52  ;;  %6862 = vmatpush3.bf16.msra.mxu1 %v7318_v21  ;;  %v7259_v52 = vld [vmem:[%s7433_s16 + $0x84] sm:$0xff]   ;;  %v4632_v60 = vsel %vm7711_vm5, %v4630_v28, %v4631_v33  ;;  %v7321_v21 = vld [vmem:[%s7433_s16 + $0x70] sm:$0xf]  ;;  %v6028_v28 = vcombine.low %v9035_v55, %v9040_v49  ;;  %v4714_v19 = vrot.slane %v4712_v39, 4  ;;  %v2446_v24 = vshll.u32 %v7323_v0, 16 }
 0x130   : > { %6855 = vmatprep.subr.bf16.mxu1 %v7320_v10  ;;  %v2398_v48 = vshll.u32 %v7321_v21, 16  ;;  %v2402_v47 = vshrl.u32 %v7321_v21, 16  ;;  %v6017_v6 = vcombine.low %v4629_v1, %v4632_v60  ;;  %v2408_v1 = vshll.u32 %v7322_v56, 16 }
 0x131   : > { %v9062_v11 = vsel %vm7711_vm5, %v4714_v19, %v4715_v23  ;;  %v2450_v21 = vshrl.u32 %v7323_v0, 16  ;;  %v7325_v19 = vld [vmem:[%s7433_s16 + $0xa0] sm:$0xf] }
 0x132   : > { %v9042_v14 = vrot.slane %v2398_v48, 5  ;;  %v2404_v33 = vrot.slane %v2402_v47, 4  ;;  %v2498_v56 = vshrl.u32 %v7325_v19, 16 }
 0x133   : > { %6863 = vmatpush3.bf16.msra.mxu1 %v7320_v10  ;;  %v5997_v10 = vrot.slane %v5981_v51, 9 }
 0x134   : > { %v2405_v31 = vor.u32 %v2404_v33, %v9042_v14  ;;  %v2464_v33 = vshll.u32 %v5679_v61, 16 }
 0x135   : > { %6817 = vmatmul.mubr.bf16.vlgmr.msra.gmra.mrb[0].mxu0 %v6015_v3  ;;  %v7261_v3 = vld [vmem:[%s7433_s16 + $0x9c] sm:$0xff]  }
 0x136   : > { %6593 = vmatmul.mubr.bf16.gmra.mrb[16].mxu1 %v7258_v30  ;;  %6820 = vmatprep.mubr.bf16.mxu0 %v6016_v34  ;;  %v5676_v30 = vld [vmem:[%s7433_s16 + $0x84] sm:$0xf]  ;;  %v9053_v34 = vsel %vm7711_vm5, %v5997_v10, %v4712_v39  ;;  %v2406_v47 = vrot.slane %v2405_v31, 4  ;;  %v7324_v10 = vld [vmem:[%s7433_s16 + $0x94] sm:$0xf]  ;;  %v2466_v0 = vrot.slane %v2464_v33, 5 }
 0x137   : > { %6596 = vmatprep.mubr.bf16.mxu1 %v7259_v52  ;;  %v2395_v52 = vor.u32 %v2394_v26, %v2391_v40  ;;  %v2437_v13 = vshrl.u32 %v5676_v30, 16  ;;  %v2440_v60 = vshll.u32 %v5676_v30, 16  ;;  %v6029_v48 = vcombine.low %v9053_v34, %v9062_v11 }
 0x138   : > { %v9071_v40 = vrot.slane %v2446_v24, 5  ;;  %v2452_v26 = vrot.slane %v2450_v21, 4  ;;  %v2470_v39 = vshll.u32 %v7324_v10, 16  ;;  %v2474_v23 = vshrl.u32 %v7324_v10, 16  ;;  %v7328_v10 = vld [vmem:[%s7433_s16 + $0xa4] sm:$0x1] }
 0x139   : > { %v2396_v36 = vrot.slane %v2395_v52, 4  ;;  %v2439_v12 = vrot.slane %v2437_v13, 4  ;;  %v2442_v51 = vrot.slane %v2440_v60, 5  ;;  %v2494_v52 = vshll.u32 %v7325_v19, 16  ;;  %v7329_v19 = vld [vmem:[%s7433_s16 + $0xac] sm:$0xf] }
 0x13a   : > { %v2453_v13 = vor.u32 %v2452_v26, %v9071_v40  ;;  %v9088_v41 = vrot.slane %v2470_v39, 5  ;;  %v2476_v42 = vrot.slane %v2474_v23, 4  ;;  %v2500_v21 = vrot.slane %v2498_v56, 4  ;;  %v5688_v23 = vld [vmem:[%s7433_s16 + $0xb4] sm:$0xf] }
 0x13b   : > { %v2504_v39 = vshll.u32 %v7328_v10, 16  ;;  %v2522_v15 = vshrl.u32 %v7329_v19, 16  ;;  %v2536_v63 = vshll.u32 %v5688_v23, 16 }
 0x13c   : > { %v2477_v26 = vor.u32 %v2476_v42, %v9088_v41 }
 0x13d   : > { %6821 = vmatmul.mubr.bf16.gmra.mrb[4].mxu0 %v6017_v6  ;;  %v5682_v6 = vld [vmem:[%s7433_s16 + $0x9c] sm:$0xf] }
 0x13e   : > { %6597 = vmatmul.mubr.bf16.gmra.mrb[20].mxu1 %v7260_v18  ;;  %6824 = vmatprep.mubr.bf16.mxu0 %v6018_v8  ;;  %v2410_v8 = vrot.slane %v2408_v1, 5  ;;  %v2461_v18 = vshrl.u32 %v5679_v61, 16  ;;  %v2488_v30 = vshll.u32 %v5682_v6, 16  ;;  %v2401_v1 = vsel %vm7465_vm2, %v2396_v36, %v9042_v14  ;;  %v7264_v61 = vld [vmem:[%s7433_s16 + $0xc0] sm:$0xff]  }
 0x13f   : > { %6600 = vmatprep.mubr.bf16.mxu1 %v7261_v3  ;;  %v2485_v3 = vshrl.u32 %v5682_v6, 16  ;;  %v9090_v14 = vrot.slane %v2494_v52, 5  ;;  %v2518_v52 = vshll.u32 %v7329_v19, 16 }
 0x140   : > { %v2411_v31 = vsel %vm7465_vm2, %v2406_v47, %v2410_v8  ;;  %v2463_v60 = vrot.slane %v2461_v18, 4  ;;  %v2490_v24 = vrot.slane %v2488_v30, 5  ;;  %v2458_v8 = vrot.slane %v2456_v20, 5  ;;  %v7330_v20 = vld [vmem:[%s7433_s16 + $0xb8] sm:$0xf] }
 0x141   : > { %v2454_v47 = vrot.slane %v2453_v13, 4  ;;  %v2501_v33 = vor.u32 %v2500_v21, %v9090_v14  ;;  %v2542_v29 = vshll.u32 %v7330_v20, 16  ;;  %v2546_v44 = vshrl.u32 %v7330_v20, 16 }
 0x143   : > { %v2502_v13 = vrot.slane %v2501_v33, 4 }
 0x145   : > { %6825 = vmatmul.mubr.bf16.gmra.mrb[8].mxu0 %v6019_v54  ;;  %v2443_v54 = vor.u32 %v2442_v51, %v2439_v12  ;;  %v2467_v12 = vor.u32 %v2466_v0, %v2463_v60  ;;  %v7327_v51 = vld [vmem:[%s7433_s16 + $0x98] sm:$0x1]  ;;  %v2506_v60 = vrot.slane %v2504_v39, 5 }
 0x146   : > { %6601 = vmatmul.mubr.bf16.gmra.mrb[24].mxu1 %v7262_v45  ;;  %6828 = vmatprep.mubr.bf16.mxu0 %v6020_v17  ;;  %v2487_v17 = vrot.slane %v2485_v3, 4  ;;  %v5718_v45 = vcombine.low %v2401_v1, %v2411_v31  ;;  %v2480_v6 = vshll.u32 %v7327_v51, 16  ;;  %v2533_v31 = vshrl.u32 %v5688_v23, 16 }
 0x147   : > { %6604 = vmatprep.mubr.bf16.mxu1 %v7263_v9  ;;  %v2444_v36 = vrot.slane %v2443_v54, 4  ;;  %v5685_v9 = vld [vmem:[%s7433_s16 + $0xa8] sm:$0xf]  ;;  %v2468_v56 = vrot.slane %v2467_v12, 4  ;;  %v2507_v32 = vsel %vm7465_vm2, %v2502_v13, %v2506_v60 }
 0x148   : > { %v2491_v18 = vor.u32 %v2490_v24, %v2487_v17  ;;  %v2509_v3 = vshrl.u32 %v5685_v9, 16  ;;  %v2512_v30 = vshll.u32 %v5685_v9, 16  ;;  %v2482_v1 = vrot.slane %v2480_v6, 5 }
 0x149   : > { %v2449_v43 = vsel %vm7465_vm2, %v2444_v36, %v9071_v40  ;;  %v2520_v17 = vrot.slane %v2518_v52, 5  ;;  %v2524_v24 = vrot.slane %v2522_v15, 4  ;;  %v2535_v21 = vrot.slane %v2533_v31, 4  ;;  %v5691_v36 = vld [vmem:[%s7433_s16 + $0xc0] sm:$0xf] }
 0x14a   : > { %v2492_v54 = vrot.slane %v2491_v18, 4  ;;  %v2511_v0 = vrot.slane %v2509_v3, 4  ;;  %v2514_v42 = vrot.slane %v2512_v30, 5  ;;  %v2557_v9 = vshrl.u32 %v5691_v36, 16  ;;  %v7332_v18 = vld [vmem:[%s7433_s16 + $0xc4] sm:$0xf] }
 0x14b   : > { %v2566_v33 = vshll.u32 %v7332_v18, 16 }
 0x14c   : > { %v2497_v51 = vsel %vm7465_vm2, %v2492_v54, %v9090_v14  ;;  %v2515_v5 = vor.u32 %v2514_v42, %v2511_v0  ;;  %v2570_v14 = vshrl.u32 %v7332_v18, 16  ;;  %v2559_v19 = vrot.slane %v2557_v9, 4 }
 0x14d   : > { %6829 = vmatmul.mubr.bf16.gmra.mrb[12].mxu0 %v6021_v38  ;;  %v2459_v38 = vsel %vm7465_vm2, %v2454_v47, %v2458_v8  ;;  %v2548_v8 = vrot.slane %v2546_v44, 4  ;;  %v2473_v47 = vsel %vm7465_vm2, %v2468_v56, %v9088_v41  ;;  %v7331_v41 = vld [vmem:[%s7433_s16 + $0xb0] sm:$0x1]  ;;  %v5722_v58 = vcombine.low %v2497_v51, %v2507_v32  ;;  %v7334_v44 = vld [vmem:[%s7433_s16 + $0xc8] sm:$0x1] }
 0x14e   : > { %6605 = vmatmul.mubr.bf16.gmra.mrb[28].mxu1 %v7264_v61  ;;  %6832 = vmatprep.mubr.bf16.mxu0 %v6022_v35  ;;  %v2478_v35 = vrot.slane %v2477_v26, 4  ;;  %v5720_v40 = vcombine.low %v2449_v43, %v2459_v38  ;;  %v2538_v61 = vrot.slane %v2536_v63, 5  ;;  %v2528_v6 = vshll.u32 %v7331_v41, 16 }
 0x14f   : > { %6640 = vmatprep.mubr.bf16.mxu1 %v5718_v45  ;;  %v2544_v45 = vrot.slane %v2542_v29, 5  ;;  %v2560_v26 = vshll.u32 %v5691_v36, 16  ;;  %v2516_v22 = vrot.slane %v2515_v5, 4  ;;  %v2568_v15 = vrot.slane %v2566_v33, 5 }
 0x150   : > { %v2483_v12 = vsel %vm7465_vm2, %v2478_v35, %v2482_v1  ;;  %v2539_v10 = vor.u32 %v2538_v61, %v2535_v21  ;;  %v2530_v30 = vrot.slane %v2528_v6, 5  ;;  %v2572_v43 = vrot.slane %v2570_v14, 4 }
 0x151   : > { %v2549_v39 = vor.u32 %v2548_v8, %v2544_v45  ;;  %v5721_v3 = vcombine.low %v2473_v47, %v2483_v12  ;;  %v2562_v52 = vrot.slane %v2560_v26, 5  ;;  %v2521_v31 = vsel %vm7465_vm2, %v2516_v22, %v2520_v17 }
 0x152   : > { %v2540_v38 = vrot.slane %v2539_v10, 4  ;;  %v2573_v29 = vor.u32 %v2572_v43, %v2568_v15  ;;  %v2576_v35 = vshll.u32 %v7334_v44, 16 }
 0x153   : > { %v2550_v56 = vrot.slane %v2549_v39, 4  ;;  %v2563_v20 = vor.u32 %v2562_v52, %v2559_v19 }
 0x154   : > { %v2545_v4 = vsel %vm7465_vm2, %v2540_v38, %v2544_v45  ;;  %v2578_v54 = vrot.slane %v2576_v35, 5 }
 0x155   : > { %6833 = vmatmul.mubr.bf16.gmra.mrb[16].mxu0 %v6023_v62  ;;  %v2525_v62 = vor.u32 %v2524_v24, %v2520_v17  ;;  %v2564_v25 = vrot.slane %v2563_v20, 4 }
 0x156   : > { %6641 = vmatmul.mubr.bf16.vlgmr.msra.gmra.mrb[16].mxu1 %v8913_v50  ;;  %6836 = vmatprep.mubr.bf16.mxu0 %v6024_v59  ;;  %v7333_v50 = vld [vmem:[%s7433_s16 + $0xbc] sm:$0x1]  ;;  %s6072_s16 = sshll.u32 %s9283_s12, 7 }
 0x157   : > { %6644 = vmatprep.mubr.bf16.mxu1 %v5720_v40  ;;  %v2552_v23 = vshll.u32 %v7333_v50, 16  ;;  %v2526_v59 = vrot.slane %v2525_v62, 4  ;;  %v2569_v13 = vsel %vm7465_vm2, %v2564_v25, %v2568_v15  ;;  %s9173_s27 = scalar_lea.vmem %s9210_s2, %s6072_s16 }
 0x159   : > { %v2554_v1 = vrot.slane %v2552_v23, 5  ;;  %v2531_v63 = vsel %vm7465_vm2, %v2526_v59, %v2530_v30 }
 0x15b   : > { %v2555_v57 = vsel %vm7465_vm2, %v2550_v56, %v2554_v1 }
 0x15c   : > { %v5724_v7 = vcombine.low %v2545_v4, %v2555_v57 }
 0x15d   : > { %6837 = vmatmul.mubr.bf16.gmra.mrb[20].mxu0 %v6025_v53  ;;  %v5723_v53 = vcombine.low %v2521_v31, %v2531_v63 }
 0x15e   : > { %6645 = vmatmul.mubr.bf16.gmra.mrb[20].mxu1 %v5721_v3  ;;  %6840 = vmatprep.mubr.bf16.mxu0 %v6026_v16  ;;  %v2574_v16 = vrot.slane %v2573_v29, 4 }
 0x15f   : > { %6648 = vmatprep.mubr.bf16.mxu1 %v5722_v58 }
 0x160   : > { %v2579_v60 = vsel %vm7465_vm2, %v2574_v16, %v2578_v54 }
 0x161   : > { %v5725_v0 = vcombine.low %v2569_v13, %v2579_v60 }
 0x165   : > { %6841 = vmatmul.mubr.bf16.gmra.mrb[24].mxu0 %v6027_v2 }
 0x166   : > { %6649 = vmatmul.mubr.bf16.gmra.mrb[24].mxu1 %v5723_v53  ;;  %6844 = vmatprep.mubr.bf16.mxu0 %v6028_v28 }
 0x167   : > { %6652 = vmatprep.mubr.bf16.mxu1 %v5724_v7 }
 0x16d   : > { %6845 = vmatmul.mubr.bf16.gmra.mrb[28].mxu0 %v6029_v48 }
 0x16e   : > { %6653 = vmatmul.mubr.bf16.gmra.mrb[28].mxu1 %v5725_v0 }
 0x1e9   : > { %v6578_v27 = vpop.f32.mrb[0].mxu1 }
 0x1ea   : > { %v1989_v46 = vpop.f32.mrb[1].mxu1 }
 0x1eb   : > { %v6579_v2 = vpop.f32.mrb[2].mxu1 }
 0x1ec   : > { %v1992_v42 = vpop.f32.mrb[3].mxu1 }
 0x1f1   : > { %v6582_v55 = vpop.f32.mrb[4].mxu1 }
 0x1f2   : > { %v2005_v49 = vpop.f32.mrb[5].mxu1 }
 0x1f3   : > { %v6583_v28 = vpop.f32.mrb[6].mxu1 }
 0x1f4   : > { %v2008_v17 = vpop.f32.mrb[7].mxu1 }
 0x1f9   : > { %v6586_v24 = vpop.f32.mrb[8].mxu1 }
 0x1fa   : > { %v2021_v40 = vpop.f32.mrb[9].mxu1 }
 0x1fb   : > { %v6587_v21 = vpop.f32.mrb[10].mxu1 }
 0x1fc   : > { %v2024_v37 = vpop.f32.mrb[11].mxu1 }
 0x201   : > { %v9161_v61 = vpop.f32.mrb[12].mxu1 }
 0x202   : > { %v9163_v45 = vpop.f32.mrb[13].mxu1 }
 0x203   : > { %v9165_v34 = vpop.f32.mrb[14].mxu1 }
 0x204   : > { %v9167_v11 = vpop.f32.mrb[15].mxu1 }
 0x208   : > { %v6818_v48 = vpop.f32.mrb[0].mxu0 }
 0x209   : > { %v6864_v8 = vadd.f32 %v6818_v48, %v6578_v27  ;;  %v4880_v36 = vpop.f32.mrb[1].mxu0 }
 0x20a   : > { %v6865_v47 = vadd.f32 %v4880_v36, %v1989_v46  ;;  %v6819_v12 = vpop.f32.mrb[2].mxu0 }
 0x20b   : > { %v6866_v51 = vadd.f32 %v6819_v12, %v6579_v2  ;;  %v4883_v32 = vpop.f32.mrb[3].mxu0  ;;  %v5078_v18 = vmul.f32 %v6864_v8, %v6864_v8 }
 0x20c   : > { %v6867_v5 = vadd.f32 %v4883_v32, %v1992_v42  ;;  %v5076_v41 = vmul.f32 %v6865_v47, %v6865_v47 }
 0x20d   : > { %v6113_v62 = vpack.c.bf16 %v6866_v51, %v6864_v8  ;;  %v5079_v23 = vmul.f32 %v6866_v51, %v6866_v51 }
 0x20e   : > { %v5039_v6 = vadd.f32 %v6867_v5, %v6865_v47  ;;  %v5077_v9 = vmul.f32 %v6867_v5, %v6867_v5  ;;  %v6108_v26 = vpack.c.bf16 %v6867_v5, %v6865_v47 }
 0x20f   : > { %6185 = vst [vmem:[%s9173_s27 + $0x8] sm:$0xff] %v6113_v62  }
 0x210   : > { %v5040_v33 = vadd.f32 %v6864_v8, %v5039_v6  ;;  %v5108_v14 = vadd.f32 %v5077_v9, %v5076_v41  ;;  %6109 = vst [vmem:[%s9173_s27] sm:$0xff] %v6108_v26   ;;  %v6822_v10 = vpop.f32.mrb[4].mxu0 }
 0x211   : > { %v6868_v39 = vadd.f32 %v6822_v10, %v6582_v55  ;;  %v4896_v50 = vpop.f32.mrb[5].mxu0 }
 0x212   : > { %v5109_v3 = vadd.f32 %v5108_v14, %v5078_v18  ;;  %v6869_v58 = vadd.f32 %v4896_v50, %v2005_v49  ;;  %v5041_v22 = vadd.f32 %v6866_v51, %v5040_v33  ;;  %v6823_v59 = vpop.f32.mrb[6].mxu0 }
 0x213   : > { %v6870_v30 = vadd.f32 %v6823_v59, %v6583_v28  ;;  %v4899_v19 = vpop.f32.mrb[7].mxu0  ;;  %v5082_v29 = vmul.f32 %v6868_v39, %v6868_v39 }
 0x214   : > { %v5042_v52 = vadd.f32 %v6869_v58, %v5041_v22  ;;  %v5080_v15 = vmul.f32 %v6869_v58, %v6869_v58  ;;  %v5110_v43 = vadd.f32 %v5109_v3, %v5079_v23  ;;  %v6871_v38 = vadd.f32 %v4899_v19, %v2008_v17 }
 0x215   : > { %v6123_v56 = vpack.c.bf16 %v6870_v30, %v6868_v39  ;;  %v5083_v7 = vmul.f32 %v6870_v30, %v6870_v30 }
 0x216   : > { %v5111_v1 = vadd.f32 %v5110_v43, %v5080_v15  ;;  %v5043_v31 = vadd.f32 %v6871_v38, %v5042_v52  ;;  %v5081_v63 = vmul.f32 %v6871_v38, %v6871_v38  ;;  %v6118_v20 = vpack.c.bf16 %v6871_v38, %v6869_v58 }
 0x217   : > { %6187 = vst [vmem:[%s9173_s27 + $0x18] sm:$0xff] %v6123_v56  }
 0x218   : > { %v5044_v44 = vadd.f32 %v6868_v39, %v5043_v31  ;;  %v5112_v35 = vadd.f32 %v5111_v1, %v5081_v63  ;;  %6186 = vst [vmem:[%s9173_s27 + $0x10] sm:$0xff] %v6118_v20   ;;  %v6826_v4 = vpop.f32.mrb[8].mxu0 }
 0x219   : > { %v6872_v57 = vadd.f32 %v6826_v4, %v6586_v24  ;;  %v4912_v53 = vpop.f32.mrb[9].mxu0 }
 0x21a   : > { %v5113_v25 = vadd.f32 %v5112_v35, %v5082_v29  ;;  %v6873_v16 = vadd.f32 %v4912_v53, %v2021_v40  ;;  %v5045_v54 = vadd.f32 %v6870_v30, %v5044_v44  ;;  %v6827_v13 = vpop.f32.mrb[10].mxu0 }
 0x21b   : > { %v6874_v60 = vadd.f32 %v6827_v13, %v6587_v21  ;;  %v4915_v0 = vpop.f32.mrb[11].mxu0  ;;  %v5086_v24 = vmul.f32 %v6872_v57, %v6872_v57 }
 0x21c   : > { %v5046_v27 = vadd.f32 %v6873_v16, %v5045_v54  ;;  %v5084_v46 = vmul.f32 %v6873_v16, %v6873_v16  ;;  %v5114_v2 = vadd.f32 %v5113_v25, %v5083_v7  ;;  %v6875_v42 = vadd.f32 %v4915_v0, %v2024_v37 }
 0x21d   : > { %v6133_v55 = vpack.c.bf16 %v6874_v60, %v6872_v57  ;;  %v5087_v21 = vmul.f32 %v6874_v60, %v6874_v60 }
 0x21e   : > { %v5115_v49 = vadd.f32 %v5114_v2, %v5084_v46  ;;  %v5047_v28 = vadd.f32 %v6875_v42, %v5046_v27  ;;  %v5085_v17 = vmul.f32 %v6875_v42, %v6875_v42  ;;  %v6128_v48 = vpack.c.bf16 %v6875_v42, %v6873_v16 }
 0x21f   : > { %6189 = vst [vmem:[%s9173_s27 + $0x28] sm:$0xff] %v6133_v55  }
 0x220   : > { %v5048_v8 = vadd.f32 %v6872_v57, %v5047_v28  ;;  %v5116_v36 = vadd.f32 %v5115_v49, %v5085_v17  ;;  %6188 = vst [vmem:[%s9173_s27 + $0x20] sm:$0xff] %v6128_v48   ;;  %v6830_v40 = vpop.f32.mrb[12].mxu0 }
 0x221   : > { %v6876_v47 = vadd.f32 %v6830_v40, %v9161_v61  ;;  %v4928_v12 = vpop.f32.mrb[13].mxu0 }
 0x222   : > { %v5117_v51 = vadd.f32 %v5116_v36, %v5086_v24  ;;  %v6877_v32 = vadd.f32 %v4928_v12, %v9163_v45  ;;  %v5049_v37 = vadd.f32 %v6874_v60, %v5048_v8  ;;  %v6831_v5 = vpop.f32.mrb[14].mxu0 }
 0x223   : > { %v6878_v62 = vadd.f32 %v6831_v5, %v9165_v34  ;;  %v4931_v41 = vpop.f32.mrb[15].mxu0  ;;  %v5090_v50 = vmul.f32 %v6876_v47, %v6876_v47 }
 0x224   : > { %v5050_v6 = vadd.f32 %v6877_v32, %v5049_v37  ;;  %v5088_v9 = vmul.f32 %v6877_v32, %v6877_v32  ;;  %v5118_v26 = vadd.f32 %v5117_v51, %v5087_v21  ;;  %v6879_v18 = vadd.f32 %v4931_v41, %v9167_v11 }
 0x225   : > { %v6143_v33 = vpack.c.bf16 %v6878_v62, %v6876_v47  ;;  %v5091_v34 = vmul.f32 %v6878_v62, %v6878_v62 }
 0x226   : > { %v5119_v14 = vadd.f32 %v5118_v26, %v5088_v9  ;;  %v5051_v61 = vadd.f32 %v6879_v18, %v5050_v6  ;;  %v5089_v10 = vmul.f32 %v6879_v18, %v6879_v18  ;;  %v6138_v39 = vpack.c.bf16 %v6879_v18, %v6877_v32 }
 0x227   : > { %6191 = vst [vmem:[%s9173_s27 + $0x38] sm:$0xff] %v6143_v33  }
 0x228   : > { %v5052_v23 = vadd.f32 %v6876_v47, %v5051_v61  ;;  %v5120_v45 = vadd.f32 %v5119_v14, %v5089_v10  ;;  %6190 = vst [vmem:[%s9173_s27 + $0x30] sm:$0xff] %v6138_v39   ;;  %v6834_v3 = vpop.f32.mrb[16].mxu0 }
 0x229   : > { %v6642_v58 = vpop.f32.mrb[16].mxu1  ;;  %v4944_v22 = vpop.f32.mrb[17].mxu0 }
 0x22a   : > { %v5121_v59 = vadd.f32 %v5120_v45, %v5090_v50  ;;  %v6880_v30 = vadd.f32 %v6834_v3, %v6642_v58  ;;  %v2807_v19 = vpop.f32.mrb[17].mxu1  ;;  %v5053_v52 = vadd.f32 %v6878_v62, %v5052_v23  ;;  %v6835_v11 = vpop.f32.mrb[18].mxu0 }
 0x22b   : > { %v6881_v15 = vadd.f32 %v4944_v22, %v2807_v19  ;;  %v6643_v43 = vpop.f32.mrb[18].mxu1  ;;  %v4947_v38 = vpop.f32.mrb[19].mxu0 }
 0x22c   : > { %v5122_v56 = vadd.f32 %v5121_v59, %v5091_v34  ;;  %v6882_v1 = vadd.f32 %v6835_v11, %v6643_v43  ;;  %v2810_v31 = vpop.f32.mrb[19].mxu1  ;;  %v5094_v25 = vmul.f32 %v6880_v30, %v6880_v30 }
 0x22d   : > { %v5054_v63 = vadd.f32 %v6881_v15, %v5053_v52  ;;  %v5092_v20 = vmul.f32 %v6881_v15, %v6881_v15  ;;  %v6883_v29 = vadd.f32 %v4947_v38, %v2810_v31 }
 0x22e   : > { %v6153_v44 = vpack.c.bf16 %v6882_v1, %v6880_v30  ;;  %v5095_v2 = vmul.f32 %v6882_v1, %v6882_v1 }
 0x22f   : > { %v5123_v35 = vadd.f32 %v5122_v56, %v5092_v20  ;;  %v5055_v4 = vadd.f32 %v6883_v29, %v5054_v63  ;;  %v5093_v57 = vmul.f32 %v6883_v29, %v6883_v29  ;;  %v6148_v53 = vpack.c.bf16 %v6883_v29, %v6881_v15 }
 0x230   : > { %6193 = vst [vmem:[%s9173_s27 + $0x48] sm:$0xff] %v6153_v44   ;;  %v6838_v7 = vpop.f32.mrb[20].mxu0 }
 0x231   : > { %v5056_v16 = vadd.f32 %v6880_v30, %v5055_v4  ;;  %v5124_v54 = vadd.f32 %v5123_v35, %v5093_v57  ;;  %6192 = vst [vmem:[%s9173_s27 + $0x40] sm:$0xff] %v6148_v53   ;;  %v6646_v13 = vpop.f32.mrb[20].mxu1  ;;  %v4960_v60 = vpop.f32.mrb[21].mxu0 }
 0x232   : > { %v6884_v0 = vadd.f32 %v6838_v7, %v6646_v13  ;;  %v2823_v27 = vpop.f32.mrb[21].mxu1  ;;  %v6839_v46 = vpop.f32.mrb[22].mxu0 }
 0x233   : > { %v5125_v42 = vadd.f32 %v5124_v54, %v5094_v25  ;;  %v6885_v55 = vadd.f32 %v4960_v60, %v2823_v27  ;;  %v5057_v49 = vadd.f32 %v6882_v1, %v5056_v16  ;;  %v6647_v28 = vpop.f32.mrb[22].mxu1  ;;  %v4963_v17 = vpop.f32.mrb[23].mxu0 }
 0x234   : > { %v6886_v48 = vadd.f32 %v6839_v46, %v6647_v28  ;;  %v2826_v24 = vpop.f32.mrb[23].mxu1  ;;  %v5098_v62 = vmul.f32 %v6884_v0, %v6884_v0 }
 0x235   : > { %v5058_v8 = vadd.f32 %v6885_v55, %v5057_v49  ;;  %v5096_v36 = vmul.f32 %v6885_v55, %v6885_v55  ;;  %v5126_v40 = vadd.f32 %v5125_v42, %v5095_v2  ;;  %v6887_v47 = vadd.f32 %v4963_v17, %v2826_v24 }
 0x236   : > { %v6163_v12 = vpack.c.bf16 %v6886_v48, %v6884_v0  ;;  %v5099_v61 = vmul.f32 %v6886_v48, %v6886_v48 }
 0x237   : > { %v5127_v21 = vadd.f32 %v5126_v40, %v5096_v36  ;;  %v5059_v51 = vadd.f32 %v6887_v47, %v5058_v8  ;;  %v5097_v32 = vmul.f32 %v6887_v47, %v6887_v47  ;;  %v6158_v37 = vpack.c.bf16 %v6887_v47, %v6885_v55 }
 0x238   : > { %6195 = vst [vmem:[%s9173_s27 + $0x58] sm:$0xff] %v6163_v12   ;;  %v6842_v5 = vpop.f32.mrb[24].mxu0 }
 0x239   : > { %v5060_v41 = vadd.f32 %v6884_v0, %v5059_v51  ;;  %v5128_v6 = vadd.f32 %v5127_v21, %v5097_v32  ;;  %6194 = vst [vmem:[%s9173_s27 + $0x50] sm:$0xff] %v6158_v37   ;;  %v6650_v9 = vpop.f32.mrb[24].mxu1  ;;  %v4976_v26 = vpop.f32.mrb[25].mxu0 }
 0x23a   : > { %v6888_v18 = vadd.f32 %v6842_v5, %v6650_v9  ;;  %v2839_v33 = vpop.f32.mrb[25].mxu1  ;;  %v6843_v14 = vpop.f32.mrb[26].mxu0 }
 0x23b   : > { %v5129_v10 = vadd.f32 %v5128_v6, %v5098_v62  ;;  %v6889_v39 = vadd.f32 %v4976_v26, %v2839_v33  ;;  %v5061_v50 = vadd.f32 %v6886_v48, %v5060_v41  ;;  %v6651_v23 = vpop.f32.mrb[26].mxu1  ;;  %v4979_v45 = vpop.f32.mrb[27].mxu0 }
 0x23c   : > { %v6890_v3 = vadd.f32 %v6843_v14, %v6651_v23  ;;  %v2842_v58 = vpop.f32.mrb[27].mxu1  ;;  %v5102_v56 = vmul.f32 %v6888_v18, %v6888_v18 }
 0x23d   : > { %v5062_v22 = vadd.f32 %v6889_v39, %v5061_v50  ;;  %v5100_v34 = vmul.f32 %v6889_v39, %v6889_v39  ;;  %v5130_v59 = vadd.f32 %v5129_v10, %v5099_v61  ;;  %v6891_v30 = vadd.f32 %v4979_v45, %v2842_v58 }
 0x23e   : > { %v6173_v19 = vpack.c.bf16 %v6890_v3, %v6888_v18  ;;  %v5103_v4 = vmul.f32 %v6890_v3, %v6890_v3 }
 0x23f   : > { %v5131_v52 = vadd.f32 %v5130_v59, %v5100_v34  ;;  %v5063_v11 = vadd.f32 %v6891_v30, %v5062_v22  ;;  %v5101_v15 = vmul.f32 %v6891_v30, %v6891_v30  ;;  %v6168_v43 = vpack.c.bf16 %v6891_v30, %v6889_v39 }
 0x240   : > { %6197 = vst [vmem:[%s9173_s27 + $0x68] sm:$0xff] %v6173_v19   ;;  %v6846_v38 = vpop.f32.mrb[28].mxu0 }
 0x241   : > { %v5064_v1 = vadd.f32 %v6888_v18, %v5063_v11  ;;  %v5132_v31 = vadd.f32 %v5131_v52, %v5101_v15  ;;  %6196 = vst [vmem:[%s9173_s27 + $0x60] sm:$0xff] %v6168_v43   ;;  %v6654_v63 = vpop.f32.mrb[28].mxu1  ;;  %v4992_v20 = vpop.f32.mrb[29].mxu0 }
 0x242   : > { %v6892_v29 = vadd.f32 %v6846_v38, %v6654_v63  ;;  %v2855_v44 = vpop.f32.mrb[29].mxu1  ;;  %v6847_v35 = vpop.f32.mrb[30].mxu0 }
 0x243   : > { %v5133_v57 = vadd.f32 %v5132_v31, %v5102_v56  ;;  %v6893_v53 = vadd.f32 %v4992_v20, %v2855_v44  ;;  %v5065_v7 = vadd.f32 %v6890_v3, %v5064_v1  ;;  %v6655_v25 = vpop.f32.mrb[30].mxu1  ;;  %v4995_v16 = vpop.f32.mrb[31].mxu0 }
 0x244   : > { %v6894_v54 = vadd.f32 %v6847_v35, %v6655_v25  ;;  %v2858_v13 = vpop.f32.mrb[31].mxu1  ;;  %v5106_v17 = vmul.f32 %v6892_v29, %v6892_v29 }
 0x245   : > { %v5066_v60 = vadd.f32 %v6893_v53, %v5065_v7  ;;  %v5104_v0 = vmul.f32 %v6893_v53, %v6893_v53  ;;  %v5134_v27 = vadd.f32 %v5133_v57, %v5103_v4  ;;  %v6895_v46 = vadd.f32 %v4995_v16, %v2858_v13 }
 0x246   : > { %v6183_v2 = vpack.c.bf16 %v6894_v54, %v6892_v29  ;;  %v5107_v8 = vmul.f32 %v6894_v54, %v6894_v54 }
 0x247   : > { %v5135_v42 = vadd.f32 %v5134_v27, %v5104_v0  ;;  %v5067_v55 = vadd.f32 %v6895_v46, %v5066_v60  ;;  %v5105_v49 = vmul.f32 %v6895_v46, %v6895_v46  ;;  %v6178_v28 = vpack.c.bf16 %v6895_v46, %v6893_v53 }
 0x248   : > { %6199 = vst [vmem:[%s9173_s27 + $0x78] sm:$0xff] %v6183_v2  }
 0x249   : > { %v5068_v48 = vadd.f32 %v6892_v29, %v5067_v55  ;;  %v5136_v24 = vadd.f32 %v5135_v42, %v5105_v49  ;;  %6198 = vst [vmem:[%s9173_s27 + $0x70] sm:$0xff] %v6178_v28  }
 0x24b   : > { %v5069_v36 = vadd.f32 %v6894_v54, %v5068_v48  ;;  %v5137_v40 = vadd.f32 %v5136_v24, %v5106_v17 }
 0x24d   : > { %v5070_v47 = vrot.slane %v5069_v36, 4  ;;  %v5138_v12 = vadd.f32 %v5137_v40, %v5107_v8 }
 0x24f   : > { %v5071_v21 = vadd.f32 %v5070_v47, %v5069_v36  ;;  %v5139_v51 = vrot.slane %v5138_v12, 4 }
 0x251   : > { %v5072_v32 = vrot.slane %v5071_v21, 2  ;;  %v5140_v37 = vadd.f32 %v5139_v51, %v5138_v12 }
 0x253   : > { %v5073_v5 = vadd.f32 %v5072_v32, %v5071_v21  ;;  %v5141_v62 = vrot.slane %v5140_v37, 2 }
 0x255   : > { %v5074_v41 = vrot.slane %v5073_v5, 1  ;;  %v5142_v6 = vadd.f32 %v5141_v62, %v5140_v37 }
 0x257   : > { %v5143_v9 = vrot.slane %v5142_v6, 1  ;;  %v5075_v26 = vadd.f32 %v5074_v41, %v5073_v5 }
 0x259   : > { %v5144_v18 = vadd.f32 %v5143_v9, %v5142_v6 }
 0x25b   : > { %v5146_v33 = vsel %vm5145_vm6, %v5075_v26, %v5144_v18 }
 0x25c   : > { %5147 = vst [vmem:[%s228_s4] sm:$0x3] %v5146_v33 }
 0x25d PF: > { %s14_s14 = sadd.s32 1, %s7357_s14   ;;  %s9278_s12 = smov %s7353_s13 }
 0x25e   : > { %p11_p5 = scmp.ge.s32.totalorder %s14_s14, 4   ;;  %s9279_s13 = smov %s9281_s15 }
 0x260   :  { %13 = sbr.rel (!%p11_p5) target bundleno = 2 (0x2), region = 80 }

// kernel: basic_block_forward.5
= control target key start
LH: loop header
LB: loop body
LE: loop exit
PB: predicated region body
PF: predicated region fallthrough
CT: control target
= control target key end

     0   :  { %s7092_s12 = smov 0   ;;  %s7094_s13 = smov 0   ;;  %s8940_s0 = inlined_call_operand.vmem [shape: bf16[2,1,18,18,128], index: 0, kind: input, shape index: {}]   ;;  %s8941_s1 = inlined_call_operand.vmem [shape: bf16[9,128,128], index: 1, kind: input, shape index: {}]   ;;  %s8942_s2 = inlined_call_operand.vmem [shape: f32[2,16,16,128], index: 2, kind: output, shape index: {0}]   ;;  %s8943_s3 = inlined_call_operand.vmem [shape: f32[2,1,2,128], index: 3, kind: output, shape index: {1}]  }
   0x1   :  { %s7096_s14 = smov 0  }
   0x2 LB: > { %s26_s15 = sadd.s32 1, %s7066_s13  ;;  %p5321_p0 = scmp.ge.s32.totalorder %s7070_s14, 1  ;;  %s7070_s14 = sphi %s7096_s14, %s14_s14   ;;  %s7066_s13 = sphi %s7094_s13, %s9011_s13   ;;  %s7062_s12 = sphi %s7092_s12, %s9010_s12  }
   0x3   : > { %p28_p1 = scmp.ge.s32.totalorder %s26_s15, 2  ;;  %p162_p2 = scmp.lt.s32.totalorder %s7070_s14, 3 }
   0x5   : > { %s9013_s15 = smov (%p28_p1, %s26_s15), 0  ;;  %p163_p3 = pnand %p5321_p0, %p162_p2 }
   0x7   : > { %166 = sbr.rel (%p163_p3) target bundleno = 605 (0x25d), region = 28 }
   0xe   : > { %v6858_v0 = vld [vmem:[%s8941_s1 + $0x40] sm:$0xff]   ;;  %p202_p4 = scmp.lt.s32.totalorder %s7062_s12, 1  ;;  %v6860_v2 = vld [vmem:[%s8941_s1 + $0x48] sm:$0xff]   ;;  %v6862_v4 = vld [vmem:[%s8941_s1 + $0x50] sm:$0xff]   ;;  %vm294_vm0 = vsmask.f32 3328 }
   0xf   : > { %v6859_v1 = vld [vmem:[%s8941_s1 + $0x100] sm:$0xff]   ;;  %6129 = vmatprep.subr.bf16.mxu1 %v6858_v0  ;;  %v6861_v3 = vld [vmem:[%s8941_s1 + $0x108] sm:$0xff]   ;;  %v6863_v5 = vld [vmem:[%s8941_s1 + $0x110] sm:$0xff]   ;;  %vm295_vm1 = vsmask.f32 7440  ;;  %vm1324_vm3 = vcmask 1042432  }
  0x10   : > { %6321 = vmatprep.subr.bf16.mxu0 %v6859_v1  ;;  %6130 = vmatpush3.bf16.msra.mxu1 %v6858_v0  ;;  %s9015_s12 = smov (!%p202_p4, %s7062_s12), 1  ;;  %v6864_v6 = vld [vmem:[%s8941_s1 + $0x58] sm:$0xff]   ;;  %v6866_v8 = vld [vmem:[%s8941_s1 + $0x60] sm:$0xff]   ;;  %v6868_v10 = vld [vmem:[%s8941_s1 + $0x68] sm:$0xff]   ;;  %vm1325_vm4 = vcmask 1046532   ;;  %vm5145_vm6 = vcmask 1040384  }
  0x11   : > { %6322 = vmatpush3.bf16.msra.mxu0 %v6859_v1  ;;  %6131 = vmatprep.subr.bf16.mxu1 %v6860_v2  ;;  %v6865_v7 = vld [vmem:[%s8941_s1 + $0x118] sm:$0xff]   ;;  %s6833_s5 = smul.u32 216, %s9015_s12  ;;  %v6867_v9 = vld [vmem:[%s8941_s1 + $0x120] sm:$0xff]   ;;  %v6869_v11 = vld [vmem:[%s8941_s1 + $0x128] sm:$0xff]   ;;  %s5325_s28 = sshll.u32 %s9015_s12, 1 }
  0x12   : > { %6323 = vmatprep.subr.bf16.mxu0 %v6861_v3  ;;  %v6870_v25 = vld [vmem:[%s8941_s1 + $0x70] sm:$0xff]   ;;  %v6872_v36 = vld [vmem:[%s8941_s1 + $0x78] sm:$0xff]   ;;  %vm7178_vm2 = vmor %vm294_vm0, %vm295_vm1  ;;  %s228_s4 = scalar_lea.vmem %s8943_s3, %s5325_s28 }
  0x13   : > { %s7146_s16 = scalar_lea.vmem %s8940_s0, %s6833_s5  ;;  %v6871_v30 = vld [vmem:[%s8941_s1 + $0x130] sm:$0xff]   ;;  %v6873_v51 = vld [vmem:[%s8941_s1 + $0x138] sm:$0xff]   ;;  %vm7424_vm5 = vmor %vm1324_vm3, %vm1325_vm4 }
  0x14   : > { %6132 = vmatpush3.bf16.msra.mxu1 %v6860_v2  ;;  %v230_v12 = vld [vmem:[%s7146_s16] sm:$0xf]  ;;  %v231_v13 = vld [vmem:[%s7146_s16 + $0x4] sm:$0xf]  ;;  %v278_v14 = vld [vmem:[%s7146_s16 + $0x8] sm:$0x1] }
  0x15   : > { %6324 = vmatpush3.bf16.msra.mxu0 %v6861_v3  ;;  %6133 = vmatprep.subr.bf16.mxu1 %v6862_v4  ;;  %v298_v15 = vshrl.u32 %v230_v12, 16  ;;  %v301_v16 = vshll.u32 %v230_v12, 16  ;;  %v307_v17 = vshll.u32 %v231_v13, 16  ;;  %v311_v18 = vshrl.u32 %v231_v13, 16  ;;  %v5518_v20 = vld [vmem:[%s7146_s16 + $0xc] sm:$0xf] }
  0x16   : > { %6325 = vmatprep.subr.bf16.mxu0 %v6863_v5  ;;  %v317_v19 = vshll.u32 %v278_v14, 16  ;;  %v7159_v23 = vld [vmem:[%s7146_s16 + $0x10] sm:$0xf]  ;;  %v7162_v24 = vld [vmem:[%s7146_s16 + $0x14] sm:$0x1]  ;;  %v2197_v29 = vshrl.u32 %v5518_v20, 16 }
  0x17   : > { %v300_v21 = vrot.slane %v298_v15, 4  ;;  %v303_v22 = vrot.slane %v301_v16, 5  ;;  %v309_v26 = vrot.slane %v307_v17, 5  ;;  %v313_v27 = vrot.slane %v311_v18, 4  ;;  %v232_v35 = vld [vmem:[%s7146_s16 + $0xc] sm:$0xf] }
  0x18   : > { %6134 = vmatpush3.bf16.msra.mxu1 %v6862_v4  ;;  %v319_v28 = vrot.slane %v317_v19, 5  ;;  %v2200_v32 = vshll.u32 %v5518_v20, 16  ;;  %v2206_v33 = vshll.u32 %v7159_v23, 16  ;;  %v2210_v34 = vshrl.u32 %v7159_v23, 16  ;;  %v233_v42 = vld [vmem:[%s7146_s16 + $0x10] sm:$0xf] }
  0x19   : > { %6326 = vmatpush3.bf16.msra.mxu0 %v6863_v5  ;;  %6135 = vmatprep.subr.bf16.mxu1 %v6864_v6  ;;  %v304_v31 = vor.u32 %v303_v22, %v300_v21  ;;  %v314_v38 = vor.u32 %v313_v27, %v309_v26  ;;  %v2199_v39 = vrot.slane %v2197_v29, 4  ;;  %v2216_v40 = vshll.u32 %v7162_v24, 16  ;;  %v279_v55 = vld [vmem:[%s7146_s16 + $0x14] sm:$0x1]  ;;  %v5521_v57 = vld [vmem:[%s7146_s16 + $0x18] sm:$0xf] }
  0x1a   : > { %6327 = vmatprep.subr.bf16.mxu0 %v6865_v7  ;;  %v2971_v41 = vrot.slane %v7162_v24, 5  ;;  %v2202_v44 = vrot.slane %v2200_v32, 5  ;;  %v2208_v45 = vrot.slane %v2206_v33, 5  ;;  %v2212_v46 = vrot.slane %v2210_v34, 4  ;;  %v7195_v62 = vld [vmem:[%s7146_s16 + $0x1c] sm:$0xf] }
  0x1b   : > { %v305_v43 = vrot.slane %v304_v31, 4  ;;  %v315_v47 = vrot.slane %v314_v38, 4  ;;  %v2218_v48 = vrot.slane %v2216_v40, 5  ;;  %v322_v49 = vshrl.u32 %v232_v35, 16  ;;  %v6874_v3 = vld [vmem:[%s8941_s1] sm:$0xff]  }
  0x1c   : > { %6136 = vmatpush3.bf16.msra.mxu1 %v6864_v6  ;;  %v325_v50 = vshll.u32 %v232_v35, 16  ;;  %v2203_v53 = vor.u32 %v2202_v44, %v2199_v39  ;;  %v2213_v54 = vor.u32 %v2212_v46, %v2208_v45  ;;  %v331_v56 = vshll.u32 %v233_v42, 16  ;;  %v7203_v4 = vld [vmem:[%s8941_s1 + $0x140] sm:$0xff]   ;;  %v234_v21 = vld [vmem:[%s7146_s16 + $0x18] sm:$0xf]  ;;  %v6877_v46 = vld [vmem:[%s8941_s1 + $0x8] sm:$0xff]  }
  0x1d   : > { %6328 = vmatpush3.bf16.msra.mxu0 %v6865_v7  ;;  %6137 = vmatprep.subr.bf16.mxu1 %v6866_v8  ;;  %v310_v52 = vsel %vm7178_vm2, %v305_v43, %v309_v26  ;;  %v320_v58 = vsel %vm7178_vm2, %v315_v47, %v319_v28  ;;  %v324_v59 = vrot.slane %v322_v49, 4  ;;  %v335_v61 = vshrl.u32 %v233_v42, 16  ;;  %v235_v28 = vld [vmem:[%s7146_s16 + $0x1c] sm:$0xf]  ;;  %v280_v33 = vld [vmem:[%s7146_s16 + $0x20] sm:$0x1] }
  0x1e   : > { %6329 = vmatprep.subr.bf16.mxu0 %v6867_v9  ;;  %v327_v60 = vrot.slane %v325_v50, 5  ;;  %v5342_v63 = vcombine.low %v310_v52, %v320_v58  ;;  %v2204_v0 = vrot.slane %v2203_v53, 4  ;;  %v2214_v1 = vrot.slane %v2213_v54, 4  ;;  %v5524_v39 = vld [vmem:[%s7146_s16 + $0x24] sm:$0xf] }
  0x1f   : > { %v333_v2 = vrot.slane %v331_v56, 5  ;;  %v337_v6 = vrot.slane %v335_v61, 4  ;;  %v341_v7 = vshll.u32 %v279_v55, 16  ;;  %v2224_v12 = vshll.u32 %v5521_v57, 16  ;;  %v236_v52 = vld [vmem:[%s7146_s16 + $0x24] sm:$0xf] }
  0x20   : > { %6138 = vmatpush3.bf16.msra.mxu1 %v6866_v8  ;;  %v328_v5 = vor.u32 %v327_v60, %v324_v59  ;;  %v7206_v8 = vld [vmem:[%s7146_s16 + $0x20] sm:$0x1]  ;;  %6145 = vmatprep.mubr.bf16.mxu1 %v5342_v63  ;;  %v2230_v19 = vshll.u32 %v7195_v62, 16  ;;  %v2234_v20 = vshrl.u32 %v7195_v62, 16  ;;  %v2975_v27 = vrot.slane %v7195_v62, 5  ;;  %v6876_v63 = vld [vmem:[%s8941_s1 + $0x148] sm:$0xff]  }
  0x21   : > { %6330 = vmatpush3.bf16.msra.mxu0 %v6867_v9  ;;  %6139 = vmatprep.subr.bf16.mxu1 %v6868_v10  ;;  %v2209_v9 = vsel %vm7178_vm2, %v2204_v0, %v2208_v45  ;;  %v338_v15 = vor.u32 %v337_v6, %v333_v2  ;;  %v343_v16 = vrot.slane %v341_v7, 5  ;;  %v2226_v18 = vrot.slane %v2224_v12, 5  ;;  %v7231_v45 = vld [vmem:[%s7146_s16 + $0x28] sm:$0xf] }
  0x22   : > { %6331 = vmatprep.subr.bf16.mxu0 %v6869_v11  ;;  %v329_v14 = vrot.slane %v328_v5, 4  ;;  %v2240_v26 = vshll.u32 %v7206_v8, 16  ;;  %v2236_v31 = vrot.slane %v2234_v20, 4  ;;  %v2978_v32 = vrot.slane %v7206_v8, 5  ;;  %v237_v5 = vld [vmem:[%s7146_s16 + $0x28] sm:$0xf] }
  0x23   : > { %v346_v38 = vshrl.u32 %v234_v21, 16  ;;  %v349_v44 = vshll.u32 %v234_v21, 16  ;;  %v359_v49 = vshrl.u32 %v235_v28, 16  ;;  %v365_v50 = vshll.u32 %v280_v33, 16  ;;  %v7262_v33 = vld [vmem:[%s7146_s16 + $0x34] sm:$0xf] }
  0x24   : > { %6140 = vmatpush3.bf16.msra.mxu1 %v6868_v10  ;;  %v2219_v10 = vsel %vm7178_vm2, %v2214_v1, %v2218_v48  ;;  %v334_v22 = vsel %vm7178_vm2, %v329_v14, %v333_v2  ;;  %v2242_v35 = vrot.slane %v2240_v26, 5  ;;  %v355_v48 = vshll.u32 %v235_v28, 16 }
  0x25   : > { %6332 = vmatpush3.bf16.msra.mxu0 %v6869_v11  ;;  %6141 = vmatprep.subr.bf16.mxu1 %v6870_v25  ;;  %v2221_v11 = vshrl.u32 %v5521_v57, 16  ;;  %v5582_v13 = vcombine.low %v2209_v9, %v2219_v10  ;;  %v348_v47 = vrot.slane %v346_v38, 4  ;;  %v351_v55 = vrot.slane %v349_v44, 5 }
  0x26   : > { %6333 = vmatprep.subr.bf16.mxu0 %v6871_v30  ;;  %v2245_v56 = vshrl.u32 %v5524_v39, 16  ;;  %v357_v57 = vrot.slane %v355_v48, 5  ;;  %v361_v58 = vrot.slane %v359_v49, 4  ;;  %v367_v59 = vrot.slane %v365_v50, 5  ;;  %v6879_v48 = vld [vmem:[%s8941_s1 + $0x158] sm:$0xff]  }
  0x27   : > { %v2223_v17 = vrot.slane %v2221_v11, 4  ;;  %6337 = vmatprep.mubr.bf16.mxu0 %v5582_v13  ;;  %v2248_v60 = vshll.u32 %v5524_v39, 16  ;;  %v352_v0 = vor.u32 %v351_v55, %v348_v47  ;;  %v2254_v2 = vshll.u32 %v7231_v45, 16  ;;  %v281_v11 = vld [vmem:[%s7146_s16 + $0x2c] sm:$0x1] }
  0x28   : > { %6142 = vmatpush3.bf16.msra.mxu1 %v6870_v25  ;;  %v339_v25 = vrot.slane %v338_v15, 4  ;;  %v2247_v1 = vrot.slane %v2245_v56, 4  ;;  %v362_v7 = vor.u32 %v361_v58, %v357_v57  ;;  %v2258_v10 = vshrl.u32 %v7231_v45, 16 }
  0x29   : > { %6334 = vmatpush3.bf16.msra.mxu0 %v6871_v30  ;;  %6143 = vmatprep.subr.bf16.mxu1 %v6872_v36  ;;  %v2227_v29 = vor.u32 %v2226_v18, %v2223_v17  ;;  %v2232_v30 = vrot.slane %v2230_v19, 5  ;;  %v2250_v9 = vrot.slane %v2248_v60, 5  ;;  %v353_v12 = vrot.slane %v352_v0, 4  ;;  %v6886_v60 = vld [vmem:[%s8941_s1 + $0x20] sm:$0xff]  }
  0x2a   : > { %6335 = vmatprep.subr.bf16.mxu0 %v6873_v51  ;;  %v344_v34 = vsel %vm7178_vm2, %v339_v25, %v343_v16  ;;  %v2256_v13 = vrot.slane %v2254_v2, 5  ;;  %v370_v15 = vshrl.u32 %v236_v52, 16  ;;  %v5527_v16 = vld [vmem:[%s7146_s16 + $0x30] sm:$0xf]  ;;  %v363_v17 = vrot.slane %v362_v7, 4 }
  0x2b   : > { %v5343_v40 = vcombine.low %v334_v22, %v344_v34  ;;  %v2228_v42 = vrot.slane %v2227_v29, 4  ;;  %v2237_v43 = vor.u32 %v2236_v31, %v2232_v30  ;;  %v2251_v18 = vor.u32 %v2250_v9, %v2247_v1  ;;  %v6883_v34 = vld [vmem:[%s8941_s1 + $0x18] sm:$0xff]  }
  0x2c   : > { %6144 = vmatpush3.bf16.msra.mxu1 %v6872_v36  ;;  %v7227_v36 = vrot.slane %v2975_v27, 4  ;;  %v2260_v19 = vrot.slane %v2258_v10, 4  ;;  %v373_v20 = vshll.u32 %v236_v52, 16  ;;  %v358_v21 = vsel %vm7178_vm2, %v353_v12, %v357_v57  ;;  %v282_v2 = vld [vmem:[%s7146_s16 + $0x38] sm:$0x1] }
  0x2d   : > { %6336 = vmatpush3.bf16.msra.mxu0 %v6873_v51  ;;  %6177 = vmatprep.subr.bf16.mxu1 %v6874_v3  ;;  %v7237_v51 = vld [vmem:[%s7146_s16 + $0x2c] sm:$0x1]  ;;  %v2233_v53 = vsel %vm7178_vm2, %v2228_v42, %v2232_v30  ;;  %v2238_v54 = vrot.slane %v2237_v43, 4  ;;  %v372_v25 = vrot.slane %v370_v15, 4  ;;  %v379_v26 = vshll.u32 %v237_v5, 16 }
  0x2e   : > { %6369 = vmatprep.subr.bf16.mxu0 %v7203_v4  ;;  %v2264_v14 = vshll.u32 %v7237_v51, 16  ;;  %v368_v28 = vsel %vm7178_vm2, %v363_v17, %v367_v59  ;;  %v2252_v29 = vrot.slane %v2251_v18, 4  ;;  %v2261_v30 = vor.u32 %v2260_v19, %v2256_v13  ;;  %v239_v59 = vld [vmem:[%s7146_s16 + $0x34] sm:$0xf]  ;;  %v5530_v9 = vld [vmem:[%s7146_s16 + $0x3c] sm:$0xf] }
  0x2f   : > { %6146 = vmatmul.mubr.bf16.vlgmr.msra.gmra.mrb[0].mxu1 %v5343_v40  ;;  %v2243_v61 = vsel %vm7178_vm2, %v2238_v54, %v2242_v35  ;;  %v375_v31 = vrot.slane %v373_v20, 5  ;;  %v5344_v35 = vcombine.low %v358_v21, %v368_v28  ;;  %v381_v38 = vrot.slane %v379_v26, 5  ;;  %v238_v54 = vld [vmem:[%s7146_s16 + $0x30] sm:$0xf]  ;;  %v7296_v19 = vld [vmem:[%s7146_s16 + $0x40] sm:$0xf] }
  0x30   : > { %6178 = vmatpush3.bf16.msra.mxu1 %v6874_v3  ;;  %v6880_v3 = vld [vmem:[%s8941_s1 + $0x10] sm:$0xff]   ;;  %v5583_v6 = vcombine.low %v2233_v53, %v2243_v61  ;;  %v2266_v22 = vrot.slane %v2264_v14, 5  ;;  %v383_v39 = vshrl.u32 %v237_v5, 16  ;;  %v389_v40 = vshll.u32 %v281_v11, 16  ;;  %v6888_v14 = vld [vmem:[%s8941_s1 + $0x28] sm:$0xff]   ;;  %v6881_v20 = vld [vmem:[%s8941_s1 + $0x160] sm:$0xff]  }
  0x31   : > { %6179 = vmatprep.subr.bf16.mxu1 %v6877_v46  ;;  %v2257_v42 = vsel %vm7178_vm2, %v2252_v29, %v2256_v13  ;;  %v2262_v43 = vrot.slane %v2261_v30, 4  ;;  %v376_v44 = vor.u32 %v375_v31, %v372_v25  ;;  %v2269_v47 = vshrl.u32 %v5527_v16, 16  ;;  %6149 = vmatprep.mubr.bf16.mxu1 %v5344_v35  ;;  %v7304_v28 = vld [vmem:[%s7146_s16 + $0x44] sm:$0x1]  ;;  %v6890_v35 = vld [vmem:[%s8941_s1 + $0x30] sm:$0xff]  }
  0x32   : > { %6338 = vmatmul.mubr.bf16.vlgmr.msra.gmra.mrb[0].mxu0 %v5583_v6  ;;  %v385_v49 = vrot.slane %v383_v39, 4  ;;  %v391_v50 = vrot.slane %v389_v40, 5  ;;  %v2272_v52 = vshll.u32 %v5527_v16, 16  ;;  %v2278_v53 = vshll.u32 %v7262_v33, 16 }
  0x33   : > { %6370 = vmatpush3.bf16.msra.mxu0 %v7203_v4  ;;  %v6878_v4 = vld [vmem:[%s8941_s1 + $0x150] sm:$0xff]   ;;  %v2267_v55 = vsel %vm7178_vm2, %v2262_v43, %v2266_v22  ;;  %v377_v56 = vrot.slane %v376_v44, 4  ;;  %v2271_v57 = vrot.slane %v2269_v47, 4  ;;  %v2282_v58 = vshrl.u32 %v7262_v33, 16 }
  0x34   : > { %6180 = vmatpush3.bf16.msra.mxu1 %v6877_v46  ;;  %6371 = vmatprep.subr.bf16.mxu0 %v6876_v63  ;;  %v7273_v46 = vld [vmem:[%s7146_s16 + $0x38] sm:$0x1]  ;;  %v5584_v61 = vcombine.low %v2257_v42, %v2267_v55  ;;  %v2274_v0 = vrot.slane %v2272_v52, 5  ;;  %v2280_v1 = vrot.slane %v2278_v53, 5  ;;  %v394_v7 = vshrl.u32 %v238_v54, 16 }
  0x35   : > { %6181 = vmatprep.subr.bf16.mxu1 %v6880_v3  ;;  %v382_v5 = vsel %vm7178_vm2, %v377_v56, %v381_v38  ;;  %v2288_v6 = vshll.u32 %v7273_v46, 16  ;;  %v397_v12 = vshll.u32 %v238_v54, 16  ;;  %v403_v13 = vshll.u32 %v239_v59, 16  ;;  %v241_v55 = vld [vmem:[%s7146_s16 + $0x40] sm:$0xf] }
  0x36   : > { %6341 = vmatprep.mubr.bf16.mxu0 %v5584_v61  ;;  %v2275_v11 = vor.u32 %v2274_v0, %v2271_v57  ;;  %v396_v17 = vrot.slane %v394_v7, 4  ;;  %v407_v18 = vshrl.u32 %v239_v59, 16  ;;  %v2293_v40 = vshrl.u32 %v5530_v9, 16 }
  0x37   : > { %6372 = vmatpush3.bf16.msra.mxu0 %v6876_v63  ;;  %v386_v63 = vor.u32 %v385_v49, %v381_v38  ;;  %v2290_v16 = vrot.slane %v2288_v6, 5  ;;  %v399_v25 = vrot.slane %v397_v12, 5  ;;  %v405_v26 = vrot.slane %v403_v13, 5 }
  0x38   : > { %6182 = vmatpush3.bf16.msra.mxu1 %v6880_v3  ;;  %6373 = vmatprep.subr.bf16.mxu0 %v6878_v4  ;;  %v2284_v3 = vrot.slane %v2282_v58, 4  ;;  %v2276_v22 = vrot.slane %v2275_v11, 4  ;;  %v409_v31 = vrot.slane %v407_v18, 4  ;;  %v2296_v42 = vshll.u32 %v5530_v9, 16  ;;  %v5533_v9 = vld [vmem:[%s7146_s16 + $0x48] sm:$0xf] }
  0x39   : > { %6183 = vmatprep.subr.bf16.mxu1 %v6883_v34  ;;  %v387_v10 = vrot.slane %v386_v63, 4  ;;  %v400_v39 = vor.u32 %v399_v25, %v396_v17  ;;  %v2302_v49 = vshll.u32 %v7296_v19, 16  ;;  %v2295_v53 = vrot.slane %v2293_v40, 4  ;;  %v283_v63 = vld [vmem:[%s7146_s16 + $0x44] sm:$0x1] }
  0x3a   : > { %v2285_v15 = vor.u32 %v2284_v3, %v2280_v1  ;;  %v2281_v38 = vsel %vm7178_vm2, %v2276_v22, %v2280_v1  ;;  %v410_v44 = vor.u32 %v409_v31, %v405_v26  ;;  %v2298_v54 = vrot.slane %v2296_v42, 5  ;;  %v7337_v22 = vld [vmem:[%s7146_s16 + $0x50] sm:$0x1]  ;;  %v6885_v31 = vld [vmem:[%s8941_s1 + $0x178] sm:$0xff]  }
  0x3b   : > { %6374 = vmatpush3.bf16.msra.mxu0 %v6878_v4  ;;  %v392_v21 = vsel %vm7178_vm2, %v387_v10, %v391_v50  ;;  %v413_v4 = vshll.u32 %v282_v2, 16  ;;  %v401_v52 = vrot.slane %v400_v39, 4  ;;  %v2304_v57 = vrot.slane %v2302_v49, 5  ;;  %v6892_v2 = vld [vmem:[%s8941_s1 + $0x38] sm:$0xff]  }
  0x3c   : > { %6184 = vmatpush3.bf16.msra.mxu1 %v6883_v34  ;;  %6375 = vmatprep.subr.bf16.mxu0 %v6879_v48  ;;  %v5345_v29 = vcombine.low %v382_v5, %v392_v21  ;;  %v2286_v30 = vrot.slane %v2285_v15, 4  ;;  %v240_v34 = vld [vmem:[%s7146_s16 + $0x3c] sm:$0xf]  ;;  %v411_v56 = vrot.slane %v410_v44, 4  ;;  %v2306_v58 = vshrl.u32 %v7296_v19, 16  ;;  %v6884_v15 = vld [vmem:[%s8941_s1 + $0x170] sm:$0xff]  }
  0x3d   : > { %6185 = vmatprep.subr.bf16.mxu1 %v6886_v60  ;;  %v415_v47 = vrot.slane %v413_v4, 5  ;;  %v2312_v59 = vshll.u32 %v7304_v28, 16  ;;  %v2299_v61 = vor.u32 %v2298_v54, %v2295_v53  ;;  %v418_v0 = vshrl.u32 %v240_v34, 16  ;;  %v7348_v4 = vld [vmem:[%s8941_s1 + $0x80] sm:$0xff]   ;;  %v243_v53 = vld [vmem:[%s7146_s16 + $0x4c] sm:$0xf] }
  0x3e   : > { %6150 = vmatmul.mubr.bf16.gmra.mrb[4].mxu1 %v5345_v29  ;;  %v2291_v43 = vsel %vm7178_vm2, %v2286_v30, %v2290_v16  ;;  %v421_v1 = vshll.u32 %v240_v34, 16  ;;  %v2308_v3 = vrot.slane %v2306_v58, 4  ;;  %v427_v7 = vshll.u32 %v241_v55, 16  ;;  %v242_v30 = vld [vmem:[%s7146_s16 + $0x48] sm:$0xf] }
  0x3f   : > { %6376 = vmatpush3.bf16.msra.mxu0 %v6879_v48  ;;  %v5585_v50 = vcombine.low %v2281_v38, %v2291_v43  ;;  %v6882_v48 = vld [vmem:[%s8941_s1 + $0x168] sm:$0xff]   ;;  %v416_v5 = vsel %vm7178_vm2, %v411_v56, %v415_v47  ;;  %v2314_v6 = vrot.slane %v2312_v59, 5  ;;  %v2300_v11 = vrot.slane %v2299_v61, 4  ;;  %v284_v54 = vld [vmem:[%s7146_s16 + $0x50] sm:$0x1] }
  0x40   : > { %6186 = vmatpush3.bf16.msra.mxu1 %v6886_v60  ;;  %6377 = vmatprep.subr.bf16.mxu0 %v6881_v20  ;;  %v406_v60 = vsel %vm7178_vm2, %v401_v52, %v405_v26  ;;  %v420_v12 = vrot.slane %v418_v0, 4  ;;  %v423_v13 = vrot.slane %v421_v1, 5  ;;  %v2309_v16 = vor.u32 %v2308_v3, %v2304_v57  ;;  %v5536_v58 = vld [vmem:[%s7146_s16 + $0x54] sm:$0xf]  ;;  %v7362_v0 = vld [vmem:[%s7146_s16 + $0x58] sm:$0xf] }
  0x41   : > { %6187 = vmatprep.subr.bf16.mxu1 %v6888_v14  ;;  %6342 = vmatmul.mubr.bf16.gmra.mrb[4].mxu0 %v5585_v50  ;;  %v5346_v10 = vcombine.low %v406_v60, %v416_v5  ;;  %v429_v17 = vrot.slane %v427_v7, 5  ;;  %v431_v18 = vshrl.u32 %v241_v55, 16  ;;  %v437_v21 = vshll.u32 %v283_v63, 16 }
  0x42   : > { %v424_v25 = vor.u32 %v423_v13, %v420_v12  ;;  %v2317_v26 = vshrl.u32 %v5533_v9, 16  ;;  %v2320_v29 = vshll.u32 %v5533_v9, 16  ;;  %v2310_v34 = vrot.slane %v2309_v16, 4 }
  0x43   : > { %6378 = vmatpush3.bf16.msra.mxu0 %v6881_v20  ;;  %6153 = vmatprep.mubr.bf16.mxu1 %v5346_v10  ;;  %v2305_v20 = vsel %vm7178_vm2, %v2300_v11, %v2304_v57  ;;  %v439_v38 = vrot.slane %v437_v21, 5  ;;  %v2336_v52 = vshll.u32 %v7337_v22, 16  ;;  %v442_v61 = vshrl.u32 %v242_v30, 16 }
  0x44   : > { %6188 = vmatpush3.bf16.msra.mxu1 %v6888_v14  ;;  %v7331_v14 = vld [vmem:[%s7146_s16 + $0x4c] sm:$0xf]  ;;  %6379 = vmatprep.subr.bf16.mxu0 %v6882_v48  ;;  %v425_v40 = vrot.slane %v424_v25, 4  ;;  %v2319_v42 = vrot.slane %v2317_v26, 4  ;;  %v2322_v43 = vrot.slane %v2320_v29, 5  ;;  %v2315_v47 = vsel %vm7178_vm2, %v2310_v34, %v2314_v6  ;;  %v7367_v6 = vld [vmem:[%s8941_s1 + $0x180] sm:$0xff]  }
  0x45   : > { %6189 = vmatprep.subr.bf16.mxu1 %v6890_v35  ;;  %v2326_v39 = vshll.u32 %v7331_v14, 16  ;;  %v2330_v44 = vshrl.u32 %v7331_v14, 16  ;;  %v5586_v55 = vcombine.low %v2305_v20, %v2315_v47  ;;  %v2338_v60 = vrot.slane %v2336_v52, 5  ;;  %v7374_v20 = vld [vmem:[%s7146_s16 + $0x5c] sm:$0x1] }
  0x46   : > { %v2323_v56 = vor.u32 %v2322_v43, %v2319_v42  ;;  %v445_v63 = vshll.u32 %v242_v30, 16  ;;  %v455_v3 = vshrl.u32 %v243_v53, 16  ;;  %v444_v9 = vrot.slane %v442_v61, 4  ;;  %v245_v43 = vld [vmem:[%s7146_s16 + $0x58] sm:$0xf] }
  0x47   : > { %6380 = vmatpush3.bf16.msra.mxu0 %v6882_v48  ;;  %v2328_v50 = vrot.slane %v2326_v39, 5  ;;  %v430_v48 = vsel %vm7178_vm2, %v425_v40, %v429_v17  ;;  %v2332_v57 = vrot.slane %v2330_v44, 4  ;;  %6345 = vmatprep.mubr.bf16.mxu0 %v5586_v55  ;;  %v461_v11 = vshll.u32 %v284_v54, 16  ;;  %v5539_v52 = vld [vmem:[%s7146_s16 + $0x60] sm:$0xf] }
  0x48   : > { %6190 = vmatpush3.bf16.msra.mxu1 %v6890_v35  ;;  %v433_v35 = vrot.slane %v431_v18, 4  ;;  %6381 = vmatprep.subr.bf16.mxu0 %v6884_v15  ;;  %v2324_v1 = vrot.slane %v2323_v56, 4  ;;  %v447_v10 = vrot.slane %v445_v63, 5  ;;  %v457_v18 = vrot.slane %v455_v3, 4 }
  0x49   : > { %6191 = vmatprep.subr.bf16.mxu1 %v6892_v2  ;;  %v2333_v5 = vor.u32 %v2332_v57, %v2328_v50  ;;  %v463_v21 = vrot.slane %v461_v11, 5  ;;  %v2341_v25 = vshrl.u32 %v5536_v58, 16  ;;  %v2344_v29 = vshll.u32 %v5536_v58, 16 }
  0x4a   : > { %v434_v49 = vor.u32 %v433_v35, %v429_v17  ;;  %v2329_v13 = vsel %vm7178_vm2, %v2324_v1, %v2328_v50  ;;  %v448_v17 = vor.u32 %v447_v10, %v444_v9  ;;  %v2350_v30 = vshll.u32 %v7362_v0, 16  ;;  %v244_v35 = vld [vmem:[%s7146_s16 + $0x54] sm:$0xf]  ;;  %v285_v50 = vld [vmem:[%s7146_s16 + $0x5c] sm:$0x1] }
  0x4b   : > { %6382 = vmatpush3.bf16.msra.mxu0 %v6884_v15  ;;  %v2334_v15 = vrot.slane %v2333_v5, 4  ;;  %v2354_v34 = vshrl.u32 %v7362_v0, 16  ;;  %v2343_v42 = vrot.slane %v2341_v25, 4  ;;  %v466_v55 = vshrl.u32 %v244_v35, 16  ;;  %v7402_v25 = vld [vmem:[%s7146_s16 + $0x60] sm:$0xf] }
  0x4c   : > { %6192 = vmatpush3.bf16.msra.mxu1 %v6892_v2  ;;  %v435_v59 = vrot.slane %v434_v49, 4  ;;  %v451_v2 = vshll.u32 %v243_v53, 16  ;;  %6383 = vmatprep.subr.bf16.mxu0 %v6885_v31  ;;  %v449_v39 = vrot.slane %v448_v17, 4  ;;  %v2352_v44 = vrot.slane %v2350_v30, 5  ;;  %v7398_v17 = vld [vmem:[%s7146_s16 + $0x68] sm:$0x1] }
  0x4d   : > { %6225 = vmatprep.subr.bf16.mxu1 %v7348_v4  ;;  %v2339_v26 = vsel %vm7178_vm2, %v2334_v15, %v2338_v60  ;;  %v2356_v47 = vrot.slane %v2354_v34, 4  ;;  %v2360_v49 = vshll.u32 %v7374_v20, 16  ;;  %v7389_v60 = vld [vmem:[%s7146_s16 + $0x64] sm:$0xf]  ;;  %v468_v63 = vrot.slane %v466_v55, 4 }
  0x4e   : > { %v440_v7 = vsel %vm7178_vm2, %v435_v59, %v439_v38  ;;  %v453_v16 = vrot.slane %v451_v2, 5  ;;  %v5587_v38 = vcombine.low %v2329_v13, %v2339_v26  ;;  %v475_v59 = vshll.u32 %v245_v43, 16 }
  0x4f   : > { %v5347_v12 = vcombine.low %v430_v48, %v440_v7  ;;  %6384 = vmatpush3.bf16.msra.mxu0 %v6885_v31  ;;  %v2346_v31 = vrot.slane %v2344_v29, 5  ;;  %v469_v48 = vshll.u32 %v244_v35, 16  ;;  %v2357_v57 = vor.u32 %v2356_v47, %v2352_v44  ;;  %v7405_v35 = vld [vmem:[%s7146_s16 + $0x64] sm:$0xf] }
  0x50   : > { %6417 = vmatprep.subr.bf16.mxu0 %v7367_v6  ;;  %v458_v40 = vor.u32 %v457_v18, %v453_v16  ;;  %6346 = vmatmul.mubr.bf16.gmra.mrb[8].mxu0 %v5587_v38  ;;  %v454_v53 = vsel %vm7178_vm2, %v449_v39, %v453_v16  ;;  %v2362_v58 = vrot.slane %v2360_v49, 5  ;;  %v479_v5 = vshrl.u32 %v245_v43, 16  ;;  %v286_v43 = vld [vmem:[%s7146_s16 + $0x68] sm:$0x1] }
  0x51   : > { %6154 = vmatmul.mubr.bf16.gmra.mrb[8].mxu1 %v5347_v12  ;;  %v2347_v56 = vor.u32 %v2346_v31, %v2343_v42  ;;  %v471_v1 = vrot.slane %v469_v48, 5  ;;  %v2358_v7 = vrot.slane %v2357_v57, 4  ;;  %v477_v9 = vrot.slane %v475_v59, 5 }
  0x52   : > { %v459_v54 = vrot.slane %v458_v40, 4  ;;  %v481_v11 = vrot.slane %v479_v5, 4  ;;  %v485_v12 = vshll.u32 %v285_v50, 16  ;;  %v2365_v13 = vshrl.u32 %v5539_v52, 16  ;;  %v5606_v50 = vld [vmem:[%s7146_s16 + $0xc] sm:$0xe] }
  0x53   : > { %v2348_v3 = vrot.slane %v2347_v56, 4  ;;  %v472_v10 = vor.u32 %v471_v1, %v468_v63  ;;  %v2363_v16 = vsel %vm7178_vm2, %v2358_v7, %v2362_v58  ;;  %v2368_v18 = vshll.u32 %v5539_v52, 16  ;;  %v7420_v5 = vld [vmem:[%s7146_s16 + $0x6c] sm:$0xf] }
  0x54   : > { %v464_v61 = vsel %vm7178_vm2, %v459_v54, %v463_v21  ;;  %v2374_v21 = vshll.u32 %v7389_v60, 16  ;;  %v482_v30 = vor.u32 %v481_v11, %v477_v9  ;;  %v487_v34 = vrot.slane %v485_v12, 5 }
  0x55   : > { %v5348_v2 = vcombine.low %v454_v53, %v464_v61  ;;  %v2353_v15 = vsel %vm7178_vm2, %v2348_v3, %v2352_v44  ;;  %v473_v29 = vrot.slane %v472_v10, 4  ;;  %v2367_v38 = vrot.slane %v2365_v13, 4 }
  0x56   : > { %v5588_v26 = vcombine.low %v2353_v15, %v2363_v16  ;;  %v2370_v39 = vrot.slane %v2368_v18, 5  ;;  %v2376_v40 = vrot.slane %v2374_v21, 5  ;;  %v2378_v42 = vshrl.u32 %v7389_v60, 16  ;;  %v7432_v21 = vld [vmem:[%s7146_s16 + $0x70] sm:$0xf] }
  0x57   : > { %6157 = vmatprep.mubr.bf16.mxu1 %v5348_v2  ;;  %v478_v31 = vsel %vm7178_vm2, %v473_v29, %v477_v9  ;;  %v483_v44 = vrot.slane %v482_v30, 4  ;;  %v2384_v47 = vshll.u32 %v7398_v17, 16  ;;  %v490_v49 = vshrl.u32 %v7402_v25, 16  ;;  %v6976_v9 = vld [vmem:[%s7146_s16 + $0xb4] sm:$0xff]  }
  0x58   : > { %6349 = vmatprep.mubr.bf16.mxu0 %v5588_v26  ;;  %v2371_v52 = vor.u32 %v2370_v39, %v2367_v38  ;;  %v2380_v53 = vrot.slane %v2378_v42, 4  ;;  %v493_v54 = vshll.u32 %v7402_v25, 16  ;;  %v499_v55 = vshll.u32 %v7405_v35, 16 }
  0x59   : > { %v488_v48 = vsel %vm7178_vm2, %v483_v44, %v487_v34  ;;  %v2386_v56 = vrot.slane %v2384_v47, 5  ;;  %v492_v57 = vrot.slane %v490_v49, 4  ;;  %v503_v58 = vshrl.u32 %v7405_v35, 16  ;;  %v7443_v47 = vld [vmem:[%s7146_s16 + $0x78] sm:$0xf] }
  0x5a   : > { %v5349_v59 = vcombine.low %v478_v31, %v488_v48  ;;  %v2372_v61 = vrot.slane %v2371_v52, 4  ;;  %v2381_v63 = vor.u32 %v2380_v53, %v2376_v40  ;;  %v495_v1 = vrot.slane %v493_v54, 5  ;;  %v7454_v54 = vld [vmem:[%s7146_s16 + $0x7c] sm:$0xf] }
  0x5b   : > { %v501_v2 = vrot.slane %v499_v55, 5  ;;  %v505_v3 = vrot.slane %v503_v58, 4  ;;  %v509_v7 = vshll.u32 %v286_v43, 16  ;;  %v5622_v10 = vrot.slane %v5606_v50, 9  ;;  %v288_v58 = vld [vmem:[%s7146_s16 + $0x80] sm:$0x1] }
  0x5c   : > { %6158 = vmatmul.mubr.bf16.gmra.mrb[12].mxu1 %v5349_v59  ;;  %v2377_v11 = vsel %vm7178_vm2, %v2372_v61, %v2376_v40  ;;  %v2382_v12 = vrot.slane %v2381_v63, 4  ;;  %v496_v13 = vor.u32 %v495_v1, %v492_v57  ;;  %v2968_v15 = vrot.slane %v7159_v23, 5  ;;  %v287_v40 = vld [vmem:[%s7146_s16 + $0x74] sm:$0x1]  ;;  %v5607_v23 = vld [vmem:[%s7146_s16 + $0x18] sm:$0xe] }
  0x5d   : > { %v506_v16 = vor.u32 %v505_v3, %v501_v2  ;;  %v511_v18 = vrot.slane %v509_v7, 5  ;;  %v514_v26 = vshrl.u32 %v7420_v5, 16  ;;  %v517_v29 = vshll.u32 %v7420_v5, 16 }
  0x5e   : > { %v2387_v30 = vsel %vm7178_vm2, %v2382_v12, %v2386_v56  ;;  %v497_v34 = vrot.slane %v496_v13, 4  ;;  %v2969_v38 = vsel %vm7424_vm5, %v5622_v10, %v2968_v15  ;;  %v2970_v39 = vrot.slane %v2968_v15, 4  ;;  %v5608_v13 = vld [vmem:[%s7146_s16 + $0x24] sm:$0xe] }
  0x5f   : > { %v5589_v42 = vcombine.low %v2377_v11, %v2387_v30  ;;  %v507_v43 = vrot.slane %v506_v16, 4  ;;  %v516_v31 = vrot.slane %v514_v26, 4  ;;  %v519_v44 = vrot.slane %v517_v29, 5  ;;  %v7476_v16 = vld [vmem:[%s7146_s16 + $0x84] sm:$0xf]  ;;  %v6889_v29 = vld [vmem:[%s8941_s1 + $0x188] sm:$0xff]  }
  0x60   : > { %v502_v49 = vsel %vm7178_vm2, %v497_v34, %v501_v2  ;;  %v2972_v50 = vsel %vm7424_vm5, %v2970_v39, %v2971_v41  ;;  %v523_v52 = vshll.u32 %v7432_v21, 16  ;;  %v527_v53 = vshrl.u32 %v7432_v21, 16 }
  0x61   : > { %6350 = vmatmul.mubr.bf16.gmra.mrb[12].mxu0 %v5589_v42  ;;  %v512_v55 = vsel %vm7178_vm2, %v507_v43, %v511_v18  ;;  %v5654_v48 = vcombine.low %v2969_v38, %v2972_v50  ;;  %v520_v56 = vor.u32 %v519_v44, %v516_v31  ;;  %v533_v57 = vshll.u32 %v287_v40, 16  ;;  %v7484_v40 = vld [vmem:[%s7146_s16 + $0x88] sm:$0xf]  ;;  %v289_v31 = vld [vmem:[%s7146_s16 + $0x8c] sm:$0x1] }
  0x62   : > { %v5350_v59 = vcombine.low %v502_v49, %v512_v55  ;;  %v525_v24 = vrot.slane %v523_v52, 5  ;;  %v529_v61 = vrot.slane %v527_v53, 4  ;;  %v5623_v63 = vrot.slane %v5607_v23, 9 }
  0x63   : > { %6385 = vmatprep.mubr.bf16.mxu0 %v5654_v48  ;;  %v521_v41 = vrot.slane %v520_v56, 4  ;;  %v535_v1 = vrot.slane %v533_v57, 5  ;;  %v2979_v2 = vsel %vm7424_vm5, %v7227_v36, %v2978_v32  ;;  %v538_v3 = vshrl.u32 %v7443_v47, 16 }
  0x64   : > { %6161 = vmatprep.mubr.bf16.mxu1 %v5350_v59  ;;  %v530_v7 = vor.u32 %v529_v61, %v525_v24  ;;  %v2976_v10 = vsel %vm7424_vm5, %v5623_v63, %v2975_v27  ;;  %v541_v11 = vshll.u32 %v7443_v47, 16  ;;  %v547_v12 = vshll.u32 %v7454_v54, 16 }
  0x65   : > { %v526_v8 = vsel %vm7178_vm2, %v521_v41, %v525_v24  ;;  %v5655_v15 = vcombine.low %v2976_v10, %v2979_v2  ;;  %v540_v32 = vrot.slane %v538_v3, 4  ;;  %v551_v36 = vshrl.u32 %v7454_v54, 16  ;;  %v7505_v2 = vld [vmem:[%s7146_s16 + $0x90] sm:$0xf]  ;;  %v7508_v3 = vld [vmem:[%s7146_s16 + $0x94] sm:$0xf] }
  0x66   : > { %v531_v62 = vrot.slane %v530_v7, 4  ;;  %v543_v18 = vrot.slane %v541_v11, 5  ;;  %v549_v26 = vrot.slane %v547_v12, 5  ;;  %v557_v27 = vshll.u32 %v288_v58, 16 }
  0x67   : > { %v553_v30 = vrot.slane %v551_v36, 4  ;;  %v5624_v34 = vrot.slane %v5608_v13, 9  ;;  %v2982_v38 = vrot.slane %v7231_v45, 5  ;;  %v2985_v39 = vrot.slane %v7237_v51, 5  ;;  %v5609_v45 = vld [vmem:[%s7146_s16 + $0x30] sm:$0xe] }
  0x68   : > { %v536_v23 = vsel %vm7178_vm2, %v531_v62, %v535_v1  ;;  %v544_v42 = vor.u32 %v543_v18, %v540_v32  ;;  %v559_v43 = vrot.slane %v557_v27, 5  ;;  %v562_v44 = vshrl.u32 %v7476_v16, 16  ;;  %v290_v62 = vld [vmem:[%s7146_s16 + $0x98] sm:$0x1] }
  0x69   : > { %v5351_v49 = vcombine.low %v526_v8, %v536_v23  ;;  %6386 = vmatmul.mubr.bf16.vlgmr.msra.gmra.mrb[0].mxu0 %v5655_v15  ;;  %v554_v50 = vor.u32 %v553_v30, %v549_v26  ;;  %v2983_v52 = vsel %vm7424_vm5, %v5624_v34, %v2982_v38  ;;  %v2984_v53 = vrot.slane %v2982_v38, 4  ;;  %v6893_v30 = vld [vmem:[%s8941_s1 + $0x198] sm:$0xff]  }
  0x6a   : > { %6418 = vmatpush3.bf16.msra.mxu0 %v7367_v6  ;;  %v545_v51 = vrot.slane %v544_v42, 4  ;;  %v564_v55 = vrot.slane %v562_v44, 4  ;;  %v565_v48 = vshll.u32 %v7476_v16, 16  ;;  %v571_v56 = vshll.u32 %v7484_v40, 16  ;;  %v6891_v6 = vld [vmem:[%s8941_s1 + $0x190] sm:$0xff]  }
  0x6b   : > { %6162 = vmatmul.mubr.bf16.gmra.mrb[16].mxu1 %v5351_v49  ;;  %v555_v57 = vrot.slane %v554_v50, 4  ;;  %v2986_v58 = vsel %vm7424_vm5, %v2984_v53, %v2985_v39  ;;  %v575_v59 = vshrl.u32 %v7484_v40, 16  ;;  %v581_v24 = vshll.u32 %v289_v31, 16  ;;  %6419 = vmatprep.subr.bf16.mxu0 %v6889_v29  ;;  %v5610_v38 = vld [vmem:[%s7146_s16 + $0x3c] sm:$0xe] }
  0x6c   : > { %v550_v61 = vsel %vm7178_vm2, %v545_v51, %v549_v26  ;;  %v5656_v63 = vcombine.low %v2983_v52, %v2986_v58  ;;  %v567_v41 = vrot.slane %v565_v48, 5  ;;  %v573_v1 = vrot.slane %v571_v56, 5  ;;  %v7526_v31 = vld [vmem:[%s7146_s16 + $0x9c] sm:$0xf]  ;;  %v7535_v48 = vld [vmem:[%s7146_s16 + $0xa0] sm:$0xf] }
  0x6d   : > { %v560_v7 = vsel %vm7178_vm2, %v555_v57, %v559_v43  ;;  %v577_v10 = vrot.slane %v575_v59, 4  ;;  %v583_v11 = vrot.slane %v581_v24, 5  ;;  %v5625_v12 = vrot.slane %v5609_v45, 9  ;;  %v6897_v56 = vld [vmem:[%s8941_s1 + $0x1a0] sm:$0xff]  }
  0x6e   : > { %v5352_v13 = vcombine.low %v550_v61, %v560_v7  ;;  %6389 = vmatprep.mubr.bf16.mxu0 %v5656_v63  ;;  %v568_v8 = vor.u32 %v567_v41, %v564_v55  ;;  %v2989_v15 = vrot.slane %v7262_v33, 5  ;;  %v2992_v32 = vrot.slane %v7273_v46, 5  ;;  %6420 = vmatpush3.bf16.msra.mxu0 %v6889_v29  ;;  %v291_v61 = vld [vmem:[%s7146_s16 + $0xa4] sm:$0x1] }
  0x6f   : > { %v578_v36 = vor.u32 %v577_v10, %v573_v1  ;;  %v586_v18 = vshrl.u32 %v7505_v2, 16  ;;  %v589_v26 = vshll.u32 %v7505_v2, 16  ;;  %v595_v27 = vshll.u32 %v7508_v3, 16  ;;  %6421 = vmatprep.subr.bf16.mxu0 %v6891_v6 }
  0x70   : > { %6165 = vmatprep.mubr.bf16.mxu1 %v5352_v13  ;;  %v569_v34 = vrot.slane %v568_v8, 4  ;;  %v2990_v33 = vsel %vm7424_vm5, %v5625_v12, %v2989_v15  ;;  %v2991_v46 = vrot.slane %v2989_v15, 4  ;;  %v599_v29 = vshrl.u32 %v7508_v3, 16  ;;  %v5611_v15 = vld [vmem:[%s7146_s16 + $0x48] sm:$0xe] }
  0x71   : > { %v579_v39 = vrot.slane %v578_v36, 4  ;;  %v588_v23 = vrot.slane %v586_v18, 4  ;;  %v591_v42 = vrot.slane %v589_v26, 5  ;;  %v597_v43 = vrot.slane %v595_v27, 5  ;;  %v7560_v27 = vld [vmem:[%s7146_s16 + $0xa8] sm:$0xf] }
  0x72   : > { %v574_v44 = vsel %vm7178_vm2, %v569_v34, %v573_v1  ;;  %v2993_v49 = vsel %vm7424_vm5, %v2991_v46, %v2992_v32  ;;  %v601_v50 = vrot.slane %v599_v29, 4  ;;  %v605_v52 = vshll.u32 %v290_v62, 16  ;;  %6422 = vmatpush3.bf16.msra.mxu0 %v6891_v6  ;;  %v6901_v32 = vld [vmem:[%s8941_s1 + $0x1a8] sm:$0xff]  }
  0x73   : > { %v584_v53 = vsel %vm7178_vm2, %v579_v39, %v583_v11  ;;  %v5657_v45 = vcombine.low %v2990_v33, %v2993_v49  ;;  %v592_v51 = vor.u32 %v591_v42, %v588_v23  ;;  %v5626_v55 = vrot.slane %v5610_v38, 9  ;;  %6423 = vmatprep.subr.bf16.mxu0 %v6893_v30  ;;  %v7563_v29 = vld [vmem:[%s7146_s16 + $0xac] sm:$0xf] }
  0x74   : > { %v5353_v57 = vcombine.low %v574_v44, %v584_v53  ;;  %v602_v58 = vor.u32 %v601_v50, %v597_v43  ;;  %v607_v59 = vrot.slane %v605_v52, 5  ;;  %v2996_v24 = vrot.slane %v7296_v19, 5  ;;  %v5612_v53 = vld [vmem:[%s7146_s16 + $0x54] sm:$0xe] }
  0x75   : > { %6390 = vmatmul.mubr.bf16.gmra.mrb[4].mxu0 %v5657_v45  ;;  %v593_v6 = vrot.slane %v592_v51, 4  ;;  %v2999_v63 = vrot.slane %v7304_v28, 5  ;;  %v610_v41 = vshrl.u32 %v7526_v31, 16  ;;  %v613_v1 = vshll.u32 %v7526_v31, 16  ;;  %v6905_v45 = vld [vmem:[%s8941_s1 + $0x1b0] sm:$0xff]  }
  0x76   : > { %6166 = vmatmul.mubr.bf16.gmra.mrb[20].mxu1 %v5353_v57  ;;  %v603_v7 = vrot.slane %v602_v58, 4  ;;  %v2997_v10 = vsel %vm7424_vm5, %v5626_v55, %v2996_v24  ;;  %v2998_v11 = vrot.slane %v2996_v24, 4  ;;  %v619_v12 = vshll.u32 %v7535_v48, 16  ;;  %6424 = vmatpush3.bf16.msra.mxu0 %v6893_v30 }
  0x77   : > { %v598_v19 = vsel %vm7178_vm2, %v593_v6, %v597_v43  ;;  %v612_v13 = vrot.slane %v610_v41, 4  ;;  %v615_v28 = vrot.slane %v613_v1, 5  ;;  %v623_v8 = vshrl.u32 %v7535_v48, 16  ;;  %6425 = vmatprep.subr.bf16.mxu0 %v6897_v56  ;;  %v292_v43 = vld [vmem:[%s7146_s16 + $0xb0] sm:$0x1] }
  0x78   : > { %v608_v36 = vsel %vm7178_vm2, %v603_v7, %v607_v59  ;;  %v3000_v62 = vsel %vm7424_vm5, %v2998_v11, %v2999_v63  ;;  %v621_v18 = vrot.slane %v619_v12, 5  ;;  %v629_v26 = vshll.u32 %v291_v61, 16  ;;  %v7583_v41 = vld [vmem:[%s7146_s16 + $0xb4] sm:$0xf]  ;;  %v7588_v12 = vld [vmem:[%s7146_s16 + $0xb8] sm:$0xf] }
  0x79   : > { %v5354_v30 = vcombine.low %v598_v19, %v608_v36  ;;  %v5658_v34 = vcombine.low %v2997_v10, %v3000_v62  ;;  %v616_v33 = vor.u32 %v615_v28, %v612_v13  ;;  %v625_v46 = vrot.slane %v623_v8, 4  ;;  %v293_v19 = vld [vmem:[%s7146_s16 + $0xbc] sm:$0x1] }
  0x7a   : > { %v631_v38 = vrot.slane %v629_v26, 5  ;;  %v5627_v39 = vrot.slane %v5611_v15, 9  ;;  %v3003_v23 = vrot.slane %v7331_v14, 5  ;;  %v3006_v42 = vrot.slane %v7337_v22, 5  ;;  %6426 = vmatpush3.bf16.msra.mxu0 %v6897_v56  ;;  %v6909_v13 = vld [vmem:[%s8941_s1 + $0x1b8] sm:$0xff]  }
  0x7b   : > { %6169 = vmatprep.mubr.bf16.mxu1 %v5354_v30  ;;  %6393 = vmatprep.mubr.bf16.mxu0 %v5658_v34  ;;  %v617_v44 = vrot.slane %v616_v33, 4  ;;  %v626_v49 = vor.u32 %v625_v46, %v621_v18  ;;  %v634_v50 = vshrl.u32 %v7560_v27, 16  ;;  %v637_v52 = vshll.u32 %v7560_v27, 16  ;;  %v5613_v30 = vld [vmem:[%s7146_s16 + $0x60] sm:$0xe] }
  0x7c   : > { %v3004_v14 = vsel %vm7424_vm5, %v5627_v39, %v3003_v23  ;;  %v3005_v22 = vrot.slane %v3003_v23, 4  ;;  %v643_v51 = vshll.u32 %v7563_v29, 16  ;;  %v647_v55 = vshrl.u32 %v7563_v29, 16  ;;  %6427 = vmatprep.subr.bf16.mxu0 %v6901_v32  ;;  %v5543_v39 = vld [vmem:[%s7146_s16 + $0x70] sm:$0xf] }
  0x7d   : > { %v622_v56 = vsel %vm7178_vm2, %v617_v44, %v621_v18  ;;  %v627_v57 = vrot.slane %v626_v49, 4  ;;  %v636_v58 = vrot.slane %v634_v50, 4  ;;  %v639_v59 = vrot.slane %v637_v52, 5  ;;  %v7610_v44 = vld [vmem:[%s8941_s1 + $0x1c0] sm:$0xff]  }
  0x7e   : > { %v3007_v24 = vsel %vm7424_vm5, %v3005_v22, %v3006_v42  ;;  %v645_v61 = vrot.slane %v643_v51, 5  ;;  %v649_v6 = vrot.slane %v647_v55, 4  ;;  %v653_v63 = vshll.u32 %v292_v43, 16  ;;  %6428 = vmatpush3.bf16.msra.mxu0 %v6901_v32  ;;  %v5614_v43 = vld [vmem:[%s7146_s16 + $0x6c] sm:$0xe] }
  0x7f   : > { %v632_v1 = vsel %vm7178_vm2, %v627_v57, %v631_v38  ;;  %v5659_v7 = vcombine.low %v3004_v14, %v3007_v24  ;;  %v640_v10 = vor.u32 %v639_v59, %v636_v58  ;;  %v5628_v11 = vrot.slane %v5612_v53, 9  ;;  %6429 = vmatprep.subr.bf16.mxu0 %v6905_v45  ;;  %v5544_v55 = vld [vmem:[%s7146_s16 + $0x74] sm:$0x1]  ;;  %v5615_v24 = vld [vmem:[%s7146_s16 + $0x78] sm:$0xe] }
  0x80   : > { %v5355_v28 = vcombine.low %v622_v56, %v632_v1  ;;  %v650_v8 = vor.u32 %v649_v6, %v645_v61  ;;  %v655_v15 = vrot.slane %v653_v63, 5  ;;  %v3010_v32 = vrot.slane %v7362_v0, 5 }
  0x81   : > { %6394 = vmatmul.mubr.bf16.gmra.mrb[8].mxu0 %v5659_v7  ;;  %v641_v36 = vrot.slane %v640_v10, 4  ;;  %v3013_v62 = vrot.slane %v7374_v20, 5  ;;  %v658_v18 = vshrl.u32 %v7583_v41, 16  ;;  %v661_v26 = vshll.u32 %v7583_v41, 16 }
  0x82   : > { %6170 = vmatmul.mubr.bf16.gmra.mrb[24].mxu1 %v5355_v28  ;;  %v651_v34 = vrot.slane %v650_v8, 4  ;;  %v3011_v33 = vsel %vm7424_vm5, %v5628_v11, %v3010_v32  ;;  %v3012_v46 = vrot.slane %v3010_v32, 4  ;;  %v667_v38 = vshll.u32 %v7588_v12, 16  ;;  %6430 = vmatpush3.bf16.msra.mxu0 %v6905_v45  ;;  %v7623_v11 = vld [vmem:[%s7146_s16 + $0x7c] sm:$0xf] }
  0x83   : > { %v646_v0 = vsel %vm7178_vm2, %v641_v36, %v645_v61  ;;  %v660_v20 = vrot.slane %v658_v18, 4  ;;  %v663_v23 = vrot.slane %v661_v26, 5  ;;  %v671_v42 = vshrl.u32 %v7588_v12, 16  ;;  %6431 = vmatprep.subr.bf16.mxu0 %v6909_v13  ;;  %v6978_v36 = vld [vmem:[%s7146_s16] sm:$0xf] }
  0x84   : > { %v656_v49 = vsel %vm7178_vm2, %v651_v34, %v655_v15  ;;  %v3014_v50 = vsel %vm7424_vm5, %v3012_v46, %v3013_v62  ;;  %v669_v52 = vrot.slane %v667_v38, 5  ;;  %v677_v53 = vshll.u32 %v293_v19, 16  ;;  %v5549_v15 = vld [vmem:[%s7146_s16 + $0x88] sm:$0xf]  ;;  %v7638_v62 = vld [vmem:[%s7146_s16 + $0x4] sm:$0xf] }
  0x85   : > { %v5356_v45 = vcombine.low %v646_v0, %v656_v49  ;;  %v5660_v14 = vcombine.low %v3011_v33, %v3014_v50  ;;  %v664_v22 = vor.u32 %v663_v23, %v660_v20  ;;  %v673_v51 = vrot.slane %v671_v42, 4  ;;  %v5550_v26 = vld [vmem:[%s7146_s16 + $0x8c] sm:$0x1]  ;;  %v5553_v23 = vld [vmem:[%s7146_s16 + $0x98] sm:$0x1] }
  0x86   : > { %v679_v56 = vrot.slane %v677_v53, 5  ;;  %v5629_v57 = vrot.slane %v5613_v30, 9  ;;  %v3017_v58 = vrot.slane %v7389_v60, 5  ;;  %v3020_v59 = vrot.slane %v7398_v17, 5  ;;  %6432 = vmatpush3.bf16.msra.mxu0 %v6909_v13  ;;  %v7626_v17 = vld [vmem:[%s7146_s16 + $0x80] sm:$0x1] }
  0x87   : > { %6173 = vmatprep.mubr.bf16.mxu1 %v5356_v45  ;;  %6397 = vmatprep.mubr.bf16.mxu0 %v5660_v14  ;;  %v665_v61 = vrot.slane %v664_v22, 4  ;;  %v674_v6 = vor.u32 %v673_v51, %v669_v52  ;;  %v5630_v63 = vrot.slane %v5614_v43, 9  ;;  %v3024_v1 = vrot.slane %v5543_v39, 5  ;;  %v5616_v30 = vld [vmem:[%s7146_s16 + $0x84] sm:$0xe] }
  0x88   : > { %v3018_v7 = vsel %vm7424_vm5, %v5629_v57, %v3017_v58  ;;  %v3019_v10 = vrot.slane %v3017_v58, 4  ;;  %v3027_v60 = vrot.slane %v5544_v55, 5  ;;  %6465 = vmatprep.subr.bf16.mxu0 %v7610_v44  ;;  %v5366_v18 = vcombine.low %v6978_v36, %v7638_v62  ;;  %v5552_v39 = vld [vmem:[%s7146_s16 + $0x94] sm:$0xf]  ;;  %v5617_v42 = vld [vmem:[%s7146_s16 + $0x90] sm:$0xe] }
  0x89   : > { %v670_v19 = vsel %vm7178_vm2, %v665_v61, %v669_v52  ;;  %v675_v13 = vrot.slane %v674_v6, 4  ;;  %v3025_v28 = vsel %vm7424_vm5, %v5630_v63, %v3024_v1  ;;  %v3026_v8 = vrot.slane %v3024_v1, 4  ;;  %v5618_v50 = vld [vmem:[%s7146_s16 + $0x9c] sm:$0xe]  ;;  %v5555_v14 = vld [vmem:[%s7146_s16 + $0xa0] sm:$0xf] }
  0x8a   : > { %v3021_v32 = vsel %vm7424_vm5, %v3019_v10, %v3020_v59  ;;  %v5631_v38 = vrot.slane %v5615_v24, 9  ;;  %v3031_v43 = vrot.slane %v7623_v11, 5  ;;  %v3034_v49 = vrot.slane %v7626_v17, 5  ;;  %v5556_v22 = vld [vmem:[%s7146_s16 + $0xa4] sm:$0x1] }
  0x8b   : > { %v680_v34 = vsel %vm7178_vm2, %v675_v13, %v679_v56  ;;  %v5661_v33 = vcombine.low %v3018_v7, %v3021_v32  ;;  %v3028_v46 = vsel %vm7424_vm5, %v3026_v8, %v3027_v60  ;;  %v5632_v52 = vrot.slane %v5616_v30, 9  ;;  %v5558_v59 = vld [vmem:[%s7146_s16 + $0xac] sm:$0xf]  ;;  %v7662_v61 = vld [vmem:[%s7146_s16 + $0x10] sm:$0xf] }
  0x8c   : > { %v5357_v0 = vcombine.low %v670_v19, %v680_v34  ;;  %v5662_v20 = vcombine.low %v3025_v28, %v3028_v46  ;;  %v3038_v53 = vrot.slane %v5549_v15, 5  ;;  %v3041_v45 = vrot.slane %v5550_v26, 5  ;;  %v6980_v24 = vld [vmem:[%s7146_s16 + $0xc] sm:$0xf]  ;;  %v6982_v8 = vld [vmem:[%s7146_s16 + $0x18] sm:$0xf] }
  0x8d   : > { %6398 = vmatmul.mubr.bf16.gmra.mrb[12].mxu0 %v5661_v33  ;;  %v3032_v51 = vsel %vm7424_vm5, %v5631_v38, %v3031_v43  ;;  %v3033_v55 = vrot.slane %v3031_v43, 4  ;;  %v3045_v58 = vrot.slane %v5552_v39, 5  ;;  %v5367_v6 = vcombine.low %v6980_v24, %v7662_v61  ;;  %v6900_v19 = vld [vmem:[%s8941_s1 + $0x88] sm:$0xff]   ;;  %v7674_v15 = vld [vmem:[%s7146_s16 + $0x1c] sm:$0xf] }
  0x8e   : > { %6174 = vmatmul.mubr.bf16.gmra.mrb[28].mxu1 %v5357_v0  ;;  %6401 = vmatprep.mubr.bf16.mxu0 %v5662_v20  ;;  %v3039_v56 = vsel %vm7424_vm5, %v5632_v52, %v3038_v53  ;;  %v3040_v57 = vrot.slane %v3038_v53, 4  ;;  %v5633_v1 = vrot.slane %v5617_v42, 9  ;;  %v3048_v7 = vrot.slane %v5553_v23, 5  ;;  %v5559_v30 = vld [vmem:[%s7146_s16 + $0xb0] sm:$0x1] }
  0x8f   : > { %6193 = vmatprep.mubr.bf16.mxu1 %v5366_v18  ;;  %v3035_v63 = vsel %vm7424_vm5, %v3033_v55, %v3034_v49  ;;  %v3047_v13 = vrot.slane %v3045_v58, 4  ;;  %v5634_v28 = vrot.slane %v5618_v50, 9  ;;  %v5368_v32 = vcombine.low %v6982_v8, %v7674_v15  ;;  %v5619_v34 = vld [vmem:[%s7146_s16 + $0xa8] sm:$0xe]  ;;  %v5561_v33 = vld [vmem:[%s7146_s16 + $0xb8] sm:$0xf] }
  0x90   : > { %v5663_v10 = vcombine.low %v3032_v51, %v3035_v63  ;;  %v3042_v60 = vsel %vm7424_vm5, %v3040_v57, %v3041_v45  ;;  %v3052_v18 = vrot.slane %v5555_v14, 5  ;;  %v3055_v26 = vrot.slane %v5556_v22, 5  ;;  %v5562_v20 = vld [vmem:[%s7146_s16 + $0xbc] sm:$0x1]  ;;  %v5620_v23 = vld [vmem:[%s7146_s16 + $0xb4] sm:$0xe] }
  0x91   : > { %v5664_v36 = vcombine.low %v3039_v56, %v3042_v60  ;;  %v3059_v38 = vrot.slane %v5558_v59, 5  ;;  %v3046_v39 = vsel %vm7424_vm5, %v5633_v1, %v3045_v58  ;;  %v3049_v0 = vsel %vm7424_vm5, %v3047_v13, %v3048_v7  ;;  %v6904_v50 = vld [vmem:[%s8941_s1 + $0x90] sm:$0xff]   ;;  %v5564_v53 = vld [vmem:[%s7146_s16 + $0xc4] sm:$0xf]  ;;  %v7697_v51 = vld [vmem:[%s7146_s16 + $0x28] sm:$0xf] }
  0x92   : > { %v3054_v46 = vrot.slane %v3052_v18, 4  ;;  %v3053_v42 = vsel %vm7424_vm5, %v5634_v28, %v3052_v18  ;;  %v3066_v49 = vrot.slane %v5561_v33, 5  ;;  %v5635_v52 = vrot.slane %v5619_v34, 9  ;;  %v6984_v22 = vld [vmem:[%s7146_s16 + $0x24] sm:$0xf]  ;;  %v6908_v1 = vld [vmem:[%s8941_s1 + $0x98] sm:$0xff]  }
  0x93   : > { %v5665_v45 = vcombine.low %v3046_v39, %v3049_v0  ;;  %v3061_v14 = vrot.slane %v3059_v38, 4  ;;  %v5369_v55 = vcombine.low %v6984_v22, %v7697_v51  ;;  %v6986_v57 = vld [vmem:[%s7146_s16 + $0x30] sm:$0xf]  ;;  %v7702_v58 = vld [vmem:[%s7146_s16 + $0x34] sm:$0xf]  ;;  %v5636_v24 = vrot.slane %v5620_v23, 9 }
  0x94   : > { %v3056_v43 = vsel %vm7424_vm5, %v3054_v46, %v3055_v26  ;;  %v5370_v59 = vcombine.low %v6986_v57, %v7702_v58  ;;  %v3069_v63 = vrot.slane %v5562_v20, 5  ;;  %v5621_v7 = vld [vmem:[%s7146_s16 + $0xc0] sm:$0xe]  ;;  %v3060_v60 = vsel %vm7424_vm5, %v5635_v52, %v3059_v38  ;;  %v5565_v8 = vld [vmem:[%s7146_s16 + $0xc8] sm:$0x1]  ;;  %v6911_v22 = vld [vmem:[%s7146_s16 + $0x18] sm:$0xff]  }
  0x95   : > { %6402 = vmatmul.mubr.bf16.gmra.mrb[16].mxu0 %v5663_v10  ;;  %v5666_v56 = vcombine.low %v3053_v42, %v3056_v43  ;;  %v3073_v10 = vrot.slane %v5564_v53, 5  ;;  %v3067_v13 = vsel %vm7424_vm5, %v5636_v24, %v3066_v49  ;;  %v5637_v18 = vrot.slane %v5621_v7, 9  ;;  %v6988_v26 = vld [vmem:[%s7146_s16 + $0x3c] sm:$0xf]  ;;  %v6990_v39 = vld [vmem:[%s7146_s16 + $0x48] sm:$0xf] }
  0x96   : > { %6194 = vmatmul.mubr.bf16.vlgmr.msra.gmra.mrb[0].mxu1 %v5367_v6  ;;  %6405 = vmatprep.mubr.bf16.mxu0 %v5664_v36  ;;  %v3068_v6 = vrot.slane %v3066_v49, 4  ;;  %v3076_v38 = vrot.slane %v5565_v8, 5  ;;  %v7728_v0 = vld [vmem:[%s7146_s16 + $0x4c] sm:$0xf]  ;;  %v6925_v49 = vld [vmem:[%s8941_s1 + $0xb0] sm:$0xff]   ;;  %v2426_v52 = vshrl.u32 %v7623_v11, 16 }
  0x97   : > { %6226 = vmatpush3.bf16.msra.mxu1 %v7348_v4  ;;  %6197 = vmatprep.mubr.bf16.mxu1 %v5368_v32  ;;  %v3062_v4 = vrot.slane %v5559_v30, 5  ;;  %v6913_v32 = vld [vmem:[%s8941_s1 + $0xa0] sm:$0xff]   ;;  %v3075_v46 = vrot.slane %v3073_v10, 4  ;;  %v5372_v20 = vcombine.low %v6990_v39, %v7728_v0  ;;  %v6919_v23 = vld [vmem:[%s8941_s1 + $0xa8] sm:$0xff]   ;;  %v3074_v42 = vsel %vm7424_vm5, %v5637_v18, %v3073_v10  ;;  %v6917_v18 = vld [vmem:[%s7146_s16 + $0x30] sm:$0xff]  }
  0x98   : > { %6227 = vmatprep.subr.bf16.mxu1 %v6900_v19  ;;  %v3070_v28 = vsel %vm7424_vm5, %v3068_v6, %v3069_v63  ;;  %v7723_v30 = vld [vmem:[%s7146_s16 + $0x40] sm:$0xf]  ;;  %v7756_v57 = vrot.slane %v2426_v52, 4  ;;  %v6914_v6 = vld [vmem:[%s7146_s16 + $0x24] sm:$0xff]   ;;  %v1336_v7 = vrot.slane %v7662_v61, 5  ;;  %v2432_v8 = vshll.u32 %v7626_v17, 16 }
  0x99   : > { %v5371_v34 = vcombine.low %v6988_v26, %v7723_v30  ;;  %v5668_v33 = vcombine.low %v3067_v13, %v3070_v28  ;;  %v3077_v43 = vsel %vm7424_vm5, %v3075_v46, %v3076_v38  ;;  %v1276_v63 = vld [vmem:[%s7146_s16] sm:$0xe]  ;;  %v1277_v10 = vld [vmem:[%s7146_s16 + $0xc] sm:$0xe]  ;;  %v1343_v13 = vrot.slane %v7674_v15, 5 }
  0x9a   : > { %v5669_v53 = vcombine.low %v3074_v42, %v3077_v43  ;;  %v1279_v61 = vld [vmem:[%s7146_s16 + $0x24] sm:$0xe]  ;;  %v5377_v15 = vcombine.low %v7476_v16, %v7484_v40  ;;  %v5378_v26 = vcombine.low %v7505_v2, %v7508_v3  ;;  %v5390_v17 = vrot.slane %v1276_v63, 9  ;;  %v6996_v38 = vld [vmem:[%s7146_s16 + $0x20] sm:$0x1]  ;;  %v6926_v2 = vld [vmem:[%s7146_s16 + $0x54] sm:$0xff]  }
  0x9b   : > { %6228 = vmatpush3.bf16.msra.mxu1 %v6900_v19  ;;  %v3063_v19 = vsel %vm7424_vm5, %v3061_v14, %v3062_v4  ;;  %v7745_v14 = vld [vmem:[%s7146_s16 + $0x58] sm:$0xf]  ;;  %v1345_v46 = vrot.slane %v1343_v13, 4  ;;  %v1346_v39 = vrot.slane %v6996_v38, 5  ;;  %v6997_v43 = vld [vmem:[%s7146_s16 + $0x2c] sm:$0x1] }
  0x9c   : > { %6229 = vmatprep.subr.bf16.mxu1 %v6904_v50  ;;  %v5667_v36 = vcombine.low %v3060_v60, %v3063_v19  ;;  %v7771_v60 = vld [vmem:[%s8941_s1 + $0xc0] sm:$0xff]   ;;  %v1278_v19 = vld [vmem:[%s7146_s16 + $0x18] sm:$0xe]  ;;  %v7000_v38 = vld [vmem:[%s7146_s16 + $0x50] sm:$0x1]  ;;  %v1378_v16 = vrot.slane %v7745_v14, 5 }
  0x9d   : > { %6406 = vmatmul.mubr.bf16.gmra.mrb[20].mxu0 %v5665_v45  ;;  %v6992_v45 = vld [vmem:[%s7146_s16 + $0x54] sm:$0xf]  ;;  %v7894_v40 = vld [vmem:[%s7146_s16 + $0x64] sm:$0xf] }
  0x9e   : > { %6198 = vmatmul.mubr.bf16.gmra.mrb[4].mxu1 %v5369_v55  ;;  %6409 = vmatprep.mubr.bf16.mxu0 %v5666_v56  ;;  %v5373_v4 = vcombine.low %v6992_v45, %v7745_v14  ;;  %v5374_v55 = vcombine.low %v7402_v25, %v7405_v35  ;;  %v6931_v56 = vld [vmem:[%s8941_s1 + $0xb8] sm:$0xff]   ;;  %v6995_v25 = vld [vmem:[%s7146_s16 + $0x14] sm:$0x1]  ;;  %v6929_v3 = vld [vmem:[%s7146_s16 + $0x60] sm:$0xff]  }
  0x9f   : > { %6201 = vmatprep.mubr.bf16.mxu1 %v5370_v59  ;;  %6230 = vmatpush3.bf16.msra.mxu1 %v6904_v50  ;;  %v2422_v50 = vshll.u32 %v7623_v11, 16  ;;  %v7759_v59 = vld [vmem:[%s7146_s16 + $0x8] sm:$0x1]  ;;  %v1339_v35 = vrot.slane %v6995_v25, 5 }
  0xa0   : > { %6231 = vmatprep.subr.bf16.mxu1 %v6908_v1  ;;  %v1332_v24 = vrot.slane %v7759_v59, 5 }
  0xa1   : > { %v7754_v11 = vrot.slane %v2422_v50, 5 }
  0xa3   : > { %6232 = vmatpush3.bf16.msra.mxu1 %v6908_v1  ;;  %v1329_v1 = vrot.slane %v7638_v62, 5  ;;  %v5375_v62 = vcombine.low %v7420_v5, %v7432_v21  ;;  %v5391_v21 = vrot.slane %v1277_v10, 9  ;;  %v5750_v10 = vld [vmem:[%s7146_s16 + $0x18] sm:$0xf] }
  0xa4   : > { %6233 = vmatprep.subr.bf16.mxu1 %v6913_v32 }
  0xa5   : > { %6410 = vmatmul.mubr.bf16.gmra.mrb[24].mxu0 %v5667_v36  ;;  %v5376_v36 = vcombine.low %v7443_v47, %v7454_v54  ;;  %v1331_v5 = vrot.slane %v1329_v1, 4  ;;  %v6921_v47 = vld [vmem:[%s8941_s1 + $0x1c8] sm:$0xff]   ;;  %v5392_v54 = vrot.slane %v1278_v19, 9  ;;  %v7814_v59 = vsel %vm7424_vm5, %v5390_v17, %v1329_v1  ;;  %v5751_v19 = vld [vmem:[%s7146_s16 + $0x1c] sm:$0xf] }
  0xa6   : > { %6202 = vmatmul.mubr.bf16.gmra.mrb[8].mxu1 %v5371_v34  ;;  %6413 = vmatprep.mubr.bf16.mxu0 %v5668_v33  ;;  %v1357_v34 = vrot.slane %v7702_v58, 5  ;;  %v1338_v33 = vrot.slane %v1336_v7, 4  ;;  %v5393_v58 = vrot.slane %v1279_v61, 9  ;;  %v1371_v1 = vrot.slane %v7728_v0, 5  ;;  %v6923_v0 = vld [vmem:[%s7146_s16 + $0x48] sm:$0xff]  }
  0xa7   : > { %6205 = vmatprep.mubr.bf16.mxu1 %v5372_v20  ;;  %6234 = vmatpush3.bf16.msra.mxu1 %v6913_v32  ;;  %v1350_v32 = vrot.slane %v7697_v51, 5  ;;  %v1280_v51 = vld [vmem:[%s7146_s16 + $0x30] sm:$0xe]  ;;  %v5379_v20 = vcombine.low %v7526_v31, %v7535_v48  ;;  %v7822_v25 = vsel %vm7424_vm5, %v1331_v5, %v1332_v24  ;;  %v7830_v63 = vsel %vm7424_vm5, %v5392_v54, %v1343_v13  ;;  %v1282_v13 = vld [vmem:[%s7146_s16 + $0x48] sm:$0xe] }
  0xa8   : > { %6235 = vmatprep.subr.bf16.mxu1 %v6919_v23  ;;  %v5394_v50 = vrot.slane %v1280_v51, 9  ;;  %v1359_v52 = vrot.slane %v1357_v34, 4  ;;  %v3836_v5 = vshrl.u32 %v5750_v10, 16  ;;  %v3849_v51 = vshrl.u32 %v5751_v19, 16  ;;  %v6932_v48 = vld [vmem:[%s7146_s16 + $0x6c] sm:$0xff]  }
  0xa9   : > { %v1352_v42 = vrot.slane %v1350_v32, 4  ;;  %v7842_v24 = vsel %vm7424_vm5, %v5393_v58, %v1350_v32  ;;  %v6999_v32 = vld [vmem:[%s7146_s16 + $0x44] sm:$0x1]  ;;  %v5396_v54 = vrot.slane %v1282_v13, 9  ;;  %v5754_v13 = vld [vmem:[%s7146_s16 + $0x28] sm:$0xf] }
  0xaa   : > { %v7852_v61 = vsel %vm7424_vm5, %v5394_v50, %v1357_v34  ;;  %v1367_v17 = vrot.slane %v6999_v32, 5  ;;  %v5752_v50 = vld [vmem:[%s7146_s16 + $0x20] sm:$0x1]  ;;  %v1284_v32 = vld [vmem:[%s7146_s16 + $0x60] sm:$0xe] }
  0xab   : > { %6236 = vmatpush3.bf16.msra.mxu1 %v6919_v23  ;;  %v5380_v23 = vcombine.low %v7560_v27, %v7563_v29 }
  0xac   : > { %6237 = vmatprep.subr.bf16.mxu1 %v6925_v49 }
  0xad   : > { %6414 = vmatmul.mubr.bf16.gmra.mrb[28].mxu0 %v5669_v53  ;;  %v6998_v53 = vld [vmem:[%s7146_s16 + $0x38] sm:$0x1] }
  0xae   : > { %6206 = vmatmul.mubr.bf16.gmra.mrb[12].mxu1 %v5373_v4  ;;  %6433 = vmatprep.mubr.bf16.mxu0 %v6911_v22  ;;  %v1360_v45 = vrot.slane %v6998_v53, 5  ;;  %v1281_v4 = vld [vmem:[%s7146_s16 + $0x3c] sm:$0xe]  ;;  %v1364_v22 = vrot.slane %v7723_v30, 5  ;;  %v7818_v30 = vsel %vm7424_vm5, %v5391_v21, %v1336_v7  ;;  %v3839_v21 = vshll.u32 %v5750_v10, 16  ;;  %v6937_v53 = vld [vmem:[%s8941_s1 + $0x1e0] sm:$0xff]  }
  0xaf   : > { %6209 = vmatprep.mubr.bf16.mxu1 %v5374_v55  ;;  %6238 = vmatpush3.bf16.msra.mxu1 %v6925_v49  ;;  %v1353_v49 = vrot.slane %v6997_v43, 5  ;;  %v7805_v55 = vrot.slane %v2432_v8, 5  ;;  %v6920_v7 = vld [vmem:[%s7146_s16 + $0x3c] sm:$0xff]   ;;  %v7838_v8 = vsel %vm7424_vm5, %v1345_v46, %v1346_v39  ;;  %v1373_v46 = vrot.slane %v1371_v1, 4  ;;  %v5756_v43 = vld [vmem:[%s7146_s16 + $0x30] sm:$0xf] }
  0xb0   : > { %6239 = vmatprep.subr.bf16.mxu1 %v6931_v56  ;;  %v1374_v39 = vrot.slane %v7000_v38, 5  ;;  %v3838_v10 = vrot.slane %v3836_v5, 4 }
  0xb1   : > { %8962 = vst [vmem:[#allocation2_spill] sm:$0xff] %v7805_v55 }
  0xb3   : > { %6240 = vmatpush3.bf16.msra.mxu1 %v6931_v56  ;;  %v6927_v56 = vld [vmem:[%s8941_s1 + $0x1d0] sm:$0xff]  }
  0xb4   : > { %6273 = vmatprep.subr.bf16.mxu1 %v7771_v60 }
  0xb5   : > { %6434 = vmatmul.mubr.bf16.vlgmr.msra.gmra.mrb[0].mxu0 %v6914_v6  ;;  %v7826_v6 = vsel %vm7424_vm5, %v1338_v33, %v1339_v35  ;;  %v7846_v35 = vsel %vm7424_vm5, %v1352_v42, %v1353_v49  ;;  %v3845_v33 = vshll.u32 %v5751_v19, 16  ;;  %v3841_v19 = vrot.slane %v3839_v21, 5  ;;  %v1285_v21 = vld [vmem:[%s7146_s16 + $0x6c] sm:$0xe] }
  0xb6   : > { %6210 = vmatmul.mubr.bf16.gmra.mrb[16].mxu1 %v5375_v62  ;;  %6466 = vmatpush3.bf16.msra.mxu0 %v7610_v44  ;;  %v5395_v62 = vrot.slane %v1281_v4, 9  ;;  %v5399_v58 = vrot.slane %v1285_v21, 9 }
  0xb7   : > { %6213 = vmatprep.mubr.bf16.mxu1 %v5376_v36  ;;  %6437 = vmatprep.mubr.bf16.mxu0 %v6917_v18  ;;  %v7856_v36 = vsel %vm7424_vm5, %v1359_v52, %v1360_v45  ;;  %v1366_v18 = vrot.slane %v1364_v22, 4  ;;  %v5753_v52 = vld [vmem:[%s7146_s16 + $0x24] sm:$0xf]  ;;  %v3873_v45 = vshrl.u32 %v5754_v13, 16 }
  0xb8   : > { %6467 = vmatprep.subr.bf16.mxu0 %v6921_v47  ;;  %v7873_v49 = vsel %vm7424_vm5, %v5395_v62, %v1364_v22  ;;  %v7890_v22 = vld [vmem:[%s7146_s16 + $0x54] sm:$0xe]  ;;  %v3851_v62 = vrot.slane %v3849_v51, 4  ;;  %v3860_v38 = vshrl.u32 %v5753_v52, 16  ;;  %v3863_v28 = vshll.u32 %v5753_v52, 16 }
  0xb9   : > { %v7887_v4 = vsel %vm7424_vm5, %v1366_v18, %v1367_v17  ;;  %v3855_v17 = vshll.u32 %v5752_v50, 16  ;;  %v5397_v5 = vrot.slane %v7890_v22, 9  ;;  %v6941_v50 = vld [vmem:[%s8941_s1 + $0x1e8] sm:$0xff]   ;;  %v1380_v52 = vrot.slane %v1378_v16, 4 }
  0xba   : > { %6468 = vmatpush3.bf16.msra.mxu0 %v6921_v47  ;;  %v6933_v47 = vld [vmem:[%s8941_s1 + $0x1d8] sm:$0xff]   ;;  %v3842_v22 = vor.u32 %v3841_v19, %v3838_v10  ;;  %v3862_v34 = vrot.slane %v3860_v38, 4  ;;  %v3865_v44 = vrot.slane %v3863_v28, 5  ;;  %v7005_v10 = vld [vmem:[%s7146_s16 + $0x74] sm:$0x1]  ;;  %v3875_v28 = vrot.slane %v3873_v45, 4 }
  0xbb   : > { %6469 = vmatprep.subr.bf16.mxu0 %v6927_v56  ;;  %v7928_v42 = vrot.slane %v3855_v17, 5  ;;  %v1395_v19 = vrot.slane %v7005_v10, 5  ;;  %v3884_v38 = vshrl.u32 %v5756_v43, 16  ;;  %v7953_v27 = vsel %vm7424_vm5, %v5397_v5, %v1378_v16 }
  0xbc   : > { %v3843_v21 = vrot.slane %v3842_v22, 4 }
  0xbd   : > { %6438 = vmatmul.mubr.bf16.gmra.mrb[4].mxu0 %v6920_v7  ;;  %v7900_v7 = vrot.slane %v3845_v33, 5  ;;  %v7003_v33 = vld [vmem:[%s7146_s16 + $0x70] sm:$0xf] }
  0xbe   : > { %6214 = vmatmul.mubr.bf16.gmra.mrb[20].mxu1 %v5377_v15  ;;  %6441 = vmatprep.mubr.bf16.mxu0 %v6923_v0  ;;  %v1385_v15 = vrot.slane %v7894_v40, 5  ;;  %v7002_v0 = vld [vmem:[%s7146_s16 + $0x5c] sm:$0x1]  ;;  %v1392_v51 = vrot.slane %v7003_v33, 5 }
  0xbf   : > { %6217 = vmatprep.mubr.bf16.mxu1 %v5378_v26  ;;  %6470 = vmatpush3.bf16.msra.mxu0 %v6927_v56  ;;  %v1381_v18 = vrot.slane %v7002_v0, 5  ;;  %v7909_v26 = vsel %vm7424_vm5, %v5396_v54, %v1371_v1  ;;  %v7913_v56 = vsel %vm7424_vm5, %v1373_v46, %v1374_v39  ;;  %v7004_v1 = vld [vmem:[%s7146_s16 + $0x68] sm:$0x1]  ;;  %v3869_v0 = vshll.u32 %v5754_v13, 16  ;;  %v6949_v40 = vld [vmem:[%s8941_s1 + $0x1f8] sm:$0xff]  }
  0xc0   : > { %6471 = vmatprep.subr.bf16.mxu0 %v6933_v47  ;;  %v1388_v54 = vrot.slane %v7004_v1, 5  ;;  %v5398_v46 = vrot.slane %v1284_v32, 9  ;;  %v1387_v39 = vrot.slane %v1385_v15, 4  ;;  %v3852_v33 = vor.u32 %v3851_v62, %v7900_v7  ;;  %v5757_v1 = vld [vmem:[%s7146_s16 + $0x34] sm:$0xf] }
  0xc1   : > { %v1394_v32 = vrot.slane %v1392_v51, 4  ;;  %v5755_v62 = vld [vmem:[%s7146_s16 + $0x2c] sm:$0x1]  ;;  %v7940_v17 = vrot.slane %v3869_v0, 5  ;;  %v3893_v13 = vshll.u32 %v5757_v1, 16  ;;  %v3897_v31 = vshrl.u32 %v5757_v1, 16 }
  0xc2   : > { %v3853_v10 = vrot.slane %v3852_v33, 4  ;;  %v7957_v29 = vsel %vm7424_vm5, %v1380_v52, %v1381_v18  ;;  %v7964_v45 = vsel %vm7424_vm5, %v5398_v46, %v1385_v15  ;;  %v7968_v14 = vsel %vm7424_vm5, %v1387_v39, %v1388_v54  ;;  %v1286_v18 = vld [vmem:[%s7146_s16 + $0x78] sm:$0xe] }
  0xc3   : > { %6472 = vmatpush3.bf16.msra.mxu0 %v6933_v47  ;;  %v7972_v16 = vsel %vm7424_vm5, %v5399_v58, %v1392_v51  ;;  %v7982_v15 = vsel %vm7424_vm5, %v1394_v32, %v1395_v19  ;;  %v3876_v5 = vor.u32 %v3875_v28, %v7940_v17  ;;  %v3886_v52 = vrot.slane %v3884_v38, 4  ;;  %v5759_v58 = vld [vmem:[%s7146_s16 + $0x3c] sm:$0xf]  ;;  %v5760_v51 = vld [vmem:[%s7146_s16 + $0x40] sm:$0xf] }
  0xc4   : > { %6473 = vmatprep.subr.bf16.mxu0 %v6937_v53  ;;  %v3848_v0 = vsel %vm7178_vm2, %v3843_v21, %v7900_v7  ;;  %v3858_v46 = vsel %vm7178_vm2, %v3853_v10, %v7928_v42  ;;  %v7993_v39 = vrot.slane %v3893_v13, 5  ;;  %v3899_v22 = vrot.slane %v3897_v31, 4  ;;  %v7007_v19 = vld [vmem:[%s7146_s16 + $0x80] sm:$0x1]  ;;  %v8152_v47 = vld [vmem:[%s7146_s16 + $0x68] sm:$0x1] }
  0xc5   : > { %6442 = vmatmul.mubr.bf16.gmra.mrb[8].mxu0 %v6926_v2  ;;  %v3887_v2 = vshll.u32 %v5756_v43, 16  ;;  %v3879_v43 = vshll.u32 %v5755_v62, 16  ;;  %v5400_v32 = vrot.slane %v1286_v18, 9  ;;  %v1287_v62 = vld [vmem:[%s7146_s16 + $0x84] sm:$0xe]  ;;  %v3908_v28 = vshrl.u32 %v5759_v58, 16 }
  0xc6   : > { %6218 = vmatmul.mubr.bf16.gmra.mrb[24].mxu1 %v5379_v20  ;;  %6445 = vmatprep.mubr.bf16.mxu0 %v6929_v3  ;;  %v6945_v20 = vld [vmem:[%s8941_s1 + $0x1f0] sm:$0xff]   ;;  %v7006_v3 = vld [vmem:[%s7146_s16 + $0x7c] sm:$0xf]  ;;  %v3911_v7 = vshll.u32 %v5759_v58, 16  ;;  %v3917_v38 = vshll.u32 %v5760_v51, 16  ;;  %v8963_v42 = vcombine.low %v7583_v41, %v7588_v12  ;;  %v8004_v13 = vrot.slane %v3876_v5, 4 }
  0xc7   : > { %6221 = vmatprep.mubr.bf16.mxu1 %v5380_v23  ;;  %6474 = vmatpush3.bf16.msra.mxu0 %v6937_v53  ;;  %v3866_v23 = vor.u32 %v3865_v44, %v3862_v34  ;;  %v6934_v53 = vld [vmem:[%s7146_s16 + $0x78] sm:$0xff]   ;;  %v1399_v44 = vrot.slane %v7006_v3, 5  ;;  %v3889_v54 = vrot.slane %v3887_v2, 5  ;;  %v7997_v1 = vrot.slane %v3879_v43, 5  ;;  %v8009_v21 = vld [vmem:[%s8941_s1 + $0x200] sm:$0xff]   ;;  %8971 = vst [vmem:[#allocation5_spill] sm:$0xff] %v8152_v47 }
  0xc8   : > { %6475 = vmatprep.subr.bf16.mxu0 %v6941_v50  ;;  %v5758_v34 = vld [vmem:[%s7146_s16 + $0x38] sm:$0x1]  ;;  %v3921_v2 = vshrl.u32 %v5760_v51, 16  ;;  %v6936_v43 = vld [vmem:[%s7146_s16 + $0x84] sm:$0xff]   ;;  %v3900_v12 = vor.u32 %v3899_v22, %v7993_v39  ;;  %v3913_v58 = vrot.slane %v3911_v7, 5  ;;  %v8031_v51 = vrot.slane %v3917_v38, 5 }
  0xc9   : > { %v7995_v33 = vrot.slane %v3866_v23, 4  ;;  %v1401_v10 = vrot.slane %v1399_v44, 4  ;;  %v3890_v31 = vor.u32 %v3889_v54, %v3886_v52  ;;  %v8964_v23 = vcombine.low %v7814_v59, %v7822_v25  ;;  %v7008_v18 = vld [vmem:[%s7146_s16 + $0x88] sm:$0xf]  ;;  %v5761_v5 = vld [vmem:[%s7146_s16 + $0x44] sm:$0x1] }
  0xca   : > { %v1406_v3 = vrot.slane %v7008_v18, 5  ;;  %v8022_v59 = vcombine.low %v3848_v0, %v3858_v46  ;;  %v5762_v52 = vld [vmem:[%s7146_s16 + $0x48] sm:$0xf]  ;;  %v3910_v54 = vrot.slane %v3908_v28, 4  ;;  %v3923_v22 = vrot.slane %v3921_v2, 4 }
  0xcb   : > { %6476 = vmatpush3.bf16.msra.mxu0 %v6941_v50  ;;  %v1402_v50 = vrot.slane %v7007_v19, 5  ;;  %v6938_v19 = vld [vmem:[%s7146_s16 + $0x90] sm:$0xff]   ;;  %v3872_v0 = vsel %vm7178_vm2, %v7995_v33, %v7940_v17  ;;  %v3891_v46 = vrot.slane %v3890_v31, 4  ;;  %v3882_v28 = vsel %vm7178_vm2, %v8004_v13, %v7997_v1  ;;  %v8053_v33 = vld [vmem:[%s7146_s16 + $0x58] sm:$0xf]  ;;  %v6939_v31 = vld [vmem:[%s8941_s1 + $0xc8] sm:$0xff]  }
  0xcc   : > { %6477 = vmatprep.subr.bf16.mxu0 %v6945_v20  ;;  %v3901_v38 = vrot.slane %v3900_v12, 4  ;;  %v1408_v2 = vrot.slane %v1406_v3, 4  ;;  %v5765_v17 = vld [vmem:[%s7146_s16 + $0x54] sm:$0xf]  ;;  %v3927_v1 = vshll.u32 %v5761_v5, 16  ;;  %v3932_v13 = vshrl.u32 %v5762_v52, 16 }
  0xcd   : > { %6446 = vmatmul.mubr.bf16.gmra.mrb[12].mxu0 %v6932_v48  ;;  %v3903_v48 = vshll.u32 %v5758_v34, 16  ;;  %v8049_v7 = vsel %vm7424_vm5, %v1401_v10, %v1402_v50  ;;  %v3935_v50 = vshll.u32 %v5762_v52, 16  ;;  %v3914_v10 = vor.u32 %v3913_v58, %v3910_v54  ;;  %v6940_v54 = vld [vmem:[%s7146_s16 + $0x9c] sm:$0xff]   ;;  %v7014_v41 = vld [vmem:[%s7146_s16 + $0xac] sm:$0xf] }
  0xce   : > { %6222 = vmatmul.mubr.bf16.gmra.mrb[28].mxu1 %v8963_v42  ;;  %6449 = vmatprep.mubr.bf16.mxu0 %v6934_v53  ;;  %v5401_v53 = vrot.slane %v1287_v62, 9  ;;  %v7009_v42 = vld [vmem:[%s7146_s16 + $0x8c] sm:$0x1]  ;;  %v3965_v5 = vshll.u32 %v8053_v33, 16  ;;  %v8966_v52 = vcombine.low %v7830_v63, %v7838_v8  ;;  %v8089_v63 = vld [vmem:[%s7146_s16 + $0x50] sm:$0x1] }
  0xcf   : > { %6241 = vmatprep.mubr.bf16.mxu1 %v8964_v23  ;;  %6478 = vmatpush3.bf16.msra.mxu0 %v6945_v20  ;;  %v8028_v20 = vsel %vm7424_vm5, %v5400_v32, %v1399_v44  ;;  %v3905_v62 = vrot.slane %v3903_v48, 5  ;;  %v1409_v23 = vrot.slane %v7009_v42, 5  ;;  %v1288_v44 = vld [vmem:[%s7146_s16 + $0x90] sm:$0xe]  ;;  %v8041_v32 = vld [vmem:[%s7146_s16 + $0x4c] sm:$0xf]  ;;  %v3924_v48 = vor.u32 %v3923_v22, %v8031_v51 }
  0xd0   : > { %6479 = vmatprep.subr.bf16.mxu0 %v6949_v40  ;;  %v3941_v12 = vshll.u32 %v8041_v32, 16  ;;  %v3945_v18 = vshrl.u32 %v8041_v32, 16  ;;  %v8965_v42 = vcombine.low %v7818_v30, %v7826_v6  ;;  %v6943_v30 = vld [vmem:[%s8941_s1 + $0xd0] sm:$0xff]   ;;  %v3896_v6 = vsel %vm7178_vm2, %v3891_v46, %v7993_v39  ;;  %v6942_v8 = vld [vmem:[%s7146_s16 + $0xa8] sm:$0xff]   ;;  %v8096_v39 = vld [vmem:[%s7146_s16 + $0x5c] sm:$0x1] }
  0xd1   : > { %v3906_v58 = vsel %vm7178_vm2, %v3901_v38, %v3905_v62  ;;  %v5402_v22 = vrot.slane %v1288_v44, 9  ;;  %v3937_v25 = vrot.slane %v3935_v50, 5  ;;  %8967 = vst [vmem:[#allocation3_spill] sm:$0xff] %v8096_v39  ;;  %v3915_v46 = vrot.slane %v3914_v10, 4 }
  0xd2   : > { %v3925_v62 = vrot.slane %v3924_v48, 4  ;;  %v8098_v38 = vrot.slane %v3941_v12, 5  ;;  %v8100_v34 = vrot.slane %v3965_v5, 5  ;;  %v8105_v50 = vcombine.low %v3872_v0, %v3882_v28  ;;  %v5768_v28 = vld [vmem:[%s7146_s16 + $0x60] sm:$0xf] }
  0xd3   : > { %6480 = vmatpush3.bf16.msra.mxu0 %v6949_v40  ;;  %v8061_v40 = vsel %vm7424_vm5, %v5401_v53, %v1406_v3  ;;  %v3956_v53 = vshrl.u32 %v5765_v17, 16  ;;  %v3959_v3 = vshll.u32 %v5765_v17, 16  ;;  %v7010_v17 = vld [vmem:[%s7146_s16 + $0x94] sm:$0xf]  ;;  %v8109_v48 = vcombine.low %v3896_v6, %v3906_v58 }
  0xd4   : > { %6513 = vmatprep.subr.bf16.mxu0 %v8009_v21  ;;  %v3951_v0 = vshll.u32 %v8089_v63, 16  ;;  %v3920_v6 = vsel %vm7178_vm2, %v3915_v46, %v8031_v51  ;;  %v8970_v46 = vcombine.low %v7852_v61, %v7856_v36 }
  0xd5   : > { %6450 = vmatmul.mubr.bf16.gmra.mrb[16].mxu0 %v6936_v43  ;;  %v3969_v43 = vshrl.u32 %v8053_v33, 16  ;;  %v3958_v44 = vrot.slane %v3956_v53, 4  ;;  %v7011_v53 = vld [vmem:[%s7146_s16 + $0x98] sm:$0x1] }
  0xd6   : > { %6242 = vmatmul.mubr.bf16.vlgmr.msra.gmra.mrb[0].mxu1 %v8965_v42  ;;  %6453 = vmatprep.mubr.bf16.mxu0 %v6938_v19  ;;  %v8092_v19 = vrot.slane %v3927_v1, 5  ;;  %v1413_v42 = vrot.slane %v7010_v17, 5  ;;  %v7012_v17 = vld [vmem:[%s7146_s16 + $0xa0] sm:$0xf]  ;;  %v3953_v36 = vrot.slane %v3951_v0, 5 }
  0xd7   : > { %6274 = vmatpush3.bf16.msra.mxu1 %v7771_v60  ;;  %6245 = vmatprep.mubr.bf16.mxu1 %v8966_v52  ;;  %v8086_v60 = vsel %vm7424_vm5, %v1408_v2, %v1409_v23  ;;  %v3934_v52 = vrot.slane %v3932_v13, 4  ;;  %v3947_v23 = vrot.slane %v3945_v18, 4  ;;  %v3961_v2 = vrot.slane %v3959_v3, 5  ;;  %v6947_v13 = vld [vmem:[%s8941_s1 + $0xd8] sm:$0xff]  }
  0xd8   : > { %6275 = vmatprep.subr.bf16.mxu1 %v6939_v31  ;;  %v3971_v1 = vrot.slane %v3969_v43, 4  ;;  %v1289_v18 = vld [vmem:[%s7146_s16 + $0x9c] sm:$0xe]  ;;  %v1416_v3 = vrot.slane %v7011_v53, 5  ;;  %v8122_v43 = vld [vmem:[%s7146_s16 + $0x64] sm:$0xf] }
  0xd9   : > { %v3938_v5 = vor.u32 %v3937_v25, %v3934_v52  ;;  %8968 = vst [vmem:[#allocation4_spill] sm:$0xff] %v8122_v43  ;;  %v3948_v58 = vor.u32 %v3947_v23, %v8098_v38  ;;  %v1420_v12 = vrot.slane %v7012_v17, 5  ;;  %v8969_v25 = vcombine.low %v7842_v24, %v7846_v35  ;;  %v6944_v23 = vld [vmem:[%s7146_s16 + $0xb4] sm:$0xff]   ;;  %v6950_v24 = vld [vmem:[%s8941_s1 + $0xe0] sm:$0xff]   ;;  %v5771_v17 = vld [vmem:[%s7146_s16 + $0x6c] sm:$0xf] }
  0xda   : > { %v1415_v52 = vrot.slane %v1413_v42, 4  ;;  %v3962_v53 = vor.u32 %v3961_v2, %v3958_v44  ;;  %v3972_v51 = vor.u32 %v3971_v1, %v8100_v34  ;;  %v3980_v35 = vshrl.u32 %v5768_v28, 16  ;;  %v7013_v2 = vld [vmem:[%s7146_s16 + $0xa4] sm:$0x1] }
  0xdb   : > { %6276 = vmatpush3.bf16.msra.mxu1 %v6939_v31  ;;  %v8116_v31 = vsel %vm7424_vm5, %v5402_v22, %v1413_v42  ;;  %v3975_v22 = vshll.u32 %v8096_v39, 16  ;;  %v3993_v42 = vshrl.u32 %v8122_v43, 16  ;;  %v3939_v61 = vrot.slane %v3938_v5, 4  ;;  %v8291_v39 = vld [vmem:[%s7146_s16 + $0x98] sm:$0x1] }
  0xdc   : > { %6277 = vmatprep.subr.bf16.mxu1 %v6943_v30  ;;  %v5403_v44 = vrot.slane %v1289_v18, 9  ;;  %v1423_v1 = vrot.slane %v7013_v2, 5  ;;  %v3963_v5 = vrot.slane %v3962_v53, 4  ;;  %v3973_v18 = vrot.slane %v3972_v51, 4  ;;  %8984 = vst [vmem:[#allocation14_spill] sm:$0xff] %v8291_v39 }
  0xdd   : > { %6454 = vmatmul.mubr.bf16.gmra.mrb[20].mxu0 %v6940_v54  ;;  %v3930_v54 = vsel %vm7178_vm2, %v3925_v62, %v8092_v19  ;;  %v3989_v19 = vshll.u32 %v8122_v43, 16  ;;  %v6946_v62 = vld [vmem:[%s7146_s16 + $0xc0] sm:$0xff]   ;;  %v3977_v10 = vrot.slane %v3975_v22, 5  ;;  %v8158_v43 = vsel %vm7424_vm5, %v1415_v52, %v1416_v3 }
  0xde   : > { %6246 = vmatmul.mubr.bf16.gmra.mrb[4].mxu1 %v8969_v25  ;;  %6457 = vmatprep.mubr.bf16.mxu0 %v6942_v8  ;;  %v3983_v8 = vshll.u32 %v5768_v28, 16  ;;  %v3949_v25 = vrot.slane %v3948_v58, 4  ;;  %v1427_v28 = vrot.slane %v7014_v41, 5  ;;  %v8154_v55 = vcombine.low %v3920_v6, %v3930_v54  ;;  %v6952_v41 = vld [vmem:[%s8941_s1 + $0xe8] sm:$0xff]  }
  0xdf   : > { %6249 = vmatprep.mubr.bf16.mxu1 %v8970_v46  ;;  %6278 = vmatpush3.bf16.msra.mxu1 %v6943_v30  ;;  %v1290_v30 = vld [vmem:[%s7146_s16 + $0xa8] sm:$0xe]  ;;  %v1422_v46 = vrot.slane %v1420_v12, 4  ;;  %v3982_v0 = vrot.slane %v3980_v35, 4  ;;  %v8160_v58 = vrot.slane %v3989_v19, 5  ;;  %v3995_v22 = vrot.slane %v3993_v42, 4 }
  0xe0   : > { %6279 = vmatprep.subr.bf16.mxu1 %v6947_v13  ;;  %v3985_v2 = vrot.slane %v3983_v8, 5  ;;  %v3944_v3 = vsel %vm7178_vm2, %v3939_v61, %v8098_v38  ;;  %v8170_v6 = vsel %vm7424_vm5, %v5403_v44, %v1420_v12  ;;  %v4004_v54 = vshrl.u32 %v5771_v17, 16  ;;  %v7015_v38 = vld [vmem:[%s7146_s16 + $0xb0] sm:$0x1]  ;;  %v1291_v19 = vld [vmem:[%s7146_s16 + $0xb4] sm:$0xe] }
  0xe1   : > { %v4007_v52 = vshll.u32 %v5771_v17, 16  ;;  %v3954_v53 = vsel %vm7178_vm2, %v3949_v25, %v3953_v36  ;;  %v8179_v51 = vsel %vm7424_vm5, %v1422_v46, %v1423_v1  ;;  %v5404_v35 = vrot.slane %v1290_v30, 9  ;;  %v8201_v30 = vld [vmem:[%s7146_s16 + $0x74] sm:$0x1]  ;;  %v7016_v25 = vld [vmem:[%s7146_s16 + $0xb8] sm:$0xf] }
  0xe2   : > { %v1430_v8 = vrot.slane %v7015_v38, 5  ;;  %v8973_v12 = vcombine.low %v7873_v49, %v7887_v4  ;;  %v3968_v42 = vsel %vm7178_vm2, %v3963_v5, %v8100_v34  ;;  %v3978_v61 = vsel %vm7178_vm2, %v3973_v18, %v3977_v10  ;;  %v6948_v4 = vld [vmem:[%s7146_s16 + $0xcc] sm:$0xff]   ;;  %8975 = vst [vmem:[#allocation7_spill] sm:$0xff] %v8201_v30  ;;  %v5777_v38 = vld [vmem:[%s7146_s16 + $0x84] sm:$0xf] }
  0xe3   : > { %6280 = vmatpush3.bf16.msra.mxu1 %v6947_v13  ;;  %v8173_v13 = vld [vmem:[%s7146_s16 + $0x70] sm:$0xf]  ;;  %v1429_v36 = vrot.slane %v1427_v28, 4  ;;  %v3999_v44 = vshll.u32 %v8152_v47, 16  ;;  %v8974_v49 = vcombine.low %v7909_v26, %v7913_v56  ;;  %v3996_v1 = vor.u32 %v3995_v22, %v8160_v58  ;;  %v8218_v22 = vld [vmem:[%s7146_s16 + $0x7c] sm:$0xf] }
  0xe4   : > { %6281 = vmatprep.subr.bf16.mxu1 %v6950_v24  ;;  %8972 = vst [vmem:[#allocation6_spill] sm:$0xff] %v8173_v13  ;;  %v4013_v34 = vshll.u32 %v8173_v13, 16  ;;  %v4017_v10 = vshrl.u32 %v8173_v13, 16  ;;  %v5405_v17 = vrot.slane %v1291_v19, 9  ;;  %v1434_v46 = vrot.slane %v7016_v25, 5  ;;  %8976 = vst [vmem:[#allocation8_spill] sm:$0xff] %v8218_v22 }
  0xe5   : > { %6458 = vmatmul.mubr.bf16.gmra.mrb[24].mxu0 %v6944_v23  ;;  %v6954_v23 = vld [vmem:[%s8941_s1 + $0xf0] sm:$0xff]   ;;  %v4006_v26 = vrot.slane %v4004_v54, 4  ;;  %v4009_v56 = vrot.slane %v4007_v52, 5  ;;  %v8209_v18 = vcombine.low %v3944_v3, %v3954_v53  ;;  %v8221_v19 = vcombine.low %v3968_v42, %v3978_v61  ;;  %v7017_v3 = vld [vmem:[%s7146_s16 + $0xbc] sm:$0x1] }
  0xe6   : > { %6250 = vmatmul.mubr.bf16.gmra.mrb[8].mxu1 %v8973_v12  ;;  %6461 = vmatprep.mubr.bf16.mxu0 %v6946_v62  ;;  %v3986_v62 = vor.u32 %v3985_v2, %v3982_v0  ;;  %v8215_v2 = vsel %vm7424_vm5, %v5404_v35, %v1427_v28  ;;  %v8225_v54 = vsel %vm7424_vm5, %v1429_v36, %v1430_v8  ;;  %v8227_v52 = vrot.slane %v3999_v44, 5  ;;  %v6956_v12 = vld [vmem:[%s8941_s1 + $0xf8] sm:$0xff]   ;;  %v8234_v28 = vld [vmem:[%s7146_s16 + $0x88] sm:$0xf] }
  0xe7   : > { %6253 = vmatprep.mubr.bf16.mxu1 %v8974_v49  ;;  %6282 = vmatpush3.bf16.msra.mxu1 %v6950_v24  ;;  %v5774_v24 = vld [vmem:[%s7146_s16 + $0x78] sm:$0xf]  ;;  %v1437_v53 = vrot.slane %v7017_v3, 5  ;;  %8977 = vst [vmem:[#allocation9_spill] sm:$0xff] %v8234_v28  ;;  %v8238_v42 = vrot.slane %v3996_v1, 4  ;;  %v8240_v61 = vrot.slane %v4013_v34, 5  ;;  %v8244_v36 = vsel %vm7424_vm5, %v5405_v17, %v1434_v46 }
  0xe8   : > { %6283 = vmatprep.subr.bf16.mxu1 %v6952_v41  ;;  %v8236_v35 = vrot.slane %v3986_v62, 4  ;;  %v4019_v8 = vrot.slane %v4017_v10, 4  ;;  %v1436_v44 = vrot.slane %v1434_v46, 4  ;;  %v4010_v49 = vor.u32 %v4009_v56, %v4006_v26  ;;  %v5780_v3 = vld [vmem:[%s7146_s16 + $0x90] sm:$0xf] }
  0xe9   : > { %v4023_v25 = vshll.u32 %v8201_v30, 16  ;;  %v4031_v0 = vshll.u32 %v5774_v24, 16  ;;  %v4037_v62 = vshll.u32 %v8218_v22, 16  ;;  %v4041_v1 = vshrl.u32 %v8218_v22, 16  ;;  %v8251_v34 = vld [vmem:[%s7146_s16 + $0x94] sm:$0xf] }
  0xea   : > { %8978 = vst [vmem:[#allocation10_spill] sm:$0xff] %v8251_v34  ;;  %v8979_v10 = vcombine.low %v7953_v27, %v7957_v29  ;;  %v4052_v17 = vshrl.u32 %v5777_v38, 16  ;;  %v4055_v46 = vshll.u32 %v5777_v38, 16  ;;  %v4065_v26 = vshrl.u32 %v8234_v28, 16  ;;  %v5783_v38 = vld [vmem:[%s7146_s16 + $0x9c] sm:$0xf] }
  0xeb   : > { %6284 = vmatpush3.bf16.msra.mxu1 %v6952_v41  ;;  %v4028_v41 = vshrl.u32 %v5774_v24, 16  ;;  %v8980_v56 = vcombine.low %v7964_v45, %v7968_v14  ;;  %v4020_v29 = vor.u32 %v4019_v8, %v8240_v61  ;;  %v4079_v24 = vshll.u32 %v5780_v3, 16  ;;  %v8273_v45 = vld [vmem:[%s7146_s16 + $0x80] sm:$0x1] }
  0xec   : > { %6285 = vmatprep.subr.bf16.mxu1 %v6954_v23  ;;  %v8270_v5 = vrot.slane %v4023_v25, 5  ;;  %8981 = vst [vmem:[#allocation11_spill] sm:$0xff] %v8273_v45  ;;  %v4085_v14 = vshll.u32 %v8251_v34, 16  ;;  %v4033_v27 = vrot.slane %v4031_v0, 5  ;;  %v4043_v8 = vrot.slane %v4041_v1, 4 }
  0xed   : > { %6462 = vmatmul.mubr.bf16.gmra.mrb[28].mxu0 %v6948_v4  ;;  %v4061_v4 = vshll.u32 %v8234_v28, 16  ;;  %v8277_v28 = vrot.slane %v4037_v62, 5  ;;  %v8283_v22 = vld [vmem:[%s7146_s16 + $0xa0] sm:$0xf]  ;;  %v4054_v25 = vrot.slane %v4052_v17, 4  ;;  %v4057_v30 = vrot.slane %v4055_v46, 5 }
  0xee   : > { %6254 = vmatmul.mubr.bf16.gmra.mrb[12].mxu1 %v8979_v10  ;;  %6481 = vmatprep.mubr.bf16.mxu0 %v8022_v59  ;;  %v4076_v59 = vshrl.u32 %v5780_v3, 16  ;;  %v8268_v10 = vrot.slane %v4010_v49, 4  ;;  %v8280_v3 = vld [vmem:[%s7146_s16 + $0x8c] sm:$0x1]  ;;  %8983 = vst [vmem:[#allocation13_spill] sm:$0xff] %v8283_v22  ;;  %v4067_v47 = vrot.slane %v4065_v26, 4  ;;  %v8300_v62 = vsel %vm7424_vm5, %v1436_v44, %v1437_v53 }
  0xef   : > { %6257 = vmatprep.mubr.bf16.mxu1 %v8980_v56  ;;  %6286 = vmatpush3.bf16.msra.mxu1 %v6954_v23  ;;  %v4089_v23 = vshrl.u32 %v8251_v34, 16  ;;  %v4030_v56 = vrot.slane %v4028_v41, 4  ;;  %8982 = vst [vmem:[#allocation12_spill] sm:$0xff] %v8280_v3  ;;  %v6953_v49 = vld [vmem:[%s8941_s1 + $0x208] sm:$0xff]   ;;  %v8288_v13 = vrot.slane %v4061_v4, 5  ;;  %v4081_v34 = vrot.slane %v4079_v24, 5 }
  0xf0   : > { %6287 = vmatprep.subr.bf16.mxu1 %v6956_v12  ;;  %v5786_v41 = vld [vmem:[%s7146_s16 + $0xa8] sm:$0xf]  ;;  %v4078_v1 = vrot.slane %v4076_v59, 4  ;;  %v8305_v17 = vld [vmem:[%s8941_s1 + $0x100] sm:$0xff]   ;;  %v8308_v46 = vrot.slane %v4085_v14, 5  ;;  %v4100_v26 = vshrl.u32 %v5783_v38, 16  ;;  %v8986_v24 = vcombine.low %v7972_v16, %v7982_v15 }
  0xf1   : > { %8985 = vst [vmem:[#allocation15_spill] sm:$0xff] %v8305_v17  ;;  %v4091_v4 = vrot.slane %v4089_v23, 4  ;;  %v4103_v0 = vshll.u32 %v5783_v38, 16  ;;  %v8311_v53 = vrot.slane %v4020_v29, 4  ;;  %v4109_v44 = vshll.u32 %v8283_v22, 16  ;;  %v6955_v16 = vld [vmem:[%s8941_s1 + $0x210] sm:$0xff]  }
  0xf2   : > { %v4113_v59 = vshrl.u32 %v8283_v22, 16  ;;  %v4034_v14 = vor.u32 %v4033_v27, %v4030_v56  ;;  %v4044_v38 = vor.u32 %v4043_v8, %v8277_v28  ;;  %v4058_v23 = vor.u32 %v4057_v30, %v4054_v25  ;;  %v8323_v29 = vld [vmem:[%s7146_s16 + $0xac] sm:$0xf]  ;;  %v8336_v25 = vld [vmem:[%s7146_s16 + $0xa4] sm:$0x1] }
  0xf3   : > { %6288 = vmatpush3.bf16.msra.mxu1 %v6956_v12  ;;  %v4047_v12 = vshll.u32 %v8273_v45, 16  ;;  %8987 = vst [vmem:[#allocation16_spill] sm:$0xff] %v8323_v29  ;;  %v4068_v15 = vor.u32 %v4067_v47, %v8288_v13  ;;  %v4124_v27 = vshrl.u32 %v5786_v41, 16  ;;  %v4127_v30 = vshll.u32 %v5786_v41, 16 }
  0xf4   : > { %6561 = vmatprep.subr.bf16.mxu1 %v8305_v17  ;;  %v8988_v17 = vcombine.low %v8028_v20, %v8049_v7  ;;  %v4082_v56 = vor.u32 %v4081_v34, %v4078_v1  ;;  %v4092_v8 = vor.u32 %v4091_v4, %v8308_v46  ;;  %v4102_v20 = vrot.slane %v4100_v26, 4 }
  0xf5   : > { %6482 = vmatmul.mubr.bf16.vlgmr.msra.gmra.mrb[0].mxu0 %v8105_v50  ;;  %v4071_v50 = vshll.u32 %v8280_v3, 16  ;;  %v4105_v7 = vrot.slane %v4103_v0, 5  ;;  %v4137_v22 = vshrl.u32 %v8323_v29, 16  ;;  %v4035_v47 = vrot.slane %v4034_v14, 4  ;;  %v6957_v0 = vld [vmem:[%s8941_s1 + $0x218] sm:$0xff]  }
  0xf6   : > { %6258 = vmatmul.mubr.bf16.gmra.mrb[16].mxu1 %v8986_v24  ;;  %6514 = vmatpush3.bf16.msra.mxu0 %v8009_v21  ;;  %v4095_v21 = vshll.u32 %v8291_v39, 16  ;;  %v4133_v24 = vshll.u32 %v8323_v29, 16  ;;  %v4045_v39 = vrot.slane %v4044_v38, 4  ;;  %v4049_v3 = vrot.slane %v4047_v12, 5 }
  0xf7   : > { %6261 = vmatprep.mubr.bf16.mxu1 %v8988_v17  ;;  %6485 = vmatprep.mubr.bf16.mxu0 %v8109_v48  ;;  %v8338_v17 = vrot.slane %v4109_v44, 5  ;;  %v4115_v48 = vrot.slane %v4113_v59, 4  ;;  %v4073_v41 = vrot.slane %v4071_v50, 5  ;;  %v4059_v34 = vrot.slane %v4058_v23, 4 }
  0xf8   : > { %6515 = vmatprep.subr.bf16.mxu0 %v6953_v49  ;;  %v4069_v1 = vrot.slane %v4068_v15, 4  ;;  %v4126_v4 = vrot.slane %v4124_v27, 4  ;;  %v4129_v45 = vrot.slane %v4127_v30, 5  ;;  %v4083_v26 = vrot.slane %v4082_v56, 4  ;;  %v8404_v27 = vld [vmem:[%s7146_s16 + $0xbc] sm:$0x1] }
  0xf9   : > { %v4097_v44 = vrot.slane %v4095_v21, 5  ;;  %v4106_v59 = vor.u32 %v4105_v7, %v4102_v20  ;;  %v4119_v29 = vshll.u32 %v8336_v25, 16  ;;  %v4116_v12 = vor.u32 %v4115_v48, %v8338_v17  ;;  %v8371_v21 = vld [vmem:[%s7146_s16 + $0xb0] sm:$0x1] }
  0xfa   : > { %6516 = vmatpush3.bf16.msra.mxu0 %v6953_v49  ;;  %v4093_v49 = vrot.slane %v4092_v8, 4  ;;  %v8348_v14 = vrot.slane %v4133_v24, 5  ;;  %v4139_v38 = vrot.slane %v4137_v22, 4  ;;  %v8989_v23 = vor.u32 %v7756_v57, %v7754_v11 }
  0xfb   : > { %6517 = vmatprep.subr.bf16.mxu0 %v6955_v16  ;;  %v8990_v15 = vcombine.low %v8061_v40, %v8086_v60  ;;  %v4026_v22 = vsel %vm7178_vm2, %v8311_v53, %v8270_v5  ;;  %v4040_v57 = vsel %vm7178_vm2, %v4035_v47, %v8277_v28  ;;  %v8991_v40 = vcombine.low %v8116_v31, %v8158_v43  ;;  %v6960_v31 = vld [vmem:[%s8941_s1 + $0x220] sm:$0xff]  }
  0xfc   : > { %v8353_v50 = vrot.slane %v8989_v23, 4  ;;  %v4050_v60 = vsel %vm7178_vm2, %v4045_v39, %v4049_v3  ;;  %v4130_v5 = vor.u32 %v4129_v45, %v4126_v4  ;;  %v4074_v28 = vsel %vm7178_vm2, %v4069_v1, %v4073_v41  ;;  %v5842_v41 = vld [vmem:[%s7146_s16 + $0x48] sm:$0xe] }
  0xfd   : > { %6486 = vmatmul.mubr.bf16.gmra.mrb[4].mxu0 %v8154_v55  ;;  %v4016_v55 = vsel %vm7178_vm2, %v8268_v10, %v8240_v61  ;;  %v5789_v61 = vld [vmem:[%s7146_s16 + $0xb4] sm:$0xf]  ;;  %v8383_v10 = vld [vmem:[%s7146_s16 + $0xb8] sm:$0xf]  ;;  %v4088_v39 = vsel %vm7178_vm2, %v4083_v26, %v8308_v46  ;;  %v8393_v43 = vrot.slane %v4106_v59, 4  ;;  %v8395_v3 = vrot.slane %v4119_v29, 5 }
  0xfe   : > { %6262 = vmatmul.mubr.bf16.gmra.mrb[20].mxu1 %v8990_v15  ;;  %6489 = vmatprep.mubr.bf16.mxu0 %v8209_v18  ;;  %v4064_v18 = vsel %vm7178_vm2, %v4059_v34, %v8288_v13  ;;  %v4098_v13 = vsel %vm7178_vm2, %v4093_v49, %v4097_v44  ;;  %v8399_v45 = vrot.slane %v4116_v12, 4  ;;  %v4140_v53 = vor.u32 %v4139_v38, %v8348_v14  ;;  %v5843_v26 = vld [vmem:[%s7146_s16 + $0x54] sm:$0xe] }
  0xff   : > { %6265 = vmatprep.mubr.bf16.mxu1 %v8991_v40  ;;  %6518 = vmatpush3.bf16.msra.mxu0 %v6955_v16  ;;  %v4143_v16 = vshll.u32 %v8371_v21, 16  ;;  %v8992_v46 = vsel %vm7178_vm2, %v8238_v42, %v8227_v52  ;;  %v8993_v29 = vsel %vm7178_vm2, %v8236_v35, %v8160_v58  ;;  %v4148_v56 = vshrl.u32 %v5789_v61, 16 }
 0x100   : > { %6519 = vmatprep.subr.bf16.mxu0 %v6957_v0  ;;  %v5820_v30 = vcombine.low %v8993_v29, %v8992_v46  ;;  %v4151_v8 = vshll.u32 %v5789_v61, 16  ;;  %v4157_v20 = vshll.u32 %v8383_v10, 16  ;;  %v5436_v7 = vcombine.low %v8215_v2, %v8225_v54  ;;  %v6963_v2 = vld [vmem:[%s8941_s1 + $0x228] sm:$0xff]   ;;  %v5792_v54 = vld [vmem:[%s7146_s16 + $0xc0] sm:$0xf]  ;;  %v8997_v29 = vld [vmem:[#allocation5_spill] sm:$0xff] }
 0x101   : > { %v5437_v48 = vcombine.low %v8244_v36, %v8300_v62  ;;  %v5821_v24 = vcombine.low %v4016_v55, %v4026_v22  ;;  %v8421_v52 = vrot.slane %v4130_v5, 4  ;;  %v5822_v42 = vcombine.low %v4040_v57, %v4050_v60 }
 0x102   : > { %v8423_v58 = vcombine.low %v4064_v18, %v4074_v28  ;;  %v8425_v35 = vcombine.low %v4088_v39, %v4098_v13  ;;  %v4112_v47 = vsel %vm7178_vm2, %v8393_v43, %v8338_v17  ;;  %v4122_v34 = vsel %vm7178_vm2, %v8399_v45, %v8395_v3  ;;  %v5845_v28 = vld [vmem:[%s7146_s16 + $0x6c] sm:$0xe] }
 0x103   : > { %6520 = vmatpush3.bf16.msra.mxu0 %v6957_v0  ;;  %v8441_v1 = vrot.slane %v4140_v53, 4  ;;  %v8443_v4 = vrot.slane %v4143_v16, 5  ;;  %v4161_v0 = vshrl.u32 %v8383_v10, 16  ;;  %v8994_v44 = vcombine.low %v8170_v6, %v8179_v51  ;;  %v6966_v6 = vld [vmem:[%s8941_s1 + $0x230] sm:$0xff]   ;;  %v8465_v51 = vld [vmem:[%s7146_s16 + $0xc4] sm:$0xf] }
 0x104   : > { %6521 = vmatprep.subr.bf16.mxu0 %v6960_v31  ;;  %v8450_v59 = vrot.slane %v4148_v56, 4  ;;  %v8454_v49 = vrot.slane %v4157_v20, 5  ;;  %v4167_v12 = vshll.u32 %v8404_v27, 16  ;;  %v4136_v38 = vsel %vm7178_vm2, %v8421_v52, %v8348_v14  ;;  %v5844_v14 = vld [vmem:[%s7146_s16 + $0x60] sm:$0xe]  ;;  %v8995_v39 = vld [vmem:[#allocation3_spill] sm:$0xff] }
 0x105   : > { %6490 = vmatmul.mubr.bf16.gmra.mrb[8].mxu0 %v8221_v19  ;;  %v8452_v19 = vrot.slane %v4151_v8, 5  ;;  %v4172_v23 = vshrl.u32 %v5792_v54, 16  ;;  %v5858_v15 = vrot.slane %v5842_v41, 9  ;;  %v4635_v55 = vrot.slane %v8041_v32, 5  ;;  %v6958_v13 = vld [vmem:[%s7146_s16 + $0xc] sm:$0xff]   ;;  %v6969_v56 = vld [vmem:[%s8941_s1 + $0x238] sm:$0xff]  }
 0x106   : > { %6266 = vmatmul.mubr.bf16.gmra.mrb[24].mxu1 %v8994_v44  ;;  %6493 = vmatprep.mubr.bf16.mxu0 %v5820_v30  ;;  %v4175_v22 = vshll.u32 %v5792_v54, 16  ;;  %v4638_v57 = vrot.slane %v8089_v63, 5  ;;  %v5859_v40 = vrot.slane %v5843_v26, 9  ;;  %v4642_v60 = vrot.slane %v8053_v33, 5  ;;  %v8996_v16 = vld [vmem:[#allocation4_spill] sm:$0xff]  ;;  %v8998_v52 = vld [vmem:[#allocation6_spill] sm:$0xff] }
 0x107   : > { %6269 = vmatprep.mubr.bf16.mxu1 %v5436_v7  ;;  %6522 = vmatpush3.bf16.msra.mxu0 %v6960_v31  ;;  %v4146_v18 = vsel %vm7178_vm2, %v8441_v1, %v8443_v4  ;;  %v8475_v5 = vrot.slane %v4161_v0, 4  ;;  %v8479_v61 = vsel %vm7424_vm5, %v5858_v15, %v4635_v55  ;;  %v4637_v32 = vrot.slane %v4635_v55, 4  ;;  %v8999_v4 = vld [vmem:[#allocation7_spill] sm:$0xff] }
 0x108   : > { %6523 = vmatprep.subr.bf16.mxu0 %v6963_v2  ;;  %v4181_v31 = vshll.u32 %v8465_v51, 16  ;;  %v8485_v63 = vsel %vm7424_vm5, %v5859_v40, %v4642_v60  ;;  %v4644_v33 = vrot.slane %v4642_v60, 4  ;;  %v4645_v3 = vrot.slane %v8995_v39, 5  ;;  %v8516_v26 = vld [vmem:[%s7146_s16 + $0xc8] sm:$0x1]  ;;  %v6959_v40 = vld [vmem:[%s7146_s16 + $0x18] sm:$0xff]  }
 0x109   : > { %v8491_v45 = vsel %vm7424_vm5, %v4637_v32, %v4638_v57  ;;  %v5860_v53 = vrot.slane %v5844_v14, 9  ;;  %v4649_v46 = vrot.slane %v8996_v16, 5  ;;  %v4652_v30 = vrot.slane %v8997_v29, 5  ;;  %v6961_v39 = vld [vmem:[%s7146_s16 + $0x24] sm:$0xff]  }
 0x10a   : > { %v5890_v8 = vcombine.low %v8479_v61, %v8491_v45  ;;  %v8502_v20 = vsel %vm7424_vm5, %v4644_v33, %v4645_v3  ;;  %v5861_v7 = vrot.slane %v5845_v28, 9  ;;  %v4659_v0 = vrot.slane %v8999_v4, 5  ;;  %v9001_v28 = vld [vmem:[#allocation11_spill] sm:$0xff]  ;;  %v5551_v61 = vld [vmem:[%s7146_s16 + $0x90] sm:$0xf] }
 0x10b   : > { %6524 = vmatpush3.bf16.msra.mxu0 %v6963_v2  ;;  %v4656_v2 = vrot.slane %v8998_v52, 5  ;;  %v5891_v54 = vcombine.low %v8485_v63, %v8502_v20  ;;  %v8509_v41 = vsel %vm7424_vm5, %v5860_v53, %v4649_v46  ;;  %v4651_v1 = vrot.slane %v4649_v46, 4  ;;  %v9002_v53 = vld [vmem:[#allocation2_spill] sm:$0xff]  ;;  %v6975_v45 = vld [vmem:[%s7146_s16 + $0xa8] sm:$0xff]  }
 0x10c   : > { %6525 = vmatprep.subr.bf16.mxu0 %v6966_v6  ;;  %v8518_v44 = vrot.slane %v4172_v23, 4  ;;  %v8531_v36 = vcombine.low %v4112_v47, %v4122_v34  ;;  %v4154_v62 = vor.u32 %v8452_v19, %v8450_v59  ;;  %v5846_v23 = vld [vmem:[%s7146_s16 + $0x78] sm:$0xe]  ;;  %v8543_v57 = vrot.slane %v4167_v12, 5  ;;  %v5795_v12 = vld [vmem:[%s7146_s16 + $0xcc] sm:$0xf] }
 0x10d   : > { %6494 = vmatmul.mubr.bf16.gmra.mrb[12].mxu0 %v5821_v24  ;;  %v8520_v24 = vrot.slane %v4175_v22, 5  ;;  %v8524_v15 = vsel %vm7424_vm5, %v5861_v7, %v4656_v2  ;;  %v4658_v55 = vrot.slane %v4656_v2, 4  ;;  %v8541_v22 = vcombine.low %v4136_v38, %v4146_v18  ;;  %v5545_v47 = vld [vmem:[%s7146_s16 + $0x78] sm:$0xf]  ;;  %v9000_v18 = vld [vmem:[#allocation8_spill] sm:$0xff] }
 0x10e   : > { %6270 = vmatmul.mubr.bf16.gmra.mrb[28].mxu1 %v5437_v48  ;;  %6497 = vmatprep.mubr.bf16.mxu0 %v5822_v42  ;;  %v4185_v48 = vshrl.u32 %v8465_v51, 16  ;;  %v8538_v42 = vsel %vm7424_vm5, %v4651_v1, %v4652_v30  ;;  %v4164_v34 = vor.u32 %v8475_v5, %v8454_v49  ;;  %v8554_v59 = vrot.slane %v4181_v31, 5  ;;  %v8568_v31 = vld [vmem:[%s7146_s16 + $0xd0] sm:$0xf]  ;;  %v9003_v1 = vld [vmem:[#allocation9_spill] sm:$0xff] }
 0x10f   : > { %6289 = vmatprep.mubr.bf16.mxu1 %v6958_v13  ;;  %6526 = vmatpush3.bf16.msra.mxu0 %v6966_v6  ;;  %v5892_v17 = vcombine.low %v8509_v41, %v8538_v42  ;;  %v8549_v43 = vsel %vm7424_vm5, %v4658_v55, %v4659_v0  ;;  %v4191_v19 = vshll.u32 %v8516_v26, 16  ;;  %v5847_v6 = vld [vmem:[%s7146_s16 + $0x84] sm:$0xe]  ;;  %v4178_v60 = vor.u32 %v8520_v24, %v8518_v44  ;;  %v9004_v24 = vld [vmem:[#allocation12_spill] sm:$0xff]  ;;  %v7039_v63 = vld [vmem:[%s7146_s16 + $0x8c] sm:$0x1] }
 0x110   : > { %6527 = vmatprep.subr.bf16.mxu0 %v6969_v56  ;;  %v5893_v38 = vcombine.low %v8524_v15, %v8549_v43  ;;  %v5862_v14 = vrot.slane %v5846_v23, 9  ;;  %v4663_v32 = vrot.slane %v9000_v18, 5  ;;  %v4666_v33 = vrot.slane %v9001_v28, 5 }
 0x111   : > { %v4187_v5 = vrot.slane %v4185_v48, 4  ;;  %v2413_v3 = vshrl.u32 %v5545_v47, 16  ;;  %v2416_v13 = vshll.u32 %v5545_v47, 16  ;;  %v2435_v16 = vsel %vm7178_vm2, %v8353_v50, %v9002_v53 }
 0x112   : > { %v4196_v46 = vshrl.u32 %v5795_v12, 16  ;;  %v8576_v29 = vsel %vm7424_vm5, %v5862_v14, %v4663_v32  ;;  %v4665_v30 = vrot.slane %v4663_v32, 4  ;;  %v5863_v7 = vrot.slane %v5847_v6, 9  ;;  %v7019_v6 = vld [vmem:[%s8941_s1 + $0x108] sm:$0xff]  }
 0x113   : > { %6528 = vmatpush3.bf16.msra.mxu0 %v6969_v56  ;;  %v4199_v52 = vshll.u32 %v5795_v12, 16  ;;  %v2415_v2 = vrot.slane %v2413_v3, 4  ;;  %v2418_v56 = vrot.slane %v2416_v13, 5  ;;  %v4670_v4 = vrot.slane %v9003_v1, 5  ;;  %v5848_v12 = vld [vmem:[%s7146_s16 + $0x90] sm:$0xe] }
 0x114   : > { %v4205_v50 = vshll.u32 %v8568_v31, 16  ;;  %v4209_v0 = vshrl.u32 %v8568_v31, 16  ;;  %v8585_v44 = vsel %vm7424_vm5, %v4665_v30, %v4666_v33  ;;  %v4673_v55 = vrot.slane %v9004_v24, 5  ;;  %v6962_v3 = vld [vmem:[%s7146_s16 + $0x30] sm:$0xff]  }
 0x115   : > { %6498 = vmatmul.mubr.bf16.gmra.mrb[16].mxu0 %v8423_v58  ;;  %v9005_v58 = vld [vmem:[#allocation15_spill] sm:$0xff]  ;;  %v4188_v48 = vor.u32 %v4187_v5, %v8554_v59  ;;  %v2419_v23 = vor.u32 %v2418_v56, %v2415_v2  ;;  %v4672_v47 = vrot.slane %v4670_v4, 4  ;;  %v4165_v14 = vrot.slane %v4164_v34, 4  ;;  %v8606_v13 = vld [vmem:[%s7146_s16 + $0xd4] sm:$0x1]  ;;  %v9006_v2 = vld [vmem:[#allocation10_spill] sm:$0xff] }
 0x116   : > { %6290 = vmatmul.mubr.bf16.vlgmr.msra.gmra.mrb[0].mxu1 %v6959_v40  ;;  %6501 = vmatprep.mubr.bf16.mxu0 %v8425_v35  ;;  %v5894_v35 = vcombine.low %v8576_v29, %v8585_v44  ;;  %v4155_v40 = vrot.slane %v4154_v62, 4  ;;  %v4193_v18 = vrot.slane %v4191_v19, 5  ;;  %v8598_v32 = vsel %vm7424_vm5, %v5863_v7, %v4670_v4  ;;  %v6964_v19 = vld [vmem:[%s7146_s16 + $0x3c] sm:$0xff]   ;;  %v7020_v1 = vld [vmem:[%s8941_s1 + $0x110] sm:$0xff]  }
 0x117   : > { %6569 = vmatpush3.bf16.msra.mxu1 %v9005_v58  ;;  %6293 = vmatprep.mubr.bf16.mxu1 %v6961_v39  ;;  %v4198_v28 = vrot.slane %v4196_v46, 4  ;;  %v4201_v33 = vrot.slane %v4199_v52, 5  ;;  %v2420_v39 = vrot.slane %v2419_v23, 4  ;;  %v8602_v5 = vsel %vm7424_vm5, %v4672_v47, %v4673_v55  ;;  %v7021_v47 = vld [vmem:[%s7146_s16 + $0x1c] sm:$0xf] }
 0x118   : > { %6562 = vmatprep.subr.bf16.mxu1 %v7019_v6  ;;  %v8608_v53 = vrot.slane %v4205_v50, 5  ;;  %v4211_v30 = vrot.slane %v4209_v0, 4  ;;  %v5895_v62 = vcombine.low %v8598_v32, %v8602_v5  ;;  %v5864_v34 = vrot.slane %v5848_v12, 9 }
 0x119   : > { %v4179_v7 = vrot.slane %v4178_v60, 4  ;;  %v4189_v46 = vrot.slane %v4188_v48, 4  ;;  %v2425_v52 = vsel %vm7178_vm2, %v2420_v39, %v7754_v11  ;;  %v4677_v56 = vrot.slane %v9006_v2, 5  ;;  %v9007_v11 = vld [vmem:[#allocation14_spill] sm:$0xff]  ;;  %v6965_v39 = vld [vmem:[%s7146_s16 + $0x48] sm:$0xff]  }
 0x11a   : > { %v4160_v4 = vsel %vm7178_vm2, %v4155_v40, %v8454_v49  ;;  %v4170_v60 = vsel %vm7178_vm2, %v4165_v14, %v8543_v57  ;;  %v8626_v50 = vcombine.low %v2425_v52, %v2435_v16  ;;  %v4680_v0 = vrot.slane %v9007_v11, 5  ;;  %v5838_v57 = vld [vmem:[%s7146_s16 + $0x18] sm:$0xe]  ;;  %v5849_v16 = vld [vmem:[%s7146_s16 + $0x9c] sm:$0xe] }
 0x11b   : > { %6570 = vmatpush3.bf16.msra.mxu1 %v7019_v6  ;;  %v4202_v24 = vor.u32 %v4201_v33, %v4198_v28  ;;  %v4215_v55 = vshll.u32 %v8606_v13, 16  ;;  %v8633_v58 = vsel %vm7424_vm5, %v5864_v34, %v4677_v56  ;;  %v4679_v48 = vrot.slane %v4677_v56, 4  ;;  %v7022_v40 = vld [vmem:[%s8941_s1 + $0x118] sm:$0xff]   ;;  %v7023_v2 = vld [vmem:[%s7146_s16 + $0x20] sm:$0x1] }
 0x11c   : > { %6563 = vmatprep.subr.bf16.mxu1 %v7020_v1  ;;  %v4212_v49 = vor.u32 %v4211_v30, %v8608_v53  ;;  %v4194_v23 = vsel %vm7178_vm2, %v4189_v46, %v4193_v18  ;;  %v4607_v12 = vrot.slane %v7021_v47, 5  ;;  %v5827_v6 = vcombine.low %v4160_v4, %v4170_v60  ;;  %v9008_v34 = vld [vmem:[#allocation13_spill] sm:$0xff]  ;;  %v5850_v11 = vld [vmem:[%s7146_s16 + $0xa8] sm:$0xe] }
 0x11d   : > { %6502 = vmatmul.mubr.bf16.gmra.mrb[20].mxu0 %v8531_v36  ;;  %v4184_v36 = vsel %vm7178_vm2, %v4179_v7, %v8554_v59  ;;  %v4203_v14 = vrot.slane %v4202_v24, 4  ;;  %v4217_v28 = vrot.slane %v4215_v55, 5  ;;  %v5854_v18 = vrot.slane %v5838_v57, 9  ;;  %v6967_v46 = vld [vmem:[%s7146_s16 + $0x54] sm:$0xff]   ;;  %v5839_v55 = vld [vmem:[%s7146_s16 + $0x24] sm:$0xe] }
 0x11e   : > { %6294 = vmatmul.mubr.bf16.gmra.mrb[4].mxu1 %v6962_v3  ;;  %6505 = vmatprep.mubr.bf16.mxu0 %v8541_v22  ;;  %v8647_v22 = vsel %vm7424_vm5, %v4679_v48, %v4680_v0  ;;  %v5865_v33 = vrot.slane %v5849_v16, 9  ;;  %v5828_v3 = vcombine.low %v4184_v36, %v4194_v23  ;;  %v4213_v30 = vrot.slane %v4212_v49, 4  ;;  %v7025_v48 = vld [vmem:[%s7146_s16 + $0x28] sm:$0xf]  ;;  %v7026_v36 = vld [vmem:[%s7146_s16 + $0x34] sm:$0xf] }
 0x11f   : > { %6297 = vmatprep.mubr.bf16.mxu1 %v6964_v19  ;;  %6571 = vmatpush3.bf16.msra.mxu1 %v7020_v1  ;;  %v5896_v59 = vcombine.low %v8633_v58, %v8647_v22  ;;  %v4684_v19 = vrot.slane %v9008_v34, 5  ;;  %v4687_v7 = vrot.slane %v8336_v25, 5  ;;  %v4609_v52 = vrot.slane %v4607_v12, 4  ;;  %v7024_v1 = vld [vmem:[%s8941_s1 + $0x120] sm:$0xff]  }
 0x120   : > { %6564 = vmatprep.subr.bf16.mxu1 %v7022_v40  ;;  %v4610_v56 = vrot.slane %v7023_v2, 5  ;;  %v4608_v25 = vsel %vm7424_vm5, %v5854_v18, %v4607_v12  ;;  %v4208_v0 = vsel %vm7178_vm2, %v4203_v14, %v8608_v53  ;;  %v4218_v24 = vsel %vm7178_vm2, %v4213_v30, %v4217_v28  ;;  %v5840_v12 = vld [vmem:[%s7146_s16 + $0x30] sm:$0xe]  ;;  %v6968_v30 = vld [vmem:[%s7146_s16 + $0x60] sm:$0xff]  }
 0x121   : > { %v8664_v4 = vsel %vm7424_vm5, %v5865_v33, %v4684_v19  ;;  %v4686_v60 = vrot.slane %v4684_v19, 4  ;;  %v4614_v49 = vrot.slane %v7025_v48, 5  ;;  %v4621_v23 = vrot.slane %v7026_v36, 5  ;;  %v7028_v33 = vld [vmem:[%s7146_s16 + $0x2c] sm:$0x1] }
 0x122   : > { %v4611_v16 = vsel %vm7424_vm5, %v4609_v52, %v4610_v56  ;;  %v5866_v47 = vrot.slane %v5850_v11, 9  ;;  %v5829_v28 = vcombine.low %v4208_v0, %v4218_v24  ;;  %v5855_v18 = vrot.slane %v5839_v55, 9  ;;  %v6970_v52 = vld [vmem:[%s7146_s16 + $0x6c] sm:$0xff]   ;;  %v5851_v11 = vld [vmem:[%s7146_s16 + $0xb4] sm:$0xe] }
 0x123   : > { %6572 = vmatpush3.bf16.msra.mxu1 %v7022_v40  ;;  %v8678_v57 = vsel %vm7424_vm5, %v4686_v60, %v4687_v7  ;;  %v9009_v40 = vld [vmem:[#allocation16_spill] sm:$0xff]  ;;  %v5886_v34 = vcombine.low %v4608_v25, %v4611_v16  ;;  %v4616_v19 = vrot.slane %v4614_v49, 4  ;;  %v5856_v2 = vrot.slane %v5840_v12, 9  ;;  %v5841_v0 = vld [vmem:[%s7146_s16 + $0x3c] sm:$0xe] }
 0x124   : > { %6565 = vmatprep.subr.bf16.mxu1 %v7024_v1  ;;  %v5897_v53 = vcombine.low %v8664_v4, %v8678_v57  ;;  %v4691_v14 = vrot.slane %v9009_v40, 5  ;;  %v4623_v56 = vrot.slane %v4621_v23, 4  ;;  %v7030_v24 = vld [vmem:[%s7146_s16 + $0x40] sm:$0xf]  ;;  %v4615_v48 = vsel %vm7424_vm5, %v5855_v18, %v4614_v49  ;;  %v7032_v18 = vld [vmem:[%s7146_s16 + $0x44] sm:$0x1] }
 0x125   : > { %6506 = vmatmul.mubr.bf16.gmra.mrb[24].mxu0 %v5827_v6  ;;  %v7027_v6 = vld [vmem:[%s8941_s1 + $0x128] sm:$0xff]   ;;  %v4628_v55 = vrot.slane %v7030_v24, 5  ;;  %v4698_v12 = vrot.slane %v8383_v10, 5  ;;  %v4622_v49 = vsel %vm7424_vm5, %v5856_v2, %v4621_v23  ;;  %v7033_v10 = vld [vmem:[%s8941_s1 + $0x138] sm:$0xff]   ;;  %v5852_v23 = vld [vmem:[%s7146_s16 + $0xc0] sm:$0xe] }
 0x126   : > { %6298 = vmatmul.mubr.bf16.gmra.mrb[8].mxu1 %v6965_v39  ;;  %6509 = vmatprep.mubr.bf16.mxu0 %v5828_v3  ;;  %v4617_v39 = vrot.slane %v7028_v33, 5  ;;  %v4694_v3 = vrot.slane %v8371_v21, 5  ;;  %v8695_v7 = vsel %vm7424_vm5, %v5866_v47, %v4691_v14  ;;  %v7031_v21 = vld [vmem:[%s8941_s1 + $0x130] sm:$0xff]   ;;  %v5867_v47 = vrot.slane %v5851_v11, 9 }
 0x127   : > { %6301 = vmatprep.mubr.bf16.mxu1 %v6967_v46  ;;  %6573 = vmatpush3.bf16.msra.mxu1 %v7024_v1  ;;  %v4693_v46 = vrot.slane %v4691_v14, 4  ;;  %v7029_v1 = vld [vmem:[%s7146_s16 + $0x38] sm:$0x1]  ;;  %v5857_v14 = vrot.slane %v5841_v0, 9  ;;  %v4631_v33 = vrot.slane %v7032_v18, 5  ;;  %v4705_v11 = vrot.slane %v8465_v51, 5 }
 0x128   : > { %6566 = vmatprep.subr.bf16.mxu1 %v7027_v6  ;;  %v4624_v60 = vrot.slane %v7029_v1, 5  ;;  %v4618_v36 = vsel %vm7424_vm5, %v4616_v19, %v4617_v39  ;;  %v4700_v39 = vrot.slane %v4698_v12, 4  ;;  %v5542_v19 = vld [vmem:[%s7146_s16 + $0x6c] sm:$0xf]  ;;  %v6973_v18 = vld [vmem:[%s7146_s16 + $0x90] sm:$0xff]   ;;  %v2456_v20 = vshll.u32 %v7039_v63, 16 }
 0x129   : > { %v8707_v25 = vsel %vm7424_vm5, %v4693_v46, %v4694_v3  ;;  %v5887_v3 = vcombine.low %v4615_v48, %v4618_v36  ;;  %v4629_v1 = vsel %vm7424_vm5, %v5857_v14, %v4628_v55  ;;  %v2389_v0 = vshrl.u32 %v5542_v19, 16  ;;  %v5853_v51 = vld [vmem:[%s7146_s16 + $0xcc] sm:$0xe] }
 0x12a   : > { %v5898_v16 = vcombine.low %v8695_v7, %v8707_v25  ;;  %v4625_v40 = vsel %vm7424_vm5, %v4623_v56, %v4624_v60  ;;  %v5868_v56 = vrot.slane %v5852_v23, 9  ;;  %v2392_v24 = vshll.u32 %v5542_v19, 16 }
 0x12b   : > { %6574 = vmatpush3.bf16.msra.mxu1 %v7027_v6  ;;  %v4701_v6 = vrot.slane %v8404_v27, 5  ;;  %v8727_v27 = vsel %vm7424_vm5, %v5867_v47, %v4698_v12  ;;  %v4708_v36 = vrot.slane %v8516_v26, 5  ;;  %v4707_v12 = vrot.slane %v4705_v11, 4 }
 0x12c   : > { %6567 = vmatprep.subr.bf16.mxu1 %v7031_v21  ;;  %v2394_v26 = vrot.slane %v2392_v24, 5  ;;  %v4715_v23 = vrot.slane %v8606_v13, 5 }
 0x12d   : > { %6510 = vmatmul.mubr.bf16.gmra.mrb[28].mxu0 %v5829_v28  ;;  %v4630_v28 = vrot.slane %v4628_v55, 4  ;;  %v8734_v46 = vsel %vm7424_vm5, %v4700_v39, %v4701_v6  ;;  %v8748_v55 = vsel %vm7424_vm5, %v5868_v56, %v4705_v11  ;;  %v4712_v39 = vrot.slane %v8568_v31, 5  ;;  %v7035_v56 = vld [vmem:[%s7146_s16 + $0x74] sm:$0x1] }
 0x12e   : > { %6302 = vmatmul.mubr.bf16.gmra.mrb[12].mxu1 %v6968_v30  ;;  %6529 = vmatprep.mubr.bf16.mxu0 %v5886_v34  ;;  %v6971_v30 = vld [vmem:[%s7146_s16 + $0x78] sm:$0xff]   ;;  %v5888_v34 = vcombine.low %v4622_v49, %v4625_v40  ;;  %v5899_v2 = vcombine.low %v8727_v27, %v8734_v46  ;;  %v8753_v49 = vsel %vm7424_vm5, %v4707_v12, %v4708_v36  ;;  %v2391_v40 = vrot.slane %v2389_v0, 4  ;;  %v7036_v0 = vld [vmem:[%s7146_s16 + $0x88] sm:$0xf] }
 0x12f   : > { %6305 = vmatprep.mubr.bf16.mxu1 %v6970_v52  ;;  %6575 = vmatpush3.bf16.msra.mxu1 %v7031_v21  ;;  %v6972_v52 = vld [vmem:[%s7146_s16 + $0x84] sm:$0xff]   ;;  %v4632_v60 = vsel %vm7424_vm5, %v4630_v28, %v4631_v33  ;;  %v7034_v21 = vld [vmem:[%s7146_s16 + $0x70] sm:$0xf]  ;;  %v5900_v28 = vcombine.low %v8748_v55, %v8753_v49  ;;  %v4714_v19 = vrot.slane %v4712_v39, 4  ;;  %v2446_v24 = vshll.u32 %v7036_v0, 16 }
 0x130   : > { %6568 = vmatprep.subr.bf16.mxu1 %v7033_v10  ;;  %v2398_v48 = vshll.u32 %v7034_v21, 16  ;;  %v2402_v47 = vshrl.u32 %v7034_v21, 16  ;;  %v5889_v6 = vcombine.low %v4629_v1, %v4632_v60  ;;  %v2408_v1 = vshll.u32 %v7035_v56, 16 }
 0x131   : > { %v8775_v11 = vsel %vm7424_vm5, %v4714_v19, %v4715_v23  ;;  %v2450_v21 = vshrl.u32 %v7036_v0, 16  ;;  %v7038_v19 = vld [vmem:[%s7146_s16 + $0xa0] sm:$0xf] }
 0x132   : > { %v8755_v14 = vrot.slane %v2398_v48, 5  ;;  %v2404_v33 = vrot.slane %v2402_v47, 4  ;;  %v2498_v56 = vshrl.u32 %v7038_v19, 16 }
 0x133   : > { %6576 = vmatpush3.bf16.msra.mxu1 %v7033_v10  ;;  %v5869_v10 = vrot.slane %v5853_v51, 9 }
 0x134   : > { %v2405_v31 = vor.u32 %v2404_v33, %v8755_v14  ;;  %v2464_v33 = vshll.u32 %v5551_v61, 16 }
 0x135   : > { %6530 = vmatmul.mubr.bf16.vlgmr.msra.gmra.mrb[0].mxu0 %v5887_v3  ;;  %v6974_v3 = vld [vmem:[%s7146_s16 + $0x9c] sm:$0xff]  }
 0x136   : > { %6306 = vmatmul.mubr.bf16.gmra.mrb[16].mxu1 %v6971_v30  ;;  %6533 = vmatprep.mubr.bf16.mxu0 %v5888_v34  ;;  %v5548_v30 = vld [vmem:[%s7146_s16 + $0x84] sm:$0xf]  ;;  %v8766_v34 = vsel %vm7424_vm5, %v5869_v10, %v4712_v39  ;;  %v2406_v47 = vrot.slane %v2405_v31, 4  ;;  %v7037_v10 = vld [vmem:[%s7146_s16 + $0x94] sm:$0xf]  ;;  %v2466_v0 = vrot.slane %v2464_v33, 5 }
 0x137   : > { %6309 = vmatprep.mubr.bf16.mxu1 %v6972_v52  ;;  %v2395_v52 = vor.u32 %v2394_v26, %v2391_v40  ;;  %v2437_v13 = vshrl.u32 %v5548_v30, 16  ;;  %v2440_v60 = vshll.u32 %v5548_v30, 16  ;;  %v5901_v48 = vcombine.low %v8766_v34, %v8775_v11 }
 0x138   : > { %v8784_v40 = vrot.slane %v2446_v24, 5  ;;  %v2452_v26 = vrot.slane %v2450_v21, 4  ;;  %v2470_v39 = vshll.u32 %v7037_v10, 16  ;;  %v2474_v23 = vshrl.u32 %v7037_v10, 16  ;;  %v7041_v10 = vld [vmem:[%s7146_s16 + $0xa4] sm:$0x1] }
 0x139   : > { %v2396_v36 = vrot.slane %v2395_v52, 4  ;;  %v2439_v12 = vrot.slane %v2437_v13, 4  ;;  %v2442_v51 = vrot.slane %v2440_v60, 5  ;;  %v2494_v52 = vshll.u32 %v7038_v19, 16  ;;  %v7042_v19 = vld [vmem:[%s7146_s16 + $0xac] sm:$0xf] }
 0x13a   : > { %v2453_v13 = vor.u32 %v2452_v26, %v8784_v40  ;;  %v8801_v41 = vrot.slane %v2470_v39, 5  ;;  %v2476_v42 = vrot.slane %v2474_v23, 4  ;;  %v2500_v21 = vrot.slane %v2498_v56, 4  ;;  %v5560_v23 = vld [vmem:[%s7146_s16 + $0xb4] sm:$0xf] }
 0x13b   : > { %v2504_v39 = vshll.u32 %v7041_v10, 16  ;;  %v2522_v15 = vshrl.u32 %v7042_v19, 16  ;;  %v2536_v63 = vshll.u32 %v5560_v23, 16 }
 0x13c   : > { %v2477_v26 = vor.u32 %v2476_v42, %v8801_v41 }
 0x13d   : > { %6534 = vmatmul.mubr.bf16.gmra.mrb[4].mxu0 %v5889_v6  ;;  %v5554_v6 = vld [vmem:[%s7146_s16 + $0x9c] sm:$0xf] }
 0x13e   : > { %6310 = vmatmul.mubr.bf16.gmra.mrb[20].mxu1 %v6973_v18  ;;  %6537 = vmatprep.mubr.bf16.mxu0 %v5890_v8  ;;  %v2410_v8 = vrot.slane %v2408_v1, 5  ;;  %v2461_v18 = vshrl.u32 %v5551_v61, 16  ;;  %v2488_v30 = vshll.u32 %v5554_v6, 16  ;;  %v2401_v1 = vsel %vm7178_vm2, %v2396_v36, %v8755_v14  ;;  %v6977_v61 = vld [vmem:[%s7146_s16 + $0xc0] sm:$0xff]  }
 0x13f   : > { %6313 = vmatprep.mubr.bf16.mxu1 %v6974_v3  ;;  %v2485_v3 = vshrl.u32 %v5554_v6, 16  ;;  %v8803_v14 = vrot.slane %v2494_v52, 5  ;;  %v2518_v52 = vshll.u32 %v7042_v19, 16 }
 0x140   : > { %v2411_v31 = vsel %vm7178_vm2, %v2406_v47, %v2410_v8  ;;  %v2463_v60 = vrot.slane %v2461_v18, 4  ;;  %v2490_v24 = vrot.slane %v2488_v30, 5  ;;  %v2458_v8 = vrot.slane %v2456_v20, 5  ;;  %v7043_v20 = vld [vmem:[%s7146_s16 + $0xb8] sm:$0xf] }
 0x141   : > { %v2454_v47 = vrot.slane %v2453_v13, 4  ;;  %v2501_v33 = vor.u32 %v2500_v21, %v8803_v14  ;;  %v2542_v29 = vshll.u32 %v7043_v20, 16  ;;  %v2546_v44 = vshrl.u32 %v7043_v20, 16 }
 0x143   : > { %v2502_v13 = vrot.slane %v2501_v33, 4 }
 0x145   : > { %6538 = vmatmul.mubr.bf16.gmra.mrb[8].mxu0 %v5891_v54  ;;  %v2443_v54 = vor.u32 %v2442_v51, %v2439_v12  ;;  %v2467_v12 = vor.u32 %v2466_v0, %v2463_v60  ;;  %v7040_v51 = vld [vmem:[%s7146_s16 + $0x98] sm:$0x1]  ;;  %v2506_v60 = vrot.slane %v2504_v39, 5 }
 0x146   : > { %6314 = vmatmul.mubr.bf16.gmra.mrb[24].mxu1 %v6975_v45  ;;  %6541 = vmatprep.mubr.bf16.mxu0 %v5892_v17  ;;  %v2487_v17 = vrot.slane %v2485_v3, 4  ;;  %v5590_v45 = vcombine.low %v2401_v1, %v2411_v31  ;;  %v2480_v6 = vshll.u32 %v7040_v51, 16  ;;  %v2533_v31 = vshrl.u32 %v5560_v23, 16 }
 0x147   : > { %6317 = vmatprep.mubr.bf16.mxu1 %v6976_v9  ;;  %v2444_v36 = vrot.slane %v2443_v54, 4  ;;  %v5557_v9 = vld [vmem:[%s7146_s16 + $0xa8] sm:$0xf]  ;;  %v2468_v56 = vrot.slane %v2467_v12, 4  ;;  %v2507_v32 = vsel %vm7178_vm2, %v2502_v13, %v2506_v60 }
 0x148   : > { %v2491_v18 = vor.u32 %v2490_v24, %v2487_v17  ;;  %v2509_v3 = vshrl.u32 %v5557_v9, 16  ;;  %v2512_v30 = vshll.u32 %v5557_v9, 16  ;;  %v2482_v1 = vrot.slane %v2480_v6, 5 }
 0x149   : > { %v2449_v43 = vsel %vm7178_vm2, %v2444_v36, %v8784_v40  ;;  %v2520_v17 = vrot.slane %v2518_v52, 5  ;;  %v2524_v24 = vrot.slane %v2522_v15, 4  ;;  %v2535_v21 = vrot.slane %v2533_v31, 4  ;;  %v5563_v36 = vld [vmem:[%s7146_s16 + $0xc0] sm:$0xf] }
 0x14a   : > { %v2492_v54 = vrot.slane %v2491_v18, 4  ;;  %v2511_v0 = vrot.slane %v2509_v3, 4  ;;  %v2514_v42 = vrot.slane %v2512_v30, 5  ;;  %v2557_v9 = vshrl.u32 %v5563_v36, 16  ;;  %v7045_v18 = vld [vmem:[%s7146_s16 + $0xc4] sm:$0xf] }
 0x14b   : > { %v2566_v33 = vshll.u32 %v7045_v18, 16 }
 0x14c   : > { %v2497_v51 = vsel %vm7178_vm2, %v2492_v54, %v8803_v14  ;;  %v2515_v5 = vor.u32 %v2514_v42, %v2511_v0  ;;  %v2570_v14 = vshrl.u32 %v7045_v18, 16  ;;  %v2559_v19 = vrot.slane %v2557_v9, 4 }
 0x14d   : > { %6542 = vmatmul.mubr.bf16.gmra.mrb[12].mxu0 %v5893_v38  ;;  %v2459_v38 = vsel %vm7178_vm2, %v2454_v47, %v2458_v8  ;;  %v2548_v8 = vrot.slane %v2546_v44, 4  ;;  %v2473_v47 = vsel %vm7178_vm2, %v2468_v56, %v8801_v41  ;;  %v7044_v41 = vld [vmem:[%s7146_s16 + $0xb0] sm:$0x1]  ;;  %v5594_v58 = vcombine.low %v2497_v51, %v2507_v32  ;;  %v7047_v44 = vld [vmem:[%s7146_s16 + $0xc8] sm:$0x1] }
 0x14e   : > { %6318 = vmatmul.mubr.bf16.gmra.mrb[28].mxu1 %v6977_v61  ;;  %6545 = vmatprep.mubr.bf16.mxu0 %v5894_v35  ;;  %v2478_v35 = vrot.slane %v2477_v26, 4  ;;  %v5592_v40 = vcombine.low %v2449_v43, %v2459_v38  ;;  %v2538_v61 = vrot.slane %v2536_v63, 5  ;;  %v2528_v6 = vshll.u32 %v7044_v41, 16 }
 0x14f   : > { %6353 = vmatprep.mubr.bf16.mxu1 %v5590_v45  ;;  %v2544_v45 = vrot.slane %v2542_v29, 5  ;;  %v2560_v26 = vshll.u32 %v5563_v36, 16  ;;  %v2516_v22 = vrot.slane %v2515_v5, 4  ;;  %v2568_v15 = vrot.slane %v2566_v33, 5 }
 0x150   : > { %v2483_v12 = vsel %vm7178_vm2, %v2478_v35, %v2482_v1  ;;  %v2539_v10 = vor.u32 %v2538_v61, %v2535_v21  ;;  %v2530_v30 = vrot.slane %v2528_v6, 5  ;;  %v2572_v43 = vrot.slane %v2570_v14, 4 }
 0x151   : > { %v2549_v39 = vor.u32 %v2548_v8, %v2544_v45  ;;  %v5593_v3 = vcombine.low %v2473_v47, %v2483_v12  ;;  %v2562_v52 = vrot.slane %v2560_v26, 5  ;;  %v2521_v31 = vsel %vm7178_vm2, %v2516_v22, %v2520_v17 }
 0x152   : > { %v2540_v38 = vrot.slane %v2539_v10, 4  ;;  %v2573_v29 = vor.u32 %v2572_v43, %v2568_v15  ;;  %v2576_v35 = vshll.u32 %v7047_v44, 16 }
 0x153   : > { %v2550_v56 = vrot.slane %v2549_v39, 4  ;;  %v2563_v20 = vor.u32 %v2562_v52, %v2559_v19 }
 0x154   : > { %v2545_v4 = vsel %vm7178_vm2, %v2540_v38, %v2544_v45  ;;  %v2578_v54 = vrot.slane %v2576_v35, 5 }
 0x155   : > { %6546 = vmatmul.mubr.bf16.gmra.mrb[16].mxu0 %v5895_v62  ;;  %v2525_v62 = vor.u32 %v2524_v24, %v2520_v17  ;;  %v2564_v25 = vrot.slane %v2563_v20, 4 }
 0x156   : > { %6354 = vmatmul.mubr.bf16.vlgmr.msra.gmra.mrb[16].mxu1 %v8626_v50  ;;  %6549 = vmatprep.mubr.bf16.mxu0 %v5896_v59  ;;  %v7046_v50 = vld [vmem:[%s7146_s16 + $0xbc] sm:$0x1]  ;;  %s5912_s16 = sshll.u32 %s9015_s12, 8 }
 0x157   : > { %6357 = vmatprep.mubr.bf16.mxu1 %v5592_v40  ;;  %v2552_v23 = vshll.u32 %v7046_v50, 16  ;;  %v2526_v59 = vrot.slane %v2525_v62, 4  ;;  %v2569_v13 = vsel %vm7178_vm2, %v2564_v25, %v2568_v15  ;;  %s8888_s27 = scalar_lea.vmem %s8942_s2, %s5912_s16 }
 0x159   : > { %v2554_v1 = vrot.slane %v2552_v23, 5  ;;  %v2531_v63 = vsel %vm7178_vm2, %v2526_v59, %v2530_v30 }
 0x15b   : > { %v2555_v57 = vsel %vm7178_vm2, %v2550_v56, %v2554_v1 }
 0x15c   : > { %v5596_v7 = vcombine.low %v2545_v4, %v2555_v57 }
 0x15d   : > { %6550 = vmatmul.mubr.bf16.gmra.mrb[20].mxu0 %v5897_v53  ;;  %v5595_v53 = vcombine.low %v2521_v31, %v2531_v63 }
 0x15e   : > { %6358 = vmatmul.mubr.bf16.gmra.mrb[20].mxu1 %v5593_v3  ;;  %6553 = vmatprep.mubr.bf16.mxu0 %v5898_v16  ;;  %v2574_v16 = vrot.slane %v2573_v29, 4 }
 0x15f   : > { %6361 = vmatprep.mubr.bf16.mxu1 %v5594_v58 }
 0x160   : > { %v2579_v60 = vsel %vm7178_vm2, %v2574_v16, %v2578_v54 }
 0x161   : > { %v5597_v0 = vcombine.low %v2569_v13, %v2579_v60 }
 0x165   : > { %6554 = vmatmul.mubr.bf16.gmra.mrb[24].mxu0 %v5899_v2 }
 0x166   : > { %6362 = vmatmul.mubr.bf16.gmra.mrb[24].mxu1 %v5595_v53  ;;  %6557 = vmatprep.mubr.bf16.mxu0 %v5900_v28 }
 0x167   : > { %6365 = vmatprep.mubr.bf16.mxu1 %v5596_v7 }
 0x16d   : > { %6558 = vmatmul.mubr.bf16.gmra.mrb[28].mxu0 %v5901_v48 }
 0x16e   : > { %6366 = vmatmul.mubr.bf16.gmra.mrb[28].mxu1 %v5597_v0 }
 0x1e9   : > { %v6291_v27 = vpop.f32.mrb[0].mxu1 }
 0x1ea   : > { %v1989_v46 = vpop.f32.mrb[1].mxu1 }
 0x1eb   : > { %v6292_v2 = vpop.f32.mrb[2].mxu1 }
 0x1ec   : > { %v1992_v42 = vpop.f32.mrb[3].mxu1 }
 0x1f1   : > { %v6295_v55 = vpop.f32.mrb[4].mxu1 }
 0x1f2   : > { %v2005_v49 = vpop.f32.mrb[5].mxu1 }
 0x1f3   : > { %v6296_v28 = vpop.f32.mrb[6].mxu1 }
 0x1f4   : > { %v2008_v17 = vpop.f32.mrb[7].mxu1 }
 0x1f9   : > { %v6299_v24 = vpop.f32.mrb[8].mxu1 }
 0x1fa   : > { %v2021_v40 = vpop.f32.mrb[9].mxu1 }
 0x1fb   : > { %v6300_v21 = vpop.f32.mrb[10].mxu1 }
 0x1fc   : > { %v8874_v37 = vpop.f32.mrb[11].mxu1 }
 0x201   : > { %v8876_v61 = vpop.f32.mrb[12].mxu1 }
 0x202   : > { %v8878_v45 = vpop.f32.mrb[13].mxu1 }
 0x203   : > { %v8880_v34 = vpop.f32.mrb[14].mxu1 }
 0x204   : > { %v8882_v11 = vpop.f32.mrb[15].mxu1 }
 0x208   : > { %v6531_v48 = vpop.f32.mrb[0].mxu0 }
 0x209   : > { %v6577_v8 = vadd.f32 %v6531_v48, %v6291_v27  ;;  %v4880_v36 = vpop.f32.mrb[1].mxu0 }
 0x20a   : > { %v6578_v47 = vadd.f32 %v4880_v36, %v1989_v46  ;;  %v6532_v12 = vpop.f32.mrb[2].mxu0 }
 0x20b   : > { %5150 = vst [vmem:[%s8888_s27 + $0x10] sm:$0xff] %v6577_v8  ;;  %v6579_v51 = vadd.f32 %v6532_v12, %v6292_v2  ;;  %v4883_v32 = vpop.f32.mrb[3].mxu0  ;;  %v5078_v9 = vmul.f32 %v6577_v8, %v6577_v8 }
 0x20c   : > { %5148 = vst [vmem:[%s8888_s27] sm:$0xff] %v6578_v47  ;;  %v6580_v5 = vadd.f32 %v4883_v32, %v1992_v42  ;;  %v5076_v62 = vmul.f32 %v6578_v47, %v6578_v47 }
 0x20d   : > { %5151 = vst [vmem:[%s8888_s27 + $0x18] sm:$0xff] %v6579_v51  ;;  %v5079_v39 = vmul.f32 %v6579_v51, %v6579_v51 }
 0x20e   : > { %v5039_v41 = vadd.f32 %v6580_v5, %v6578_v47  ;;  %v5077_v6 = vmul.f32 %v6580_v5, %v6580_v5  ;;  %5149 = vst [vmem:[%s8888_s27 + $0x8] sm:$0xff] %v6580_v5 }
 0x210   : > { %v5040_v26 = vadd.f32 %v6577_v8, %v5039_v41  ;;  %v5108_v18 = vadd.f32 %v5077_v6, %v5076_v62  ;;  %v6535_v33 = vpop.f32.mrb[4].mxu0 }
 0x211   : > { %v6581_v14 = vadd.f32 %v6535_v33, %v6295_v55  ;;  %v4896_v10 = vpop.f32.mrb[5].mxu0 }
 0x212   : > { %v5109_v50 = vadd.f32 %v5108_v18, %v5078_v9  ;;  %v6582_v23 = vadd.f32 %v4896_v10, %v2005_v49  ;;  %v5041_v3 = vadd.f32 %v6579_v51, %v5040_v26  ;;  %v6536_v58 = vpop.f32.mrb[6].mxu0 }
 0x213   : > { %5154 = vst [vmem:[%s8888_s27 + $0x30] sm:$0xff] %v6581_v14  ;;  %v6583_v22 = vadd.f32 %v6536_v58, %v6296_v28  ;;  %v4899_v59 = vpop.f32.mrb[7].mxu0  ;;  %v5082_v1 = vmul.f32 %v6581_v14, %v6581_v14 }
 0x214   : > { %v5042_v30 = vadd.f32 %v6582_v23, %v5041_v3  ;;  %v5080_v19 = vmul.f32 %v6582_v23, %v6582_v23  ;;  %v5110_v52 = vadd.f32 %v5109_v50, %v5079_v39  ;;  %5152 = vst [vmem:[%s8888_s27 + $0x20] sm:$0xff] %v6582_v23  ;;  %v6584_v15 = vadd.f32 %v4899_v59, %v2008_v17 }
 0x215   : > { %5155 = vst [vmem:[%s8888_s27 + $0x38] sm:$0xff] %v6583_v22  ;;  %v5083_v35 = vmul.f32 %v6583_v22, %v6583_v22 }
 0x216   : > { %v5111_v43 = vadd.f32 %v5110_v52, %v5080_v19  ;;  %v5043_v38 = vadd.f32 %v6584_v15, %v5042_v30  ;;  %v5081_v56 = vmul.f32 %v6584_v15, %v6584_v15  ;;  %5153 = vst [vmem:[%s8888_s27 + $0x28] sm:$0xff] %v6584_v15 }
 0x218   : > { %v5044_v31 = vadd.f32 %v6581_v14, %v5043_v38  ;;  %v5112_v63 = vadd.f32 %v5111_v43, %v5081_v56  ;;  %v6539_v20 = vpop.f32.mrb[8].mxu0 }
 0x219   : > { %v6585_v29 = vadd.f32 %v6539_v20, %v6299_v24  ;;  %v4912_v44 = vpop.f32.mrb[9].mxu0 }
 0x21a   : > { %v5113_v4 = vadd.f32 %v5112_v63, %v5082_v1  ;;  %v6586_v57 = vadd.f32 %v4912_v44, %v2021_v40  ;;  %v5045_v53 = vadd.f32 %v6583_v22, %v5044_v31  ;;  %v6540_v7 = vpop.f32.mrb[10].mxu0 }
 0x21b   : > { %5158 = vst [vmem:[%s8888_s27 + $0x50] sm:$0xff] %v6585_v29  ;;  %v6587_v25 = vadd.f32 %v6540_v7, %v6300_v21  ;;  %v4915_v16 = vpop.f32.mrb[11].mxu0  ;;  %v5086_v42 = vmul.f32 %v6585_v29, %v6585_v29 }
 0x21c   : > { %v5046_v54 = vadd.f32 %v6586_v57, %v5045_v53  ;;  %v5084_v13 = vmul.f32 %v6586_v57, %v6586_v57  ;;  %v5114_v60 = vadd.f32 %v5113_v4, %v5083_v35  ;;  %5156 = vst [vmem:[%s8888_s27 + $0x40] sm:$0xff] %v6586_v57  ;;  %v6588_v0 = vadd.f32 %v4915_v16, %v8874_v37 }
 0x21d   : > { %5159 = vst [vmem:[%s8888_s27 + $0x58] sm:$0xff] %v6587_v25  ;;  %v5087_v40 = vmul.f32 %v6587_v25, %v6587_v25 }
 0x21e   : > { %v5115_v27 = vadd.f32 %v5114_v60, %v5084_v13  ;;  %v5047_v46 = vadd.f32 %v6588_v0, %v5046_v54  ;;  %v5085_v2 = vmul.f32 %v6588_v0, %v6588_v0  ;;  %5157 = vst [vmem:[%s8888_s27 + $0x48] sm:$0xff] %v6588_v0 }
 0x220   : > { %v5048_v55 = vadd.f32 %v6585_v29, %v5047_v46  ;;  %v5116_v49 = vadd.f32 %v5115_v27, %v5085_v2  ;;  %v6543_v28 = vpop.f32.mrb[12].mxu0 }
 0x221   : > { %v6589_v17 = vadd.f32 %v6543_v28, %v8876_v61  ;;  %v4928_v24 = vpop.f32.mrb[13].mxu0 }
 0x222   : > { %v5117_v21 = vadd.f32 %v5116_v49, %v5086_v42  ;;  %v6590_v37 = vadd.f32 %v4928_v24, %v8878_v45  ;;  %v5049_v48 = vadd.f32 %v6587_v25, %v5048_v55  ;;  %v6544_v8 = vpop.f32.mrb[14].mxu0 }
 0x223   : > { %5162 = vst [vmem:[%s8888_s27 + $0x70] sm:$0xff] %v6589_v17  ;;  %v6591_v36 = vadd.f32 %v6544_v8, %v8880_v34  ;;  %v4931_v47 = vpop.f32.mrb[15].mxu0  ;;  %v5090_v6 = vmul.f32 %v6589_v17, %v6589_v17 }
 0x224   : > { %v5050_v12 = vadd.f32 %v6590_v37, %v5049_v48  ;;  %v5088_v51 = vmul.f32 %v6590_v37, %v6590_v37  ;;  %v5118_v32 = vadd.f32 %v5117_v21, %v5087_v40  ;;  %5160 = vst [vmem:[%s8888_s27 + $0x60] sm:$0xff] %v6590_v37  ;;  %v6592_v5 = vadd.f32 %v4931_v47, %v8882_v11 }
 0x225   : > { %5163 = vst [vmem:[%s8888_s27 + $0x78] sm:$0xff] %v6591_v36  ;;  %v5091_v34 = vmul.f32 %v6591_v36, %v6591_v36 }
 0x226   : > { %v5119_v61 = vadd.f32 %v5118_v32, %v5088_v51  ;;  %v5051_v62 = vadd.f32 %v6592_v5, %v5050_v12  ;;  %v5089_v41 = vmul.f32 %v6592_v5, %v6592_v5  ;;  %5161 = vst [vmem:[%s8888_s27 + $0x68] sm:$0xff] %v6592_v5 }
 0x228   : > { %v5052_v45 = vadd.f32 %v6589_v17, %v5051_v62  ;;  %v5120_v9 = vadd.f32 %v5119_v61, %v5089_v41  ;;  %v6547_v26 = vpop.f32.mrb[16].mxu0 }
 0x229   : > { %v6355_v18 = vpop.f32.mrb[16].mxu1  ;;  %v4944_v33 = vpop.f32.mrb[17].mxu0 }
 0x22a   : > { %v5121_v14 = vadd.f32 %v5120_v9, %v5090_v6  ;;  %v6593_v10 = vadd.f32 %v6547_v26, %v6355_v18  ;;  %v2807_v39 = vpop.f32.mrb[17].mxu1  ;;  %v5053_v50 = vadd.f32 %v6591_v36, %v5052_v45  ;;  %v6548_v11 = vpop.f32.mrb[18].mxu0 }
 0x22b   : > { %v6594_v23 = vadd.f32 %v4944_v33, %v2807_v39  ;;  %v6356_v3 = vpop.f32.mrb[18].mxu1  ;;  %v4947_v58 = vpop.f32.mrb[19].mxu0 }
 0x22c   : > { %5166 = vst [vmem:[%s8888_s27 + $0x90] sm:$0xff] %v6593_v10  ;;  %v5122_v22 = vadd.f32 %v5121_v14, %v5091_v34  ;;  %v6595_v59 = vadd.f32 %v6548_v11, %v6356_v3  ;;  %v2810_v30 = vpop.f32.mrb[19].mxu1  ;;  %v5094_v31 = vmul.f32 %v6593_v10, %v6593_v10 }
 0x22d   : > { %v5054_v19 = vadd.f32 %v6594_v23, %v5053_v50  ;;  %v5092_v52 = vmul.f32 %v6594_v23, %v6594_v23  ;;  %5164 = vst [vmem:[%s8888_s27 + $0x80] sm:$0xff] %v6594_v23  ;;  %v6596_v15 = vadd.f32 %v4947_v58, %v2810_v30 }
 0x22e   : > { %5167 = vst [vmem:[%s8888_s27 + $0x98] sm:$0xff] %v6595_v59  ;;  %v5095_v53 = vmul.f32 %v6595_v59, %v6595_v59 }
 0x22f   : > { %v5123_v43 = vadd.f32 %v5122_v22, %v5092_v52  ;;  %v5055_v38 = vadd.f32 %v6596_v15, %v5054_v19  ;;  %v5093_v56 = vmul.f32 %v6596_v15, %v6596_v15  ;;  %5165 = vst [vmem:[%s8888_s27 + $0x88] sm:$0xff] %v6596_v15 }
 0x230   : > { %v6551_v1 = vpop.f32.mrb[20].mxu0 }
 0x231   : > { %v5056_v63 = vadd.f32 %v6593_v10, %v5055_v38  ;;  %v5124_v20 = vadd.f32 %v5123_v43, %v5093_v56  ;;  %v6359_v29 = vpop.f32.mrb[20].mxu1  ;;  %v4960_v44 = vpop.f32.mrb[21].mxu0 }
 0x232   : > { %v6597_v35 = vadd.f32 %v6551_v1, %v6359_v29  ;;  %v2823_v4 = vpop.f32.mrb[21].mxu1  ;;  %v6552_v57 = vpop.f32.mrb[22].mxu0 }
 0x233   : > { %v5125_v7 = vadd.f32 %v5124_v20, %v5094_v31  ;;  %v6598_v25 = vadd.f32 %v4960_v44, %v2823_v4  ;;  %v5057_v16 = vadd.f32 %v6595_v59, %v5056_v63  ;;  %v6360_v54 = vpop.f32.mrb[22].mxu1  ;;  %v4963_v13 = vpop.f32.mrb[23].mxu0 }
 0x234   : > { %5170 = vst [vmem:[%s8888_s27 + $0xb0] sm:$0xff] %v6597_v35  ;;  %v6599_v60 = vadd.f32 %v6552_v57, %v6360_v54  ;;  %v2826_v0 = vpop.f32.mrb[23].mxu1  ;;  %v5098_v24 = vmul.f32 %v6597_v35, %v6597_v35 }
 0x235   : > { %v5058_v27 = vadd.f32 %v6598_v25, %v5057_v16  ;;  %v5096_v46 = vmul.f32 %v6598_v25, %v6598_v25  ;;  %v5126_v2 = vadd.f32 %v5125_v7, %v5095_v53  ;;  %5168 = vst [vmem:[%s8888_s27 + $0xa0] sm:$0xff] %v6598_v25  ;;  %v6600_v42 = vadd.f32 %v4963_v13, %v2826_v0 }
 0x236   : > { %5171 = vst [vmem:[%s8888_s27 + $0xb8] sm:$0xff] %v6599_v60  ;;  %v5099_v12 = vmul.f32 %v6599_v60, %v6599_v60 }
 0x237   : > { %v5127_v55 = vadd.f32 %v5126_v2, %v5096_v46  ;;  %v5059_v49 = vadd.f32 %v6600_v42, %v5058_v27  ;;  %v5097_v28 = vmul.f32 %v6600_v42, %v6600_v42  ;;  %5169 = vst [vmem:[%s8888_s27 + $0xa8] sm:$0xff] %v6600_v42 }
 0x238   : > { %v6555_v17 = vpop.f32.mrb[24].mxu0 }
 0x239   : > { %v5060_v40 = vadd.f32 %v6597_v35, %v5059_v49  ;;  %v5128_v21 = vadd.f32 %v5127_v55, %v5097_v28  ;;  %v6363_v37 = vpop.f32.mrb[24].mxu1  ;;  %v4976_v48 = vpop.f32.mrb[25].mxu0 }
 0x23a   : > { %v6601_v8 = vadd.f32 %v6555_v17, %v6363_v37  ;;  %v2839_v36 = vpop.f32.mrb[25].mxu1  ;;  %v6556_v47 = vpop.f32.mrb[26].mxu0 }
 0x23b   : > { %v5129_v51 = vadd.f32 %v5128_v21, %v5098_v24  ;;  %v6602_v32 = vadd.f32 %v4976_v48, %v2839_v36  ;;  %v5061_v5 = vadd.f32 %v6599_v60, %v5060_v40  ;;  %v6364_v61 = vpop.f32.mrb[26].mxu1  ;;  %v4979_v62 = vpop.f32.mrb[27].mxu0 }
 0x23c   : > { %5174 = vst [vmem:[%s8888_s27 + $0xd0] sm:$0xff] %v6601_v8  ;;  %v6603_v41 = vadd.f32 %v6556_v47, %v6364_v61  ;;  %v2842_v6 = vpop.f32.mrb[27].mxu1  ;;  %v5102_v39 = vmul.f32 %v6601_v8, %v6601_v8 }
 0x23d   : > { %v5062_v45 = vadd.f32 %v6602_v32, %v5061_v5  ;;  %v5100_v9 = vmul.f32 %v6602_v32, %v6602_v32  ;;  %v5130_v26 = vadd.f32 %v5129_v51, %v5099_v12  ;;  %5172 = vst [vmem:[%s8888_s27 + $0xc0] sm:$0xff] %v6602_v32  ;;  %v6604_v18 = vadd.f32 %v4979_v62, %v2842_v6 }
 0x23e   : > { %5175 = vst [vmem:[%s8888_s27 + $0xd8] sm:$0xff] %v6603_v41  ;;  %v5103_v30 = vmul.f32 %v6603_v41, %v6603_v41 }
 0x23f   : > { %v5131_v33 = vadd.f32 %v5130_v26, %v5100_v9  ;;  %v5063_v34 = vadd.f32 %v6604_v18, %v5062_v45  ;;  %v5101_v14 = vmul.f32 %v6604_v18, %v6604_v18  ;;  %5173 = vst [vmem:[%s8888_s27 + $0xc8] sm:$0xff] %v6604_v18 }
 0x240   : > { %v6559_v10 = vpop.f32.mrb[28].mxu0 }
 0x241   : > { %v5064_v50 = vadd.f32 %v6601_v8, %v5063_v34  ;;  %v5132_v11 = vadd.f32 %v5131_v33, %v5101_v14  ;;  %v6367_v23 = vpop.f32.mrb[28].mxu1  ;;  %v4992_v3 = vpop.f32.mrb[29].mxu0 }
 0x242   : > { %v6605_v58 = vadd.f32 %v6559_v10, %v6367_v23  ;;  %v2855_v22 = vpop.f32.mrb[29].mxu1  ;;  %v6560_v59 = vpop.f32.mrb[30].mxu0 }
 0x243   : > { %v5133_v19 = vadd.f32 %v5132_v11, %v5102_v39  ;;  %v6606_v52 = vadd.f32 %v4992_v3, %v2855_v22  ;;  %v5065_v15 = vadd.f32 %v6603_v41, %v5064_v50  ;;  %v6368_v43 = vpop.f32.mrb[30].mxu1  ;;  %v4995_v38 = vpop.f32.mrb[31].mxu0 }
 0x244   : > { %5178 = vst [vmem:[%s8888_s27 + $0xf0] sm:$0xff] %v6605_v58  ;;  %v6607_v56 = vadd.f32 %v6560_v59, %v6368_v43  ;;  %v2858_v1 = vpop.f32.mrb[31].mxu1  ;;  %v5106_v57 = vmul.f32 %v6605_v58, %v6605_v58 }
 0x245   : > { %v5066_v31 = vadd.f32 %v6606_v52, %v5065_v15  ;;  %v5104_v63 = vmul.f32 %v6606_v52, %v6606_v52  ;;  %v5134_v20 = vadd.f32 %v5133_v19, %v5103_v30  ;;  %5176 = vst [vmem:[%s8888_s27 + $0xe0] sm:$0xff] %v6606_v52  ;;  %v6608_v29 = vadd.f32 %v4995_v38, %v2858_v1 }
 0x246   : > { %5179 = vst [vmem:[%s8888_s27 + $0xf8] sm:$0xff] %v6607_v56  ;;  %v5107_v25 = vmul.f32 %v6607_v56, %v6607_v56 }
 0x247   : > { %v5135_v44 = vadd.f32 %v5134_v20, %v5104_v63  ;;  %v5067_v35 = vadd.f32 %v6608_v29, %v5066_v31  ;;  %v5105_v4 = vmul.f32 %v6608_v29, %v6608_v29  ;;  %5177 = vst [vmem:[%s8888_s27 + $0xe8] sm:$0xff] %v6608_v29 }
 0x249   : > { %v5068_v53 = vadd.f32 %v6605_v58, %v5067_v35  ;;  %v5136_v7 = vadd.f32 %v5135_v44, %v5105_v4 }
 0x24b   : > { %v5069_v16 = vadd.f32 %v6607_v56, %v5068_v53  ;;  %v5137_v54 = vadd.f32 %v5136_v7, %v5106_v57 }
 0x24d   : > { %v5070_v13 = vrot.slane %v5069_v16, 4  ;;  %v5138_v60 = vadd.f32 %v5137_v54, %v5107_v25 }
 0x24f   : > { %v5071_v0 = vadd.f32 %v5070_v13, %v5069_v16  ;;  %v5139_v27 = vrot.slane %v5138_v60, 4 }
 0x251   : > { %v5072_v46 = vrot.slane %v5071_v0, 2  ;;  %v5140_v2 = vadd.f32 %v5139_v27, %v5138_v60 }
 0x253   : > { %v5073_v42 = vadd.f32 %v5072_v46, %v5071_v0  ;;  %v5141_v55 = vrot.slane %v5140_v2, 2 }
 0x255   : > { %v5074_v49 = vrot.slane %v5073_v42, 1  ;;  %v5142_v28 = vadd.f32 %v5141_v55, %v5140_v2 }
 0x257   : > { %v5143_v17 = vrot.slane %v5142_v28, 1  ;;  %v5075_v24 = vadd.f32 %v5074_v49, %v5073_v42 }
 0x259   : > { %v5144_v40 = vadd.f32 %v5143_v17, %v5142_v28 }
 0x25b   : > { %v5146_v21 = vsel %vm5145_vm6, %v5075_v24, %v5144_v40 }
 0x25c   : > { %5147 = vst [vmem:[%s228_s4] sm:$0x3] %v5146_v21 }
 0x25d PF: > { %s14_s14 = sadd.s32 1, %s7070_s14   ;;  %s9010_s12 = smov %s7066_s13 }
 0x25e   : > { %p11_p5 = scmp.ge.s32.totalorder %s14_s14, 4   ;;  %s9011_s13 = smov %s9013_s15 }
 0x260   :  { %13 = sbr.rel (!%p11_p5) target bundleno = 2 (0x2), region = 80 }

</bundles_post_ra>
